<compile_context>
chip_gen: v5e
topology: v5e:2x2
jax: 0.10.0
libtpu: 0.0.40
codegen_flags: <defaults>
</compile_context>

<pallas_src>
import functools

import jax
import jax.numpy as jnp
from jax import lax
from jax.experimental import pallas as pl
from jax.experimental.pallas import tpu as pltpu


def _round_up(x, m):
    return (x + m - 1) // m * m


VMEM_LIMIT = 48 * 1024 * 1024   # <= v7x's 64 MiB physical VMEM; ample for these tile sizes


# ----------------------------- Fused matmul + BN(+ReLU) kernel -----------------------------

def _matmul_bn_kernel(a_ref, b_ref, s_ref, c_ref, o_ref, acc_ref, *, relu):
    k = pl.program_id(2)

    @pl.when(k == 0)
    def _():
        acc_ref[...] = jnp.zeros_like(acc_ref)

    acc_ref[...] += jnp.dot(a_ref[...], b_ref[...],
                            preferred_element_type=jnp.float32)

    @pl.when(k == pl.num_programs(2) - 1)
    def _():
        y = acc_ref[...] * s_ref[...] + c_ref[...]      # folded inference BatchNorm (f32)
        if relu:
            y = jnp.maximum(y, 0.0)
        o_ref[...] = y.astype(o_ref.dtype)              # bf16 store -> halves HBM writes


def matmul_bn_act(a, b, scale, bias, relu=True, out_dtype=jnp.bfloat16):
    """(M,K)@(K,N) on the MXU (bf16 operands / f32 VMEM accumulator), fused scale*x+bias
    (+ReLU) epilogue, bf16 output.

    Tiles adapt to the problem (tm<=512, tn in {128,256}, tk in {128,256,512}); padding is
    applied only when shapes are not already tile-aligned. Grid = (M/tm, N/tn, K/tk) with the
    K axis 'arbitrary' and M/N 'parallel' (v7x dual-TC sharding)."""
    M, K = a.shape
    K2, N = b.shape
    assert K == K2 and scale.shape == (N,) and bias.shape == (N,)

    tm = min(512, _round_up(M, 8))
    Mp = _round_up(M, tm)

    Np128 = _round_up(N, 128)
    # Prefer 256-wide N tiles (v6e/v7x 256-wide MXU) but keep >=2 parallel grid steps so both
    # v7x TensorCores get work on the deepest layers (where M collapses to a single tile).
    if Np128 % 256 == 0 and (Mp // tm >= 2 or Np128 // 256 >= 2):
        tn = 256
    else:
        tn = 128
    Np = _round_up(N, tn)

    Kp = _round_up(K, 128)
    if Kp % 512 == 0:
        tk = 512
    elif Kp % 256 == 0:
        tk = 256
    else:
        tk = 128

    a_bf = a.astype(jnp.bfloat16)
    b_bf = b.astype(jnp.bfloat16)
    a_p = a_bf if (Mp == M and Kp == K) else jnp.pad(a_bf, ((0, Mp - M), (0, Kp - K)))
    b_p = b_bf if (Kp == K and Np == N) else jnp.pad(b_bf, ((0, Kp - K), (0, Np - N)))
    s_f = scale.astype(jnp.float32)
    c_f = bias.astype(jnp.float32)
    s_p = (s_f if Np == N else jnp.pad(s_f, (0, Np - N))).reshape(1, Np)
    c_p = (c_f if Np == N else jnp.pad(c_f, (0, Np - N))).reshape(1, Np)

    kern = functools.partial(_matmul_bn_kernel, relu=relu)
    out = pl.pallas_call(
        kern,
        out_shape=jax.ShapeDtypeStruct((Mp, Np), out_dtype),
        grid=(Mp // tm, Np // tn, Kp // tk),
        in_specs=[pl.BlockSpec((tm, tk), lambda i, j, k: (i, k)),
                  pl.BlockSpec((tk, tn), lambda i, j, k: (k, j)),
                  pl.BlockSpec((1, tn), lambda i, j, k: (0, j)),
                  pl.BlockSpec((1, tn), lambda i, j, k: (0, j))],
        out_specs=pl.BlockSpec((tm, tn), lambda i, j, k: (i, j)),
        scratch_shapes=[pltpu.VMEM((tm, tn), jnp.float32)],
        compiler_params=pltpu.CompilerParams(
            dimension_semantics=("parallel", "parallel", "arbitrary"),
            vmem_limit_bytes=VMEM_LIMIT),
    )(a_p, b_p, s_p, c_p)
    if Mp == M and Np == N:
        return out
    return out[:M, :N]


# ----------------------------- SE kernels -----------------------------

def _se_gate_kernel(p_ref, w1_ref, b1_ref, w2_ref, b2_ref, o_ref):
    h = jnp.dot(p_ref[...], w1_ref[...], preferred_element_type=jnp.float32) + b1_ref[...]
    h = jnp.maximum(h, 0.0)
    g = jnp.dot(h.astype(jnp.bfloat16), w2_ref[...],
                preferred_element_type=jnp.float32) + b2_ref[...]
    o_ref[...] = 1.0 / (1.0 + jnp.exp(-g))              # sigmoid, f32


def se_gate(pooled, w1, b1, w2, b2):
    """Squeeze-Excite gate: (N,C) pooled -> fc -> ReLU -> fc -> sigmoid.
    Tiny; single block, bf16 MXU operands / f32 accumulation and epilogue."""
    N, C = pooled.shape
    Cr = w1.shape[1]
    return pl.pallas_call(
        _se_gate_kernel,
        out_shape=jax.ShapeDtypeStruct((N, C), jnp.float32),
        grid=(1,),
        in_specs=[pl.BlockSpec((N, C), lambda i: (0, 0)),
                  pl.BlockSpec((C, Cr), lambda i: (0, 0)),
                  pl.BlockSpec((1, Cr), lambda i: (0, 0)),
                  pl.BlockSpec((Cr, C), lambda i: (0, 0)),
                  pl.BlockSpec((1, C), lambda i: (0, 0))],
        out_specs=pl.BlockSpec((N, C), lambda i: (0, 0)),
        compiler_params=pltpu.CompilerParams(vmem_limit_bytes=VMEM_LIMIT),
    )(pooled.astype(jnp.bfloat16), w1.astype(jnp.bfloat16),
      b1.reshape(1, Cr).astype(jnp.float32),
      w2.astype(jnp.bfloat16), b2.reshape(1, C).astype(jnp.float32))


def _se_apply_kernel(x_ref, g_ref, r_ref, o_ref):
    x = x_ref[...].astype(jnp.float32)
    r = r_ref[...].astype(jnp.float32)
    o_ref[...] = jnp.maximum(x * g_ref[...] + r, 0.0).astype(o_ref.dtype)


def _pick_row_tile(rows, cap=1024):
    """Largest multiple-of-8 divisor of `rows` that is <= cap (or `rows` itself if small)."""
    if rows <= cap:
        return rows
    best = None
    for t in range(8, cap + 1, 8):
        if rows % t == 0:
            best = t
    return best if best is not None else rows


def se_apply(x_nhwc, gate, residual_nhwc):
    """out = relu(x * gate[:,None,None,:] + residual); bf16 in / bf16 out, f32 in-register math,
    grid = (batch, row-tile), both axes 'parallel'."""
    N, H, W, C = x_nhwc.shape
    HW = H * W
    thw = _pick_row_tile(HW)
    x3 = x_nhwc.reshape(N, HW, C)
    r3 = residual_nhwc.reshape(N, HW, C)
    g3 = gate.reshape(N, 1, C).astype(jnp.float32)
    out = pl.pallas_call(
        _se_apply_kernel,
        out_shape=jax.ShapeDtypeStruct((N, HW, C), x3.dtype),
        grid=(N, HW // thw),
        in_specs=[pl.BlockSpec((1, thw, C), lambda n, r: (n, r, 0)),
                  pl.BlockSpec((1, 1, C), lambda n, r: (n, 0, 0)),
                  pl.BlockSpec((1, thw, C), lambda n, r: (n, r, 0))],
        out_specs=pl.BlockSpec((1, thw, C), lambda n, r: (n, r, 0)),
        compiler_params=pltpu.CompilerParams(
            dimension_semantics=("parallel", "parallel"),
            vmem_limit_bytes=VMEM_LIMIT),
    )(x3, g3, r3)
    return out.reshape(N, H, W, C)


# ----------------------------- Fused global-pool + fc + L2-normalize head -----------------------------

def _head_kernel(x_ref, w_ref, b_ref, o_ref, *, normalize):
    pooled = jnp.mean(x_ref[...].astype(jnp.float32), axis=1)   # fused global average pool
    y = jnp.dot(pooled.astype(jnp.bfloat16), w_ref[...],
                preferred_element_type=jnp.float32) + b_ref[...]
    if normalize:
        # matches torch.nn.functional.normalize(p=2, dim=1, eps=1e-12)
        nrm = jnp.sqrt(jnp.sum(y * y, axis=1, keepdims=True))
        y = y / jnp.maximum(nrm, 1e-12)
    o_ref[...] = y


def head_pool_fc(x_nhwc, w, b, normalize):
    """Fused global AvgPool + Linear(+bias) + optional L2-normalize in one kernel."""
    N, H, W, C = x_nhwc.shape
    Fd = w.shape[1]
    x3 = x_nhwc.reshape(N, H * W, C)
    kern = functools.partial(_head_kernel, normalize=normalize)
    return pl.pallas_call(
        kern,
        out_shape=jax.ShapeDtypeStruct((N, Fd), jnp.float32),
        grid=(1,),
        in_specs=[pl.BlockSpec((N, H * W, C), lambda i: (0, 0, 0)),
                  pl.BlockSpec((C, Fd), lambda i: (0, 0)),
                  pl.BlockSpec((1, Fd), lambda i: (0, 0))],
        out_specs=pl.BlockSpec((N, Fd), lambda i: (0, 0)),
        compiler_params=pltpu.CompilerParams(vmem_limit_bytes=VMEM_LIMIT),
    )(x3, w.astype(jnp.bfloat16), b.reshape(1, Fd).astype(jnp.float32))


# ----------------------------- Conv (im2col + fused matmul) -----------------------------

def _im2col(x_nhwc, kh, kw, stride, pad):
    """bf16 im2col patches, (N*Ho*Wo, kh*kw*C), tap-major / channel-minor."""
    N, H, W, C = x_nhwc.shape
    xp = jnp.pad(x_nhwc.astype(jnp.bfloat16), ((0, 0), (pad, pad), (pad, pad), (0, 0)))
    Ho = (H + 2 * pad - kh) // stride + 1
    Wo = (W + 2 * pad - kw) // stride + 1
    cols = []
    for i in range(kh):
        for j in range(kw):
            cols.append(xp[:, i:i + stride * Ho:stride, j:j + stride * Wo:stride, :])
    patches = jnp.concatenate(cols, axis=-1).reshape(N * Ho * Wo, kh * kw * C)
    return patches, Ho, Wo


def conv_bn_act(x_nhwc, w_hwio, scale, bias, stride, pad, relu):
    """Bias-free conv (HWIO weights) with fused folded-BN (+ReLU) epilogue, bf16 output."""
    N, H, W, Cin = x_nhwc.shape
    kh, kw, wcin, Cout = w_hwio.shape
    assert wcin == Cin
    if kh == 1 and kw == 1 and pad == 0:
        xs = x_nhwc[:, ::stride, ::stride, :] if stride > 1 else x_nhwc
        Ho, Wo = xs.shape[1], xs.shape[2]
        patches = xs.reshape(N * Ho * Wo, Cin)
    else:
        patches, Ho, Wo = _im2col(x_nhwc, kh, kw, stride, pad)
    w2d = w_hwio.reshape(kh * kw * Cin, Cout)
    out = matmul_bn_act(patches, w2d, scale, bias, relu=relu)
    return out.reshape(N, Ho, Wo, Cout)


# ----------------------------- Model config & parameters -----------------------------

CFG = dict(
    in_ch=3,
    stem=16,                          # real: 64
    cardinality=4,                    # real: 32
    stage_width=(16, 32, 64, 128),    # real: (128, 256, 512, 1024)
    stage_out=(32, 64, 128, 256),     # real: (256, 512, 1024, 2048)
    stage_stride=(1, 2, 2, 2),
    blocks=(1, 1, 1, 1),              # real: (3, 4, 23, 3)
    se_reduction=4,                   # real: 16
    f_dim=32,
)


def _fold_bn_params(key, C, eps=1e-5):
    k1, k2, k3, k4 = jax.random.split(key, 4)
    gamma = 1.0 + 0.1 * jax.random.normal(k1, (C,))
    beta = 0.1 * jax.random.normal(k2, (C,))
    mean = 0.1 * jax.random.normal(k3, (C,))
    var = 1.0 + 0.1 * jnp.abs(jax.random.normal(k4, (C,)))
    scale = gamma / jnp.sqrt(var + eps)
    bias = beta - mean * scale
    return scale.astype(jnp.float32), bias.astype(jnp.float32)


def _conv_w(key, kh, kw, cin, cout):
    fan_in = kh * kw * cin
    return (jax.random.normal(key, (kh, kw, cin, cout))
            * jnp.sqrt(2.0 / fan_in)).astype(jnp.float32)


def _fc_w(key, cin, cout):
    k1, k2 = jax.random.split(key)
    w = jax.random.normal(k1, (cin, cout)) / jnp.sqrt(cin)
    b = 0.1 * jax.random.normal(k2, (cout,))
    return w.astype(jnp.float32), b.astype(jnp.float32)


def init_params(key, cfg):
    keys = iter(jax.random.split(key, 1024))
    p = {}
    p['conv0_w'] = _conv_w(next(keys), 7, 7, cfg['in_ch'], cfg['stem'])
    p['bn0'] = _fold_bn_params(next(keys), cfg['stem'])
    stages = []
    cin = cfg['stem']
    for si in range(4):
        width = cfg['stage_width'][si]
        cout = cfg['stage_out'][si]
        blocks = []
        for bi in range(cfg['blocks'][si]):
            bstride = cfg['stage_stride'][si] if bi == 0 else 1
            cg = width // cfg['cardinality']
            cr = max(cout // cfg['se_reduction'], 1)
            bp = {'stride': bstride}
            bp['w1'] = _conv_w(next(keys), 1, 1, cin, width)        # 1x1 reduce
            bp['bn1'] = _fold_bn_params(next(keys), width)
            # grouped 3x3 (HWIO, per-group Cin), folded once at init time into a block-diagonal
            # dense weight so the conv runs as ONE lane-dense matmul (PyTorch groups= semantics:
            # output channels ordered by group, each group only sees its own input slice).
            w2_groups = _conv_w(next(keys), 3, 3, cg, width)
            w2_dense = jnp.zeros((3, 3, width, width), jnp.float32)
            for g in range(cfg['cardinality']):
                w2_dense = w2_dense.at[:, :, g * cg:(g + 1) * cg, g * cg:(g + 1) * cg].set(
                    w2_groups[:, :, :, g * cg:(g + 1) * cg])
            bp['w2_dense'] = w2_dense
            bp['bn2'] = _fold_bn_params(next(keys), width)
            bp['w3'] = _conv_w(next(keys), 1, 1, width, cout)       # 1x1 expand
            bp['bn3'] = _fold_bn_params(next(keys), cout)
            bp['se_w1'], bp['se_b1'] = _fc_w(next(keys), cout, cr)
            bp['se_w2'], bp['se_b2'] = _fc_w(next(keys), cr, cout)
            if bstride != 1 or cin != cout:
                bp['wd'] = _conv_w(next(keys), 1, 1, cin, cout)     # downsample 1x1
                bp['bnd'] = _fold_bn_params(next(keys), cout)
            blocks.append(bp)
            cin = cout
        stages.append(blocks)
    p['stages'] = stages
    p['fc_w'], p['fc_b'] = _fc_w(next(keys), cin, cfg['f_dim'])
    return p


# ----------------------------- Forward -----------------------------

def _block_forward(x, bp):
    stride = bp['stride']
    s1, c1 = bp['bn1']
    s2, c2 = bp['bn2']
    s3, c3 = bp['bn3']

    # 1x1 reduce + BN + ReLU (fused matmul epilogue)
    h = conv_bn_act(x, bp['w1'], s1, c1, stride=1, pad=0, relu=True)

    # grouped 3x3 + BN + ReLU: ONE fused kernel over the block-diagonal weight
    # (was: `cardinality` tiny pallas_calls with N=cg padded to 128 lanes each).
    h = conv_bn_act(h, bp['w2_dense'], s2, c2, stride=stride, pad=1, relu=True)

    # 1x1 expand + BN (no ReLU here; ReLU happens after SE + residual)
    h = conv_bn_act(h, bp['w3'], s3, c3, stride=1, pad=0, relu=False)

    # Squeeze-Excite: global avg pool (bf16 read, f32 accumulate; glue) -> fused gate kernel
    # TODO(synk): could be folded into the expand-matmul epilogue at the cost of making its M
    #             axis 'arbitrary' (per-image row masking needed); kept as a cheap bf16 pass.
    pooled = jnp.mean(h.astype(jnp.float32), axis=(1, 2))
    gate = se_gate(pooled, bp['se_w1'], bp['se_b1'], bp['se_w2'], bp['se_b2'])

    # residual branch (1x1 stride conv + BN when shape changes)
    if 'wd' in bp:
        sd, cd = bp['bnd']
        res = conv_bn_act(x, bp['wd'], sd, cd, stride=stride, pad=0, relu=False)
    else:
        res = x

    # relu(h * gate + residual), fused, bf16 in/out
    return se_apply(h, gate, res)


def resnext_forward(params, cfg, x_nchw, norm=True, mode_flag='pho'):
    """Equivalent of Resnext100.forward(x) with an in-graph se_resnext-style backbone."""
    del mode_flag  # unused by the reference forward
    del cfg
    x = jnp.transpose(x_nchw, (0, 2, 3, 1)).astype(jnp.bfloat16)   # NCHW -> NHWC, bf16

    # layer0: conv7x7 s2 + BN + ReLU (fused) -> maxpool 3x3 s2 pad1 (glue, exact in bf16)
    s0, c0 = params['bn0']
    x = conv_bn_act(x, params['conv0_w'], s0, c0, stride=2, pad=3, relu=True)
    x = lax.reduce_window(x, jnp.asarray(-jnp.inf, dtype=x.dtype), lax.max,
                          (1, 3, 3, 1), (1, 2, 2, 1),
                          [(0, 0), (1, 1), (1, 1), (0, 0)])

    # 4 stages of SE-ResNeXt bottleneck blocks
    for stage in params['stages']:
        for bp in stage:
            x = _block_forward(x, bp)

    # AvgPool2d(7, stride=1).squeeze() == global mean at the scaled resolution, fused together
    # with Linear(+bias) + optional F.normalize(p=2, dim=1) in one head kernel.
    feat = head_pool_fc(x, params['fc_w'], params['fc_b'], normalize=norm)
    return feat


# ----------------------------- Demo -----------------------------

if __name__ == "__main__":
    key = jax.random.PRNGKey(0)
    pkey, xkey = jax.random.split(key)
    params = init_params(pkey, CFG)
    x = jax.random.normal(xkey, (2, 3, 64, 64), dtype=jnp.float32)  # NCHW like PyTorch

    fwd = jax.jit(functools.partial(resnext_forward, params, CFG, norm=True))
    feat = jax.block_until_ready(fwd(x))

    assert feat.shape == (2, CFG['f_dim']), feat.shape
    assert bool(jnp.all(jnp.isfinite(feat)))
    norms = jnp.linalg.norm(feat, axis=1)
    assert bool(jnp.allclose(norms, 1.0, atol=1e-4)), norms  # L2-normalized features
    print("KERNEL_OK")
</pallas_src>

<mosaic_0001>
module attributes {stable_mosaic.version = 11 : i64} {
  func.func @_matmul_bn_kernel(%arg0: i32, %arg1: i32, %arg2: i32, %arg3: memref<512x256xbf16, #tpu.memory_space<vmem>>, %arg4: memref<256x128xbf16, #tpu.memory_space<vmem>>, %arg5: memref<1x128xf32, #tpu.memory_space<vmem>>, %arg6: memref<1x128xf32, #tpu.memory_space<vmem>>, %arg7: memref<512x128xbf16, #tpu.memory_space<vmem>>, %arg8: memref<512x128xf32, #tpu.memory_space<vmem>>) attributes {dimension_semantics = [#tpu.dimension_semantics<parallel>, #tpu.dimension_semantics<parallel>, #tpu.dimension_semantics<arbitrary>], iteration_bounds = array<i64: 4, 1, 1>, scalar_prefetch = 0 : i64, scratch_operands = 1 : i64, tpu.core_type = #tpu.core_type<tc>, window_params = [{transform_indices = @transform_0, window_bounds = array<i64: 512, 256>}, {transform_indices = @transform_1, window_bounds = array<i64: 256, 128>}, {transform_indices = @transform_2, window_bounds = array<i64: 1, 128>}, {transform_indices = @transform_3, window_bounds = array<i64: 1, 128>}, {transform_indices = @transform_4, window_bounds = array<i64: 512, 128>}]} {
    %c0_i32 = arith.constant 0 : i32
    %0 = arith.cmpi eq, %arg2, %c0_i32 : i32
    %1 = arith.extui %0 : i1 to i32
    %c0_i32_0 = arith.constant 0 : i32
    %2 = arith.cmpi ne, %1, %c0_i32_0 : i32
    scf.if %2 {
      %cst_10 = arith.constant 0.000000e+00 : f32
      %12 = vector.broadcast %cst_10 : f32 to vector<512x128xf32>
      %c0_11 = arith.constant 0 : index
      %c0_12 = arith.constant 0 : index
      %13 = vector.load %arg8[%c0_11, %c0_12] : memref<512x128xf32, #tpu.memory_space<vmem>>, vector<512x128xf32>
      tpu.vector_store %arg8[%c0_11, %c0_12], %12 {strides = array<i32>} : memref<512x128xf32, #tpu.memory_space<vmem>>, vector<512x128xf32>,
    } else {
    }
    %c0 = arith.constant 0 : index
    %c0_1 = arith.constant 0 : index
    %3 = vector.load %arg8[%c0, %c0_1] : memref<512x128xf32, #tpu.memory_space<vmem>>, vector<512x128xf32>
    %c0_2 = arith.constant 0 : index
    %c0_3 = arith.constant 0 : index
    %4 = vector.load %arg3[%c0_2, %c0_3] : memref<512x256xbf16, #tpu.memory_space<vmem>>, vector<512x256xbf16>
    %c0_4 = arith.constant 0 : index
    %c0_5 = arith.constant 0 : index
    %5 = vector.load %arg4[%c0_4, %c0_5] : memref<256x128xbf16, #tpu.memory_space<vmem>>, vector<256x128xbf16>
    %cst = arith.constant dense<0.000000e+00> : vector<512x128xf32>
    %6 = tpu.matmul %4, %5, %cst {dimension_numbers = #tpu.dot_dimension_numbers<[1], [0], [0], [1], [0, 0, 1, 1], [], []>} : vector<512x256xbf16>, vector<256x128xbf16>, vector<512x128xf32> -> vector<512x128xf32>
    %7 = arith.addf %3, %6 : vector<512x128xf32>
    %c0_6 = arith.constant 0 : index
    %c0_7 = arith.constant 0 : index
    %8 = vector.load %arg8[%c0_6, %c0_7] : memref<512x128xf32, #tpu.memory_space<vmem>>, vector<512x128xf32>
    tpu.vector_store %arg8[%c0_6, %c0_7], %7 {strides = array<i32>} : memref<512x128xf32, #tpu.memory_space<vmem>>, vector<512x128xf32>,
    %c0_i32_8 = arith.constant 0 : i32
    %9 = arith.cmpi eq, %arg2, %c0_i32_8 : i32
    %10 = arith.extui %9 : i1 to i32
    %c0_i32_9 = arith.constant 0 : i32
    %11 = arith.cmpi ne, %10, %c0_i32_9 : i32
    scf.if %11 {
      %c0_10 = arith.constant 0 : index
      %c0_11 = arith.constant 0 : index
      %12 = vector.load %arg8[%c0_10, %c0_11] : memref<512x128xf32, #tpu.memory_space<vmem>>, vector<512x128xf32>
      %c0_12 = arith.constant 0 : index
      %c0_13 = arith.constant 0 : index
      %13 = vector.load %arg5[%c0_12, %c0_13] : memref<1x128xf32, #tpu.memory_space<vmem>>, vector<1x128xf32>
      %14 = vector.broadcast %13 : vector<1x128xf32> to vector<512x128xf32>
      %15 = arith.mulf %12, %14 : vector<512x128xf32>
      %c0_14 = arith.constant 0 : index
      %c0_15 = arith.constant 0 : index
      %16 = vector.load %arg6[%c0_14, %c0_15] : memref<1x128xf32, #tpu.memory_space<vmem>>, vector<1x128xf32>
      %17 = vector.broadcast %16 : vector<1x128xf32> to vector<512x128xf32>
      %18 = arith.addf %15, %17 : vector<512x128xf32>
      %cst_16 = arith.constant 0.000000e+00 : f32
      %19 = vector.broadcast %cst_16 : f32 to vector<512x128xf32>
      %20 = arith.maximumf %18, %19 : vector<512x128xf32>
      %21 = arith.truncf %20 : vector<512x128xf32> to vector<512x128xbf16>
      %c0_17 = arith.constant 0 : index
      %c0_18 = arith.constant 0 : index
      %22 = vector.load %arg7[%c0_17, %c0_18] : memref<512x128xbf16, #tpu.memory_space<vmem>>, vector<512x128xbf16>
      tpu.vector_store %arg7[%c0_17, %c0_18], %21 {strides = array<i32>} : memref<512x128xbf16, #tpu.memory_space<vmem>>, vector<512x128xbf16>,
    } else {
    }
    return
  }
  func.func @transform_0(%arg0: i32, %arg1: i32, %arg2: i32) -> (i32, i32) {
    %c0_i32 = arith.constant 0 : i32
    return %arg0, %arg2 : i32, i32
  }
  func.func @transform_1(%arg0: i32, %arg1: i32, %arg2: i32) -> (i32, i32) {
    %c0_i32 = arith.constant 0 : i32
    return %arg2, %arg1 : i32, i32
  }
  func.func @transform_2(%arg0: i32, %arg1: i32, %arg2: i32) -> (i32, i32) {
    %c0_i32 = arith.constant 0 : i32
    %c0_i32_0 = arith.constant 0 : i32
    return %c0_i32, %arg1 : i32, i32
  }
  func.func @transform_3(%arg0: i32, %arg1: i32, %arg2: i32) -> (i32, i32) {
    %c0_i32 = arith.constant 0 : i32
    %c0_i32_0 = arith.constant 0 : i32
    return %c0_i32, %arg1 : i32, i32
  }
  func.func @transform_4(%arg0: i32, %arg1: i32, %arg2: i32) -> (i32, i32) {
    %c0_i32 = arith.constant 0 : i32
    return %arg0, %arg1 : i32, i32
  }
}

module attributes {stable_mosaic.version = 11 : i64} {
  func.func @_matmul_bn_kernel(%arg0: i32, %arg1: i32, %arg2: i32, %arg3: memref<512x128xbf16, #tpu.memory_space<vmem>>, %arg4: memref<128x128xbf16, #tpu.memory_space<vmem>>, %arg5: memref<1x128xf32, #tpu.memory_space<vmem>>, %arg6: memref<1x128xf32, #tpu.memory_space<vmem>>, %arg7: memref<512x128xbf16, #tpu.memory_space<vmem>>, %arg8: memref<512x128xf32, #tpu.memory_space<vmem>>) attributes {dimension_semantics = [#tpu.dimension_semantics<parallel>, #tpu.dimension_semantics<parallel>, #tpu.dimension_semantics<arbitrary>], iteration_bounds = array<i64: 1, 1, 1>, scalar_prefetch = 0 : i64, scratch_operands = 1 : i64, tpu.core_type = #tpu.core_type<tc>, window_params = [{transform_indices = @transform_0, window_bounds = array<i64: 512, 128>}, {transform_indices = @transform_1, window_bounds = array<i64: 128, 128>}, {transform_indices = @transform_2, window_bounds = array<i64: 1, 128>}, {transform_indices = @transform_3, window_bounds = array<i64: 1, 128>}, {transform_indices = @transform_4, window_bounds = array<i64: 512, 128>}]} {
    %c0_i32 = arith.constant 0 : i32
    %0 = arith.cmpi eq, %arg2, %c0_i32 : i32
    %1 = arith.extui %0 : i1 to i32
    %c0_i32_0 = arith.constant 0 : i32
    %2 = arith.cmpi ne, %1, %c0_i32_0 : i32
    scf.if %2 {
      %cst_10 = arith.constant 0.000000e+00 : f32
      %12 = vector.broadcast %cst_10 : f32 to vector<512x128xf32>
      %c0_11 = arith.constant 0 : index
      %c0_12 = arith.constant 0 : index
      %13 = vector.load %arg8[%c0_11, %c0_12] : memref<512x128xf32, #tpu.memory_space<vmem>>, vector<512x128xf32>
      tpu.vector_store %arg8[%c0_11, %c0_12], %12 {strides = array<i32>} : memref<512x128xf32, #tpu.memory_space<vmem>>, vector<512x128xf32>,
    } else {
    }
    %c0 = arith.constant 0 : index
    %c0_1 = arith.constant 0 : index
    %3 = vector.load %arg8[%c0, %c0_1] : memref<512x128xf32, #tpu.memory_space<vmem>>, vector<512x128xf32>
    %c0_2 = arith.constant 0 : index
    %c0_3 = arith.constant 0 : index
    %4 = vector.load %arg3[%c0_2, %c0_3] : memref<512x128xbf16, #tpu.memory_space<vmem>>, vector<512x128xbf16>
    %c0_4 = arith.constant 0 : index
    %c0_5 = arith.constant 0 : index
    %5 = vector.load %arg4[%c0_4, %c0_5] : memref<128x128xbf16, #tpu.memory_space<vmem>>, vector<128x128xbf16>
    %cst = arith.constant dense<0.000000e+00> : vector<512x128xf32>
    %6 = tpu.matmul %4, %5, %cst {dimension_numbers = #tpu.dot_dimension_numbers<[1], [0], [0], [1], [0, 0, 1, 1], [], []>} : vector<512x128xbf16>, vector<128x128xbf16>, vector<512x128xf32> -> vector<512x128xf32>
    %7 = arith.addf %3, %6 : vector<512x128xf32>
    %c0_6 = arith.constant 0 : index
    %c0_7 = arith.constant 0 : index
    %8 = vector.load %arg8[%c0_6, %c0_7] : memref<512x128xf32, #tpu.memory_space<vmem>>, vector<512x128xf32>
    tpu.vector_store %arg8[%c0_6, %c0_7], %7 {strides = array<i32>} : memref<512x128xf32, #tpu.memory_space<vmem>>, vector<512x128xf32>,
    %c0_i32_8 = arith.constant 0 : i32
    %9 = arith.cmpi eq, %arg2, %c0_i32_8 : i32
    %10 = arith.extui %9 : i1 to i32
    %c0_i32_9 = arith.constant 0 : i32
    %11 = arith.cmpi ne, %10, %c0_i32_9 : i32
    scf.if %11 {
      %c0_10 = arith.constant 0 : index
      %c0_11 = arith.constant 0 : index
      %12 = vector.load %arg8[%c0_10, %c0_11] : memref<512x128xf32, #tpu.memory_space<vmem>>, vector<512x128xf32>
      %c0_12 = arith.constant 0 : index
      %c0_13 = arith.constant 0 : index
      %13 = vector.load %arg5[%c0_12, %c0_13] : memref<1x128xf32, #tpu.memory_space<vmem>>, vector<1x128xf32>
      %14 = vector.broadcast %13 : vector<1x128xf32> to vector<512x128xf32>
      %15 = arith.mulf %12, %14 : vector<512x128xf32>
      %c0_14 = arith.constant 0 : index
      %c0_15 = arith.constant 0 : index
      %16 = vector.load %arg6[%c0_14, %c0_15] : memref<1x128xf32, #tpu.memory_space<vmem>>, vector<1x128xf32>
      %17 = vector.broadcast %16 : vector<1x128xf32> to vector<512x128xf32>
      %18 = arith.addf %15, %17 : vector<512x128xf32>
      %19 = arith.truncf %18 : vector<512x128xf32> to vector<512x128xbf16>
      %c0_16 = arith.constant 0 : index
      %c0_17 = arith.constant 0 : index
      %20 = vector.load %arg7[%c0_16, %c0_17] : memref<512x128xbf16, #tpu.memory_space<vmem>>, vector<512x128xbf16>
      tpu.vector_store %arg7[%c0_16, %c0_17], %19 {strides = array<i32>} : memref<512x128xbf16, #tpu.memory_space<vmem>>, vector<512x128xbf16>,
    } else {
    }
    return
  }
  func.func @transform_0(%arg0: i32, %arg1: i32, %arg2: i32) -> (i32, i32) {
    %c0_i32 = arith.constant 0 : i32
    return %arg0, %arg2 : i32, i32
  }
  func.func @transform_1(%arg0: i32, %arg1: i32, %arg2: i32) -> (i32, i32) {
    %c0_i32 = arith.constant 0 : i32
    return %arg2, %arg1 : i32, i32
  }
  func.func @transform_2(%arg0: i32, %arg1: i32, %arg2: i32) -> (i32, i32) {
    %c0_i32 = arith.constant 0 : i32
    %c0_i32_0 = arith.constant 0 : i32
    return %c0_i32, %arg1 : i32, i32
  }
  func.func @transform_3(%arg0: i32, %arg1: i32, %arg2: i32) -> (i32, i32) {
    %c0_i32 = arith.constant 0 : i32
    %c0_i32_0 = arith.constant 0 : i32
    return %c0_i32, %arg1 : i32, i32
  }
  func.func @transform_4(%arg0: i32, %arg1: i32, %arg2: i32) -> (i32, i32) {
    %c0_i32 = arith.constant 0 : i32
    return %arg0, %arg1 : i32, i32
  }
}

module attributes {stable_mosaic.version = 11 : i64} {
  func.func @_matmul_bn_kernel(%arg0: i32, %arg1: i32, %arg2: i32, %arg3: memref<512x128xbf16, #tpu.memory_space<vmem>>, %arg4: memref<128x128xbf16, #tpu.memory_space<vmem>>, %arg5: memref<1x128xf32, #tpu.memory_space<vmem>>, %arg6: memref<1x128xf32, #tpu.memory_space<vmem>>, %arg7: memref<512x128xbf16, #tpu.memory_space<vmem>>, %arg8: memref<512x128xf32, #tpu.memory_space<vmem>>) attributes {dimension_semantics = [#tpu.dimension_semantics<parallel>, #tpu.dimension_semantics<parallel>, #tpu.dimension_semantics<arbitrary>], iteration_bounds = array<i64: 1, 1, 1>, scalar_prefetch = 0 : i64, scratch_operands = 1 : i64, tpu.core_type = #tpu.core_type<tc>, window_params = [{transform_indices = @transform_0, window_bounds = array<i64: 512, 128>}, {transform_indices = @transform_1, window_bounds = array<i64: 128, 128>}, {transform_indices = @transform_2, window_bounds = array<i64: 1, 128>}, {transform_indices = @transform_3, window_bounds = array<i64: 1, 128>}, {transform_indices = @transform_4, window_bounds = array<i64: 512, 128>}]} {
    %c0_i32 = arith.constant 0 : i32
    %0 = arith.cmpi eq, %arg2, %c0_i32 : i32
    %1 = arith.extui %0 : i1 to i32
    %c0_i32_0 = arith.constant 0 : i32
    %2 = arith.cmpi ne, %1, %c0_i32_0 : i32
    scf.if %2 {
      %cst_10 = arith.constant 0.000000e+00 : f32
      %12 = vector.broadcast %cst_10 : f32 to vector<512x128xf32>
      %c0_11 = arith.constant 0 : index
      %c0_12 = arith.constant 0 : index
      %13 = vector.load %arg8[%c0_11, %c0_12] : memref<512x128xf32, #tpu.memory_space<vmem>>, vector<512x128xf32>
      tpu.vector_store %arg8[%c0_11, %c0_12], %12 {strides = array<i32>} : memref<512x128xf32, #tpu.memory_space<vmem>>, vector<512x128xf32>,
    } else {
    }
    %c0 = arith.constant 0 : index
    %c0_1 = arith.constant 0 : index
    %3 = vector.load %arg8[%c0, %c0_1] : memref<512x128xf32, #tpu.memory_space<vmem>>, vector<512x128xf32>
    %c0_2 = arith.constant 0 : index
    %c0_3 = arith.constant 0 : index
    %4 = vector.load %arg3[%c0_2, %c0_3] : memref<512x128xbf16, #tpu.memory_space<vmem>>, vector<512x128xbf16>
    %c0_4 = arith.constant 0 : index
    %c0_5 = arith.constant 0 : index
    %5 = vector.load %arg4[%c0_4, %c0_5] : memref<128x128xbf16, #tpu.memory_space<vmem>>, vector<128x128xbf16>
    %cst = arith.constant dense<0.000000e+00> : vector<512x128xf32>
    %6 = tpu.matmul %4, %5, %cst {dimension_numbers = #tpu.dot_dimension_numbers<[1], [0], [0], [1], [0, 0, 1, 1], [], []>} : vector<512x128xbf16>, vector<128x128xbf16>, vector<512x128xf32> -> vector<512x128xf32>
    %7 = arith.addf %3, %6 : vector<512x128xf32>
    %c0_6 = arith.constant 0 : index
    %c0_7 = arith.constant 0 : index
    %8 = vector.load %arg8[%c0_6, %c0_7] : memref<512x128xf32, #tpu.memory_space<vmem>>, vector<512x128xf32>
    tpu.vector_store %arg8[%c0_6, %c0_7], %7 {strides = array<i32>} : memref<512x128xf32, #tpu.memory_space<vmem>>, vector<512x128xf32>,
    %c0_i32_8 = arith.constant 0 : i32
    %9 = arith.cmpi eq, %arg2, %c0_i32_8 : i32
    %10 = arith.extui %9 : i1 to i32
    %c0_i32_9 = arith.constant 0 : i32
    %11 = arith.cmpi ne, %10, %c0_i32_9 : i32
    scf.if %11 {
      %c0_10 = arith.constant 0 : index
      %c0_11 = arith.constant 0 : index
      %12 = vector.load %arg8[%c0_10, %c0_11] : memref<512x128xf32, #tpu.memory_space<vmem>>, vector<512x128xf32>
      %c0_12 = arith.constant 0 : index
      %c0_13 = arith.constant 0 : index
      %13 = vector.load %arg5[%c0_12, %c0_13] : memref<1x128xf32, #tpu.memory_space<vmem>>, vector<1x128xf32>
      %14 = vector.broadcast %13 : vector<1x128xf32> to vector<512x128xf32>
      %15 = arith.mulf %12, %14 : vector<512x128xf32>
      %c0_14 = arith.constant 0 : index
      %c0_15 = arith.constant 0 : index
      %16 = vector.load %arg6[%c0_14, %c0_15] : memref<1x128xf32, #tpu.memory_space<vmem>>, vector<1x128xf32>
      %17 = vector.broadcast %16 : vector<1x128xf32> to vector<512x128xf32>
      %18 = arith.addf %15, %17 : vector<512x128xf32>
      %cst_16 = arith.constant 0.000000e+00 : f32
      %19 = vector.broadcast %cst_16 : f32 to vector<512x128xf32>
      %20 = arith.maximumf %18, %19 : vector<512x128xf32>
      %21 = arith.truncf %20 : vector<512x128xf32> to vector<512x128xbf16>
      %c0_17 = arith.constant 0 : index
      %c0_18 = arith.constant 0 : index
      %22 = vector.load %arg7[%c0_17, %c0_18] : memref<512x128xbf16, #tpu.memory_space<vmem>>, vector<512x128xbf16>
      tpu.vector_store %arg7[%c0_17, %c0_18], %21 {strides = array<i32>} : memref<512x128xbf16, #tpu.memory_space<vmem>>, vector<512x128xbf16>,
    } else {
    }
    return
  }
  func.func @transform_0(%arg0: i32, %arg1: i32, %arg2: i32) -> (i32, i32) {
    %c0_i32 = arith.constant 0 : i32
    return %arg0, %arg2 : i32, i32
  }
  func.func @transform_1(%arg0: i32, %arg1: i32, %arg2: i32) -> (i32, i32) {
    %c0_i32 = arith.constant 0 : i32
    return %arg2, %arg1 : i32, i32
  }
  func.func @transform_2(%arg0: i32, %arg1: i32, %arg2: i32) -> (i32, i32) {
    %c0_i32 = arith.constant 0 : i32
    %c0_i32_0 = arith.constant 0 : i32
    return %c0_i32, %arg1 : i32, i32
  }
  func.func @transform_3(%arg0: i32, %arg1: i32, %arg2: i32) -> (i32, i32) {
    %c0_i32 = arith.constant 0 : i32
    %c0_i32_0 = arith.constant 0 : i32
    return %c0_i32, %arg1 : i32, i32
  }
  func.func @transform_4(%arg0: i32, %arg1: i32, %arg2: i32) -> (i32, i32) {
    %c0_i32 = arith.constant 0 : i32
    return %arg0, %arg1 : i32, i32
  }
}

module attributes {stable_mosaic.version = 11 : i64} {
  func.func @_matmul_bn_kernel(%arg0: i32, %arg1: i32, %arg2: i32, %arg3: memref<512x256xbf16, #tpu.memory_space<vmem>>, %arg4: memref<256x128xbf16, #tpu.memory_space<vmem>>, %arg5: memref<1x128xf32, #tpu.memory_space<vmem>>, %arg6: memref<1x128xf32, #tpu.memory_space<vmem>>, %arg7: memref<512x128xbf16, #tpu.memory_space<vmem>>, %arg8: memref<512x128xf32, #tpu.memory_space<vmem>>) attributes {dimension_semantics = [#tpu.dimension_semantics<parallel>, #tpu.dimension_semantics<parallel>, #tpu.dimension_semantics<arbitrary>], iteration_bounds = array<i64: 1, 1, 1>, scalar_prefetch = 0 : i64, scratch_operands = 1 : i64, tpu.core_type = #tpu.core_type<tc>, window_params = [{transform_indices = @transform_0, window_bounds = array<i64: 512, 256>}, {transform_indices = @transform_1, window_bounds = array<i64: 256, 128>}, {transform_indices = @transform_2, window_bounds = array<i64: 1, 128>}, {transform_indices = @transform_3, window_bounds = array<i64: 1, 128>}, {transform_indices = @transform_4, window_bounds = array<i64: 512, 128>}]} {
    %c0_i32 = arith.constant 0 : i32
    %0 = arith.cmpi eq, %arg2, %c0_i32 : i32
    %1 = arith.extui %0 : i1 to i32
    %c0_i32_0 = arith.constant 0 : i32
    %2 = arith.cmpi ne, %1, %c0_i32_0 : i32
    scf.if %2 {
      %cst_10 = arith.constant 0.000000e+00 : f32
      %12 = vector.broadcast %cst_10 : f32 to vector<512x128xf32>
      %c0_11 = arith.constant 0 : index
      %c0_12 = arith.constant 0 : index
      %13 = vector.load %arg8[%c0_11, %c0_12] : memref<512x128xf32, #tpu.memory_space<vmem>>, vector<512x128xf32>
      tpu.vector_store %arg8[%c0_11, %c0_12], %12 {strides = array<i32>} : memref<512x128xf32, #tpu.memory_space<vmem>>, vector<512x128xf32>,
    } else {
    }
    %c0 = arith.constant 0 : index
    %c0_1 = arith.constant 0 : index
    %3 = vector.load %arg8[%c0, %c0_1] : memref<512x128xf32, #tpu.memory_space<vmem>>, vector<512x128xf32>
    %c0_2 = arith.constant 0 : index
    %c0_3 = arith.constant 0 : index
    %4 = vector.load %arg3[%c0_2, %c0_3] : memref<512x256xbf16, #tpu.memory_space<vmem>>, vector<512x256xbf16>
    %c0_4 = arith.constant 0 : index
    %c0_5 = arith.constant 0 : index
    %5 = vector.load %arg4[%c0_4, %c0_5] : memref<256x128xbf16, #tpu.memory_space<vmem>>, vector<256x128xbf16>
    %cst = arith.constant dense<0.000000e+00> : vector<512x128xf32>
    %6 = tpu.matmul %4, %5, %cst {dimension_numbers = #tpu.dot_dimension_numbers<[1], [0], [0], [1], [0, 0, 1, 1], [], []>} : vector<512x256xbf16>, vector<256x128xbf16>, vector<512x128xf32> -> vector<512x128xf32>
    %7 = arith.addf %3, %6 : vector<512x128xf32>
    %c0_6 = arith.constant 0 : index
    %c0_7 = arith.constant 0 : index
    %8 = vector.load %arg8[%c0_6, %c0_7] : memref<512x128xf32, #tpu.memory_space<vmem>>, vector<512x128xf32>
    tpu.vector_store %arg8[%c0_6, %c0_7], %7 {strides = array<i32>} : memref<512x128xf32, #tpu.memory_space<vmem>>, vector<512x128xf32>,
    %c0_i32_8 = arith.constant 0 : i32
    %9 = arith.cmpi eq, %arg2, %c0_i32_8 : i32
    %10 = arith.extui %9 : i1 to i32
    %c0_i32_9 = arith.constant 0 : i32
    %11 = arith.cmpi ne, %10, %c0_i32_9 : i32
    scf.if %11 {
      %c0_10 = arith.constant 0 : index
      %c0_11 = arith.constant 0 : index
      %12 = vector.load %arg8[%c0_10, %c0_11] : memref<512x128xf32, #tpu.memory_space<vmem>>, vector<512x128xf32>
      %c0_12 = arith.constant 0 : index
      %c0_13 = arith.constant 0 : index
      %13 = vector.load %arg5[%c0_12, %c0_13] : memref<1x128xf32, #tpu.memory_space<vmem>>, vector<1x128xf32>
      %14 = vector.broadcast %13 : vector<1x128xf32> to vector<512x128xf32>
      %15 = arith.mulf %12, %14 : vector<512x128xf32>
      %c0_14 = arith.constant 0 : index
      %c0_15 = arith.constant 0 : index
      %16 = vector.load %arg6[%c0_14, %c0_15] : memref<1x128xf32, #tpu.memory_space<vmem>>, vector<1x128xf32>
      %17 = vector.broadcast %16 : vector<1x128xf32> to vector<512x128xf32>
      %18 = arith.addf %15, %17 : vector<512x128xf32>
      %cst_16 = arith.constant 0.000000e+00 : f32
      %19 = vector.broadcast %cst_16 : f32 to vector<512x128xf32>
      %20 = arith.maximumf %18, %19 : vector<512x128xf32>
      %21 = arith.truncf %20 : vector<512x128xf32> to vector<512x128xbf16>
      %c0_17 = arith.constant 0 : index
      %c0_18 = arith.constant 0 : index
      %22 = vector.load %arg7[%c0_17, %c0_18] : memref<512x128xbf16, #tpu.memory_space<vmem>>, vector<512x128xbf16>
      tpu.vector_store %arg7[%c0_17, %c0_18], %21 {strides = array<i32>} : memref<512x128xbf16, #tpu.memory_space<vmem>>, vector<512x128xbf16>,
    } else {
    }
    return
  }
  func.func @transform_0(%arg0: i32, %arg1: i32, %arg2: i32) -> (i32, i32) {
    %c0_i32 = arith.constant 0 : i32
    return %arg0, %arg2 : i32, i32
  }
  func.func @transform_1(%arg0: i32, %arg1: i32, %arg2: i32) -> (i32, i32) {
    %c0_i32 = arith.constant 0 : i32
    return %arg2, %arg1 : i32, i32
  }
  func.func @transform_2(%arg0: i32, %arg1: i32, %arg2: i32) -> (i32, i32) {
    %c0_i32 = arith.constant 0 : i32
    %c0_i32_0 = arith.constant 0 : i32
    return %c0_i32, %arg1 : i32, i32
  }
  func.func @transform_3(%arg0: i32, %arg1: i32, %arg2: i32) -> (i32, i32) {
    %c0_i32 = arith.constant 0 : i32
    %c0_i32_0 = arith.constant 0 : i32
    return %c0_i32, %arg1 : i32, i32
  }
  func.func @transform_4(%arg0: i32, %arg1: i32, %arg2: i32) -> (i32, i32) {
    %c0_i32 = arith.constant 0 : i32
    return %arg0, %arg1 : i32, i32
  }
}

module attributes {stable_mosaic.version = 11 : i64} {
  func.func @_matmul_bn_kernel(%arg0: i32, %arg1: i32, %arg2: i32, %arg3: memref<512x128xbf16, #tpu.memory_space<vmem>>, %arg4: memref<128x128xbf16, #tpu.memory_space<vmem>>, %arg5: memref<1x128xf32, #tpu.memory_space<vmem>>, %arg6: memref<1x128xf32, #tpu.memory_space<vmem>>, %arg7: memref<512x128xbf16, #tpu.memory_space<vmem>>, %arg8: memref<512x128xf32, #tpu.memory_space<vmem>>) attributes {dimension_semantics = [#tpu.dimension_semantics<parallel>, #tpu.dimension_semantics<parallel>, #tpu.dimension_semantics<arbitrary>], iteration_bounds = array<i64: 1, 1, 1>, scalar_prefetch = 0 : i64, scratch_operands = 1 : i64, tpu.core_type = #tpu.core_type<tc>, window_params = [{transform_indices = @transform_0, window_bounds = array<i64: 512, 128>}, {transform_indices = @transform_1, window_bounds = array<i64: 128, 128>}, {transform_indices = @transform_2, window_bounds = array<i64: 1, 128>}, {transform_indices = @transform_3, window_bounds = array<i64: 1, 128>}, {transform_indices = @transform_4, window_bounds = array<i64: 512, 128>}]} {
    %c0_i32 = arith.constant 0 : i32
    %0 = arith.cmpi eq, %arg2, %c0_i32 : i32
    %1 = arith.extui %0 : i1 to i32
    %c0_i32_0 = arith.constant 0 : i32
    %2 = arith.cmpi ne, %1, %c0_i32_0 : i32
    scf.if %2 {
      %cst_10 = arith.constant 0.000000e+00 : f32
      %12 = vector.broadcast %cst_10 : f32 to vector<512x128xf32>
      %c0_11 = arith.constant 0 : index
      %c0_12 = arith.constant 0 : index
      %13 = vector.load %arg8[%c0_11, %c0_12] : memref<512x128xf32, #tpu.memory_space<vmem>>, vector<512x128xf32>
      tpu.vector_store %arg8[%c0_11, %c0_12], %12 {strides = array<i32>} : memref<512x128xf32, #tpu.memory_space<vmem>>, vector<512x128xf32>,
    } else {
    }
    %c0 = arith.constant 0 : index
    %c0_1 = arith.constant 0 : index
    %3 = vector.load %arg8[%c0, %c0_1] : memref<512x128xf32, #tpu.memory_space<vmem>>, vector<512x128xf32>
    %c0_2 = arith.constant 0 : index
    %c0_3 = arith.constant 0 : index
    %4 = vector.load %arg3[%c0_2, %c0_3] : memref<512x128xbf16, #tpu.memory_space<vmem>>, vector<512x128xbf16>
    %c0_4 = arith.constant 0 : index
    %c0_5 = arith.constant 0 : index
    %5 = vector.load %arg4[%c0_4, %c0_5] : memref<128x128xbf16, #tpu.memory_space<vmem>>, vector<128x128xbf16>
    %cst = arith.constant dense<0.000000e+00> : vector<512x128xf32>
    %6 = tpu.matmul %4, %5, %cst {dimension_numbers = #tpu.dot_dimension_numbers<[1], [0], [0], [1], [0, 0, 1, 1], [], []>} : vector<512x128xbf16>, vector<128x128xbf16>, vector<512x128xf32> -> vector<512x128xf32>
    %7 = arith.addf %3, %6 : vector<512x128xf32>
    %c0_6 = arith.constant 0 : index
    %c0_7 = arith.constant 0 : index
    %8 = vector.load %arg8[%c0_6, %c0_7] : memref<512x128xf32, #tpu.memory_space<vmem>>, vector<512x128xf32>
    tpu.vector_store %arg8[%c0_6, %c0_7], %7 {strides = array<i32>} : memref<512x128xf32, #tpu.memory_space<vmem>>, vector<512x128xf32>,
    %c0_i32_8 = arith.constant 0 : i32
    %9 = arith.cmpi eq, %arg2, %c0_i32_8 : i32
    %10 = arith.extui %9 : i1 to i32
    %c0_i32_9 = arith.constant 0 : i32
    %11 = arith.cmpi ne, %10, %c0_i32_9 : i32
    scf.if %11 {
      %c0_10 = arith.constant 0 : index
      %c0_11 = arith.constant 0 : index
      %12 = vector.load %arg8[%c0_10, %c0_11] : memref<512x128xf32, #tpu.memory_space<vmem>>, vector<512x128xf32>
      %c0_12 = arith.constant 0 : index
      %c0_13 = arith.constant 0 : index
      %13 = vector.load %arg5[%c0_12, %c0_13] : memref<1x128xf32, #tpu.memory_space<vmem>>, vector<1x128xf32>
      %14 = vector.broadcast %13 : vector<1x128xf32> to vector<512x128xf32>
      %15 = arith.mulf %12, %14 : vector<512x128xf32>
      %c0_14 = arith.constant 0 : index
      %c0_15 = arith.constant 0 : index
      %16 = vector.load %arg6[%c0_14, %c0_15] : memref<1x128xf32, #tpu.memory_space<vmem>>, vector<1x128xf32>
      %17 = vector.broadcast %16 : vector<1x128xf32> to vector<512x128xf32>
      %18 = arith.addf %15, %17 : vector<512x128xf32>
      %19 = arith.truncf %18 : vector<512x128xf32> to vector<512x128xbf16>
      %c0_16 = arith.constant 0 : index
      %c0_17 = arith.constant 0 : index
      %20 = vector.load %arg7[%c0_16, %c0_17] : memref<512x128xbf16, #tpu.memory_space<vmem>>, vector<512x128xbf16>
      tpu.vector_store %arg7[%c0_16, %c0_17], %19 {strides = array<i32>} : memref<512x128xbf16, #tpu.memory_space<vmem>>, vector<512x128xbf16>,
    } else {
    }
    return
  }
  func.func @transform_0(%arg0: i32, %arg1: i32, %arg2: i32) -> (i32, i32) {
    %c0_i32 = arith.constant 0 : i32
    return %arg0, %arg2 : i32, i32
  }
  func.func @transform_1(%arg0: i32, %arg1: i32, %arg2: i32) -> (i32, i32) {
    %c0_i32 = arith.constant 0 : i32
    return %arg2, %arg1 : i32, i32
  }
  func.func @transform_2(%arg0: i32, %arg1: i32, %arg2: i32) -> (i32, i32) {
    %c0_i32 = arith.constant 0 : i32
    %c0_i32_0 = arith.constant 0 : i32
    return %c0_i32, %arg1 : i32, i32
  }
  func.func @transform_3(%arg0: i32, %arg1: i32, %arg2: i32) -> (i32, i32) {
    %c0_i32 = arith.constant 0 : i32
    %c0_i32_0 = arith.constant 0 : i32
    return %c0_i32, %arg1 : i32, i32
  }
  func.func @transform_4(%arg0: i32, %arg1: i32, %arg2: i32) -> (i32, i32) {
    %c0_i32 = arith.constant 0 : i32
    return %arg0, %arg1 : i32, i32
  }
}

module attributes {stable_mosaic.version = 11 : i64} {
  func.func @_se_gate_kernel(%arg0: i32, %arg1: memref<2x32xbf16, #tpu.memory_space<vmem>>, %arg2: memref<32x8xbf16, #tpu.memory_space<vmem>>, %arg3: memref<1x8xf32, #tpu.memory_space<vmem>>, %arg4: memref<8x32xbf16, #tpu.memory_space<vmem>>, %arg5: memref<1x32xf32, #tpu.memory_space<vmem>>, %arg6: memref<2x32xf32, #tpu.memory_space<vmem>>) attributes {dimension_semantics = [#tpu.dimension_semantics<arbitrary>], iteration_bounds = array<i64: 1>, scalar_prefetch = 0 : i64, scratch_operands = 0 : i64, tpu.core_type = #tpu.core_type<tc>, window_params = [{pipeline_mode = #tpu.pipeline_mode<synchronous>, transform_indices = @transform_0, window_bounds = array<i64: 2, 32>}, {pipeline_mode = #tpu.pipeline_mode<synchronous>, transform_indices = @transform_1, window_bounds = array<i64: 32, 8>}, {pipeline_mode = #tpu.pipeline_mode<synchronous>, transform_indices = @transform_2, window_bounds = array<i64: 1, 8>}, {pipeline_mode = #tpu.pipeline_mode<synchronous>, transform_indices = @transform_3, window_bounds = array<i64: 8, 32>}, {pipeline_mode = #tpu.pipeline_mode<synchronous>, transform_indices = @transform_4, window_bounds = array<i64: 1, 32>}, {pipeline_mode = #tpu.pipeline_mode<synchronous>, transform_indices = @transform_5, window_bounds = array<i64: 2, 32>}]} {
    %c0 = arith.constant 0 : index
    %c0_0 = arith.constant 0 : index
    %0 = vector.load %arg1[%c0, %c0_0] : memref<2x32xbf16, #tpu.memory_space<vmem>>, vector<2x32xbf16>
    %c0_1 = arith.constant 0 : index
    %c0_2 = arith.constant 0 : index
    %1 = vector.load %arg2[%c0_1, %c0_2] : memref<32x8xbf16, #tpu.memory_space<vmem>>, vector<32x8xbf16>
    %cst = arith.constant dense<0.000000e+00> : vector<2x8xf32>
    %2 = tpu.matmul %0, %1, %cst {dimension_numbers = #tpu.dot_dimension_numbers<[1], [0], [0], [1], [0, 0, 1, 1], [], []>} : vector<2x32xbf16>, vector<32x8xbf16>, vector<2x8xf32> -> vector<2x8xf32>
    %c0_3 = arith.constant 0 : index
    %c0_4 = arith.constant 0 : index
    %3 = vector.load %arg3[%c0_3, %c0_4] : memref<1x8xf32, #tpu.memory_space<vmem>>, vector<1x8xf32>
    %4 = vector.broadcast %3 : vector<1x8xf32> to vector<2x8xf32>
    %5 = arith.addf %2, %4 : vector<2x8xf32>
    %cst_5 = arith.constant 0.000000e+00 : f32
    %6 = vector.broadcast %cst_5 : f32 to vector<2x8xf32>
    %7 = arith.maximumf %5, %6 : vector<2x8xf32>
    %8 = arith.truncf %7 : vector<2x8xf32> to vector<2x8xbf16>
    %c0_6 = arith.constant 0 : index
    %c0_7 = arith.constant 0 : index
    %9 = vector.load %arg4[%c0_6, %c0_7] : memref<8x32xbf16, #tpu.memory_space<vmem>>, vector<8x32xbf16>
    %cst_8 = arith.constant dense<0.000000e+00> : vector<2x32xf32>
    %10 = tpu.matmul %8, %9, %cst_8 {dimension_numbers = #tpu.dot_dimension_numbers<[1], [0], [0], [1], [0, 0, 1, 1], [], []>} : vector<2x8xbf16>, vector<8x32xbf16>, vector<2x32xf32> -> vector<2x32xf32>
    %c0_9 = arith.constant 0 : index
    %c0_10 = arith.constant 0 : index
    %11 = vector.load %arg5[%c0_9, %c0_10] : memref<1x32xf32, #tpu.memory_space<vmem>>, vector<1x32xf32>
    %12 = vector.broadcast %11 : vector<1x32xf32> to vector<2x32xf32>
    %13 = arith.addf %10, %12 : vector<2x32xf32>
    %cst_11 = arith.constant 0.000000e+00 : f32
    %14 = vector.broadcast %cst_11 : f32 to vector<2x32xf32>
    %15 = arith.subf %14, %13 : vector<2x32xf32>
    %16 = math.exp %15 : vector<2x32xf32>
    %cst_12 = arith.constant 1.000000e+00 : f32
    %17 = vector.broadcast %cst_12 : f32 to vector<2x32xf32>
    %18 = arith.addf %17, %16 : vector<2x32xf32>
    %cst_13 = arith.constant 1.000000e+00 : f32
    %19 = vector.broadcast %cst_13 : f32 to vector<2x32xf32>
    %20 = arith.divf %19, %18 : vector<2x32xf32>
    %c0_14 = arith.constant 0 : index
    %c0_15 = arith.constant 0 : index
    %21 = vector.load %arg6[%c0_14, %c0_15] : memref<2x32xf32, #tpu.memory_space<vmem>>, vector<2x32xf32>
    tpu.vector_store %arg6[%c0_14, %c0_15], %20 {strides = array<i32>} : memref<2x32xf32, #tpu.memory_space<vmem>>, vector<2x32xf32>,
    return
  }
  func.func @transform_0(%arg0: i32) -> (i32, i32) {
    %c0_i32 = arith.constant 0 : i32
    %c0_i32_0 = arith.constant 0 : i32
    %c0_i32_1 = arith.constant 0 : i32
    return %c0_i32, %c0_i32_0 : i32, i32
  }
  func.func @transform_1(%arg0: i32) -> (i32, i32) {
    %c0_i32 = arith.constant 0 : i32
    %c0_i32_0 = arith.constant 0 : i32
    %c0_i32_1 = arith.constant 0 : i32
    return %c0_i32, %c0_i32_0 : i32, i32
  }
  func.func @transform_2(%arg0: i32) -> (i32, i32) {
    %c0_i32 = arith.constant 0 : i32
    %c0_i32_0 = arith.constant 0 : i32
    %c0_i32_1 = arith.constant 0 : i32
    return %c0_i32, %c0_i32_0 : i32, i32
  }
  func.func @transform_3(%arg0: i32) -> (i32, i32) {
    %c0_i32 = arith.constant 0 : i32
    %c0_i32_0 = arith.constant 0 : i32
    %c0_i32_1 = arith.constant 0 : i32
    return %c0_i32, %c0_i32_0 : i32, i32
  }
  func.func @transform_4(%arg0: i32) -> (i32, i32) {
    %c0_i32 = arith.constant 0 : i32
    %c0_i32_0 = arith.constant 0 : i32
    %c0_i32_1 = arith.constant 0 : i32
    return %c0_i32, %c0_i32_0 : i32, i32
  }
  func.func @transform_5(%arg0: i32) -> (i32, i32) {
    %c0_i32 = arith.constant 0 : i32
    %c0_i32_0 = arith.constant 0 : i32
    %c0_i32_1 = arith.constant 0 : i32
    return %c0_i32, %c0_i32_0 : i32, i32
  }
}

module attributes {stable_mosaic.version = 11 : i64} {
  func.func @_se_apply_kernel(%arg0: i32, %arg1: i32, %arg2: memref<1x256x32xbf16, #tpu.memory_space<vmem>>, %arg3: memref<1x1x32xf32, #tpu.memory_space<vmem>>, %arg4: memref<1x256x32xbf16, #tpu.memory_space<vmem>>, %arg5: memref<1x256x32xbf16, #tpu.memory_space<vmem>>) attributes {dimension_semantics = [#tpu.dimension_semantics<parallel>, #tpu.dimension_semantics<parallel>], iteration_bounds = array<i64: 2, 1>, scalar_prefetch = 0 : i64, scratch_operands = 0 : i64, tpu.core_type = #tpu.core_type<tc>, window_params = [{transform_indices = @transform_0, window_bounds = array<i64: 1, 256, 32>}, {transform_indices = @transform_1, window_bounds = array<i64: 1, 1, 32>}, {transform_indices = @transform_2, window_bounds = array<i64: 1, 256, 32>}, {transform_indices = @transform_3, window_bounds = array<i64: 1, 256, 32>}]} {
    %c0 = arith.constant 0 : index
    %c0_0 = arith.constant 0 : index
    %c0_1 = arith.constant 0 : index
    %0 = vector.load %arg2[%c0, %c0_0, %c0_1] : memref<1x256x32xbf16, #tpu.memory_space<vmem>>, vector<1x256x32xbf16>
    %1 = arith.extf %0 : vector<1x256x32xbf16> to vector<1x256x32xf32>
    %c0_2 = arith.constant 0 : index
    %c0_3 = arith.constant 0 : index
    %c0_4 = arith.constant 0 : index
    %2 = vector.load %arg4[%c0_2, %c0_3, %c0_4] : memref<1x256x32xbf16, #tpu.memory_space<vmem>>, vector<1x256x32xbf16>
    %3 = arith.extf %2 : vector<1x256x32xbf16> to vector<1x256x32xf32>
    %c0_5 = arith.constant 0 : index
    %c0_6 = arith.constant 0 : index
    %c0_7 = arith.constant 0 : index
    %4 = vector.load %arg3[%c0_5, %c0_6, %c0_7] : memref<1x1x32xf32, #tpu.memory_space<vmem>>, vector<1x1x32xf32>
    %5 = vector.broadcast %4 : vector<1x1x32xf32> to vector<1x256x32xf32>
    %6 = arith.mulf %1, %5 : vector<1x256x32xf32>
    %7 = arith.addf %6, %3 : vector<1x256x32xf32>
    %cst = arith.constant 0.000000e+00 : f32
    %8 = vector.broadcast %cst : f32 to vector<1x256x32xf32>
    %9 = arith.maximumf %7, %8 : vector<1x256x32xf32>
    %10 = arith.truncf %9 : vector<1x256x32xf32> to vector<1x256x32xbf16>
    %c0_8 = arith.constant 0 : index
    %c0_9 = arith.constant 0 : index
    %c0_10 = arith.constant 0 : index
    %11 = vector.load %arg5[%c0_8, %c0_9, %c0_10] : memref<1x256x32xbf16, #tpu.memory_space<vmem>>, vector<1x256x32xbf16>
    tpu.vector_store %arg5[%c0_8, %c0_9, %c0_10], %10 {strides = array<i32>} : memref<1x256x32xbf16, #tpu.memory_space<vmem>>, vector<1x256x32xbf16>,
    return
  }
  func.func @transform_0(%arg0: i32, %arg1: i32) -> (i32, i32, i32) {
    %c0_i32 = arith.constant 0 : i32
    %c0_i32_0 = arith.constant 0 : i32
    return %arg0, %arg1, %c0_i32 : i32, i32, i32
  }
  func.func @transform_1(%arg0: i32, %arg1: i32) -> (i32, i32, i32) {
    %c0_i32 = arith.constant 0 : i32
    %c0_i32_0 = arith.constant 0 : i32
    %c0_i32_1 = arith.constant 0 : i32
    return %arg0, %c0_i32, %c0_i32_0 : i32, i32, i32
  }
  func.func @transform_2(%arg0: i32, %arg1: i32) -> (i32, i32, i32) {
    %c0_i32 = arith.constant 0 : i32
    %c0_i32_0 = arith.constant 0 : i32
    return %arg0, %arg1, %c0_i32 : i32, i32, i32
  }
  func.func @transform_3(%arg0: i32, %arg1: i32) -> (i32, i32, i32) {
    %c0_i32 = arith.constant 0 : i32
    %c0_i32_0 = arith.constant 0 : i32
    return %arg0, %arg1, %c0_i32 : i32, i32, i32
  }
}

module attributes {stable_mosaic.version = 11 : i64} {
  func.func @_matmul_bn_kernel(%arg0: i32, %arg1: i32, %arg2: i32, %arg3: memref<128x128xbf16, #tpu.memory_space<vmem>>, %arg4: memref<128x128xbf16, #tpu.memory_space<vmem>>, %arg5: memref<1x128xf32, #tpu.memory_space<vmem>>, %arg6: memref<1x128xf32, #tpu.memory_space<vmem>>, %arg7: memref<128x128xbf16, #tpu.memory_space<vmem>>, %arg8: memref<128x128xf32, #tpu.memory_space<vmem>>) attributes {dimension_semantics = [#tpu.dimension_semantics<parallel>, #tpu.dimension_semantics<parallel>, #tpu.dimension_semantics<arbitrary>], iteration_bounds = array<i64: 1, 1, 1>, scalar_prefetch = 0 : i64, scratch_operands = 1 : i64, tpu.core_type = #tpu.core_type<tc>, window_params = [{transform_indices = @transform_0, window_bounds = array<i64: 128, 128>}, {transform_indices = @transform_1, window_bounds = array<i64: 128, 128>}, {transform_indices = @transform_2, window_bounds = array<i64: 1, 128>}, {transform_indices = @transform_3, window_bounds = array<i64: 1, 128>}, {transform_indices = @transform_4, window_bounds = array<i64: 128, 128>}]} {
    %c0_i32 = arith.constant 0 : i32
    %0 = arith.cmpi eq, %arg2, %c0_i32 : i32
    %1 = arith.extui %0 : i1 to i32
    %c0_i32_0 = arith.constant 0 : i32
    %2 = arith.cmpi ne, %1, %c0_i32_0 : i32
    scf.if %2 {
      %cst_10 = arith.constant 0.000000e+00 : f32
      %12 = vector.broadcast %cst_10 : f32 to vector<128x128xf32>
      %c0_11 = arith.constant 0 : index
      %c0_12 = arith.constant 0 : index
      %13 = vector.load %arg8[%c0_11, %c0_12] : memref<128x128xf32, #tpu.memory_space<vmem>>, vector<128x128xf32>
      tpu.vector_store %arg8[%c0_11, %c0_12], %12 {strides = array<i32>} : memref<128x128xf32, #tpu.memory_space<vmem>>, vector<128x128xf32>,
    } else {
    }
    %c0 = arith.constant 0 : index
    %c0_1 = arith.constant 0 : index
    %3 = vector.load %arg8[%c0, %c0_1] : memref<128x128xf32, #tpu.memory_space<vmem>>, vector<128x128xf32>
    %c0_2 = arith.constant 0 : index
    %c0_3 = arith.constant 0 : index
    %4 = vector.load %arg3[%c0_2, %c0_3] : memref<128x128xbf16, #tpu.memory_space<vmem>>, vector<128x128xbf16>
    %c0_4 = arith.constant 0 : index
    %c0_5 = arith.constant 0 : index
    %5 = vector.load %arg4[%c0_4, %c0_5] : memref<128x128xbf16, #tpu.memory_space<vmem>>, vector<128x128xbf16>
    %cst = arith.constant dense<0.000000e+00> : vector<128x128xf32>
    %6 = tpu.matmul %4, %5, %cst {dimension_numbers = #tpu.dot_dimension_numbers<[1], [0], [0], [1], [0, 0, 1, 1], [], []>} : vector<128x128xbf16>, vector<128x128xbf16>, vector<128x128xf32> -> vector<128x128xf32>
    %7 = arith.addf %3, %6 : vector<128x128xf32>
    %c0_6 = arith.constant 0 : index
    %c0_7 = arith.constant 0 : index
    %8 = vector.load %arg8[%c0_6, %c0_7] : memref<128x128xf32, #tpu.memory_space<vmem>>, vector<128x128xf32>
    tpu.vector_store %arg8[%c0_6, %c0_7], %7 {strides = array<i32>} : memref<128x128xf32, #tpu.memory_space<vmem>>, vector<128x128xf32>,
    %c0_i32_8 = arith.constant 0 : i32
    %9 = arith.cmpi eq, %arg2, %c0_i32_8 : i32
    %10 = arith.extui %9 : i1 to i32
    %c0_i32_9 = arith.constant 0 : i32
    %11 = arith.cmpi ne, %10, %c0_i32_9 : i32
    scf.if %11 {
      %c0_10 = arith.constant 0 : index
      %c0_11 = arith.constant 0 : index
      %12 = vector.load %arg8[%c0_10, %c0_11] : memref<128x128xf32, #tpu.memory_space<vmem>>, vector<128x128xf32>
      %c0_12 = arith.constant 0 : index
      %c0_13 = arith.constant 0 : index
      %13 = vector.load %arg5[%c0_12, %c0_13] : memref<1x128xf32, #tpu.memory_space<vmem>>, vector<1x128xf32>
      %14 = vector.broadcast %13 : vector<1x128xf32> to vector<128x128xf32>
      %15 = arith.mulf %12, %14 : vector<128x128xf32>
      %c0_14 = arith.constant 0 : index
      %c0_15 = arith.constant 0 : index
      %16 = vector.load %arg6[%c0_14, %c0_15] : memref<1x128xf32, #tpu.memory_space<vmem>>, vector<1x128xf32>
      %17 = vector.broadcast %16 : vector<1x128xf32> to vector<128x128xf32>
      %18 = arith.addf %15, %17 : vector<128x128xf32>
      %19 = arith.truncf %18 : vector<128x128xf32> to vector<128x128xbf16>
      %c0_16 = arith.constant 0 : index
      %c0_17 = arith.constant 0 : index
      %20 = vector.load %arg7[%c0_16, %c0_17] : memref<128x128xbf16, #tpu.memory_space<vmem>>, vector<128x128xbf16>
      tpu.vector_store %arg7[%c0_16, %c0_17], %19 {strides = array<i32>} : memref<128x128xbf16, #tpu.memory_space<vmem>>, vector<128x128xbf16>,
    } else {
    }
    return
  }
  func.func @transform_0(%arg0: i32, %arg1: i32, %arg2: i32) -> (i32, i32) {
    %c0_i32 = arith.constant 0 : i32
    return %arg0, %arg2 : i32, i32
  }
  func.func @transform_1(%arg0: i32, %arg1: i32, %arg2: i32) -> (i32, i32) {
    %c0_i32 = arith.constant 0 : i32
    return %arg2, %arg1 : i32, i32
  }
  func.func @transform_2(%arg0: i32, %arg1: i32, %arg2: i32) -> (i32, i32) {
    %c0_i32 = arith.constant 0 : i32
    %c0_i32_0 = arith.constant 0 : i32
    return %c0_i32, %arg1 : i32, i32
  }
  func.func @transform_3(%arg0: i32, %arg1: i32, %arg2: i32) -> (i32, i32) {
    %c0_i32 = arith.constant 0 : i32
    %c0_i32_0 = arith.constant 0 : i32
    return %c0_i32, %arg1 : i32, i32
  }
  func.func @transform_4(%arg0: i32, %arg1: i32, %arg2: i32) -> (i32, i32) {
    %c0_i32 = arith.constant 0 : i32
    return %arg0, %arg1 : i32, i32
  }
}

module attributes {stable_mosaic.version = 11 : i64} {
  func.func @_matmul_bn_kernel(%arg0: i32, %arg1: i32, %arg2: i32, %arg3: memref<512x128xbf16, #tpu.memory_space<vmem>>, %arg4: memref<128x128xbf16, #tpu.memory_space<vmem>>, %arg5: memref<1x128xf32, #tpu.memory_space<vmem>>, %arg6: memref<1x128xf32, #tpu.memory_space<vmem>>, %arg7: memref<512x128xbf16, #tpu.memory_space<vmem>>, %arg8: memref<512x128xf32, #tpu.memory_space<vmem>>) attributes {dimension_semantics = [#tpu.dimension_semantics<parallel>, #tpu.dimension_semantics<parallel>, #tpu.dimension_semantics<arbitrary>], iteration_bounds = array<i64: 1, 1, 1>, scalar_prefetch = 0 : i64, scratch_operands = 1 : i64, tpu.core_type = #tpu.core_type<tc>, window_params = [{transform_indices = @transform_0, window_bounds = array<i64: 512, 128>}, {transform_indices = @transform_1, window_bounds = array<i64: 128, 128>}, {transform_indices = @transform_2, window_bounds = array<i64: 1, 128>}, {transform_indices = @transform_3, window_bounds = array<i64: 1, 128>}, {transform_indices = @transform_4, window_bounds = array<i64: 512, 128>}]} {
    %c0_i32 = arith.constant 0 : i32
    %0 = arith.cmpi eq, %arg2, %c0_i32 : i32
    %1 = arith.extui %0 : i1 to i32
    %c0_i32_0 = arith.constant 0 : i32
    %2 = arith.cmpi ne, %1, %c0_i32_0 : i32
    scf.if %2 {
      %cst_10 = arith.constant 0.000000e+00 : f32
      %12 = vector.broadcast %cst_10 : f32 to vector<512x128xf32>
      %c0_11 = arith.constant 0 : index
      %c0_12 = arith.constant 0 : index
      %13 = vector.load %arg8[%c0_11, %c0_12] : memref<512x128xf32, #tpu.memory_space<vmem>>, vector<512x128xf32>
      tpu.vector_store %arg8[%c0_11, %c0_12], %12 {strides = array<i32>} : memref<512x128xf32, #tpu.memory_space<vmem>>, vector<512x128xf32>,
    } else {
    }
    %c0 = arith.constant 0 : index
    %c0_1 = arith.constant 0 : index
    %3 = vector.load %arg8[%c0, %c0_1] : memref<512x128xf32, #tpu.memory_space<vmem>>, vector<512x128xf32>
    %c0_2 = arith.constant 0 : index
    %c0_3 = arith.constant 0 : index
    %4 = vector.load %arg3[%c0_2, %c0_3] : memref<512x128xbf16, #tpu.memory_space<vmem>>, vector<512x128xbf16>
    %c0_4 = arith.constant 0 : index
    %c0_5 = arith.constant 0 : index
    %5 = vector.load %arg4[%c0_4, %c0_5] : memref<128x128xbf16, #tpu.memory_space<vmem>>, vector<128x128xbf16>
    %cst = arith.constant dense<0.000000e+00> : vector<512x128xf32>
    %6 = tpu.matmul %4, %5, %cst {dimension_numbers = #tpu.dot_dimension_numbers<[1], [0], [0], [1], [0, 0, 1, 1], [], []>} : vector<512x128xbf16>, vector<128x128xbf16>, vector<512x128xf32> -> vector<512x128xf32>
    %7 = arith.addf %3, %6 : vector<512x128xf32>
    %c0_6 = arith.constant 0 : index
    %c0_7 = arith.constant 0 : index
    %8 = vector.load %arg8[%c0_6, %c0_7] : memref<512x128xf32, #tpu.memory_space<vmem>>, vector<512x128xf32>
    tpu.vector_store %arg8[%c0_6, %c0_7], %7 {strides = array<i32>} : memref<512x128xf32, #tpu.memory_space<vmem>>, vector<512x128xf32>,
    %c0_i32_8 = arith.constant 0 : i32
    %9 = arith.cmpi eq, %arg2, %c0_i32_8 : i32
    %10 = arith.extui %9 : i1 to i32
    %c0_i32_9 = arith.constant 0 : i32
    %11 = arith.cmpi ne, %10, %c0_i32_9 : i32
    scf.if %11 {
      %c0_10 = arith.constant 0 : index
      %c0_11 = arith.constant 0 : index
      %12 = vector.load %arg8[%c0_10, %c0_11] : memref<512x128xf32, #tpu.memory_space<vmem>>, vector<512x128xf32>
      %c0_12 = arith.constant 0 : index
      %c0_13 = arith.constant 0 : index
      %13 = vector.load %arg5[%c0_12, %c0_13] : memref<1x128xf32, #tpu.memory_space<vmem>>, vector<1x128xf32>
      %14 = vector.broadcast %13 : vector<1x128xf32> to vector<512x128xf32>
      %15 = arith.mulf %12, %14 : vector<512x128xf32>
      %c0_14 = arith.constant 0 : index
      %c0_15 = arith.constant 0 : index
      %16 = vector.load %arg6[%c0_14, %c0_15] : memref<1x128xf32, #tpu.memory_space<vmem>>, vector<1x128xf32>
      %17 = vector.broadcast %16 : vector<1x128xf32> to vector<512x128xf32>
      %18 = arith.addf %15, %17 : vector<512x128xf32>
      %cst_16 = arith.constant 0.000000e+00 : f32
      %19 = vector.broadcast %cst_16 : f32 to vector<512x128xf32>
      %20 = arith.maximumf %18, %19 : vector<512x128xf32>
      %21 = arith.truncf %20 : vector<512x128xf32> to vector<512x128xbf16>
      %c0_17 = arith.constant 0 : index
      %c0_18 = arith.constant 0 : index
      %22 = vector.load %arg7[%c0_17, %c0_18] : memref<512x128xbf16, #tpu.memory_space<vmem>>, vector<512x128xbf16>
      tpu.vector_store %arg7[%c0_17, %c0_18], %21 {strides = array<i32>} : memref<512x128xbf16, #tpu.memory_space<vmem>>, vector<512x128xbf16>,
    } else {
    }
    return
  }
  func.func @transform_0(%arg0: i32, %arg1: i32, %arg2: i32) -> (i32, i32) {
    %c0_i32 = arith.constant 0 : i32
    return %arg0, %arg2 : i32, i32
  }
  func.func @transform_1(%arg0: i32, %arg1: i32, %arg2: i32) -> (i32, i32) {
    %c0_i32 = arith.constant 0 : i32
    return %arg2, %arg1 : i32, i32
  }
  func.func @transform_2(%arg0: i32, %arg1: i32, %arg2: i32) -> (i32, i32) {
    %c0_i32 = arith.constant 0 : i32
    %c0_i32_0 = arith.constant 0 : i32
    return %c0_i32, %arg1 : i32, i32
  }
  func.func @transform_3(%arg0: i32, %arg1: i32, %arg2: i32) -> (i32, i32) {
    %c0_i32 = arith.constant 0 : i32
    %c0_i32_0 = arith.constant 0 : i32
    return %c0_i32, %arg1 : i32, i32
  }
  func.func @transform_4(%arg0: i32, %arg1: i32, %arg2: i32) -> (i32, i32) {
    %c0_i32 = arith.constant 0 : i32
    return %arg0, %arg1 : i32, i32
  }
}

module attributes {stable_mosaic.version = 11 : i64} {
  func.func @_se_gate_kernel(%arg0: i32, %arg1: memref<2x64xbf16, #tpu.memory_space<vmem>>, %arg2: memref<64x16xbf16, #tpu.memory_space<vmem>>, %arg3: memref<1x16xf32, #tpu.memory_space<vmem>>, %arg4: memref<16x64xbf16, #tpu.memory_space<vmem>>, %arg5: memref<1x64xf32, #tpu.memory_space<vmem>>, %arg6: memref<2x64xf32, #tpu.memory_space<vmem>>) attributes {dimension_semantics = [#tpu.dimension_semantics<arbitrary>], iteration_bounds = array<i64: 1>, scalar_prefetch = 0 : i64, scratch_operands = 0 : i64, tpu.core_type = #tpu.core_type<tc>, window_params = [{pipeline_mode = #tpu.pipeline_mode<synchronous>, transform_indices = @transform_0, window_bounds = array<i64: 2, 64>}, {pipeline_mode = #tpu.pipeline_mode<synchronous>, transform_indices = @transform_1, window_bounds = array<i64: 64, 16>}, {pipeline_mode = #tpu.pipeline_mode<synchronous>, transform_indices = @transform_2, window_bounds = array<i64: 1, 16>}, {pipeline_mode = #tpu.pipeline_mode<synchronous>, transform_indices = @transform_3, window_bounds = array<i64: 16, 64>}, {pipeline_mode = #tpu.pipeline_mode<synchronous>, transform_indices = @transform_4, window_bounds = array<i64: 1, 64>}, {pipeline_mode = #tpu.pipeline_mode<synchronous>, transform_indices = @transform_5, window_bounds = array<i64: 2, 64>}]} {
    %c0 = arith.constant 0 : index
    %c0_0 = arith.constant 0 : index
    %0 = vector.load %arg1[%c0, %c0_0] : memref<2x64xbf16, #tpu.memory_space<vmem>>, vector<2x64xbf16>
    %c0_1 = arith.constant 0 : index
    %c0_2 = arith.constant 0 : index
    %1 = vector.load %arg2[%c0_1, %c0_2] : memref<64x16xbf16, #tpu.memory_space<vmem>>, vector<64x16xbf16>
    %cst = arith.constant dense<0.000000e+00> : vector<2x16xf32>
    %2 = tpu.matmul %0, %1, %cst {dimension_numbers = #tpu.dot_dimension_numbers<[1], [0], [0], [1], [0, 0, 1, 1], [], []>} : vector<2x64xbf16>, vector<64x16xbf16>, vector<2x16xf32> -> vector<2x16xf32>
    %c0_3 = arith.constant 0 : index
    %c0_4 = arith.constant 0 : index
    %3 = vector.load %arg3[%c0_3, %c0_4] : memref<1x16xf32, #tpu.memory_space<vmem>>, vector<1x16xf32>
    %4 = vector.broadcast %3 : vector<1x16xf32> to vector<2x16xf32>
    %5 = arith.addf %2, %4 : vector<2x16xf32>
    %cst_5 = arith.constant 0.000000e+00 : f32
    %6 = vector.broadcast %cst_5 : f32 to vector<2x16xf32>
    %7 = arith.maximumf %5, %6 : vector<2x16xf32>
    %8 = arith.truncf %7 : vector<2x16xf32> to vector<2x16xbf16>
    %c0_6 = arith.constant 0 : index
    %c0_7 = arith.constant 0 : index
    %9 = vector.load %arg4[%c0_6, %c0_7] : memref<16x64xbf16, #tpu.memory_space<vmem>>, vector<16x64xbf16>
    %cst_8 = arith.constant dense<0.000000e+00> : vector<2x64xf32>
    %10 = tpu.matmul %8, %9, %cst_8 {dimension_numbers = #tpu.dot_dimension_numbers<[1], [0], [0], [1], [0, 0, 1, 1], [], []>} : vector<2x16xbf16>, vector<16x64xbf16>, vector<2x64xf32> -> vector<2x64xf32>
    %c0_9 = arith.constant 0 : index
    %c0_10 = arith.constant 0 : index
    %11 = vector.load %arg5[%c0_9, %c0_10] : memref<1x64xf32, #tpu.memory_space<vmem>>, vector<1x64xf32>
    %12 = vector.broadcast %11 : vector<1x64xf32> to vector<2x64xf32>
    %13 = arith.addf %10, %12 : vector<2x64xf32>
    %cst_11 = arith.constant 0.000000e+00 : f32
    %14 = vector.broadcast %cst_11 : f32 to vector<2x64xf32>
    %15 = arith.subf %14, %13 : vector<2x64xf32>
    %16 = math.exp %15 : vector<2x64xf32>
    %cst_12 = arith.constant 1.000000e+00 : f32
    %17 = vector.broadcast %cst_12 : f32 to vector<2x64xf32>
    %18 = arith.addf %17, %16 : vector<2x64xf32>
    %cst_13 = arith.constant 1.000000e+00 : f32
    %19 = vector.broadcast %cst_13 : f32 to vector<2x64xf32>
    %20 = arith.divf %19, %18 : vector<2x64xf32>
    %c0_14 = arith.constant 0 : index
    %c0_15 = arith.constant 0 : index
    %21 = vector.load %arg6[%c0_14, %c0_15] : memref<2x64xf32, #tpu.memory_space<vmem>>, vector<2x64xf32>
    tpu.vector_store %arg6[%c0_14, %c0_15], %20 {strides = array<i32>} : memref<2x64xf32, #tpu.memory_space<vmem>>, vector<2x64xf32>,
    return
  }
  func.func @transform_0(%arg0: i32) -> (i32, i32) {
    %c0_i32 = arith.constant 0 : i32
    %c0_i32_0 = arith.constant 0 : i32
    %c0_i32_1 = arith.constant 0 : i32
    return %c0_i32, %c0_i32_0 : i32, i32
  }
  func.func @transform_1(%arg0: i32) -> (i32, i32) {
    %c0_i32 = arith.constant 0 : i32
    %c0_i32_0 = arith.constant 0 : i32
    %c0_i32_1 = arith.constant 0 : i32
    return %c0_i32, %c0_i32_0 : i32, i32
  }
  func.func @transform_2(%arg0: i32) -> (i32, i32) {
    %c0_i32 = arith.constant 0 : i32
    %c0_i32_0 = arith.constant 0 : i32
    %c0_i32_1 = arith.constant 0 : i32
    return %c0_i32, %c0_i32_0 : i32, i32
  }
  func.func @transform_3(%arg0: i32) -> (i32, i32) {
    %c0_i32 = arith.constant 0 : i32
    %c0_i32_0 = arith.constant 0 : i32
    %c0_i32_1 = arith.constant 0 : i32
    return %c0_i32, %c0_i32_0 : i32, i32
  }
  func.func @transform_4(%arg0: i32) -> (i32, i32) {
    %c0_i32 = arith.constant 0 : i32
    %c0_i32_0 = arith.constant 0 : i32
    %c0_i32_1 = arith.constant 0 : i32
    return %c0_i32, %c0_i32_0 : i32, i32
  }
  func.func @transform_5(%arg0: i32) -> (i32, i32) {
    %c0_i32 = arith.constant 0 : i32
    %c0_i32_0 = arith.constant 0 : i32
    %c0_i32_1 = arith.constant 0 : i32
    return %c0_i32, %c0_i32_0 : i32, i32
  }
}

module attributes {stable_mosaic.version = 11 : i64} {
  func.func @_matmul_bn_kernel(%arg0: i32, %arg1: i32, %arg2: i32, %arg3: memref<128x128xbf16, #tpu.memory_space<vmem>>, %arg4: memref<128x128xbf16, #tpu.memory_space<vmem>>, %arg5: memref<1x128xf32, #tpu.memory_space<vmem>>, %arg6: memref<1x128xf32, #tpu.memory_space<vmem>>, %arg7: memref<128x128xbf16, #tpu.memory_space<vmem>>, %arg8: memref<128x128xf32, #tpu.memory_space<vmem>>) attributes {dimension_semantics = [#tpu.dimension_semantics<parallel>, #tpu.dimension_semantics<parallel>, #tpu.dimension_semantics<arbitrary>], iteration_bounds = array<i64: 1, 1, 3>, scalar_prefetch = 0 : i64, scratch_operands = 1 : i64, tpu.core_type = #tpu.core_type<tc>, window_params = [{transform_indices = @transform_0, window_bounds = array<i64: 128, 128>}, {transform_indices = @transform_1, window_bounds = array<i64: 128, 128>}, {transform_indices = @transform_2, window_bounds = array<i64: 1, 128>}, {transform_indices = @transform_3, window_bounds = array<i64: 1, 128>}, {transform_indices = @transform_4, window_bounds = array<i64: 128, 128>}]} {
    %c0_i32 = arith.constant 0 : i32
    %0 = arith.cmpi eq, %arg2, %c0_i32 : i32
    %1 = arith.extui %0 : i1 to i32
    %c0_i32_0 = arith.constant 0 : i32
    %2 = arith.cmpi ne, %1, %c0_i32_0 : i32
    scf.if %2 {
      %cst_9 = arith.constant 0.000000e+00 : f32
      %12 = vector.broadcast %cst_9 : f32 to vector<128x128xf32>
      %c0_10 = arith.constant 0 : index
      %c0_11 = arith.constant 0 : index
      %13 = vector.load %arg8[%c0_10, %c0_11] : memref<128x128xf32, #tpu.memory_space<vmem>>, vector<128x128xf32>
      tpu.vector_store %arg8[%c0_10, %c0_11], %12 {strides = array<i32>} : memref<128x128xf32, #tpu.memory_space<vmem>>, vector<128x128xf32>,
    } else {
    }
    %c0 = arith.constant 0 : index
    %c0_1 = arith.constant 0 : index
    %3 = vector.load %arg8[%c0, %c0_1] : memref<128x128xf32, #tpu.memory_space<vmem>>, vector<128x128xf32>
    %c0_2 = arith.constant 0 : index
    %c0_3 = arith.constant 0 : index
    %4 = vector.load %arg3[%c0_2, %c0_3] : memref<128x128xbf16, #tpu.memory_space<vmem>>, vector<128x128xbf16>
    %c0_4 = arith.constant 0 : index
    %c0_5 = arith.constant 0 : index
    %5 = vector.load %arg4[%c0_4, %c0_5] : memref<128x128xbf16, #tpu.memory_space<vmem>>, vector<128x128xbf16>
    %cst = arith.constant dense<0.000000e+00> : vector<128x128xf32>
    %6 = tpu.matmul %4, %5, %cst {dimension_numbers = #tpu.dot_dimension_numbers<[1], [0], [0], [1], [0, 0, 1, 1], [], []>} : vector<128x128xbf16>, vector<128x128xbf16>, vector<128x128xf32> -> vector<128x128xf32>
    %7 = arith.addf %3, %6 : vector<128x128xf32>
    %c0_6 = arith.constant 0 : index
    %c0_7 = arith.constant 0 : index
    %8 = vector.load %arg8[%c0_6, %c0_7] : memref<128x128xf32, #tpu.memory_space<vmem>>, vector<128x128xf32>
    tpu.vector_store %arg8[%c0_6, %c0_7], %7 {strides = array<i32>} : memref<128x128xf32, #tpu.memory_space<vmem>>, vector<128x128xf32>,
    %c2_i32 = arith.constant 2 : i32
    %9 = arith.cmpi eq, %arg2, %c2_i32 : i32
    %10 = arith.extui %9 : i1 to i32
    %c0_i32_8 = arith.constant 0 : i32
    %11 = arith.cmpi ne, %10, %c0_i32_8 : i32
    scf.if %11 {
      %c0_9 = arith.constant 0 : index
      %c0_10 = arith.constant 0 : index
      %12 = vector.load %arg8[%c0_9, %c0_10] : memref<128x128xf32, #tpu.memory_space<vmem>>, vector<128x128xf32>
      %c0_11 = arith.constant 0 : index
      %c0_12 = arith.constant 0 : index
      %13 = vector.load %arg5[%c0_11, %c0_12] : memref<1x128xf32, #tpu.memory_space<vmem>>, vector<1x128xf32>
      %14 = vector.broadcast %13 : vector<1x128xf32> to vector<128x128xf32>
      %15 = arith.mulf %12, %14 : vector<128x128xf32>
      %c0_13 = arith.constant 0 : index
      %c0_14 = arith.constant 0 : index
      %16 = vector.load %arg6[%c0_13, %c0_14] : memref<1x128xf32, #tpu.memory_space<vmem>>, vector<1x128xf32>
      %17 = vector.broadcast %16 : vector<1x128xf32> to vector<128x128xf32>
      %18 = arith.addf %15, %17 : vector<128x128xf32>
      %cst_15 = arith.constant 0.000000e+00 : f32
      %19 = vector.broadcast %cst_15 : f32 to vector<128x128xf32>
      %20 = arith.maximumf %18, %19 : vector<128x128xf32>
      %21 = arith.truncf %20 : vector<128x128xf32> to vector<128x128xbf16>
      %c0_16 = arith.constant 0 : index
      %c0_17 = arith.constant 0 : index
      %22 = vector.load %arg7[%c0_16, %c0_17] : memref<128x128xbf16, #tpu.memory_space<vmem>>, vector<128x128xbf16>
      tpu.vector_store %arg7[%c0_16, %c0_17], %21 {strides = array<i32>} : memref<128x128xbf16, #tpu.memory_space<vmem>>, vector<128x128xbf16>,
    } else {
    }
    return
  }
  func.func @transform_0(%arg0: i32, %arg1: i32, %arg2: i32) -> (i32, i32) {
    %c0_i32 = arith.constant 0 : i32
    return %arg0, %arg2 : i32, i32
  }
  func.func @transform_1(%arg0: i32, %arg1: i32, %arg2: i32) -> (i32, i32) {
    %c0_i32 = arith.constant 0 : i32
    return %arg2, %arg1 : i32, i32
  }
  func.func @transform_2(%arg0: i32, %arg1: i32, %arg2: i32) -> (i32, i32) {
    %c0_i32 = arith.constant 0 : i32
    %c0_i32_0 = arith.constant 0 : i32
    return %c0_i32, %arg1 : i32, i32
  }
  func.func @transform_3(%arg0: i32, %arg1: i32, %arg2: i32) -> (i32, i32) {
    %c0_i32 = arith.constant 0 : i32
    %c0_i32_0 = arith.constant 0 : i32
    return %c0_i32, %arg1 : i32, i32
  }
  func.func @transform_4(%arg0: i32, %arg1: i32, %arg2: i32) -> (i32, i32) {
    %c0_i32 = arith.constant 0 : i32
    return %arg0, %arg1 : i32, i32
  }
}

module attributes {stable_mosaic.version = 11 : i64} {
  func.func @_se_apply_kernel(%arg0: i32, %arg1: i32, %arg2: memref<1x64x64xbf16, #tpu.memory_space<vmem>>, %arg3: memref<1x1x64xf32, #tpu.memory_space<vmem>>, %arg4: memref<1x64x64xbf16, #tpu.memory_space<vmem>>, %arg5: memref<1x64x64xbf16, #tpu.memory_space<vmem>>) attributes {dimension_semantics = [#tpu.dimension_semantics<parallel>, #tpu.dimension_semantics<parallel>], iteration_bounds = array<i64: 2, 1>, scalar_prefetch = 0 : i64, scratch_operands = 0 : i64, tpu.core_type = #tpu.core_type<tc>, window_params = [{transform_indices = @transform_0, window_bounds = array<i64: 1, 64, 64>}, {transform_indices = @transform_1, window_bounds = array<i64: 1, 1, 64>}, {transform_indices = @transform_2, window_bounds = array<i64: 1, 64, 64>}, {transform_indices = @transform_3, window_bounds = array<i64: 1, 64, 64>}]} {
    %c0 = arith.constant 0 : index
    %c0_0 = arith.constant 0 : index
    %c0_1 = arith.constant 0 : index
    %0 = vector.load %arg2[%c0, %c0_0, %c0_1] : memref<1x64x64xbf16, #tpu.memory_space<vmem>>, vector<1x64x64xbf16>
    %1 = arith.extf %0 : vector<1x64x64xbf16> to vector<1x64x64xf32>
    %c0_2 = arith.constant 0 : index
    %c0_3 = arith.constant 0 : index
    %c0_4 = arith.constant 0 : index
    %2 = vector.load %arg4[%c0_2, %c0_3, %c0_4] : memref<1x64x64xbf16, #tpu.memory_space<vmem>>, vector<1x64x64xbf16>
    %3 = arith.extf %2 : vector<1x64x64xbf16> to vector<1x64x64xf32>
    %c0_5 = arith.constant 0 : index
    %c0_6 = arith.constant 0 : index
    %c0_7 = arith.constant 0 : index
    %4 = vector.load %arg3[%c0_5, %c0_6, %c0_7] : memref<1x1x64xf32, #tpu.memory_space<vmem>>, vector<1x1x64xf32>
    %5 = vector.broadcast %4 : vector<1x1x64xf32> to vector<1x64x64xf32>
    %6 = arith.mulf %1, %5 : vector<1x64x64xf32>
    %7 = arith.addf %6, %3 : vector<1x64x64xf32>
    %cst = arith.constant 0.000000e+00 : f32
    %8 = vector.broadcast %cst : f32 to vector<1x64x64xf32>
    %9 = arith.maximumf %7, %8 : vector<1x64x64xf32>
    %10 = arith.truncf %9 : vector<1x64x64xf32> to vector<1x64x64xbf16>
    %c0_8 = arith.constant 0 : index
    %c0_9 = arith.constant 0 : index
    %c0_10 = arith.constant 0 : index
    %11 = vector.load %arg5[%c0_8, %c0_9, %c0_10] : memref<1x64x64xbf16, #tpu.memory_space<vmem>>, vector<1x64x64xbf16>
    tpu.vector_store %arg5[%c0_8, %c0_9, %c0_10], %10 {strides = array<i32>} : memref<1x64x64xbf16, #tpu.memory_space<vmem>>, vector<1x64x64xbf16>,
    return
  }
  func.func @transform_0(%arg0: i32, %arg1: i32) -> (i32, i32, i32) {
    %c0_i32 = arith.constant 0 : i32
    %c0_i32_0 = arith.constant 0 : i32
    return %arg0, %arg1, %c0_i32 : i32, i32, i32
  }
  func.func @transform_1(%arg0: i32, %arg1: i32) -> (i32, i32, i32) {
    %c0_i32 = arith.constant 0 : i32
    %c0_i32_0 = arith.constant 0 : i32
    %c0_i32_1 = arith.constant 0 : i32
    return %arg0, %c0_i32, %c0_i32_0 : i32, i32, i32
  }
  func.func @transform_2(%arg0: i32, %arg1: i32) -> (i32, i32, i32) {
    %c0_i32 = arith.constant 0 : i32
    %c0_i32_0 = arith.constant 0 : i32
    return %arg0, %arg1, %c0_i32 : i32, i32, i32
  }
  func.func @transform_3(%arg0: i32, %arg1: i32) -> (i32, i32, i32) {
    %c0_i32 = arith.constant 0 : i32
    %c0_i32_0 = arith.constant 0 : i32
    return %arg0, %arg1, %c0_i32 : i32, i32, i32
  }
}

module attributes {stable_mosaic.version = 11 : i64} {
  func.func @_matmul_bn_kernel(%arg0: i32, %arg1: i32, %arg2: i32, %arg3: memref<32x128xbf16, #tpu.memory_space<vmem>>, %arg4: memref<128x128xbf16, #tpu.memory_space<vmem>>, %arg5: memref<1x128xf32, #tpu.memory_space<vmem>>, %arg6: memref<1x128xf32, #tpu.memory_space<vmem>>, %arg7: memref<32x128xbf16, #tpu.memory_space<vmem>>, %arg8: memref<32x128xf32, #tpu.memory_space<vmem>>) attributes {dimension_semantics = [#tpu.dimension_semantics<parallel>, #tpu.dimension_semantics<parallel>, #tpu.dimension_semantics<arbitrary>], iteration_bounds = array<i64: 1, 1, 1>, scalar_prefetch = 0 : i64, scratch_operands = 1 : i64, tpu.core_type = #tpu.core_type<tc>, window_params = [{transform_indices = @transform_0, window_bounds = array<i64: 32, 128>}, {transform_indices = @transform_1, window_bounds = array<i64: 128, 128>}, {transform_indices = @transform_2, window_bounds = array<i64: 1, 128>}, {transform_indices = @transform_3, window_bounds = array<i64: 1, 128>}, {transform_indices = @transform_4, window_bounds = array<i64: 32, 128>}]} {
    %c0_i32 = arith.constant 0 : i32
    %0 = arith.cmpi eq, %arg2, %c0_i32 : i32
    %1 = arith.extui %0 : i1 to i32
    %c0_i32_0 = arith.constant 0 : i32
    %2 = arith.cmpi ne, %1, %c0_i32_0 : i32
    scf.if %2 {
      %cst_10 = arith.constant 0.000000e+00 : f32
      %12 = vector.broadcast %cst_10 : f32 to vector<32x128xf32>
      %c0_11 = arith.constant 0 : index
      %c0_12 = arith.constant 0 : index
      %13 = vector.load %arg8[%c0_11, %c0_12] : memref<32x128xf32, #tpu.memory_space<vmem>>, vector<32x128xf32>
      tpu.vector_store %arg8[%c0_11, %c0_12], %12 {strides = array<i32>} : memref<32x128xf32, #tpu.memory_space<vmem>>, vector<32x128xf32>,
    } else {
    }
    %c0 = arith.constant 0 : index
    %c0_1 = arith.constant 0 : index
    %3 = vector.load %arg8[%c0, %c0_1] : memref<32x128xf32, #tpu.memory_space<vmem>>, vector<32x128xf32>
    %c0_2 = arith.constant 0 : index
    %c0_3 = arith.constant 0 : index
    %4 = vector.load %arg3[%c0_2, %c0_3] : memref<32x128xbf16, #tpu.memory_space<vmem>>, vector<32x128xbf16>
    %c0_4 = arith.constant 0 : index
    %c0_5 = arith.constant 0 : index
    %5 = vector.load %arg4[%c0_4, %c0_5] : memref<128x128xbf16, #tpu.memory_space<vmem>>, vector<128x128xbf16>
    %cst = arith.constant dense<0.000000e+00> : vector<32x128xf32>
    %6 = tpu.matmul %4, %5, %cst {dimension_numbers = #tpu.dot_dimension_numbers<[1], [0], [0], [1], [0, 0, 1, 1], [], []>} : vector<32x128xbf16>, vector<128x128xbf16>, vector<32x128xf32> -> vector<32x128xf32>
    %7 = arith.addf %3, %6 : vector<32x128xf32>
    %c0_6 = arith.constant 0 : index
    %c0_7 = arith.constant 0 : index
    %8 = vector.load %arg8[%c0_6, %c0_7] : memref<32x128xf32, #tpu.memory_space<vmem>>, vector<32x128xf32>
    tpu.vector_store %arg8[%c0_6, %c0_7], %7 {strides = array<i32>} : memref<32x128xf32, #tpu.memory_space<vmem>>, vector<32x128xf32>,
    %c0_i32_8 = arith.constant 0 : i32
    %9 = arith.cmpi eq, %arg2, %c0_i32_8 : i32
    %10 = arith.extui %9 : i1 to i32
    %c0_i32_9 = arith.constant 0 : i32
    %11 = arith.cmpi ne, %10, %c0_i32_9 : i32
    scf.if %11 {
      %c0_10 = arith.constant 0 : index
      %c0_11 = arith.constant 0 : index
      %12 = vector.load %arg8[%c0_10, %c0_11] : memref<32x128xf32, #tpu.memory_space<vmem>>, vector<32x128xf32>
      %c0_12 = arith.constant 0 : index
      %c0_13 = arith.constant 0 : index
      %13 = vector.load %arg5[%c0_12, %c0_13] : memref<1x128xf32, #tpu.memory_space<vmem>>, vector<1x128xf32>
      %14 = vector.broadcast %13 : vector<1x128xf32> to vector<32x128xf32>
      %15 = arith.mulf %12, %14 : vector<32x128xf32>
      %c0_14 = arith.constant 0 : index
      %c0_15 = arith.constant 0 : index
      %16 = vector.load %arg6[%c0_14, %c0_15] : memref<1x128xf32, #tpu.memory_space<vmem>>, vector<1x128xf32>
      %17 = vector.broadcast %16 : vector<1x128xf32> to vector<32x128xf32>
      %18 = arith.addf %15, %17 : vector<32x128xf32>
      %19 = arith.truncf %18 : vector<32x128xf32> to vector<32x128xbf16>
      %c0_16 = arith.constant 0 : index
      %c0_17 = arith.constant 0 : index
      %20 = vector.load %arg7[%c0_16, %c0_17] : memref<32x128xbf16, #tpu.memory_space<vmem>>, vector<32x128xbf16>
      tpu.vector_store %arg7[%c0_16, %c0_17], %19 {strides = array<i32>} : memref<32x128xbf16, #tpu.memory_space<vmem>>, vector<32x128xbf16>,
    } else {
    }
    return
  }
  func.func @transform_0(%arg0: i32, %arg1: i32, %arg2: i32) -> (i32, i32) {
    %c0_i32 = arith.constant 0 : i32
    return %arg0, %arg2 : i32, i32
  }
  func.func @transform_1(%arg0: i32, %arg1: i32, %arg2: i32) -> (i32, i32) {
    %c0_i32 = arith.constant 0 : i32
    return %arg2, %arg1 : i32, i32
  }
  func.func @transform_2(%arg0: i32, %arg1: i32, %arg2: i32) -> (i32, i32) {
    %c0_i32 = arith.constant 0 : i32
    %c0_i32_0 = arith.constant 0 : i32
    return %c0_i32, %arg1 : i32, i32
  }
  func.func @transform_3(%arg0: i32, %arg1: i32, %arg2: i32) -> (i32, i32) {
    %c0_i32 = arith.constant 0 : i32
    %c0_i32_0 = arith.constant 0 : i32
    return %c0_i32, %arg1 : i32, i32
  }
  func.func @transform_4(%arg0: i32, %arg1: i32, %arg2: i32) -> (i32, i32) {
    %c0_i32 = arith.constant 0 : i32
    return %arg0, %arg1 : i32, i32
  }
}

module attributes {stable_mosaic.version = 11 : i64} {
  func.func @_matmul_bn_kernel(%arg0: i32, %arg1: i32, %arg2: i32, %arg3: memref<128x128xbf16, #tpu.memory_space<vmem>>, %arg4: memref<128x128xbf16, #tpu.memory_space<vmem>>, %arg5: memref<1x128xf32, #tpu.memory_space<vmem>>, %arg6: memref<1x128xf32, #tpu.memory_space<vmem>>, %arg7: memref<128x128xbf16, #tpu.memory_space<vmem>>, %arg8: memref<128x128xf32, #tpu.memory_space<vmem>>) attributes {dimension_semantics = [#tpu.dimension_semantics<parallel>, #tpu.dimension_semantics<parallel>, #tpu.dimension_semantics<arbitrary>], iteration_bounds = array<i64: 1, 1, 1>, scalar_prefetch = 0 : i64, scratch_operands = 1 : i64, tpu.core_type = #tpu.core_type<tc>, window_params = [{transform_indices = @transform_0, window_bounds = array<i64: 128, 128>}, {transform_indices = @transform_1, window_bounds = array<i64: 128, 128>}, {transform_indices = @transform_2, window_bounds = array<i64: 1, 128>}, {transform_indices = @transform_3, window_bounds = array<i64: 1, 128>}, {transform_indices = @transform_4, window_bounds = array<i64: 128, 128>}]} {
    %c0_i32 = arith.constant 0 : i32
    %0 = arith.cmpi eq, %arg2, %c0_i32 : i32
    %1 = arith.extui %0 : i1 to i32
    %c0_i32_0 = arith.constant 0 : i32
    %2 = arith.cmpi ne, %1, %c0_i32_0 : i32
    scf.if %2 {
      %cst_10 = arith.constant 0.000000e+00 : f32
      %12 = vector.broadcast %cst_10 : f32 to vector<128x128xf32>
      %c0_11 = arith.constant 0 : index
      %c0_12 = arith.constant 0 : index
      %13 = vector.load %arg8[%c0_11, %c0_12] : memref<128x128xf32, #tpu.memory_space<vmem>>, vector<128x128xf32>
      tpu.vector_store %arg8[%c0_11, %c0_12], %12 {strides = array<i32>} : memref<128x128xf32, #tpu.memory_space<vmem>>, vector<128x128xf32>,
    } else {
    }
    %c0 = arith.constant 0 : index
    %c0_1 = arith.constant 0 : index
    %3 = vector.load %arg8[%c0, %c0_1] : memref<128x128xf32, #tpu.memory_space<vmem>>, vector<128x128xf32>
    %c0_2 = arith.constant 0 : index
    %c0_3 = arith.constant 0 : index
    %4 = vector.load %arg3[%c0_2, %c0_3] : memref<128x128xbf16, #tpu.memory_space<vmem>>, vector<128x128xbf16>
    %c0_4 = arith.constant 0 : index
    %c0_5 = arith.constant 0 : index
    %5 = vector.load %arg4[%c0_4, %c0_5] : memref<128x128xbf16, #tpu.memory_space<vmem>>, vector<128x128xbf16>
    %cst = arith.constant dense<0.000000e+00> : vector<128x128xf32>
    %6 = tpu.matmul %4, %5, %cst {dimension_numbers = #tpu.dot_dimension_numbers<[1], [0], [0], [1], [0, 0, 1, 1], [], []>} : vector<128x128xbf16>, vector<128x128xbf16>, vector<128x128xf32> -> vector<128x128xf32>
    %7 = arith.addf %3, %6 : vector<128x128xf32>
    %c0_6 = arith.constant 0 : index
    %c0_7 = arith.constant 0 : index
    %8 = vector.load %arg8[%c0_6, %c0_7] : memref<128x128xf32, #tpu.memory_space<vmem>>, vector<128x128xf32>
    tpu.vector_store %arg8[%c0_6, %c0_7], %7 {strides = array<i32>} : memref<128x128xf32, #tpu.memory_space<vmem>>, vector<128x128xf32>,
    %c0_i32_8 = arith.constant 0 : i32
    %9 = arith.cmpi eq, %arg2, %c0_i32_8 : i32
    %10 = arith.extui %9 : i1 to i32
    %c0_i32_9 = arith.constant 0 : i32
    %11 = arith.cmpi ne, %10, %c0_i32_9 : i32
    scf.if %11 {
      %c0_10 = arith.constant 0 : index
      %c0_11 = arith.constant 0 : index
      %12 = vector.load %arg8[%c0_10, %c0_11] : memref<128x128xf32, #tpu.memory_space<vmem>>, vector<128x128xf32>
      %c0_12 = arith.constant 0 : index
      %c0_13 = arith.constant 0 : index
      %13 = vector.load %arg5[%c0_12, %c0_13] : memref<1x128xf32, #tpu.memory_space<vmem>>, vector<1x128xf32>
      %14 = vector.broadcast %13 : vector<1x128xf32> to vector<128x128xf32>
      %15 = arith.mulf %12, %14 : vector<128x128xf32>
      %c0_14 = arith.constant 0 : index
      %c0_15 = arith.constant 0 : index
      %16 = vector.load %arg6[%c0_14, %c0_15] : memref<1x128xf32, #tpu.memory_space<vmem>>, vector<1x128xf32>
      %17 = vector.broadcast %16 : vector<1x128xf32> to vector<128x128xf32>
      %18 = arith.addf %15, %17 : vector<128x128xf32>
      %cst_16 = arith.constant 0.000000e+00 : f32
      %19 = vector.broadcast %cst_16 : f32 to vector<128x128xf32>
      %20 = arith.maximumf %18, %19 : vector<128x128xf32>
      %21 = arith.truncf %20 : vector<128x128xf32> to vector<128x128xbf16>
      %c0_17 = arith.constant 0 : index
      %c0_18 = arith.constant 0 : index
      %22 = vector.load %arg7[%c0_17, %c0_18] : memref<128x128xbf16, #tpu.memory_space<vmem>>, vector<128x128xbf16>
      tpu.vector_store %arg7[%c0_17, %c0_18], %21 {strides = array<i32>} : memref<128x128xbf16, #tpu.memory_space<vmem>>, vector<128x128xbf16>,
    } else {
    }
    return
  }
  func.func @transform_0(%arg0: i32, %arg1: i32, %arg2: i32) -> (i32, i32) {
    %c0_i32 = arith.constant 0 : i32
    return %arg0, %arg2 : i32, i32
  }
  func.func @transform_1(%arg0: i32, %arg1: i32, %arg2: i32) -> (i32, i32) {
    %c0_i32 = arith.constant 0 : i32
    return %arg2, %arg1 : i32, i32
  }
  func.func @transform_2(%arg0: i32, %arg1: i32, %arg2: i32) -> (i32, i32) {
    %c0_i32 = arith.constant 0 : i32
    %c0_i32_0 = arith.constant 0 : i32
    return %c0_i32, %arg1 : i32, i32
  }
  func.func @transform_3(%arg0: i32, %arg1: i32, %arg2: i32) -> (i32, i32) {
    %c0_i32 = arith.constant 0 : i32
    %c0_i32_0 = arith.constant 0 : i32
    return %c0_i32, %arg1 : i32, i32
  }
  func.func @transform_4(%arg0: i32, %arg1: i32, %arg2: i32) -> (i32, i32) {
    %c0_i32 = arith.constant 0 : i32
    return %arg0, %arg1 : i32, i32
  }
}

module attributes {stable_mosaic.version = 11 : i64} {
  func.func @_matmul_bn_kernel(%arg0: i32, %arg1: i32, %arg2: i32, %arg3: memref<32x128xbf16, #tpu.memory_space<vmem>>, %arg4: memref<128x128xbf16, #tpu.memory_space<vmem>>, %arg5: memref<1x128xf32, #tpu.memory_space<vmem>>, %arg6: memref<1x128xf32, #tpu.memory_space<vmem>>, %arg7: memref<32x128xbf16, #tpu.memory_space<vmem>>, %arg8: memref<32x128xf32, #tpu.memory_space<vmem>>) attributes {dimension_semantics = [#tpu.dimension_semantics<parallel>, #tpu.dimension_semantics<parallel>, #tpu.dimension_semantics<arbitrary>], iteration_bounds = array<i64: 1, 1, 5>, scalar_prefetch = 0 : i64, scratch_operands = 1 : i64, tpu.core_type = #tpu.core_type<tc>, window_params = [{transform_indices = @transform_0, window_bounds = array<i64: 32, 128>}, {transform_indices = @transform_1, window_bounds = array<i64: 128, 128>}, {transform_indices = @transform_2, window_bounds = array<i64: 1, 128>}, {transform_indices = @transform_3, window_bounds = array<i64: 1, 128>}, {transform_indices = @transform_4, window_bounds = array<i64: 32, 128>}]} {
    %c0_i32 = arith.constant 0 : i32
    %0 = arith.cmpi eq, %arg2, %c0_i32 : i32
    %1 = arith.extui %0 : i1 to i32
    %c0_i32_0 = arith.constant 0 : i32
    %2 = arith.cmpi ne, %1, %c0_i32_0 : i32
    scf.if %2 {
      %cst_9 = arith.constant 0.000000e+00 : f32
      %12 = vector.broadcast %cst_9 : f32 to vector<32x128xf32>
      %c0_10 = arith.constant 0 : index
      %c0_11 = arith.constant 0 : index
      %13 = vector.load %arg8[%c0_10, %c0_11] : memref<32x128xf32, #tpu.memory_space<vmem>>, vector<32x128xf32>
      tpu.vector_store %arg8[%c0_10, %c0_11], %12 {strides = array<i32>} : memref<32x128xf32, #tpu.memory_space<vmem>>, vector<32x128xf32>,
    } else {
    }
    %c0 = arith.constant 0 : index
    %c0_1 = arith.constant 0 : index
    %3 = vector.load %arg8[%c0, %c0_1] : memref<32x128xf32, #tpu.memory_space<vmem>>, vector<32x128xf32>
    %c0_2 = arith.constant 0 : index
    %c0_3 = arith.constant 0 : index
    %4 = vector.load %arg3[%c0_2, %c0_3] : memref<32x128xbf16, #tpu.memory_space<vmem>>, vector<32x128xbf16>
    %c0_4 = arith.constant 0 : index
    %c0_5 = arith.constant 0 : index
    %5 = vector.load %arg4[%c0_4, %c0_5] : memref<128x128xbf16, #tpu.memory_space<vmem>>, vector<128x128xbf16>
    %cst = arith.constant dense<0.000000e+00> : vector<32x128xf32>
    %6 = tpu.matmul %4, %5, %cst {dimension_numbers = #tpu.dot_dimension_numbers<[1], [0], [0], [1], [0, 0, 1, 1], [], []>} : vector<32x128xbf16>, vector<128x128xbf16>, vector<32x128xf32> -> vector<32x128xf32>
    %7 = arith.addf %3, %6 : vector<32x128xf32>
    %c0_6 = arith.constant 0 : index
    %c0_7 = arith.constant 0 : index
    %8 = vector.load %arg8[%c0_6, %c0_7] : memref<32x128xf32, #tpu.memory_space<vmem>>, vector<32x128xf32>
    tpu.vector_store %arg8[%c0_6, %c0_7], %7 {strides = array<i32>} : memref<32x128xf32, #tpu.memory_space<vmem>>, vector<32x128xf32>,
    %c4_i32 = arith.constant 4 : i32
    %9 = arith.cmpi eq, %arg2, %c4_i32 : i32
    %10 = arith.extui %9 : i1 to i32
    %c0_i32_8 = arith.constant 0 : i32
    %11 = arith.cmpi ne, %10, %c0_i32_8 : i32
    scf.if %11 {
      %c0_9 = arith.constant 0 : index
      %c0_10 = arith.constant 0 : index
      %12 = vector.load %arg8[%c0_9, %c0_10] : memref<32x128xf32, #tpu.memory_space<vmem>>, vector<32x128xf32>
      %c0_11 = arith.constant 0 : index
      %c0_12 = arith.constant 0 : index
      %13 = vector.load %arg5[%c0_11, %c0_12] : memref<1x128xf32, #tpu.memory_space<vmem>>, vector<1x128xf32>
      %14 = vector.broadcast %13 : vector<1x128xf32> to vector<32x128xf32>
      %15 = arith.mulf %12, %14 : vector<32x128xf32>
      %c0_13 = arith.constant 0 : index
      %c0_14 = arith.constant 0 : index
      %16 = vector.load %arg6[%c0_13, %c0_14] : memref<1x128xf32, #tpu.memory_space<vmem>>, vector<1x128xf32>
      %17 = vector.broadcast %16 : vector<1x128xf32> to vector<32x128xf32>
      %18 = arith.addf %15, %17 : vector<32x128xf32>
      %cst_15 = arith.constant 0.000000e+00 : f32
      %19 = vector.broadcast %cst_15 : f32 to vector<32x128xf32>
      %20 = arith.maximumf %18, %19 : vector<32x128xf32>
      %21 = arith.truncf %20 : vector<32x128xf32> to vector<32x128xbf16>
      %c0_16 = arith.constant 0 : index
      %c0_17 = arith.constant 0 : index
      %22 = vector.load %arg7[%c0_16, %c0_17] : memref<32x128xbf16, #tpu.memory_space<vmem>>, vector<32x128xbf16>
      tpu.vector_store %arg7[%c0_16, %c0_17], %21 {strides = array<i32>} : memref<32x128xbf16, #tpu.memory_space<vmem>>, vector<32x128xbf16>,
    } else {
    }
    return
  }
  func.func @transform_0(%arg0: i32, %arg1: i32, %arg2: i32) -> (i32, i32) {
    %c0_i32 = arith.constant 0 : i32
    return %arg0, %arg2 : i32, i32
  }
  func.func @transform_1(%arg0: i32, %arg1: i32, %arg2: i32) -> (i32, i32) {
    %c0_i32 = arith.constant 0 : i32
    return %arg2, %arg1 : i32, i32
  }
  func.func @transform_2(%arg0: i32, %arg1: i32, %arg2: i32) -> (i32, i32) {
    %c0_i32 = arith.constant 0 : i32
    %c0_i32_0 = arith.constant 0 : i32
    return %c0_i32, %arg1 : i32, i32
  }
  func.func @transform_3(%arg0: i32, %arg1: i32, %arg2: i32) -> (i32, i32) {
    %c0_i32 = arith.constant 0 : i32
    %c0_i32_0 = arith.constant 0 : i32
    return %c0_i32, %arg1 : i32, i32
  }
  func.func @transform_4(%arg0: i32, %arg1: i32, %arg2: i32) -> (i32, i32) {
    %c0_i32 = arith.constant 0 : i32
    return %arg0, %arg1 : i32, i32
  }
}

module attributes {stable_mosaic.version = 11 : i64} {
  func.func @_se_apply_kernel(%arg0: i32, %arg1: i32, %arg2: memref<1x16x128xbf16, #tpu.memory_space<vmem>>, %arg3: memref<1x1x128xf32, #tpu.memory_space<vmem>>, %arg4: memref<1x16x128xbf16, #tpu.memory_space<vmem>>, %arg5: memref<1x16x128xbf16, #tpu.memory_space<vmem>>) attributes {dimension_semantics = [#tpu.dimension_semantics<parallel>, #tpu.dimension_semantics<parallel>], iteration_bounds = array<i64: 2, 1>, scalar_prefetch = 0 : i64, scratch_operands = 0 : i64, tpu.core_type = #tpu.core_type<tc>, window_params = [{transform_indices = @transform_0, window_bounds = array<i64: 1, 16, 128>}, {transform_indices = @transform_1, window_bounds = array<i64: 1, 1, 128>}, {transform_indices = @transform_2, window_bounds = array<i64: 1, 16, 128>}, {transform_indices = @transform_3, window_bounds = array<i64: 1, 16, 128>}]} {
    %c0 = arith.constant 0 : index
    %c0_0 = arith.constant 0 : index
    %c0_1 = arith.constant 0 : index
    %0 = vector.load %arg2[%c0, %c0_0, %c0_1] : memref<1x16x128xbf16, #tpu.memory_space<vmem>>, vector<1x16x128xbf16>
    %1 = arith.extf %0 : vector<1x16x128xbf16> to vector<1x16x128xf32>
    %c0_2 = arith.constant 0 : index
    %c0_3 = arith.constant 0 : index
    %c0_4 = arith.constant 0 : index
    %2 = vector.load %arg4[%c0_2, %c0_3, %c0_4] : memref<1x16x128xbf16, #tpu.memory_space<vmem>>, vector<1x16x128xbf16>
    %3 = arith.extf %2 : vector<1x16x128xbf16> to vector<1x16x128xf32>
    %c0_5 = arith.constant 0 : index
    %c0_6 = arith.constant 0 : index
    %c0_7 = arith.constant 0 : index
    %4 = vector.load %arg3[%c0_5, %c0_6, %c0_7] : memref<1x1x128xf32, #tpu.memory_space<vmem>>, vector<1x1x128xf32>
    %5 = vector.broadcast %4 : vector<1x1x128xf32> to vector<1x16x128xf32>
    %6 = arith.mulf %1, %5 : vector<1x16x128xf32>
    %7 = arith.addf %6, %3 : vector<1x16x128xf32>
    %cst = arith.constant 0.000000e+00 : f32
    %8 = vector.broadcast %cst : f32 to vector<1x16x128xf32>
    %9 = arith.maximumf %7, %8 : vector<1x16x128xf32>
    %10 = arith.truncf %9 : vector<1x16x128xf32> to vector<1x16x128xbf16>
    %c0_8 = arith.constant 0 : index
    %c0_9 = arith.constant 0 : index
    %c0_10 = arith.constant 0 : index
    %11 = vector.load %arg5[%c0_8, %c0_9, %c0_10] : memref<1x16x128xbf16, #tpu.memory_space<vmem>>, vector<1x16x128xbf16>
    tpu.vector_store %arg5[%c0_8, %c0_9, %c0_10], %10 {strides = array<i32>} : memref<1x16x128xbf16, #tpu.memory_space<vmem>>, vector<1x16x128xbf16>,
    return
  }
  func.func @transform_0(%arg0: i32, %arg1: i32) -> (i32, i32, i32) {
    %c0_i32 = arith.constant 0 : i32
    %c0_i32_0 = arith.constant 0 : i32
    return %arg0, %arg1, %c0_i32 : i32, i32, i32
  }
  func.func @transform_1(%arg0: i32, %arg1: i32) -> (i32, i32, i32) {
    %c0_i32 = arith.constant 0 : i32
    %c0_i32_0 = arith.constant 0 : i32
    %c0_i32_1 = arith.constant 0 : i32
    return %arg0, %c0_i32, %c0_i32_0 : i32, i32, i32
  }
  func.func @transform_2(%arg0: i32, %arg1: i32) -> (i32, i32, i32) {
    %c0_i32 = arith.constant 0 : i32
    %c0_i32_0 = arith.constant 0 : i32
    return %arg0, %arg1, %c0_i32 : i32, i32, i32
  }
  func.func @transform_3(%arg0: i32, %arg1: i32) -> (i32, i32, i32) {
    %c0_i32 = arith.constant 0 : i32
    %c0_i32_0 = arith.constant 0 : i32
    return %arg0, %arg1, %c0_i32 : i32, i32, i32
  }
}

module attributes {stable_mosaic.version = 11 : i64} {
  func.func @_matmul_bn_kernel(%arg0: i32, %arg1: i32, %arg2: i32, %arg3: memref<32x128xbf16, #tpu.memory_space<vmem>>, %arg4: memref<128x128xbf16, #tpu.memory_space<vmem>>, %arg5: memref<1x128xf32, #tpu.memory_space<vmem>>, %arg6: memref<1x128xf32, #tpu.memory_space<vmem>>, %arg7: memref<32x128xbf16, #tpu.memory_space<vmem>>, %arg8: memref<32x128xf32, #tpu.memory_space<vmem>>) attributes {dimension_semantics = [#tpu.dimension_semantics<parallel>, #tpu.dimension_semantics<parallel>, #tpu.dimension_semantics<arbitrary>], iteration_bounds = array<i64: 1, 1, 1>, scalar_prefetch = 0 : i64, scratch_operands = 1 : i64, tpu.core_type = #tpu.core_type<tc>, window_params = [{transform_indices = @transform_0, window_bounds = array<i64: 32, 128>}, {transform_indices = @transform_1, window_bounds = array<i64: 128, 128>}, {transform_indices = @transform_2, window_bounds = array<i64: 1, 128>}, {transform_indices = @transform_3, window_bounds = array<i64: 1, 128>}, {transform_indices = @transform_4, window_bounds = array<i64: 32, 128>}]} {
    %c0_i32 = arith.constant 0 : i32
    %0 = arith.cmpi eq, %arg2, %c0_i32 : i32
    %1 = arith.extui %0 : i1 to i32
    %c0_i32_0 = arith.constant 0 : i32
    %2 = arith.cmpi ne, %1, %c0_i32_0 : i32
    scf.if %2 {
      %cst_10 = arith.constant 0.000000e+00 : f32
      %12 = vector.broadcast %cst_10 : f32 to vector<32x128xf32>
      %c0_11 = arith.constant 0 : index
      %c0_12 = arith.constant 0 : index
      %13 = vector.load %arg8[%c0_11, %c0_12] : memref<32x128xf32, #tpu.memory_space<vmem>>, vector<32x128xf32>
      tpu.vector_store %arg8[%c0_11, %c0_12], %12 {strides = array<i32>} : memref<32x128xf32, #tpu.memory_space<vmem>>, vector<32x128xf32>,
    } else {
    }
    %c0 = arith.constant 0 : index
    %c0_1 = arith.constant 0 : index
    %3 = vector.load %arg8[%c0, %c0_1] : memref<32x128xf32, #tpu.memory_space<vmem>>, vector<32x128xf32>
    %c0_2 = arith.constant 0 : index
    %c0_3 = arith.constant 0 : index
    %4 = vector.load %arg3[%c0_2, %c0_3] : memref<32x128xbf16, #tpu.memory_space<vmem>>, vector<32x128xbf16>
    %c0_4 = arith.constant 0 : index
    %c0_5 = arith.constant 0 : index
    %5 = vector.load %arg4[%c0_4, %c0_5] : memref<128x128xbf16, #tpu.memory_space<vmem>>, vector<128x128xbf16>
    %cst = arith.constant dense<0.000000e+00> : vector<32x128xf32>
    %6 = tpu.matmul %4, %5, %cst {dimension_numbers = #tpu.dot_dimension_numbers<[1], [0], [0], [1], [0, 0, 1, 1], [], []>} : vector<32x128xbf16>, vector<128x128xbf16>, vector<32x128xf32> -> vector<32x128xf32>
    %7 = arith.addf %3, %6 : vector<32x128xf32>
    %c0_6 = arith.constant 0 : index
    %c0_7 = arith.constant 0 : index
    %8 = vector.load %arg8[%c0_6, %c0_7] : memref<32x128xf32, #tpu.memory_space<vmem>>, vector<32x128xf32>
    tpu.vector_store %arg8[%c0_6, %c0_7], %7 {strides = array<i32>} : memref<32x128xf32, #tpu.memory_space<vmem>>, vector<32x128xf32>,
    %c0_i32_8 = arith.constant 0 : i32
    %9 = arith.cmpi eq, %arg2, %c0_i32_8 : i32
    %10 = arith.extui %9 : i1 to i32
    %c0_i32_9 = arith.constant 0 : i32
    %11 = arith.cmpi ne, %10, %c0_i32_9 : i32
    scf.if %11 {
      %c0_10 = arith.constant 0 : index
      %c0_11 = arith.constant 0 : index
      %12 = vector.load %arg8[%c0_10, %c0_11] : memref<32x128xf32, #tpu.memory_space<vmem>>, vector<32x128xf32>
      %c0_12 = arith.constant 0 : index
      %c0_13 = arith.constant 0 : index
      %13 = vector.load %arg5[%c0_12, %c0_13] : memref<1x128xf32, #tpu.memory_space<vmem>>, vector<1x128xf32>
      %14 = vector.broadcast %13 : vector<1x128xf32> to vector<32x128xf32>
      %15 = arith.mulf %12, %14 : vector<32x128xf32>
      %c0_14 = arith.constant 0 : index
      %c0_15 = arith.constant 0 : index
      %16 = vector.load %arg6[%c0_14, %c0_15] : memref<1x128xf32, #tpu.memory_space<vmem>>, vector<1x128xf32>
      %17 = vector.broadcast %16 : vector<1x128xf32> to vector<32x128xf32>
      %18 = arith.addf %15, %17 : vector<32x128xf32>
      %19 = arith.truncf %18 : vector<32x128xf32> to vector<32x128xbf16>
      %c0_16 = arith.constant 0 : index
      %c0_17 = arith.constant 0 : index
      %20 = vector.load %arg7[%c0_16, %c0_17] : memref<32x128xbf16, #tpu.memory_space<vmem>>, vector<32x128xbf16>
      tpu.vector_store %arg7[%c0_16, %c0_17], %19 {strides = array<i32>} : memref<32x128xbf16, #tpu.memory_space<vmem>>, vector<32x128xbf16>,
    } else {
    }
    return
  }
  func.func @transform_0(%arg0: i32, %arg1: i32, %arg2: i32) -> (i32, i32) {
    %c0_i32 = arith.constant 0 : i32
    return %arg0, %arg2 : i32, i32
  }
  func.func @transform_1(%arg0: i32, %arg1: i32, %arg2: i32) -> (i32, i32) {
    %c0_i32 = arith.constant 0 : i32
    return %arg2, %arg1 : i32, i32
  }
  func.func @transform_2(%arg0: i32, %arg1: i32, %arg2: i32) -> (i32, i32) {
    %c0_i32 = arith.constant 0 : i32
    %c0_i32_0 = arith.constant 0 : i32
    return %c0_i32, %arg1 : i32, i32
  }
  func.func @transform_3(%arg0: i32, %arg1: i32, %arg2: i32) -> (i32, i32) {
    %c0_i32 = arith.constant 0 : i32
    %c0_i32_0 = arith.constant 0 : i32
    return %c0_i32, %arg1 : i32, i32
  }
  func.func @transform_4(%arg0: i32, %arg1: i32, %arg2: i32) -> (i32, i32) {
    %c0_i32 = arith.constant 0 : i32
    return %arg0, %arg1 : i32, i32
  }
}

module attributes {stable_mosaic.version = 11 : i64} {
  func.func @_se_gate_kernel(%arg0: i32, %arg1: memref<2x128xbf16, #tpu.memory_space<vmem>>, %arg2: memref<128x32xbf16, #tpu.memory_space<vmem>>, %arg3: memref<1x32xf32, #tpu.memory_space<vmem>>, %arg4: memref<32x128xbf16, #tpu.memory_space<vmem>>, %arg5: memref<1x128xf32, #tpu.memory_space<vmem>>, %arg6: memref<2x128xf32, #tpu.memory_space<vmem>>) attributes {dimension_semantics = [#tpu.dimension_semantics<arbitrary>], iteration_bounds = array<i64: 1>, scalar_prefetch = 0 : i64, scratch_operands = 0 : i64, tpu.core_type = #tpu.core_type<tc>, window_params = [{pipeline_mode = #tpu.pipeline_mode<synchronous>, transform_indices = @transform_0, window_bounds = array<i64: 2, 128>}, {pipeline_mode = #tpu.pipeline_mode<synchronous>, transform_indices = @transform_1, window_bounds = array<i64: 128, 32>}, {pipeline_mode = #tpu.pipeline_mode<synchronous>, transform_indices = @transform_2, window_bounds = array<i64: 1, 32>}, {pipeline_mode = #tpu.pipeline_mode<synchronous>, transform_indices = @transform_3, window_bounds = array<i64: 32, 128>}, {pipeline_mode = #tpu.pipeline_mode<synchronous>, transform_indices = @transform_4, window_bounds = array<i64: 1, 128>}, {pipeline_mode = #tpu.pipeline_mode<synchronous>, transform_indices = @transform_5, window_bounds = array<i64: 2, 128>}]} {
    %c0 = arith.constant 0 : index
    %c0_0 = arith.constant 0 : index
    %0 = vector.load %arg1[%c0, %c0_0] : memref<2x128xbf16, #tpu.memory_space<vmem>>, vector<2x128xbf16>
    %c0_1 = arith.constant 0 : index
    %c0_2 = arith.constant 0 : index
    %1 = vector.load %arg2[%c0_1, %c0_2] : memref<128x32xbf16, #tpu.memory_space<vmem>>, vector<128x32xbf16>
    %cst = arith.constant dense<0.000000e+00> : vector<2x32xf32>
    %2 = tpu.matmul %0, %1, %cst {dimension_numbers = #tpu.dot_dimension_numbers<[1], [0], [0], [1], [0, 0, 1, 1], [], []>} : vector<2x128xbf16>, vector<128x32xbf16>, vector<2x32xf32> -> vector<2x32xf32>
    %c0_3 = arith.constant 0 : index
    %c0_4 = arith.constant 0 : index
    %3 = vector.load %arg3[%c0_3, %c0_4] : memref<1x32xf32, #tpu.memory_space<vmem>>, vector<1x32xf32>
    %4 = vector.broadcast %3 : vector<1x32xf32> to vector<2x32xf32>
    %5 = arith.addf %2, %4 : vector<2x32xf32>
    %cst_5 = arith.constant 0.000000e+00 : f32
    %6 = vector.broadcast %cst_5 : f32 to vector<2x32xf32>
    %7 = arith.maximumf %5, %6 : vector<2x32xf32>
    %8 = arith.truncf %7 : vector<2x32xf32> to vector<2x32xbf16>
    %c0_6 = arith.constant 0 : index
    %c0_7 = arith.constant 0 : index
    %9 = vector.load %arg4[%c0_6, %c0_7] : memref<32x128xbf16, #tpu.memory_space<vmem>>, vector<32x128xbf16>
    %cst_8 = arith.constant dense<0.000000e+00> : vector<2x128xf32>
    %10 = tpu.matmul %8, %9, %cst_8 {dimension_numbers = #tpu.dot_dimension_numbers<[1], [0], [0], [1], [0, 0, 1, 1], [], []>} : vector<2x32xbf16>, vector<32x128xbf16>, vector<2x128xf32> -> vector<2x128xf32>
    %c0_9 = arith.constant 0 : index
    %c0_10 = arith.constant 0 : index
    %11 = vector.load %arg5[%c0_9, %c0_10] : memref<1x128xf32, #tpu.memory_space<vmem>>, vector<1x128xf32>
    %12 = vector.broadcast %11 : vector<1x128xf32> to vector<2x128xf32>
    %13 = arith.addf %10, %12 : vector<2x128xf32>
    %cst_11 = arith.constant 0.000000e+00 : f32
    %14 = vector.broadcast %cst_11 : f32 to vector<2x128xf32>
    %15 = arith.subf %14, %13 : vector<2x128xf32>
    %16 = math.exp %15 : vector<2x128xf32>
    %cst_12 = arith.constant 1.000000e+00 : f32
    %17 = vector.broadcast %cst_12 : f32 to vector<2x128xf32>
    %18 = arith.addf %17, %16 : vector<2x128xf32>
    %cst_13 = arith.constant 1.000000e+00 : f32
    %19 = vector.broadcast %cst_13 : f32 to vector<2x128xf32>
    %20 = arith.divf %19, %18 : vector<2x128xf32>
    %c0_14 = arith.constant 0 : index
    %c0_15 = arith.constant 0 : index
    %21 = vector.load %arg6[%c0_14, %c0_15] : memref<2x128xf32, #tpu.memory_space<vmem>>, vector<2x128xf32>
    tpu.vector_store %arg6[%c0_14, %c0_15], %20 {strides = array<i32>} : memref<2x128xf32, #tpu.memory_space<vmem>>, vector<2x128xf32>,
    return
  }
  func.func @transform_0(%arg0: i32) -> (i32, i32) {
    %c0_i32 = arith.constant 0 : i32
    %c0_i32_0 = arith.constant 0 : i32
    %c0_i32_1 = arith.constant 0 : i32
    return %c0_i32, %c0_i32_0 : i32, i32
  }
  func.func @transform_1(%arg0: i32) -> (i32, i32) {
    %c0_i32 = arith.constant 0 : i32
    %c0_i32_0 = arith.constant 0 : i32
    %c0_i32_1 = arith.constant 0 : i32
    return %c0_i32, %c0_i32_0 : i32, i32
  }
  func.func @transform_2(%arg0: i32) -> (i32, i32) {
    %c0_i32 = arith.constant 0 : i32
    %c0_i32_0 = arith.constant 0 : i32
    %c0_i32_1 = arith.constant 0 : i32
    return %c0_i32, %c0_i32_0 : i32, i32
  }
  func.func @transform_3(%arg0: i32) -> (i32, i32) {
    %c0_i32 = arith.constant 0 : i32
    %c0_i32_0 = arith.constant 0 : i32
    %c0_i32_1 = arith.constant 0 : i32
    return %c0_i32, %c0_i32_0 : i32, i32
  }
  func.func @transform_4(%arg0: i32) -> (i32, i32) {
    %c0_i32 = arith.constant 0 : i32
    %c0_i32_0 = arith.constant 0 : i32
    %c0_i32_1 = arith.constant 0 : i32
    return %c0_i32, %c0_i32_0 : i32, i32
  }
  func.func @transform_5(%arg0: i32) -> (i32, i32) {
    %c0_i32 = arith.constant 0 : i32
    %c0_i32_0 = arith.constant 0 : i32
    %c0_i32_1 = arith.constant 0 : i32
    return %c0_i32, %c0_i32_0 : i32, i32
  }
}

module attributes {stable_mosaic.version = 11 : i64} {
  func.func @_matmul_bn_kernel(%arg0: i32, %arg1: i32, %arg2: i32, %arg3: memref<8x128xbf16, #tpu.memory_space<vmem>>, %arg4: memref<128x128xbf16, #tpu.memory_space<vmem>>, %arg5: memref<1x128xf32, #tpu.memory_space<vmem>>, %arg6: memref<1x128xf32, #tpu.memory_space<vmem>>, %arg7: memref<8x128xbf16, #tpu.memory_space<vmem>>, %arg8: memref<8x128xf32, #tpu.memory_space<vmem>>) attributes {dimension_semantics = [#tpu.dimension_semantics<parallel>, #tpu.dimension_semantics<parallel>, #tpu.dimension_semantics<arbitrary>], iteration_bounds = array<i64: 1, 2, 1>, scalar_prefetch = 0 : i64, scratch_operands = 1 : i64, tpu.core_type = #tpu.core_type<tc>, window_params = [{transform_indices = @transform_0, window_bounds = array<i64: 8, 128>}, {transform_indices = @transform_1, window_bounds = array<i64: 128, 128>}, {transform_indices = @transform_2, window_bounds = array<i64: 1, 128>}, {transform_indices = @transform_3, window_bounds = array<i64: 1, 128>}, {transform_indices = @transform_4, window_bounds = array<i64: 8, 128>}]} {
    %c0_i32 = arith.constant 0 : i32
    %0 = arith.cmpi eq, %arg2, %c0_i32 : i32
    %1 = arith.extui %0 : i1 to i32
    %c0_i32_0 = arith.constant 0 : i32
    %2 = arith.cmpi ne, %1, %c0_i32_0 : i32
    scf.if %2 {
      %cst_10 = arith.constant 0.000000e+00 : f32
      %12 = vector.broadcast %cst_10 : f32 to vector<8x128xf32>
      %c0_11 = arith.constant 0 : index
      %c0_12 = arith.constant 0 : index
      %13 = vector.load %arg8[%c0_11, %c0_12] : memref<8x128xf32, #tpu.memory_space<vmem>>, vector<8x128xf32>
      tpu.vector_store %arg8[%c0_11, %c0_12], %12 {strides = array<i32>} : memref<8x128xf32, #tpu.memory_space<vmem>>, vector<8x128xf32>,
    } else {
    }
    %c0 = arith.constant 0 : index
    %c0_1 = arith.constant 0 : index
    %3 = vector.load %arg8[%c0, %c0_1] : memref<8x128xf32, #tpu.memory_space<vmem>>, vector<8x128xf32>
    %c0_2 = arith.constant 0 : index
    %c0_3 = arith.constant 0 : index
    %4 = vector.load %arg3[%c0_2, %c0_3] : memref<8x128xbf16, #tpu.memory_space<vmem>>, vector<8x128xbf16>
    %c0_4 = arith.constant 0 : index
    %c0_5 = arith.constant 0 : index
    %5 = vector.load %arg4[%c0_4, %c0_5] : memref<128x128xbf16, #tpu.memory_space<vmem>>, vector<128x128xbf16>
    %cst = arith.constant dense<0.000000e+00> : vector<8x128xf32>
    %6 = tpu.matmul %4, %5, %cst {dimension_numbers = #tpu.dot_dimension_numbers<[1], [0], [0], [1], [0, 0, 1, 1], [], []>} : vector<8x128xbf16>, vector<128x128xbf16>, vector<8x128xf32> -> vector<8x128xf32>
    %7 = arith.addf %3, %6 : vector<8x128xf32>
    %c0_6 = arith.constant 0 : index
    %c0_7 = arith.constant 0 : index
    %8 = vector.load %arg8[%c0_6, %c0_7] : memref<8x128xf32, #tpu.memory_space<vmem>>, vector<8x128xf32>
    tpu.vector_store %arg8[%c0_6, %c0_7], %7 {strides = array<i32>} : memref<8x128xf32, #tpu.memory_space<vmem>>, vector<8x128xf32>,
    %c0_i32_8 = arith.constant 0 : i32
    %9 = arith.cmpi eq, %arg2, %c0_i32_8 : i32
    %10 = arith.extui %9 : i1 to i32
    %c0_i32_9 = arith.constant 0 : i32
    %11 = arith.cmpi ne, %10, %c0_i32_9 : i32
    scf.if %11 {
      %c0_10 = arith.constant 0 : index
      %c0_11 = arith.constant 0 : index
      %12 = vector.load %arg8[%c0_10, %c0_11] : memref<8x128xf32, #tpu.memory_space<vmem>>, vector<8x128xf32>
      %c0_12 = arith.constant 0 : index
      %c0_13 = arith.constant 0 : index
      %13 = vector.load %arg5[%c0_12, %c0_13] : memref<1x128xf32, #tpu.memory_space<vmem>>, vector<1x128xf32>
      %14 = vector.broadcast %13 : vector<1x128xf32> to vector<8x128xf32>
      %15 = arith.mulf %12, %14 : vector<8x128xf32>
      %c0_14 = arith.constant 0 : index
      %c0_15 = arith.constant 0 : index
      %16 = vector.load %arg6[%c0_14, %c0_15] : memref<1x128xf32, #tpu.memory_space<vmem>>, vector<1x128xf32>
      %17 = vector.broadcast %16 : vector<1x128xf32> to vector<8x128xf32>
      %18 = arith.addf %15, %17 : vector<8x128xf32>
      %19 = arith.truncf %18 : vector<8x128xf32> to vector<8x128xbf16>
      %c0_16 = arith.constant 0 : index
      %c0_17 = arith.constant 0 : index
      %20 = vector.load %arg7[%c0_16, %c0_17] : memref<8x128xbf16, #tpu.memory_space<vmem>>, vector<8x128xbf16>
      tpu.vector_store %arg7[%c0_16, %c0_17], %19 {strides = array<i32>} : memref<8x128xbf16, #tpu.memory_space<vmem>>, vector<8x128xbf16>,
    } else {
    }
    return
  }
  func.func @transform_0(%arg0: i32, %arg1: i32, %arg2: i32) -> (i32, i32) {
    %c0_i32 = arith.constant 0 : i32
    return %arg0, %arg2 : i32, i32
  }
  func.func @transform_1(%arg0: i32, %arg1: i32, %arg2: i32) -> (i32, i32) {
    %c0_i32 = arith.constant 0 : i32
    return %arg2, %arg1 : i32, i32
  }
  func.func @transform_2(%arg0: i32, %arg1: i32, %arg2: i32) -> (i32, i32) {
    %c0_i32 = arith.constant 0 : i32
    %c0_i32_0 = arith.constant 0 : i32
    return %c0_i32, %arg1 : i32, i32
  }
  func.func @transform_3(%arg0: i32, %arg1: i32, %arg2: i32) -> (i32, i32) {
    %c0_i32 = arith.constant 0 : i32
    %c0_i32_0 = arith.constant 0 : i32
    return %c0_i32, %arg1 : i32, i32
  }
  func.func @transform_4(%arg0: i32, %arg1: i32, %arg2: i32) -> (i32, i32) {
    %c0_i32 = arith.constant 0 : i32
    return %arg0, %arg1 : i32, i32
  }
}

module attributes {stable_mosaic.version = 11 : i64} {
  func.func @_matmul_bn_kernel(%arg0: i32, %arg1: i32, %arg2: i32, %arg3: memref<32x128xbf16, #tpu.memory_space<vmem>>, %arg4: memref<128x128xbf16, #tpu.memory_space<vmem>>, %arg5: memref<1x128xf32, #tpu.memory_space<vmem>>, %arg6: memref<1x128xf32, #tpu.memory_space<vmem>>, %arg7: memref<32x128xbf16, #tpu.memory_space<vmem>>, %arg8: memref<32x128xf32, #tpu.memory_space<vmem>>) attributes {dimension_semantics = [#tpu.dimension_semantics<parallel>, #tpu.dimension_semantics<parallel>, #tpu.dimension_semantics<arbitrary>], iteration_bounds = array<i64: 1, 1, 1>, scalar_prefetch = 0 : i64, scratch_operands = 1 : i64, tpu.core_type = #tpu.core_type<tc>, window_params = [{transform_indices = @transform_0, window_bounds = array<i64: 32, 128>}, {transform_indices = @transform_1, window_bounds = array<i64: 128, 128>}, {transform_indices = @transform_2, window_bounds = array<i64: 1, 128>}, {transform_indices = @transform_3, window_bounds = array<i64: 1, 128>}, {transform_indices = @transform_4, window_bounds = array<i64: 32, 128>}]} {
    %c0_i32 = arith.constant 0 : i32
    %0 = arith.cmpi eq, %arg2, %c0_i32 : i32
    %1 = arith.extui %0 : i1 to i32
    %c0_i32_0 = arith.constant 0 : i32
    %2 = arith.cmpi ne, %1, %c0_i32_0 : i32
    scf.if %2 {
      %cst_10 = arith.constant 0.000000e+00 : f32
      %12 = vector.broadcast %cst_10 : f32 to vector<32x128xf32>
      %c0_11 = arith.constant 0 : index
      %c0_12 = arith.constant 0 : index
      %13 = vector.load %arg8[%c0_11, %c0_12] : memref<32x128xf32, #tpu.memory_space<vmem>>, vector<32x128xf32>
      tpu.vector_store %arg8[%c0_11, %c0_12], %12 {strides = array<i32>} : memref<32x128xf32, #tpu.memory_space<vmem>>, vector<32x128xf32>,
    } else {
    }
    %c0 = arith.constant 0 : index
    %c0_1 = arith.constant 0 : index
    %3 = vector.load %arg8[%c0, %c0_1] : memref<32x128xf32, #tpu.memory_space<vmem>>, vector<32x128xf32>
    %c0_2 = arith.constant 0 : index
    %c0_3 = arith.constant 0 : index
    %4 = vector.load %arg3[%c0_2, %c0_3] : memref<32x128xbf16, #tpu.memory_space<vmem>>, vector<32x128xbf16>
    %c0_4 = arith.constant 0 : index
    %c0_5 = arith.constant 0 : index
    %5 = vector.load %arg4[%c0_4, %c0_5] : memref<128x128xbf16, #tpu.memory_space<vmem>>, vector<128x128xbf16>
    %cst = arith.constant dense<0.000000e+00> : vector<32x128xf32>
    %6 = tpu.matmul %4, %5, %cst {dimension_numbers = #tpu.dot_dimension_numbers<[1], [0], [0], [1], [0, 0, 1, 1], [], []>} : vector<32x128xbf16>, vector<128x128xbf16>, vector<32x128xf32> -> vector<32x128xf32>
    %7 = arith.addf %3, %6 : vector<32x128xf32>
    %c0_6 = arith.constant 0 : index
    %c0_7 = arith.constant 0 : index
    %8 = vector.load %arg8[%c0_6, %c0_7] : memref<32x128xf32, #tpu.memory_space<vmem>>, vector<32x128xf32>
    tpu.vector_store %arg8[%c0_6, %c0_7], %7 {strides = array<i32>} : memref<32x128xf32, #tpu.memory_space<vmem>>, vector<32x128xf32>,
    %c0_i32_8 = arith.constant 0 : i32
    %9 = arith.cmpi eq, %arg2, %c0_i32_8 : i32
    %10 = arith.extui %9 : i1 to i32
    %c0_i32_9 = arith.constant 0 : i32
    %11 = arith.cmpi ne, %10, %c0_i32_9 : i32
    scf.if %11 {
      %c0_10 = arith.constant 0 : index
      %c0_11 = arith.constant 0 : index
      %12 = vector.load %arg8[%c0_10, %c0_11] : memref<32x128xf32, #tpu.memory_space<vmem>>, vector<32x128xf32>
      %c0_12 = arith.constant 0 : index
      %c0_13 = arith.constant 0 : index
      %13 = vector.load %arg5[%c0_12, %c0_13] : memref<1x128xf32, #tpu.memory_space<vmem>>, vector<1x128xf32>
      %14 = vector.broadcast %13 : vector<1x128xf32> to vector<32x128xf32>
      %15 = arith.mulf %12, %14 : vector<32x128xf32>
      %c0_14 = arith.constant 0 : index
      %c0_15 = arith.constant 0 : index
      %16 = vector.load %arg6[%c0_14, %c0_15] : memref<1x128xf32, #tpu.memory_space<vmem>>, vector<1x128xf32>
      %17 = vector.broadcast %16 : vector<1x128xf32> to vector<32x128xf32>
      %18 = arith.addf %15, %17 : vector<32x128xf32>
      %cst_16 = arith.constant 0.000000e+00 : f32
      %19 = vector.broadcast %cst_16 : f32 to vector<32x128xf32>
      %20 = arith.maximumf %18, %19 : vector<32x128xf32>
      %21 = arith.truncf %20 : vector<32x128xf32> to vector<32x128xbf16>
      %c0_17 = arith.constant 0 : index
      %c0_18 = arith.constant 0 : index
      %22 = vector.load %arg7[%c0_17, %c0_18] : memref<32x128xbf16, #tpu.memory_space<vmem>>, vector<32x128xbf16>
      tpu.vector_store %arg7[%c0_17, %c0_18], %21 {strides = array<i32>} : memref<32x128xbf16, #tpu.memory_space<vmem>>, vector<32x128xbf16>,
    } else {
    }
    return
  }
  func.func @transform_0(%arg0: i32, %arg1: i32, %arg2: i32) -> (i32, i32) {
    %c0_i32 = arith.constant 0 : i32
    return %arg0, %arg2 : i32, i32
  }
  func.func @transform_1(%arg0: i32, %arg1: i32, %arg2: i32) -> (i32, i32) {
    %c0_i32 = arith.constant 0 : i32
    return %arg2, %arg1 : i32, i32
  }
  func.func @transform_2(%arg0: i32, %arg1: i32, %arg2: i32) -> (i32, i32) {
    %c0_i32 = arith.constant 0 : i32
    %c0_i32_0 = arith.constant 0 : i32
    return %c0_i32, %arg1 : i32, i32
  }
  func.func @transform_3(%arg0: i32, %arg1: i32, %arg2: i32) -> (i32, i32) {
    %c0_i32 = arith.constant 0 : i32
    %c0_i32_0 = arith.constant 0 : i32
    return %c0_i32, %arg1 : i32, i32
  }
  func.func @transform_4(%arg0: i32, %arg1: i32, %arg2: i32) -> (i32, i32) {
    %c0_i32 = arith.constant 0 : i32
    return %arg0, %arg1 : i32, i32
  }
}

module attributes {stable_mosaic.version = 11 : i64} {
  func.func @_se_gate_kernel(%arg0: i32, %arg1: memref<2x256xbf16, #tpu.memory_space<vmem>>, %arg2: memref<256x64xbf16, #tpu.memory_space<vmem>>, %arg3: memref<1x64xf32, #tpu.memory_space<vmem>>, %arg4: memref<64x256xbf16, #tpu.memory_space<vmem>>, %arg5: memref<1x256xf32, #tpu.memory_space<vmem>>, %arg6: memref<2x256xf32, #tpu.memory_space<vmem>>) attributes {dimension_semantics = [#tpu.dimension_semantics<arbitrary>], iteration_bounds = array<i64: 1>, scalar_prefetch = 0 : i64, scratch_operands = 0 : i64, tpu.core_type = #tpu.core_type<tc>, window_params = [{pipeline_mode = #tpu.pipeline_mode<synchronous>, transform_indices = @transform_0, window_bounds = array<i64: 2, 256>}, {pipeline_mode = #tpu.pipeline_mode<synchronous>, transform_indices = @transform_1, window_bounds = array<i64: 256, 64>}, {pipeline_mode = #tpu.pipeline_mode<synchronous>, transform_indices = @transform_2, window_bounds = array<i64: 1, 64>}, {pipeline_mode = #tpu.pipeline_mode<synchronous>, transform_indices = @transform_3, window_bounds = array<i64: 64, 256>}, {pipeline_mode = #tpu.pipeline_mode<synchronous>, transform_indices = @transform_4, window_bounds = array<i64: 1, 256>}, {pipeline_mode = #tpu.pipeline_mode<synchronous>, transform_indices = @transform_5, window_bounds = array<i64: 2, 256>}]} {
    %c0 = arith.constant 0 : index
    %c0_0 = arith.constant 0 : index
    %0 = vector.load %arg1[%c0, %c0_0] : memref<2x256xbf16, #tpu.memory_space<vmem>>, vector<2x256xbf16>
    %c0_1 = arith.constant 0 : index
    %c0_2 = arith.constant 0 : index
    %1 = vector.load %arg2[%c0_1, %c0_2] : memref<256x64xbf16, #tpu.memory_space<vmem>>, vector<256x64xbf16>
    %cst = arith.constant dense<0.000000e+00> : vector<2x64xf32>
    %2 = tpu.matmul %0, %1, %cst {dimension_numbers = #tpu.dot_dimension_numbers<[1], [0], [0], [1], [0, 0, 1, 1], [], []>} : vector<2x256xbf16>, vector<256x64xbf16>, vector<2x64xf32> -> vector<2x64xf32>
    %c0_3 = arith.constant 0 : index
    %c0_4 = arith.constant 0 : index
    %3 = vector.load %arg3[%c0_3, %c0_4] : memref<1x64xf32, #tpu.memory_space<vmem>>, vector<1x64xf32>
    %4 = vector.broadcast %3 : vector<1x64xf32> to vector<2x64xf32>
    %5 = arith.addf %2, %4 : vector<2x64xf32>
    %cst_5 = arith.constant 0.000000e+00 : f32
    %6 = vector.broadcast %cst_5 : f32 to vector<2x64xf32>
    %7 = arith.maximumf %5, %6 : vector<2x64xf32>
    %8 = arith.truncf %7 : vector<2x64xf32> to vector<2x64xbf16>
    %c0_6 = arith.constant 0 : index
    %c0_7 = arith.constant 0 : index
    %9 = vector.load %arg4[%c0_6, %c0_7] : memref<64x256xbf16, #tpu.memory_space<vmem>>, vector<64x256xbf16>
    %cst_8 = arith.constant dense<0.000000e+00> : vector<2x256xf32>
    %10 = tpu.matmul %8, %9, %cst_8 {dimension_numbers = #tpu.dot_dimension_numbers<[1], [0], [0], [1], [0, 0, 1, 1], [], []>} : vector<2x64xbf16>, vector<64x256xbf16>, vector<2x256xf32> -> vector<2x256xf32>
    %c0_9 = arith.constant 0 : index
    %c0_10 = arith.constant 0 : index
    %11 = vector.load %arg5[%c0_9, %c0_10] : memref<1x256xf32, #tpu.memory_space<vmem>>, vector<1x256xf32>
    %12 = vector.broadcast %11 : vector<1x256xf32> to vector<2x256xf32>
    %13 = arith.addf %10, %12 : vector<2x256xf32>
    %cst_11 = arith.constant 0.000000e+00 : f32
    %14 = vector.broadcast %cst_11 : f32 to vector<2x256xf32>
    %15 = arith.subf %14, %13 : vector<2x256xf32>
    %16 = math.exp %15 : vector<2x256xf32>
    %cst_12 = arith.constant 1.000000e+00 : f32
    %17 = vector.broadcast %cst_12 : f32 to vector<2x256xf32>
    %18 = arith.addf %17, %16 : vector<2x256xf32>
    %cst_13 = arith.constant 1.000000e+00 : f32
    %19 = vector.broadcast %cst_13 : f32 to vector<2x256xf32>
    %20 = arith.divf %19, %18 : vector<2x256xf32>
    %c0_14 = arith.constant 0 : index
    %c0_15 = arith.constant 0 : index
    %21 = vector.load %arg6[%c0_14, %c0_15] : memref<2x256xf32, #tpu.memory_space<vmem>>, vector<2x256xf32>
    tpu.vector_store %arg6[%c0_14, %c0_15], %20 {strides = array<i32>} : memref<2x256xf32, #tpu.memory_space<vmem>>, vector<2x256xf32>,
    return
  }
  func.func @transform_0(%arg0: i32) -> (i32, i32) {
    %c0_i32 = arith.constant 0 : i32
    %c0_i32_0 = arith.constant 0 : i32
    %c0_i32_1 = arith.constant 0 : i32
    return %c0_i32, %c0_i32_0 : i32, i32
  }
  func.func @transform_1(%arg0: i32) -> (i32, i32) {
    %c0_i32 = arith.constant 0 : i32
    %c0_i32_0 = arith.constant 0 : i32
    %c0_i32_1 = arith.constant 0 : i32
    return %c0_i32, %c0_i32_0 : i32, i32
  }
  func.func @transform_2(%arg0: i32) -> (i32, i32) {
    %c0_i32 = arith.constant 0 : i32
    %c0_i32_0 = arith.constant 0 : i32
    %c0_i32_1 = arith.constant 0 : i32
    return %c0_i32, %c0_i32_0 : i32, i32
  }
  func.func @transform_3(%arg0: i32) -> (i32, i32) {
    %c0_i32 = arith.constant 0 : i32
    %c0_i32_0 = arith.constant 0 : i32
    %c0_i32_1 = arith.constant 0 : i32
    return %c0_i32, %c0_i32_0 : i32, i32
  }
  func.func @transform_4(%arg0: i32) -> (i32, i32) {
    %c0_i32 = arith.constant 0 : i32
    %c0_i32_0 = arith.constant 0 : i32
    %c0_i32_1 = arith.constant 0 : i32
    return %c0_i32, %c0_i32_0 : i32, i32
  }
  func.func @transform_5(%arg0: i32) -> (i32, i32) {
    %c0_i32 = arith.constant 0 : i32
    %c0_i32_0 = arith.constant 0 : i32
    %c0_i32_1 = arith.constant 0 : i32
    return %c0_i32, %c0_i32_0 : i32, i32
  }
}

module attributes {stable_mosaic.version = 11 : i64} {
  func.func @_se_apply_kernel(%arg0: i32, %arg1: i32, %arg2: memref<1x4x256xbf16, #tpu.memory_space<vmem>>, %arg3: memref<1x1x256xf32, #tpu.memory_space<vmem>>, %arg4: memref<1x4x256xbf16, #tpu.memory_space<vmem>>, %arg5: memref<1x4x256xbf16, #tpu.memory_space<vmem>>) attributes {dimension_semantics = [#tpu.dimension_semantics<parallel>, #tpu.dimension_semantics<parallel>], iteration_bounds = array<i64: 2, 1>, scalar_prefetch = 0 : i64, scratch_operands = 0 : i64, tpu.core_type = #tpu.core_type<tc>, window_params = [{transform_indices = @transform_0, window_bounds = array<i64: 1, 4, 256>}, {transform_indices = @transform_1, window_bounds = array<i64: 1, 1, 256>}, {transform_indices = @transform_2, window_bounds = array<i64: 1, 4, 256>}, {transform_indices = @transform_3, window_bounds = array<i64: 1, 4, 256>}]} {
    %c0 = arith.constant 0 : index
    %c0_0 = arith.constant 0 : index
    %c0_1 = arith.constant 0 : index
    %0 = vector.load %arg2[%c0, %c0_0, %c0_1] : memref<1x4x256xbf16, #tpu.memory_space<vmem>>, vector<1x4x256xbf16>
    %1 = arith.extf %0 : vector<1x4x256xbf16> to vector<1x4x256xf32>
    %c0_2 = arith.constant 0 : index
    %c0_3 = arith.constant 0 : index
    %c0_4 = arith.constant 0 : index
    %2 = vector.load %arg4[%c0_2, %c0_3, %c0_4] : memref<1x4x256xbf16, #tpu.memory_space<vmem>>, vector<1x4x256xbf16>
    %3 = arith.extf %2 : vector<1x4x256xbf16> to vector<1x4x256xf32>
    %c0_5 = arith.constant 0 : index
    %c0_6 = arith.constant 0 : index
    %c0_7 = arith.constant 0 : index
    %4 = vector.load %arg3[%c0_5, %c0_6, %c0_7] : memref<1x1x256xf32, #tpu.memory_space<vmem>>, vector<1x1x256xf32>
    %5 = vector.broadcast %4 : vector<1x1x256xf32> to vector<1x4x256xf32>
    %6 = arith.mulf %1, %5 : vector<1x4x256xf32>
    %7 = arith.addf %6, %3 : vector<1x4x256xf32>
    %cst = arith.constant 0.000000e+00 : f32
    %8 = vector.broadcast %cst : f32 to vector<1x4x256xf32>
    %9 = arith.maximumf %7, %8 : vector<1x4x256xf32>
    %10 = arith.truncf %9 : vector<1x4x256xf32> to vector<1x4x256xbf16>
    %c0_8 = arith.constant 0 : index
    %c0_9 = arith.constant 0 : index
    %c0_10 = arith.constant 0 : index
    %11 = vector.load %arg5[%c0_8, %c0_9, %c0_10] : memref<1x4x256xbf16, #tpu.memory_space<vmem>>, vector<1x4x256xbf16>
    tpu.vector_store %arg5[%c0_8, %c0_9, %c0_10], %10 {strides = array<i32>} : memref<1x4x256xbf16, #tpu.memory_space<vmem>>, vector<1x4x256xbf16>,
    return
  }
  func.func @transform_0(%arg0: i32, %arg1: i32) -> (i32, i32, i32) {
    %c0_i32 = arith.constant 0 : i32
    %c0_i32_0 = arith.constant 0 : i32
    return %arg0, %arg1, %c0_i32 : i32, i32, i32
  }
  func.func @transform_1(%arg0: i32, %arg1: i32) -> (i32, i32, i32) {
    %c0_i32 = arith.constant 0 : i32
    %c0_i32_0 = arith.constant 0 : i32
    %c0_i32_1 = arith.constant 0 : i32
    return %arg0, %c0_i32, %c0_i32_0 : i32, i32, i32
  }
  func.func @transform_2(%arg0: i32, %arg1: i32) -> (i32, i32, i32) {
    %c0_i32 = arith.constant 0 : i32
    %c0_i32_0 = arith.constant 0 : i32
    return %arg0, %arg1, %c0_i32 : i32, i32, i32
  }
  func.func @transform_3(%arg0: i32, %arg1: i32) -> (i32, i32, i32) {
    %c0_i32 = arith.constant 0 : i32
    %c0_i32_0 = arith.constant 0 : i32
    return %arg0, %arg1, %c0_i32 : i32, i32, i32
  }
}

module attributes {stable_mosaic.version = 11 : i64} {
  func.func @_head_kernel(%arg0: i32, %arg1: memref<2x4x256xbf16, #tpu.memory_space<vmem>>, %arg2: memref<256x32xbf16, #tpu.memory_space<vmem>>, %arg3: memref<1x32xf32, #tpu.memory_space<vmem>>, %arg4: memref<2x32xf32, #tpu.memory_space<vmem>>) attributes {dimension_semantics = [#tpu.dimension_semantics<arbitrary>], iteration_bounds = array<i64: 1>, scalar_prefetch = 0 : i64, scratch_operands = 0 : i64, tpu.core_type = #tpu.core_type<tc>, window_params = [{pipeline_mode = #tpu.pipeline_mode<synchronous>, transform_indices = @transform_0, window_bounds = array<i64: 2, 4, 256>}, {pipeline_mode = #tpu.pipeline_mode<synchronous>, transform_indices = @transform_1, window_bounds = array<i64: 256, 32>}, {pipeline_mode = #tpu.pipeline_mode<synchronous>, transform_indices = @transform_2, window_bounds = array<i64: 1, 32>}, {pipeline_mode = #tpu.pipeline_mode<synchronous>, transform_indices = @transform_3, window_bounds = array<i64: 2, 32>}]} {
    %c0 = arith.constant 0 : index
    %c0_0 = arith.constant 0 : index
    %c0_1 = arith.constant 0 : index
    %0 = vector.load %arg1[%c0, %c0_0, %c0_1] : memref<2x4x256xbf16, #tpu.memory_space<vmem>>, vector<2x4x256xbf16>
    %1 = arith.extf %0 : vector<2x4x256xbf16> to vector<2x4x256xf32>
    %cst = arith.constant dense<0.000000e+00> : vector<2x256xf32>
    %2 = vector.multi_reduction <add>, %1, %cst [1] : vector<2x4x256xf32> to vector<2x256xf32>
    %cst_2 = arith.constant 4.000000e+00 : f32
    %3 = vector.broadcast %cst_2 : f32 to vector<2x256xf32>
    %4 = arith.divf %2, %3 : vector<2x256xf32>
    %5 = arith.truncf %4 : vector<2x256xf32> to vector<2x256xbf16>
    %c0_3 = arith.constant 0 : index
    %c0_4 = arith.constant 0 : index
    %6 = vector.load %arg2[%c0_3, %c0_4] : memref<256x32xbf16, #tpu.memory_space<vmem>>, vector<256x32xbf16>
    %cst_5 = arith.constant dense<0.000000e+00> : vector<2x32xf32>
    %7 = tpu.matmul %5, %6, %cst_5 {dimension_numbers = #tpu.dot_dimension_numbers<[1], [0], [0], [1], [0, 0, 1, 1], [], []>} : vector<2x256xbf16>, vector<256x32xbf16>, vector<2x32xf32> -> vector<2x32xf32>
    %c0_6 = arith.constant 0 : index
    %c0_7 = arith.constant 0 : index
    %8 = vector.load %arg3[%c0_6, %c0_7] : memref<1x32xf32, #tpu.memory_space<vmem>>, vector<1x32xf32>
    %9 = vector.broadcast %8 : vector<1x32xf32> to vector<2x32xf32>
    %10 = arith.addf %7, %9 : vector<2x32xf32>
    %11 = arith.mulf %10, %10 : vector<2x32xf32>
    %cst_8 = arith.constant dense<0.000000e+00> : vector<2xf32>
    %12 = vector.multi_reduction <add>, %11, %cst_8 [1] : vector<2x32xf32> to vector<2xf32>
    %13 = vector.shape_cast %12 : vector<2xf32> to vector<2x1xf32>
    %14 = math.sqrt %13 : vector<2x1xf32>
    %cst_9 = arith.constant 9.99999996E-13 : f32
    %15 = vector.broadcast %cst_9 : f32 to vector<2x1xf32>
    %16 = arith.maximumf %14, %15 : vector<2x1xf32>
    %17 = vector.broadcast %16 : vector<2x1xf32> to vector<2x32xf32>
    %18 = arith.divf %10, %17 : vector<2x32xf32>
    %c0_10 = arith.constant 0 : index
    %c0_11 = arith.constant 0 : index
    %19 = vector.load %arg4[%c0_10, %c0_11] : memref<2x32xf32, #tpu.memory_space<vmem>>, vector<2x32xf32>
    tpu.vector_store %arg4[%c0_10, %c0_11], %18 {strides = array<i32>} : memref<2x32xf32, #tpu.memory_space<vmem>>, vector<2x32xf32>,
    return
  }
  func.func @transform_0(%arg0: i32) -> (i32, i32, i32) {
    %c0_i32 = arith.constant 0 : i32
    %c0_i32_0 = arith.constant 0 : i32
    %c0_i32_1 = arith.constant 0 : i32
    %c0_i32_2 = arith.constant 0 : i32
    return %c0_i32, %c0_i32_0, %c0_i32_1 : i32, i32, i32
  }
  func.func @transform_1(%arg0: i32) -> (i32, i32) {
    %c0_i32 = arith.constant 0 : i32
    %c0_i32_0 = arith.constant 0 : i32
    %c0_i32_1 = arith.constant 0 : i32
    return %c0_i32, %c0_i32_0 : i32, i32
  }
  func.func @transform_2(%arg0: i32) -> (i32, i32) {
    %c0_i32 = arith.constant 0 : i32
    %c0_i32_0 = arith.constant 0 : i32
    %c0_i32_1 = arith.constant 0 : i32
    return %c0_i32, %c0_i32_0 : i32, i32
  }
  func.func @transform_3(%arg0: i32) -> (i32, i32) {
    %c0_i32 = arith.constant 0 : i32
    %c0_i32_0 = arith.constant 0 : i32
    %c0_i32_1 = arith.constant 0 : i32
    return %c0_i32, %c0_i32_0 : i32, i32
  }
}

module attributes {stable_mosaic.version = 11 : i64} {
  func.func @_matmul_bn_kernel(%arg0: i32, %arg1: i32, %arg2: i32, %arg3: memref<8x128xbf16, #tpu.memory_space<vmem>>, %arg4: memref<128x128xbf16, #tpu.memory_space<vmem>>, %arg5: memref<1x128xf32, #tpu.memory_space<vmem>>, %arg6: memref<1x128xf32, #tpu.memory_space<vmem>>, %arg7: memref<8x128xbf16, #tpu.memory_space<vmem>>, %arg8: memref<8x128xf32, #tpu.memory_space<vmem>>) attributes {dimension_semantics = [#tpu.dimension_semantics<parallel>, #tpu.dimension_semantics<parallel>, #tpu.dimension_semantics<arbitrary>], iteration_bounds = array<i64: 1, 1, 9>, scalar_prefetch = 0 : i64, scratch_operands = 1 : i64, tpu.core_type = #tpu.core_type<tc>, window_params = [{transform_indices = @transform_0, window_bounds = array<i64: 8, 128>}, {transform_indices = @transform_1, window_bounds = array<i64: 128, 128>}, {transform_indices = @transform_2, window_bounds = array<i64: 1, 128>}, {transform_indices = @transform_3, window_bounds = array<i64: 1, 128>}, {transform_indices = @transform_4, window_bounds = array<i64: 8, 128>}]} {
    %c0_i32 = arith.constant 0 : i32
    %0 = arith.cmpi eq, %arg2, %c0_i32 : i32
    %1 = arith.extui %0 : i1 to i32
    %c0_i32_0 = arith.constant 0 : i32
    %2 = arith.cmpi ne, %1, %c0_i32_0 : i32
    scf.if %2 {
      %cst_9 = arith.constant 0.000000e+00 : f32
      %12 = vector.broadcast %cst_9 : f32 to vector<8x128xf32>
      %c0_10 = arith.constant 0 : index
      %c0_11 = arith.constant 0 : index
      %13 = vector.load %arg8[%c0_10, %c0_11] : memref<8x128xf32, #tpu.memory_space<vmem>>, vector<8x128xf32>
      tpu.vector_store %arg8[%c0_10, %c0_11], %12 {strides = array<i32>} : memref<8x128xf32, #tpu.memory_space<vmem>>, vector<8x128xf32>,
    } else {
    }
    %c0 = arith.constant 0 : index
    %c0_1 = arith.constant 0 : index
    %3 = vector.load %arg8[%c0, %c0_1] : memref<8x128xf32, #tpu.memory_space<vmem>>, vector<8x128xf32>
    %c0_2 = arith.constant 0 : index
    %c0_3 = arith.constant 0 : index
    %4 = vector.load %arg3[%c0_2, %c0_3] : memref<8x128xbf16, #tpu.memory_space<vmem>>, vector<8x128xbf16>
    %c0_4 = arith.constant 0 : index
    %c0_5 = arith.constant 0 : index
    %5 = vector.load %arg4[%c0_4, %c0_5] : memref<128x128xbf16, #tpu.memory_space<vmem>>, vector<128x128xbf16>
    %cst = arith.constant dense<0.000000e+00> : vector<8x128xf32>
    %6 = tpu.matmul %4, %5, %cst {dimension_numbers = #tpu.dot_dimension_numbers<[1], [0], [0], [1], [0, 0, 1, 1], [], []>} : vector<8x128xbf16>, vector<128x128xbf16>, vector<8x128xf32> -> vector<8x128xf32>
    %7 = arith.addf %3, %6 : vector<8x128xf32>
    %c0_6 = arith.constant 0 : index
    %c0_7 = arith.constant 0 : index
    %8 = vector.load %arg8[%c0_6, %c0_7] : memref<8x128xf32, #tpu.memory_space<vmem>>, vector<8x128xf32>
    tpu.vector_store %arg8[%c0_6, %c0_7], %7 {strides = array<i32>} : memref<8x128xf32, #tpu.memory_space<vmem>>, vector<8x128xf32>,
    %c8_i32 = arith.constant 8 : i32
    %9 = arith.cmpi eq, %arg2, %c8_i32 : i32
    %10 = arith.extui %9 : i1 to i32
    %c0_i32_8 = arith.constant 0 : i32
    %11 = arith.cmpi ne, %10, %c0_i32_8 : i32
    scf.if %11 {
      %c0_9 = arith.constant 0 : index
      %c0_10 = arith.constant 0 : index
      %12 = vector.load %arg8[%c0_9, %c0_10] : memref<8x128xf32, #tpu.memory_space<vmem>>, vector<8x128xf32>
      %c0_11 = arith.constant 0 : index
      %c0_12 = arith.constant 0 : index
      %13 = vector.load %arg5[%c0_11, %c0_12] : memref<1x128xf32, #tpu.memory_space<vmem>>, vector<1x128xf32>
      %14 = vector.broadcast %13 : vector<1x128xf32> to vector<8x128xf32>
      %15 = arith.mulf %12, %14 : vector<8x128xf32>
      %c0_13 = arith.constant 0 : index
      %c0_14 = arith.constant 0 : index
      %16 = vector.load %arg6[%c0_13, %c0_14] : memref<1x128xf32, #tpu.memory_space<vmem>>, vector<1x128xf32>
      %17 = vector.broadcast %16 : vector<1x128xf32> to vector<8x128xf32>
      %18 = arith.addf %15, %17 : vector<8x128xf32>
      %cst_15 = arith.constant 0.000000e+00 : f32
      %19 = vector.broadcast %cst_15 : f32 to vector<8x128xf32>
      %20 = arith.maximumf %18, %19 : vector<8x128xf32>
      %21 = arith.truncf %20 : vector<8x128xf32> to vector<8x128xbf16>
      %c0_16 = arith.constant 0 : index
      %c0_17 = arith.constant 0 : index
      %22 = vector.load %arg7[%c0_16, %c0_17] : memref<8x128xbf16, #tpu.memory_space<vmem>>, vector<8x128xbf16>
      tpu.vector_store %arg7[%c0_16, %c0_17], %21 {strides = array<i32>} : memref<8x128xbf16, #tpu.memory_space<vmem>>, vector<8x128xbf16>,
    } else {
    }
    return
  }
  func.func @transform_0(%arg0: i32, %arg1: i32, %arg2: i32) -> (i32, i32) {
    %c0_i32 = arith.constant 0 : i32
    return %arg0, %arg2 : i32, i32
  }
  func.func @transform_1(%arg0: i32, %arg1: i32, %arg2: i32) -> (i32, i32) {
    %c0_i32 = arith.constant 0 : i32
    return %arg2, %arg1 : i32, i32
  }
  func.func @transform_2(%arg0: i32, %arg1: i32, %arg2: i32) -> (i32, i32) {
    %c0_i32 = arith.constant 0 : i32
    %c0_i32_0 = arith.constant 0 : i32
    return %c0_i32, %arg1 : i32, i32
  }
  func.func @transform_3(%arg0: i32, %arg1: i32, %arg2: i32) -> (i32, i32) {
    %c0_i32 = arith.constant 0 : i32
    %c0_i32_0 = arith.constant 0 : i32
    return %c0_i32, %arg1 : i32, i32
  }
  func.func @transform_4(%arg0: i32, %arg1: i32, %arg2: i32) -> (i32, i32) {
    %c0_i32 = arith.constant 0 : i32
    return %arg0, %arg1 : i32, i32
  }
}

</mosaic_0001>

<bundles_post_ra>
// kernel: resnext_forward.26
= control target key start
LH: loop header
LB: loop body
LE: loop exit
PB: predicated region body
PF: predicated region fallthrough
CT: control target
= control target key end

     0   :  { %s2639_s15 = smov 0   ;;  %s2641_s16 = smov 0   ;;  %s3021_s0 = inlined_call_operand.vmem [shape: bf16[2048,256], index: 0, kind: input, shape index: {}]   ;;  %s3022_s1 = inlined_call_operand.vmem [shape: bf16[256,128], index: 1, kind: input, shape index: {}]   ;;  %s3023_s2 = inlined_call_operand.vmem [shape: f32[1,128], index: 2, kind: input, shape index: {}]   ;;  %s3024_s3 = inlined_call_operand.vmem [shape: f32[1,128], index: 3, kind: input, shape index: {}]   ;;  %s3025_s4 = inlined_call_operand.vmem [shape: bf16[2048,128], index: 4, kind: output, shape index: {}]  }
   0x1   :  { %s2643_s17 = smov 0  }
   0x2 LB: > { %s33_s18 = sadd.s32 1, %s2608_s16  ;;  %p1946_p0 = scmp.ge.s32.totalorder %s2612_s17, 1  ;;  %s2612_s17 = sphi %s2643_s17, %s14_s17   ;;  %s2608_s16 = sphi %s2641_s16, %s3027_s16   ;;  %s2604_s15 = sphi %s2639_s15, %s3026_s15  }
   0x3   : > { %p35_p1 = scmp.ge.s32.totalorder %s33_s18, 4  ;;  %p224_p2 = scmp.lt.s32.totalorder %s2612_s17, 5 }
   0x5   : > { %s3029_s18 = smov (%p35_p1, %s33_s18), 0  ;;  %p225_p3 = pnand %p1946_p0, %p224_p2 }
   0x6   : > { %s1947_s5 = sshll.u32 (!%p225_p3), %s2604_s15, 6 }
   0x7   : > { %228 = sbr.rel (%p225_p3) target bundleno = 436 (0x1b4), region = 36  ;;  %p274_p4 = scmp.lt.s32.totalorder (!%p225_p3), %s1947_s5, 255 }
   0xc   : > { %v2346_v0 = vld [vmem:[%s3022_s1 + $0x38] sm:$0xff]  ;;  %v2345_v2 = vld [vmem:[%s3022_s1 + $0x30] sm:$0xff]  ;;  %v2344_v4 = vld [vmem:[%s3022_s1 + $0x28] sm:$0xff]  ;;  %s3031_s5 = smov (!%p274_p4, %s1947_s5), 255 }
   0xd   : > { %v2354_v1 = vld [vmem:[%s3022_s1 + $0x78] sm:$0xff]  ;;  %952 = vmatpush.bf16.msra.mxu0 %v2346_v0  ;;  %2546 = vmatpush.bf16.msra.mxu2 %v2346_v0  ;;  %v2353_v3 = vld [vmem:[%s3022_s1 + $0x70] sm:$0xff]  ;;  %v2352_v5 = vld [vmem:[%s3022_s1 + $0x68] sm:$0xff]  ;;  %s2274_s21 = sshll.u32 %s3031_s5, 3  ;;  %s1951_s12 = sshll.u32 %s3031_s5, 2 }
   0xe   : > { %1121 = vmatpush.bf16.msra.mxu1 %v2354_v1  ;;  %2554 = vmatpush.bf16.msra.mxu3 %v2354_v1  ;;  %v2343_v6 = vld [vmem:[%s3022_s1 + $0x20] sm:$0xff]  ;;  %v2342_v8 = vld [vmem:[%s3022_s1 + $0x18] sm:$0xff]  ;;  %v2341_v10 = vld [vmem:[%s3022_s1 + $0x10] sm:$0xff]  ;;  %s2705_s26 = scalar_lea.vmem %s3021_s0, %s2274_s21  ;;  %s2815_s15 = scalar_lea.vmem %s3025_s4, %s1951_s12 }
   0xf   : > { %v2351_v7 = vld [vmem:[%s3022_s1 + $0x60] sm:$0xff]  ;;  %v2350_v9 = vld [vmem:[%s3022_s1 + $0x58] sm:$0xff]  ;;  %v2349_v11 = vld [vmem:[%s3022_s1 + $0x50] sm:$0xff] }
  0x10   : > { %v2340_v12 = vld [vmem:[%s3022_s1 + $0x8] sm:$0xff]  ;;  %v2339_v14 = vld [vmem:[%s3022_s1] sm:$0xff]  ;;  %v1962_v28 = vld [vmem:[%s2705_s26 + $0x10] sm:$0xf] }
  0x11   : > { %953 = vmatpush.bf16.msra.mxu0 %v2345_v2  ;;  %2547 = vmatpush.bf16.msra.mxu2 %v2345_v2  ;;  %v2348_v13 = vld [vmem:[%s3022_s1 + $0x48] sm:$0xff]  ;;  %v2347_v15 = vld [vmem:[%s3022_s1 + $0x40] sm:$0xff]  ;;  %v2278_v29 = vld [vmem:[%s2705_s26 + $0x14] sm:$0xf0] }
  0x12   : > { %1122 = vmatpush.bf16.msra.mxu1 %v2353_v3  ;;  %2555 = vmatpush.bf16.msra.mxu3 %v2353_v3  ;;  %v1954_v16 = vld [vmem:[%s2705_s26] sm:$0xf]  ;;  %v2276_v17 = vld [vmem:[%s2705_s26 + $0x4] sm:$0xf0]  ;;  %v2275_v20 = vld [vmem:[%s2705_s26 + $0x4] sm:$0xf]  ;;  %v1963_v36 = vor.u32 %v2278_v29, %v1962_v28 }
  0x13   : > { %v2082_v18 = vld [vmem:[%s2705_s26 + $0x100] sm:$0xf]  ;;  %v2308_v19 = vld [vmem:[%s2705_s26 + $0x104] sm:$0xf0]  ;;  %v1956_v21 = vld [vmem:[%s2705_s26 + $0x8] sm:$0xf0]  ;;  %v1955_v24 = vor.u32 %v2276_v17, %v1954_v16 }
  0x14   : > { %v2307_v22 = vld [vmem:[%s2705_s26 + $0x104] sm:$0xf]  ;;  %v2084_v23 = vld [vmem:[%s2705_s26 + $0x108] sm:$0xf0]  ;;  %v2083_v25 = vor.u32 %v2308_v19, %v2082_v18  ;;  %v1959_v26 = vor.u32 %v2275_v20, %v1956_v21  ;;  %v2090_v30 = vld [vmem:[%s2705_s26 + $0x110] sm:$0xf] }
  0x15   : > { %954 = vmatpush.bf16.msra.mxu0 %v2344_v4  ;;  %2548 = vmatpush.bf16.msra.mxu2 %v2344_v4  ;;  %v2087_v27 = vor.u32 %v2307_v22, %v2084_v23  ;;  %v2310_v31 = vld [vmem:[%s2705_s26 + $0x114] sm:$0xf0]  ;;  %v2277_v32 = vld [vmem:[%s2705_s26 + $0x14] sm:$0xf]  ;;  %v1964_v33 = vld [vmem:[%s2705_s26 + $0x18] sm:$0xf0] }
  0x16   : > { %1123 = vmatpush.bf16.msra.mxu1 %v2352_v5  ;;  %2556 = vmatpush.bf16.msra.mxu3 %v2352_v5  ;;  %v2309_v34 = vld [vmem:[%s2705_s26 + $0x114] sm:$0xf]  ;;  %v2092_v35 = vld [vmem:[%s2705_s26 + $0x118] sm:$0xf0]  ;;  %v2091_v37 = vor.u32 %v2310_v31, %v2090_v30  ;;  %v1967_v38 = vor.u32 %v2277_v32, %v1964_v33  ;;  %v1970_v40 = vld [vmem:[%s2705_s26 + $0x20] sm:$0xf] }
  0x17   : > { %v2095_v39 = vor.u32 %v2309_v34, %v2092_v35  ;;  %v2280_v41 = vld [vmem:[%s2705_s26 + $0x24] sm:$0xf0]  ;;  %v2098_v42 = vld [vmem:[%s2705_s26 + $0x120] sm:$0xf]  ;;  %v2279_v44 = vld [vmem:[%s2705_s26 + $0x24] sm:$0xf] }
  0x18   : > { %v2312_v43 = vld [vmem:[%s2705_s26 + $0x124] sm:$0xf0]  ;;  %v1972_v45 = vld [vmem:[%s2705_s26 + $0x28] sm:$0xf0]  ;;  %v2311_v46 = vld [vmem:[%s2705_s26 + $0x124] sm:$0xf]  ;;  %v1971_v48 = vor.u32 %v2280_v41, %v1970_v40 }
  0x19   : > { %955 = vmatpush.bf16.msra.mxu0 %v2343_v6  ;;  %2549 = vmatpush.bf16.msra.mxu2 %v2343_v6  ;;  %v2100_v47 = vld [vmem:[%s2705_s26 + $0x128] sm:$0xf0]  ;;  %v2099_v49 = vor.u32 %v2312_v43, %v2098_v42  ;;  %v1975_v50 = vor.u32 %v2279_v44, %v1972_v45  ;;  %v1978_v52 = vld [vmem:[%s2705_s26 + $0x30] sm:$0xf]  ;;  %v2282_v53 = vld [vmem:[%s2705_s26 + $0x34] sm:$0xf0] }
  0x1a   : > { %1124 = vmatpush.bf16.msra.mxu1 %v2351_v7  ;;  %2557 = vmatpush.bf16.msra.mxu3 %v2351_v7  ;;  %v2103_v51 = vor.u32 %v2311_v46, %v2100_v47  ;;  %v2106_v54 = vld [vmem:[%s2705_s26 + $0x130] sm:$0xf]  ;;  %v2314_v55 = vld [vmem:[%s2705_s26 + $0x134] sm:$0xf0]  ;;  %v2281_v56 = vld [vmem:[%s2705_s26 + $0x34] sm:$0xf]  ;;  %v1979_v60 = vor.u32 %v2282_v53, %v1978_v52 }
  0x1b   : > { %v1980_v57 = vld [vmem:[%s2705_s26 + $0x38] sm:$0xf0]  ;;  %v2313_v58 = vld [vmem:[%s2705_s26 + $0x134] sm:$0xf]  ;;  %v2107_v61 = vor.u32 %v2314_v55, %v2106_v54  ;;  %v1986_v0 = vld [vmem:[%s2705_s26 + $0x40] sm:$0xf] }
  0x1c   : > { %v2108_v59 = vld [vmem:[%s2705_s26 + $0x138] sm:$0xf0]  ;;  %v1983_v62 = vor.u32 %v2281_v56, %v1980_v57  ;;  %v2284_v1 = vld [vmem:[%s2705_s26 + $0x44] sm:$0xf0]  ;;  %v2114_v2 = vld [vmem:[%s2705_s26 + $0x140] sm:$0xf] }
  0x1d   : > { %956 = vmatpush.bf16.msra.mxu0 %v2342_v8  ;;  %2550 = vmatpush.bf16.msra.mxu2 %v2342_v8  ;;  %v2111_v63 = vor.u32 %v2313_v58, %v2108_v59  ;;  %v2316_v3 = vld [vmem:[%s2705_s26 + $0x144] sm:$0xf0]  ;;  %v2283_v4 = vld [vmem:[%s2705_s26 + $0x44] sm:$0xf]  ;;  %v1988_v5 = vld [vmem:[%s2705_s26 + $0x48] sm:$0xf0]  ;;  %v1987_v8 = vor.u32 %v2284_v1, %v1986_v0 }
  0x1e   : > { %1125 = vmatpush.bf16.msra.mxu1 %v2350_v9  ;;  %2558 = vmatpush.bf16.msra.mxu3 %v2350_v9  ;;  %v2315_v6 = vld [vmem:[%s2705_s26 + $0x144] sm:$0xf]  ;;  %v2116_v7 = vld [vmem:[%s2705_s26 + $0x148] sm:$0xf0]  ;;  %v2115_v9 = vor.u32 %v2316_v3, %v2114_v2  ;;  %v2285_v16 = vld [vmem:[%s2705_s26 + $0x54] sm:$0xf] }
  0x1f   : > { %v1996_v17 = vld [vmem:[%s2705_s26 + $0x58] sm:$0xf0]  ;;  %v2317_v18 = vld [vmem:[%s2705_s26 + $0x154] sm:$0xf]  ;;  %v2287_v28 = vld [vmem:[%s2705_s26 + $0x64] sm:$0xf] }
  0x20   : > { %v2124_v19 = vld [vmem:[%s2705_s26 + $0x158] sm:$0xf0]  ;;  %v1999_v22 = vor.u32 %v2285_v16, %v1996_v17  ;;  %v2004_v29 = vld [vmem:[%s2705_s26 + $0x68] sm:$0xf0]  ;;  %v2319_v30 = vld [vmem:[%s2705_s26 + $0x164] sm:$0xf] }
  0x21   : > { %957 = vmatpush.bf16.msra.mxu0 %v2341_v10  ;;  %2551 = vmatpush.bf16.msra.mxu2 %v2341_v10  ;;  %v1991_v10 = vor.u32 %v2283_v4, %v1988_v5  ;;  %v2127_v23 = vor.u32 %v2317_v18, %v2124_v19  ;;  %v2132_v31 = vld [vmem:[%s2705_s26 + $0x168] sm:$0xf0]  ;;  %v2007_v34 = vor.u32 %v2287_v28, %v2004_v29  ;;  %v2289_v40 = vld [vmem:[%s2705_s26 + $0x74] sm:$0xf]  ;;  %v2012_v41 = vld [vmem:[%s2705_s26 + $0x78] sm:$0xf0] }
  0x22   : > { %1126 = vmatpush.bf16.msra.mxu1 %v2349_v11  ;;  %2559 = vmatpush.bf16.msra.mxu3 %v2349_v11  ;;  %v2119_v11 = vor.u32 %v2315_v6, %v2116_v7  ;;  %v2135_v35 = vor.u32 %v2319_v30, %v2132_v31  ;;  %v2321_v42 = vld [vmem:[%s2705_s26 + $0x174] sm:$0xf]  ;;  %v2140_v43 = vld [vmem:[%s2705_s26 + $0x178] sm:$0xf0]  ;;  %v2015_v46 = vor.u32 %v2289_v40, %v2012_v41  ;;  %v2291_v52 = vld [vmem:[%s2705_s26 + $0x84] sm:$0xf] }
  0x23   : > { %v2143_v47 = vor.u32 %v2321_v42, %v2140_v43  ;;  %v2020_v53 = vld [vmem:[%s2705_s26 + $0x88] sm:$0xf0]  ;;  %v2323_v54 = vld [vmem:[%s2705_s26 + $0x184] sm:$0xf]  ;;  %v2797_v3 = vld [vmem:[%s3024_s3] ss:$0 sm:$0xff] }
  0x24   : > { %v2148_v55 = vld [vmem:[%s2705_s26 + $0x188] sm:$0xf0]  ;;  %v2023_v59 = vor.u32 %v2291_v52, %v2020_v53  ;;  %v2325_v16 = vld [vmem:[%s2705_s26 + $0x194] sm:$0xf]  ;;  %v2156_v17 = vld [vmem:[%s2705_s26 + $0x198] sm:$0xf0] }
  0x25   : > { %958 = vmatpush.bf16.msra.mxu0 %v2340_v12  ;;  %2552 = vmatpush.bf16.msra.mxu2 %v2340_v12  ;;  %v1994_v12 = vld [vmem:[%s2705_s26 + $0x50] sm:$0xf]  ;;  %v2159_v29 = vor.u32 %v2325_v16, %v2156_v17  ;;  %v2295_v52 = vld [vmem:[%s2705_s26 + $0xa4] sm:$0xf]  ;;  %v2036_v53 = vld [vmem:[%s2705_s26 + $0xa8] sm:$0xf0] }
  0x26   : > { %1127 = vmatpush.bf16.msra.mxu1 %v2348_v13  ;;  %2560 = vmatpush.bf16.msra.mxu3 %v2348_v13  ;;  %v2286_v13 = vld [vmem:[%s2705_s26 + $0x54] sm:$0xf0] }
  0x27   : > { %v1995_v20 = vor.u32 %v2286_v13, %v1994_v12  ;;  %v2326_v13 = vld [vmem:[%s2705_s26 + $0x194] sm:$0xf0] }
  0x29   : > { %959 = vmatpush.bf16.msra.mxu0 %v2339_v14  ;;  %2553 = vmatpush.bf16.msra.mxu2 %v2339_v14  ;;  %v2122_v14 = vld [vmem:[%s2705_s26 + $0x150] sm:$0xf] }
  0x2a   : > { %1128 = vmatpush.bf16.msra.mxu1 %v2347_v15  ;;  %2561 = vmatpush.bf16.msra.mxu3 %v2347_v15  ;;  %v2318_v15 = vld [vmem:[%s2705_s26 + $0x154] sm:$0xf0] }
  0x2b   : > { %v2123_v21 = vor.u32 %v2318_v15, %v2122_v14  ;;  %v2293_v14 = vld [vmem:[%s2705_s26 + $0x94] sm:$0xf]  ;;  %v2028_v15 = vld [vmem:[%s2705_s26 + $0x98] sm:$0xf0] }
  0x2c   : > { %960 = vmatmul.bf16.vlgmr.msra.gmra.mxu0 %v1955_v24  ;;  %1040 = vmatmul.bf16.vlgmr.msra.gmra.mxu2 %v2083_v25  ;;  %v2002_v24 = vld [vmem:[%s2705_s26 + $0x60] sm:$0xf]  ;;  %v2288_v25 = vld [vmem:[%s2705_s26 + $0x64] sm:$0xf0] }
  0x2d   : > { %1129 = vmatmul.bf16.vlgmr.msra.gmra.mxu1 %v1959_v26  ;;  %1209 = vmatmul.bf16.vlgmr.msra.gmra.mxu3 %v2087_v27  ;;  %v2130_v26 = vld [vmem:[%s2705_s26 + $0x160] sm:$0xf]  ;;  %v2320_v27 = vld [vmem:[%s2705_s26 + $0x164] sm:$0xf0]  ;;  %v2003_v32 = vor.u32 %v2288_v25, %v2002_v24  ;;  %v2031_v24 = vor.u32 %v2293_v14, %v2028_v15 }
  0x2e   : > { %v2131_v33 = vor.u32 %v2320_v27, %v2130_v26 }
  0x3c   : > { %965 = vmatmul.bf16.gmra.mxu0 %v1963_v36  ;;  %1045 = vmatmul.bf16.gmra.mxu2 %v2091_v37  ;;  %v2010_v36 = vld [vmem:[%s2705_s26 + $0x70] sm:$0xf]  ;;  %v2290_v37 = vld [vmem:[%s2705_s26 + $0x74] sm:$0xf0] }
  0x3d   : > { %1134 = vmatmul.bf16.gmra.mxu1 %v1967_v38  ;;  %1214 = vmatmul.bf16.gmra.mxu3 %v2095_v39  ;;  %v2138_v38 = vld [vmem:[%s2705_s26 + $0x170] sm:$0xf]  ;;  %v2322_v39 = vld [vmem:[%s2705_s26 + $0x174] sm:$0xf0]  ;;  %v2011_v44 = vor.u32 %v2290_v37, %v2010_v36 }
  0x3e   : > { %v2139_v45 = vor.u32 %v2322_v39, %v2138_v38 }
  0x4c   : > { %970 = vmatmul.bf16.gmra.mxu0 %v1971_v48  ;;  %1050 = vmatmul.bf16.gmra.mxu2 %v2099_v49  ;;  %v2018_v48 = vld [vmem:[%s2705_s26 + $0x80] sm:$0xf]  ;;  %v2292_v49 = vld [vmem:[%s2705_s26 + $0x84] sm:$0xf0] }
  0x4d   : > { %1139 = vmatmul.bf16.gmra.mxu1 %v1975_v50  ;;  %1219 = vmatmul.bf16.gmra.mxu3 %v2103_v51  ;;  %v2146_v50 = vld [vmem:[%s2705_s26 + $0x180] sm:$0xf]  ;;  %v2324_v51 = vld [vmem:[%s2705_s26 + $0x184] sm:$0xf0]  ;;  %v2019_v56 = vor.u32 %v2292_v49, %v2018_v48 }
  0x4e   : > { %v2147_v57 = vor.u32 %v2324_v51, %v2146_v50  ;;  %v2162_v48 = vld [vmem:[%s2705_s26 + $0x1a0] sm:$0xf]  ;;  %v2328_v51 = vld [vmem:[%s2705_s26 + $0x1a4] sm:$0xf0] }
  0x5c   : > { %975 = vmatmul.bf16.gmra.mxu0 %v1979_v60  ;;  %1055 = vmatmul.bf16.gmra.mxu2 %v2107_v61  ;;  %v2151_v60 = vor.u32 %v2323_v54, %v2148_v55  ;;  %v2327_v54 = vld [vmem:[%s2705_s26 + $0x1a4] sm:$0xf]  ;;  %v2164_v55 = vld [vmem:[%s2705_s26 + $0x1a8] sm:$0xf0] }
  0x5d   : > { %1144 = vmatmul.bf16.gmra.mxu1 %v1983_v62  ;;  %1224 = vmatmul.bf16.gmra.mxu3 %v2111_v63  ;;  %v2791_v63 = vld [vmem:[%s3023_s2] ss:$0 sm:$0xff] }
  0x6c   : > { %980 = vmatmul.bf16.gmra.mxu0 %v1987_v8  ;;  %1060 = vmatmul.bf16.gmra.mxu2 %v2115_v9  ;;  %v2026_v8 = vld [vmem:[%s2705_s26 + $0x90] sm:$0xf]  ;;  %v2294_v9 = vld [vmem:[%s2705_s26 + $0x94] sm:$0xf0] }
  0x6d   : > { %1149 = vmatmul.bf16.gmra.mxu1 %v1991_v10  ;;  %1229 = vmatmul.bf16.gmra.mxu3 %v2119_v11  ;;  %v2154_v10 = vld [vmem:[%s2705_s26 + $0x190] sm:$0xf] }
  0x7c   : > { %985 = vmatmul.bf16.gmra.mxu0 %v1995_v20  ;;  %1065 = vmatmul.bf16.gmra.mxu2 %v2123_v21 }
  0x7d   : > { %1154 = vmatmul.bf16.gmra.mxu1 %v1999_v22  ;;  %1234 = vmatmul.bf16.gmra.mxu3 %v2127_v23  ;;  %v2027_v22 = vor.u32 %v2294_v9, %v2026_v8  ;;  %v2155_v23 = vor.u32 %v2326_v13, %v2154_v10 }
  0x8c   : > { %990 = vmatmul.bf16.gmra.mxu0 %v2003_v32  ;;  %1070 = vmatmul.bf16.gmra.mxu2 %v2131_v33 }
  0x8d   : > { %1159 = vmatmul.bf16.gmra.mxu1 %v2007_v34  ;;  %1239 = vmatmul.bf16.gmra.mxu3 %v2135_v35 }
  0x9c   : > { %995 = vmatmul.bf16.gmra.mxu0 %v2011_v44  ;;  %1075 = vmatmul.bf16.gmra.mxu2 %v2139_v45 }
  0x9d   : > { %1164 = vmatmul.bf16.gmra.mxu1 %v2015_v46  ;;  %1244 = vmatmul.bf16.gmra.mxu3 %v2143_v47  ;;  %v2034_v46 = vld [vmem:[%s2705_s26 + $0xa0] sm:$0xf]  ;;  %v2296_v47 = vld [vmem:[%s2705_s26 + $0xa4] sm:$0xf0] }
  0xa9   : > { %v961_v58 = vpop.f32.mrf.mxu0 }
  0xaa   : > { %v1130_v61 = vpop.f32.mrf.mxu1 }
  0xab   : > { %v1131_v62 = vadd.f32 %v1130_v61, %v961_v58  ;;  %v2163_v61 = vor.u32 %v2328_v51, %v2162_v48 }
  0xac   : > { %1000 = vmatmul.bf16.gmra.mxu0 %v2019_v56  ;;  %1080 = vmatmul.bf16.gmra.mxu2 %v2147_v57 }
  0xad   : > { %1169 = vmatmul.bf16.gmra.mxu1 %v2023_v59  ;;  %1249 = vmatmul.bf16.gmra.mxu3 %v2151_v60  ;;  %v1489_v2 = vmul.f32 %v2791_v63, %v1131_v62  ;;  %v2035_v60 = vor.u32 %v2296_v47, %v2034_v46  ;;  %v2039_v62 = vor.u32 %v2295_v52, %v2036_v53 }
  0xaf   : > { %v1041_v0 = vpop.f32.mrf.mxu2  ;;  %v1557_v11 = vadd.f32 %v2797_v3, %v1489_v2 }
  0xb0   : > { %v1210_v1 = vpop.f32.mrf.mxu3 }
  0xb1   : > { %v963_v4 = vpop.f32.mrf.mxu0  ;;  %v1211_v6 = vadd.f32 %v1210_v1, %v1041_v0  ;;  %v1621_v25 = vmax.f32 %v1557_v11, 0.0 }
  0xb2   : > { %v1132_v5 = vpop.f32.mrf.mxu1 }
  0xb3   : > { %v1133_v7 = vadd.f32 %v1132_v5, %v963_v4  ;;  %v1521_v18 = vmul.f32 %v2791_v63, %v1211_v6  ;;  %v2167_v5 = vor.u32 %v2327_v54, %v2164_v55 }
  0xb5   : > { %v1490_v12 = vmul.f32 %v2791_v63, %v1133_v7  ;;  %v1589_v31 = vadd.f32 %v2797_v3, %v1521_v18 }
  0xb7   : > { %v1558_v19 = vadd.f32 %v2797_v3, %v1490_v12  ;;  %v1043_v20 = vpop.f32.mrf.mxu2  ;;  %v1653_v36 = vmax.f32 %v1589_v31, 0.0  ;;  %v2172_v31 = vld [vmem:[%s2705_s26 + $0x1b8] sm:$0xf0] }
  0xb8   : > { %v1212_v21 = vpop.f32.mrf.mxu3 }
  0xb9   : > { %v1622_v26 = vmax.f32 %v1558_v19, 0.0  ;;  %v1213_v27 = vadd.f32 %v1212_v21, %v1043_v20  ;;  %v966_v28 = vpop.f32.mrf.mxu0 }
  0xba   : > { %v1135_v30 = vpop.f32.mrf.mxu1 }
  0xbb   : > { %v2358_v32 = vpack.c.bf16 %v1622_v26, %v1621_v25  ;;  %v1522_v33 = vmul.f32 %v2791_v63, %v1213_v27  ;;  %v1136_v35 = vadd.f32 %v1135_v30, %v966_v28  ;;  %v2330_v27 = vld [vmem:[%s2705_s26 + $0x1b4] sm:$0xf0]  ;;  %v2297_v28 = vld [vmem:[%s2705_s26 + $0xb4] sm:$0xf] }
  0xbc   : > { %1005 = vmatmul.bf16.gmra.mxu0 %v2027_v22  ;;  %1085 = vmatmul.bf16.gmra.mxu2 %v2155_v23  ;;  %v2042_v22 = vld [vmem:[%s2705_s26 + $0xb0] sm:$0xf]  ;;  %v2298_v23 = vld [vmem:[%s2705_s26 + $0xb4] sm:$0xf0]  ;;  %v2329_v30 = vld [vmem:[%s2705_s26 + $0x1b4] sm:$0xf] }
  0xbd   : > { %2359 = vst [vmem:[%s2815_s15] sm:$0xff] %v2358_v32   ;;  %v1590_v34 = vadd.f32 %v2797_v3, %v1522_v33  ;;  %1174 = vmatmul.bf16.gmra.mxu1 %v2031_v24  ;;  %1254 = vmatmul.bf16.gmra.mxu3 %v2159_v29  ;;  %v1491_v41 = vmul.f32 %v2791_v63, %v1136_v35  ;;  %v2170_v24 = vld [vmem:[%s2705_s26 + $0x1b0] sm:$0xf]  ;;  %v2044_v29 = vld [vmem:[%s2705_s26 + $0xb8] sm:$0xf0] }
  0xbf   : > { %v1654_v37 = vmax.f32 %v1590_v34, 0.0  ;;  %v1046_v38 = vpop.f32.mrf.mxu2  ;;  %v1559_v49 = vadd.f32 %v2797_v3, %v1491_v41 }
  0xc0   : > { %v1215_v39 = vpop.f32.mrf.mxu3 }
  0xc1   : > { %v2438_v40 = vpack.c.bf16 %v1654_v37, %v1653_v36  ;;  %v968_v42 = vpop.f32.mrf.mxu0  ;;  %v1216_v44 = vadd.f32 %v1215_v39, %v1046_v38  ;;  %v1623_v0 = vmax.f32 %v1559_v49, 0.0  ;;  %v2043_v36 = vor.u32 %v2298_v23, %v2042_v22 }
  0xc2   : > { %v1137_v43 = vpop.f32.mrf.mxu1  ;;  %v2171_v37 = vor.u32 %v2330_v27, %v2170_v24  ;;  %v2047_v38 = vor.u32 %v2297_v28, %v2044_v29 }
  0xc3   : > { %2530 = vst [vmem:[%s2815_s15 + $0x80] sm:$0xff] %v2438_v40   ;;  %v1138_v45 = vadd.f32 %v1137_v43, %v968_v42  ;;  %v1523_v56 = vmul.f32 %v2791_v63, %v1216_v44  ;;  %v2175_v43 = vor.u32 %v2329_v30, %v2172_v31 }
  0xc5   : > { %v1492_v50 = vmul.f32 %v2791_v63, %v1138_v45  ;;  %v1591_v7 = vadd.f32 %v2797_v3, %v1523_v56 }
  0xc7   : > { %v1560_v57 = vadd.f32 %v2797_v3, %v1492_v50  ;;  %v1048_v58 = vpop.f32.mrf.mxu2  ;;  %v1655_v12 = vmax.f32 %v1591_v7, 0.0  ;;  %v2180_v7 = vld [vmem:[%s2705_s26 + $0x1c8] sm:$0xf0] }
  0xc8   : > { %v1217_v59 = vpop.f32.mrf.mxu3 }
  0xc9   : > { %v1624_v1 = vmax.f32 %v1560_v57, 0.0  ;;  %v1218_v2 = vadd.f32 %v1217_v59, %v1048_v58  ;;  %v971_v4 = vpop.f32.mrf.mxu0 }
  0xca   : > { %v1140_v6 = vpop.f32.mrf.mxu1 }
  0xcb   : > { %v2363_v8 = vpack.c.bf16 %v1624_v1, %v1623_v0  ;;  %v1524_v9 = vmul.f32 %v2791_v63, %v1218_v2  ;;  %v1141_v11 = vadd.f32 %v1140_v6, %v971_v4  ;;  %v2332_v2 = vld [vmem:[%s2705_s26 + $0x1c4] sm:$0xf0]  ;;  %v2299_v4 = vld [vmem:[%s2705_s26 + $0xc4] sm:$0xf] }
  0xcc   : > { %1010 = vmatmul.bf16.gmra.mxu0 %v2035_v60  ;;  %1090 = vmatmul.bf16.gmra.mxu2 %v2163_v61  ;;  %v2050_v60 = vld [vmem:[%s2705_s26 + $0xc0] sm:$0xf]  ;;  %v2300_v61 = vld [vmem:[%s2705_s26 + $0xc4] sm:$0xf0]  ;;  %v2331_v6 = vld [vmem:[%s2705_s26 + $0x1c4] sm:$0xf] }
  0xcd   : > { %2515 = vst [vmem:[%s2815_s15 + $0x8] sm:$0xff] %v2363_v8   ;;  %v1592_v10 = vadd.f32 %v2797_v3, %v1524_v9  ;;  %1179 = vmatmul.bf16.gmra.mxu1 %v2039_v62  ;;  %1259 = vmatmul.bf16.gmra.mxu3 %v2167_v5  ;;  %v1493_v17 = vmul.f32 %v2791_v63, %v1141_v11  ;;  %v2178_v62 = vld [vmem:[%s2705_s26 + $0x1c0] sm:$0xf]  ;;  %v2052_v5 = vld [vmem:[%s2705_s26 + $0xc8] sm:$0xf0] }
  0xcf   : > { %v1656_v13 = vmax.f32 %v1592_v10, 0.0  ;;  %v1051_v14 = vpop.f32.mrf.mxu2  ;;  %v1561_v25 = vadd.f32 %v2797_v3, %v1493_v17 }
  0xd0   : > { %v1220_v15 = vpop.f32.mrf.mxu3 }
  0xd1   : > { %v2443_v16 = vpack.c.bf16 %v1656_v13, %v1655_v12  ;;  %v973_v18 = vpop.f32.mrf.mxu0  ;;  %v1221_v20 = vadd.f32 %v1220_v15, %v1051_v14  ;;  %v1625_v39 = vmax.f32 %v1561_v25, 0.0  ;;  %v2051_v12 = vor.u32 %v2300_v61, %v2050_v60 }
  0xd2   : > { %v1142_v19 = vpop.f32.mrf.mxu1  ;;  %v2179_v13 = vor.u32 %v2332_v2, %v2178_v62  ;;  %v2055_v14 = vor.u32 %v2299_v4, %v2052_v5 }
  0xd3   : > { %2531 = vst [vmem:[%s2815_s15 + $0x88] sm:$0xff] %v2443_v16   ;;  %v1143_v21 = vadd.f32 %v1142_v19, %v973_v18  ;;  %v1525_v32 = vmul.f32 %v2791_v63, %v1221_v20  ;;  %v2183_v19 = vor.u32 %v2331_v6, %v2180_v7 }
  0xd5   : > { %v1494_v26 = vmul.f32 %v2791_v63, %v1143_v21  ;;  %v1593_v45 = vadd.f32 %v2797_v3, %v1525_v32 }
  0xd7   : > { %v1562_v33 = vadd.f32 %v2797_v3, %v1494_v26  ;;  %v1053_v34 = vpop.f32.mrf.mxu2  ;;  %v1657_v50 = vmax.f32 %v1593_v45, 0.0  ;;  %v2188_v45 = vld [vmem:[%s2705_s26 + $0x1d8] sm:$0xf0] }
  0xd8   : > { %v1222_v35 = vpop.f32.mrf.mxu3 }
  0xd9   : > { %v1626_v40 = vmax.f32 %v1562_v33, 0.0  ;;  %v1223_v41 = vadd.f32 %v1222_v35, %v1053_v34  ;;  %v976_v42 = vpop.f32.mrf.mxu0 }
  0xda   : > { %v1145_v44 = vpop.f32.mrf.mxu1 }
  0xdb   : > { %v2368_v46 = vpack.c.bf16 %v1626_v40, %v1625_v39  ;;  %v1526_v47 = vmul.f32 %v2791_v63, %v1223_v41  ;;  %v1146_v49 = vadd.f32 %v1145_v44, %v976_v42  ;;  %v2334_v41 = vld [vmem:[%s2705_s26 + $0x1d4] sm:$0xf0]  ;;  %v2301_v42 = vld [vmem:[%s2705_s26 + $0xd4] sm:$0xf] }
  0xdc   : > { %1015 = vmatmul.bf16.gmra.mxu0 %v2043_v36  ;;  %1095 = vmatmul.bf16.gmra.mxu2 %v2171_v37  ;;  %v2058_v36 = vld [vmem:[%s2705_s26 + $0xd0] sm:$0xf]  ;;  %v2302_v37 = vld [vmem:[%s2705_s26 + $0xd4] sm:$0xf0]  ;;  %v2333_v44 = vld [vmem:[%s2705_s26 + $0x1d4] sm:$0xf] }
  0xdd   : > { %2516 = vst [vmem:[%s2815_s15 + $0x10] sm:$0xff] %v2368_v46   ;;  %v1594_v48 = vadd.f32 %v2797_v3, %v1526_v47  ;;  %1184 = vmatmul.bf16.gmra.mxu1 %v2047_v38  ;;  %1264 = vmatmul.bf16.gmra.mxu3 %v2175_v43  ;;  %v1495_v55 = vmul.f32 %v2791_v63, %v1146_v49  ;;  %v2186_v38 = vld [vmem:[%s2705_s26 + $0x1d0] sm:$0xf]  ;;  %v2060_v43 = vld [vmem:[%s2705_s26 + $0xd8] sm:$0xf0] }
  0xdf   : > { %v1658_v51 = vmax.f32 %v1594_v48, 0.0  ;;  %v1056_v52 = vpop.f32.mrf.mxu2  ;;  %v1563_v0 = vadd.f32 %v2797_v3, %v1495_v55 }
  0xe0   : > { %v1225_v53 = vpop.f32.mrf.mxu3 }
  0xe1   : > { %v2448_v54 = vpack.c.bf16 %v1658_v51, %v1657_v50  ;;  %v978_v56 = vpop.f32.mrf.mxu0  ;;  %v1226_v58 = vadd.f32 %v1225_v53, %v1056_v52  ;;  %v1627_v15 = vmax.f32 %v1563_v0, 0.0  ;;  %v2059_v50 = vor.u32 %v2302_v37, %v2058_v36 }
  0xe2   : > { %v1147_v57 = vpop.f32.mrf.mxu1  ;;  %v2187_v51 = vor.u32 %v2334_v41, %v2186_v38  ;;  %v2063_v52 = vor.u32 %v2301_v42, %v2060_v43 }
  0xe3   : > { %2532 = vst [vmem:[%s2815_s15 + $0x90] sm:$0xff] %v2448_v54   ;;  %v1148_v59 = vadd.f32 %v1147_v57, %v978_v56  ;;  %v1527_v8 = vmul.f32 %v2791_v63, %v1226_v58  ;;  %v2191_v57 = vor.u32 %v2333_v44, %v2188_v45 }
  0xe5   : > { %v1496_v1 = vmul.f32 %v2791_v63, %v1148_v59  ;;  %v1595_v21 = vadd.f32 %v2797_v3, %v1527_v8 }
  0xe7   : > { %v1564_v9 = vadd.f32 %v2797_v3, %v1496_v1  ;;  %v1058_v10 = vpop.f32.mrf.mxu2  ;;  %v1659_v26 = vmax.f32 %v1595_v21, 0.0  ;;  %v2196_v21 = vld [vmem:[%s2705_s26 + $0x1e8] sm:$0xf0] }
  0xe8   : > { %v1227_v11 = vpop.f32.mrf.mxu3 }
  0xe9   : > { %v1628_v16 = vmax.f32 %v1564_v9, 0.0  ;;  %v1228_v17 = vadd.f32 %v1227_v11, %v1058_v10  ;;  %v981_v18 = vpop.f32.mrf.mxu0 }
  0xea   : > { %v1150_v20 = vpop.f32.mrf.mxu1 }
  0xeb   : > { %v2373_v22 = vpack.c.bf16 %v1628_v16, %v1627_v15  ;;  %v1528_v23 = vmul.f32 %v2791_v63, %v1228_v17  ;;  %v1151_v25 = vadd.f32 %v1150_v20, %v981_v18  ;;  %v2336_v17 = vld [vmem:[%s2705_s26 + $0x1e4] sm:$0xf0]  ;;  %v2303_v18 = vld [vmem:[%s2705_s26 + $0xe4] sm:$0xf] }
  0xec   : > { %1020 = vmatmul.bf16.gmra.mxu0 %v2051_v12  ;;  %1100 = vmatmul.bf16.gmra.mxu2 %v2179_v13  ;;  %v2066_v12 = vld [vmem:[%s2705_s26 + $0xe0] sm:$0xf]  ;;  %v2304_v13 = vld [vmem:[%s2705_s26 + $0xe4] sm:$0xf0]  ;;  %v2335_v20 = vld [vmem:[%s2705_s26 + $0x1e4] sm:$0xf] }
  0xed   : > { %2517 = vst [vmem:[%s2815_s15 + $0x18] sm:$0xff] %v2373_v22   ;;  %v1596_v24 = vadd.f32 %v2797_v3, %v1528_v23  ;;  %1189 = vmatmul.bf16.gmra.mxu1 %v2055_v14  ;;  %1269 = vmatmul.bf16.gmra.mxu3 %v2183_v19  ;;  %v1497_v31 = vmul.f32 %v2791_v63, %v1151_v25  ;;  %v2194_v14 = vld [vmem:[%s2705_s26 + $0x1e0] sm:$0xf]  ;;  %v2068_v19 = vld [vmem:[%s2705_s26 + $0xe8] sm:$0xf0] }
  0xef   : > { %v1660_v27 = vmax.f32 %v1596_v24, 0.0  ;;  %v1061_v28 = vpop.f32.mrf.mxu2  ;;  %v1565_v39 = vadd.f32 %v2797_v3, %v1497_v31 }
  0xf0   : > { %v1230_v29 = vpop.f32.mrf.mxu3 }
  0xf1   : > { %v2453_v30 = vpack.c.bf16 %v1660_v27, %v1659_v26  ;;  %v983_v32 = vpop.f32.mrf.mxu0  ;;  %v1231_v34 = vadd.f32 %v1230_v29, %v1061_v28  ;;  %v1629_v53 = vmax.f32 %v1565_v39, 0.0  ;;  %v2067_v26 = vor.u32 %v2304_v13, %v2066_v12 }
  0xf2   : > { %v1152_v33 = vpop.f32.mrf.mxu1  ;;  %v2195_v27 = vor.u32 %v2336_v17, %v2194_v14  ;;  %v2071_v28 = vor.u32 %v2303_v18, %v2068_v19 }
  0xf3   : > { %2533 = vst [vmem:[%s2815_s15 + $0x98] sm:$0xff] %v2453_v30   ;;  %v1153_v35 = vadd.f32 %v1152_v33, %v983_v32  ;;  %v1529_v46 = vmul.f32 %v2791_v63, %v1231_v34  ;;  %v2199_v33 = vor.u32 %v2335_v20, %v2196_v21 }
  0xf5   : > { %v1498_v40 = vmul.f32 %v2791_v63, %v1153_v35  ;;  %v1597_v59 = vadd.f32 %v2797_v3, %v1529_v46 }
  0xf7   : > { %v1566_v47 = vadd.f32 %v2797_v3, %v1498_v40  ;;  %v1063_v48 = vpop.f32.mrf.mxu2  ;;  %v1661_v1 = vmax.f32 %v1597_v59, 0.0  ;;  %v2204_v59 = vld [vmem:[%s2705_s26 + $0x1f8] sm:$0xf0] }
  0xf8   : > { %v1232_v49 = vpop.f32.mrf.mxu3 }
  0xf9   : > { %v1630_v54 = vmax.f32 %v1566_v47, 0.0  ;;  %v1233_v55 = vadd.f32 %v1232_v49, %v1063_v48  ;;  %v986_v56 = vpop.f32.mrf.mxu0 }
  0xfa   : > { %v1155_v58 = vpop.f32.mrf.mxu1 }
  0xfb   : > { %v2378_v60 = vpack.c.bf16 %v1630_v54, %v1629_v53  ;;  %v1530_v61 = vmul.f32 %v2791_v63, %v1233_v55  ;;  %v1156_v0 = vadd.f32 %v1155_v58, %v986_v56  ;;  %v2338_v55 = vld [vmem:[%s2705_s26 + $0x1f4] sm:$0xf0]  ;;  %v2305_v56 = vld [vmem:[%s2705_s26 + $0xf4] sm:$0xf] }
  0xfc   : > { %1025 = vmatmul.bf16.gmra.mxu0 %v2059_v50  ;;  %1105 = vmatmul.bf16.gmra.mxu2 %v2187_v51  ;;  %v2074_v50 = vld [vmem:[%s2705_s26 + $0xf0] sm:$0xf]  ;;  %v2306_v51 = vld [vmem:[%s2705_s26 + $0xf4] sm:$0xf0]  ;;  %v2337_v58 = vld [vmem:[%s2705_s26 + $0x1f4] sm:$0xf] }
  0xfd   : > { %2518 = vst [vmem:[%s2815_s15 + $0x20] sm:$0xff] %v2378_v60   ;;  %v1598_v62 = vadd.f32 %v2797_v3, %v1530_v61  ;;  %1194 = vmatmul.bf16.gmra.mxu1 %v2063_v52  ;;  %1274 = vmatmul.bf16.gmra.mxu3 %v2191_v57  ;;  %v1499_v7 = vmul.f32 %v2791_v63, %v1156_v0  ;;  %v2202_v52 = vld [vmem:[%s2705_s26 + $0x1f0] sm:$0xf]  ;;  %v2076_v57 = vld [vmem:[%s2705_s26 + $0xf8] sm:$0xf0] }
  0xff   : > { %v1662_v2 = vmax.f32 %v1598_v62, 0.0  ;;  %v1066_v4 = vpop.f32.mrf.mxu2  ;;  %v1567_v15 = vadd.f32 %v2797_v3, %v1499_v7 }
 0x100   : > { %v1235_v5 = vpop.f32.mrf.mxu3 }
 0x101   : > { %v2458_v6 = vpack.c.bf16 %v1662_v2, %v1661_v1  ;;  %v988_v8 = vpop.f32.mrf.mxu0  ;;  %v1236_v10 = vadd.f32 %v1235_v5, %v1066_v4  ;;  %v1631_v29 = vmax.f32 %v1567_v15, 0.0  ;;  %v2075_v1 = vor.u32 %v2306_v51, %v2074_v50 }
 0x102   : > { %v1157_v9 = vpop.f32.mrf.mxu1  ;;  %v2203_v2 = vor.u32 %v2338_v55, %v2202_v52  ;;  %v2079_v4 = vor.u32 %v2305_v56, %v2076_v57 }
 0x103   : > { %2534 = vst [vmem:[%s2815_s15 + $0xa0] sm:$0xff] %v2458_v6   ;;  %v1158_v11 = vadd.f32 %v1157_v9, %v988_v8  ;;  %v1531_v22 = vmul.f32 %v2791_v63, %v1236_v10  ;;  %v2207_v9 = vor.u32 %v2337_v58, %v2204_v59 }
 0x105   : > { %v1500_v16 = vmul.f32 %v2791_v63, %v1158_v11  ;;  %v1599_v35 = vadd.f32 %v2797_v3, %v1531_v22 }
 0x107   : > { %v1568_v23 = vadd.f32 %v2797_v3, %v1500_v16  ;;  %v1068_v24 = vpop.f32.mrf.mxu2  ;;  %v1663_v40 = vmax.f32 %v1599_v35, 0.0 }
 0x108   : > { %v1237_v25 = vpop.f32.mrf.mxu3 }
 0x109   : > { %v1632_v30 = vmax.f32 %v1568_v23, 0.0  ;;  %v1238_v31 = vadd.f32 %v1237_v25, %v1068_v24  ;;  %v991_v32 = vpop.f32.mrf.mxu0 }
 0x10a   : > { %v1160_v34 = vpop.f32.mrf.mxu1 }
 0x10b   : > { %v2383_v36 = vpack.c.bf16 %v1632_v30, %v1631_v29  ;;  %v1532_v37 = vmul.f32 %v2791_v63, %v1238_v31  ;;  %v1161_v39 = vadd.f32 %v1160_v34, %v991_v32 }
 0x10c   : > { %1030 = vmatmul.bf16.gmra.mxu0 %v2067_v26  ;;  %1110 = vmatmul.bf16.gmra.mxu2 %v2195_v27 }
 0x10d   : > { %2519 = vst [vmem:[%s2815_s15 + $0x28] sm:$0xff] %v2383_v36   ;;  %v1600_v38 = vadd.f32 %v2797_v3, %v1532_v37  ;;  %1199 = vmatmul.bf16.gmra.mxu1 %v2071_v28  ;;  %1279 = vmatmul.bf16.gmra.mxu3 %v2199_v33  ;;  %v1501_v45 = vmul.f32 %v2791_v63, %v1161_v39 }
 0x10f   : > { %v1664_v41 = vmax.f32 %v1600_v38, 0.0  ;;  %v1071_v42 = vpop.f32.mrf.mxu2  ;;  %v1569_v53 = vadd.f32 %v2797_v3, %v1501_v45 }
 0x110   : > { %v1240_v43 = vpop.f32.mrf.mxu3 }
 0x111   : > { %v2463_v44 = vpack.c.bf16 %v1664_v41, %v1663_v40  ;;  %v993_v46 = vpop.f32.mrf.mxu0  ;;  %v1241_v48 = vadd.f32 %v1240_v43, %v1071_v42  ;;  %v1633_v5 = vmax.f32 %v1569_v53, 0.0 }
 0x112   : > { %v1162_v47 = vpop.f32.mrf.mxu1 }
 0x113   : > { %2535 = vst [vmem:[%s2815_s15 + $0xa8] sm:$0xff] %v2463_v44   ;;  %v1163_v49 = vadd.f32 %v1162_v47, %v993_v46  ;;  %v1533_v60 = vmul.f32 %v2791_v63, %v1241_v48 }
 0x115   : > { %v1502_v54 = vmul.f32 %v2791_v63, %v1163_v49  ;;  %v1601_v11 = vadd.f32 %v2797_v3, %v1533_v60 }
 0x117   : > { %v1570_v61 = vadd.f32 %v2797_v3, %v1502_v54  ;;  %v1073_v62 = vpop.f32.mrf.mxu2  ;;  %v1665_v16 = vmax.f32 %v1601_v11, 0.0 }
 0x118   : > { %v1242_v0 = vpop.f32.mrf.mxu3 }
 0x119   : > { %v1634_v6 = vmax.f32 %v1570_v61, 0.0  ;;  %v1243_v7 = vadd.f32 %v1242_v0, %v1073_v62  ;;  %v996_v8 = vpop.f32.mrf.mxu0 }
 0x11a   : > { %v1165_v10 = vpop.f32.mrf.mxu1 }
 0x11b   : > { %v2388_v12 = vpack.c.bf16 %v1634_v6, %v1633_v5  ;;  %v1534_v13 = vmul.f32 %v2791_v63, %v1243_v7  ;;  %v1166_v15 = vadd.f32 %v1165_v10, %v996_v8 }
 0x11c   : > { %1035 = vmatmul.bf16.gmra.mxu0 %v2075_v1  ;;  %1115 = vmatmul.bf16.gmra.mxu2 %v2203_v2 }
 0x11d   : > { %2520 = vst [vmem:[%s2815_s15 + $0x30] sm:$0xff] %v2388_v12   ;;  %v1602_v14 = vadd.f32 %v2797_v3, %v1534_v13  ;;  %1204 = vmatmul.bf16.gmra.mxu1 %v2079_v4  ;;  %1284 = vmatmul.bf16.gmra.mxu3 %v2207_v9  ;;  %v1503_v21 = vmul.f32 %v2791_v63, %v1166_v15 }
 0x11f   : > { %v1666_v17 = vmax.f32 %v1602_v14, 0.0  ;;  %v1076_v18 = vpop.f32.mrf.mxu2  ;;  %v1571_v26 = vadd.f32 %v2797_v3, %v1503_v21 }
 0x120   : > { %v1245_v19 = vpop.f32.mrf.mxu3 }
 0x121   : > { %v2468_v20 = vpack.c.bf16 %v1666_v17, %v1665_v16  ;;  %v998_v22 = vpop.f32.mrf.mxu0  ;;  %v1246_v24 = vadd.f32 %v1245_v19, %v1076_v18  ;;  %v1635_v32 = vmax.f32 %v1571_v26, 0.0 }
 0x122   : > { %v1167_v23 = vpop.f32.mrf.mxu1 }
 0x123   : > { %2536 = vst [vmem:[%s2815_s15 + $0xb0] sm:$0xff] %v2468_v20   ;;  %v1168_v25 = vadd.f32 %v1167_v23, %v998_v22  ;;  %v1535_v28 = vmul.f32 %v2791_v63, %v1246_v24 }
 0x125   : > { %v1504_v27 = vmul.f32 %v2791_v63, %v1168_v25  ;;  %v1603_v37 = vadd.f32 %v2797_v3, %v1535_v28 }
 0x127   : > { %v1572_v29 = vadd.f32 %v2797_v3, %v1504_v27  ;;  %v1078_v30 = vpop.f32.mrf.mxu2  ;;  %v1667_v42 = vmax.f32 %v1603_v37, 0.0 }
 0x128   : > { %v1247_v31 = vpop.f32.mrf.mxu3 }
 0x129   : > { %v1636_v33 = vmax.f32 %v1572_v29, 0.0  ;;  %v1248_v34 = vadd.f32 %v1247_v31, %v1078_v30  ;;  %v1001_v35 = vpop.f32.mrf.mxu0 }
 0x12a   : > { %v1170_v36 = vpop.f32.mrf.mxu1 }
 0x12b   : > { %v2393_v38 = vpack.c.bf16 %v1636_v33, %v1635_v32  ;;  %v1536_v39 = vmul.f32 %v2791_v63, %v1248_v34  ;;  %v1171_v41 = vadd.f32 %v1170_v36, %v1001_v35 }
 0x12d   : > { %2521 = vst [vmem:[%s2815_s15 + $0x38] sm:$0xff] %v2393_v38   ;;  %v1604_v40 = vadd.f32 %v2797_v3, %v1536_v39  ;;  %v1505_v47 = vmul.f32 %v2791_v63, %v1171_v41 }
 0x12f   : > { %v1668_v43 = vmax.f32 %v1604_v40, 0.0  ;;  %v1081_v44 = vpop.f32.mrf.mxu2  ;;  %v1573_v52 = vadd.f32 %v2797_v3, %v1505_v47 }
 0x130   : > { %v1250_v45 = vpop.f32.mrf.mxu3 }
 0x131   : > { %v2473_v46 = vpack.c.bf16 %v1668_v43, %v1667_v42  ;;  %v1003_v48 = vpop.f32.mrf.mxu0  ;;  %v1251_v50 = vadd.f32 %v1250_v45, %v1081_v44  ;;  %v1637_v58 = vmax.f32 %v1573_v52, 0.0 }
 0x132   : > { %v1172_v49 = vpop.f32.mrf.mxu1 }
 0x133   : > { %2537 = vst [vmem:[%s2815_s15 + $0xb8] sm:$0xff] %v2473_v46   ;;  %v1173_v51 = vadd.f32 %v1172_v49, %v1003_v48  ;;  %v1537_v54 = vmul.f32 %v2791_v63, %v1251_v50 }
 0x135   : > { %v1506_v53 = vmul.f32 %v2791_v63, %v1173_v51  ;;  %v1605_v0 = vadd.f32 %v2797_v3, %v1537_v54 }
 0x137   : > { %v1574_v55 = vadd.f32 %v2797_v3, %v1506_v53  ;;  %v1083_v56 = vpop.f32.mrf.mxu2  ;;  %v1669_v6 = vmax.f32 %v1605_v0, 0.0 }
 0x138   : > { %v1252_v57 = vpop.f32.mrf.mxu3 }
 0x139   : > { %v1638_v59 = vmax.f32 %v1574_v55, 0.0  ;;  %v1253_v60 = vadd.f32 %v1252_v57, %v1083_v56  ;;  %v1006_v61 = vpop.f32.mrf.mxu0 }
 0x13a   : > { %v1175_v62 = vpop.f32.mrf.mxu1 }
 0x13b   : > { %v2398_v1 = vpack.c.bf16 %v1638_v59, %v1637_v58  ;;  %v1538_v2 = vmul.f32 %v2791_v63, %v1253_v60  ;;  %v1176_v5 = vadd.f32 %v1175_v62, %v1006_v61 }
 0x13d   : > { %2522 = vst [vmem:[%s2815_s15 + $0x40] sm:$0xff] %v2398_v1   ;;  %v1606_v4 = vadd.f32 %v2797_v3, %v1538_v2  ;;  %v1507_v11 = vmul.f32 %v2791_v63, %v1176_v5 }
 0x13f   : > { %v1670_v7 = vmax.f32 %v1606_v4, 0.0  ;;  %v1086_v8 = vpop.f32.mrf.mxu2  ;;  %v1575_v16 = vadd.f32 %v2797_v3, %v1507_v11 }
 0x140   : > { %v1255_v9 = vpop.f32.mrf.mxu3 }
 0x141   : > { %v2478_v10 = vpack.c.bf16 %v1670_v7, %v1669_v6  ;;  %v1008_v12 = vpop.f32.mrf.mxu0  ;;  %v1256_v14 = vadd.f32 %v1255_v9, %v1086_v8  ;;  %v1639_v22 = vmax.f32 %v1575_v16, 0.0 }
 0x142   : > { %v1177_v13 = vpop.f32.mrf.mxu1 }
 0x143   : > { %2538 = vst [vmem:[%s2815_s15 + $0xc0] sm:$0xff] %v2478_v10   ;;  %v1178_v15 = vadd.f32 %v1177_v13, %v1008_v12  ;;  %v1539_v18 = vmul.f32 %v2791_v63, %v1256_v14 }
 0x145   : > { %v1508_v17 = vmul.f32 %v2791_v63, %v1178_v15  ;;  %v1607_v27 = vadd.f32 %v2797_v3, %v1539_v18 }
 0x147   : > { %v1576_v19 = vadd.f32 %v2797_v3, %v1508_v17  ;;  %v1088_v20 = vpop.f32.mrf.mxu2  ;;  %v1671_v32 = vmax.f32 %v1607_v27, 0.0 }
 0x148   : > { %v1257_v21 = vpop.f32.mrf.mxu3 }
 0x149   : > { %v1640_v23 = vmax.f32 %v1576_v19, 0.0  ;;  %v1258_v24 = vadd.f32 %v1257_v21, %v1088_v20  ;;  %v1011_v25 = vpop.f32.mrf.mxu0 }
 0x14a   : > { %v1180_v26 = vpop.f32.mrf.mxu1 }
 0x14b   : > { %v2403_v28 = vpack.c.bf16 %v1640_v23, %v1639_v22  ;;  %v1540_v29 = vmul.f32 %v2791_v63, %v1258_v24  ;;  %v1181_v31 = vadd.f32 %v1180_v26, %v1011_v25 }
 0x14d   : > { %2523 = vst [vmem:[%s2815_s15 + $0x48] sm:$0xff] %v2403_v28   ;;  %v1608_v30 = vadd.f32 %v2797_v3, %v1540_v29  ;;  %v1509_v37 = vmul.f32 %v2791_v63, %v1181_v31 }
 0x14f   : > { %v1672_v33 = vmax.f32 %v1608_v30, 0.0  ;;  %v1091_v34 = vpop.f32.mrf.mxu2  ;;  %v1577_v42 = vadd.f32 %v2797_v3, %v1509_v37 }
 0x150   : > { %v1260_v35 = vpop.f32.mrf.mxu3 }
 0x151   : > { %v2483_v36 = vpack.c.bf16 %v1672_v33, %v1671_v32  ;;  %v1013_v38 = vpop.f32.mrf.mxu0  ;;  %v1261_v40 = vadd.f32 %v1260_v35, %v1091_v34  ;;  %v1641_v48 = vmax.f32 %v1577_v42, 0.0 }
 0x152   : > { %v1182_v39 = vpop.f32.mrf.mxu1 }
 0x153   : > { %2539 = vst [vmem:[%s2815_s15 + $0xc8] sm:$0xff] %v2483_v36   ;;  %v1183_v41 = vadd.f32 %v1182_v39, %v1013_v38  ;;  %v1541_v44 = vmul.f32 %v2791_v63, %v1261_v40 }
 0x155   : > { %v1510_v43 = vmul.f32 %v2791_v63, %v1183_v41  ;;  %v1609_v53 = vadd.f32 %v2797_v3, %v1541_v44 }
 0x157   : > { %v1578_v45 = vadd.f32 %v2797_v3, %v1510_v43  ;;  %v1093_v46 = vpop.f32.mrf.mxu2  ;;  %v1673_v58 = vmax.f32 %v1609_v53, 0.0 }
 0x158   : > { %v1262_v47 = vpop.f32.mrf.mxu3 }
 0x159   : > { %v1642_v49 = vmax.f32 %v1578_v45, 0.0  ;;  %v1263_v50 = vadd.f32 %v1262_v47, %v1093_v46  ;;  %v1016_v51 = vpop.f32.mrf.mxu0 }
 0x15a   : > { %v1185_v52 = vpop.f32.mrf.mxu1 }
 0x15b   : > { %v2408_v54 = vpack.c.bf16 %v1642_v49, %v1641_v48  ;;  %v1542_v55 = vmul.f32 %v2791_v63, %v1263_v50  ;;  %v1186_v57 = vadd.f32 %v1185_v52, %v1016_v51 }
 0x15d   : > { %2524 = vst [vmem:[%s2815_s15 + $0x50] sm:$0xff] %v2408_v54   ;;  %v1610_v56 = vadd.f32 %v2797_v3, %v1542_v55  ;;  %v1511_v0 = vmul.f32 %v2791_v63, %v1186_v57 }
 0x15f   : > { %v1674_v59 = vmax.f32 %v1610_v56, 0.0  ;;  %v1096_v60 = vpop.f32.mrf.mxu2  ;;  %v1579_v6 = vadd.f32 %v2797_v3, %v1511_v0 }
 0x160   : > { %v1265_v61 = vpop.f32.mrf.mxu3 }
 0x161   : > { %v2488_v62 = vpack.c.bf16 %v1674_v59, %v1673_v58  ;;  %v1018_v1 = vpop.f32.mrf.mxu0  ;;  %v1266_v4 = vadd.f32 %v1265_v61, %v1096_v60  ;;  %v1643_v12 = vmax.f32 %v1579_v6, 0.0 }
 0x162   : > { %v1187_v2 = vpop.f32.mrf.mxu1 }
 0x163   : > { %2540 = vst [vmem:[%s2815_s15 + $0xd0] sm:$0xff] %v2488_v62   ;;  %v1188_v5 = vadd.f32 %v1187_v2, %v1018_v1  ;;  %v1543_v8 = vmul.f32 %v2791_v63, %v1266_v4 }
 0x165   : > { %v1512_v7 = vmul.f32 %v2791_v63, %v1188_v5  ;;  %v1611_v17 = vadd.f32 %v2797_v3, %v1543_v8 }
 0x167   : > { %v1580_v9 = vadd.f32 %v2797_v3, %v1512_v7  ;;  %v1098_v10 = vpop.f32.mrf.mxu2  ;;  %v1675_v22 = vmax.f32 %v1611_v17, 0.0 }
 0x168   : > { %v1267_v11 = vpop.f32.mrf.mxu3 }
 0x169   : > { %v1644_v13 = vmax.f32 %v1580_v9, 0.0  ;;  %v1268_v14 = vadd.f32 %v1267_v11, %v1098_v10  ;;  %v1021_v15 = vpop.f32.mrf.mxu0 }
 0x16a   : > { %v1190_v16 = vpop.f32.mrf.mxu1 }
 0x16b   : > { %v2413_v18 = vpack.c.bf16 %v1644_v13, %v1643_v12  ;;  %v1544_v19 = vmul.f32 %v2791_v63, %v1268_v14  ;;  %v1191_v21 = vadd.f32 %v1190_v16, %v1021_v15 }
 0x16d   : > { %2525 = vst [vmem:[%s2815_s15 + $0x58] sm:$0xff] %v2413_v18   ;;  %v1612_v20 = vadd.f32 %v2797_v3, %v1544_v19  ;;  %v1513_v27 = vmul.f32 %v2791_v63, %v1191_v21 }
 0x16f   : > { %v1676_v23 = vmax.f32 %v1612_v20, 0.0  ;;  %v1101_v24 = vpop.f32.mrf.mxu2  ;;  %v1581_v32 = vadd.f32 %v2797_v3, %v1513_v27 }
 0x170   : > { %v1270_v25 = vpop.f32.mrf.mxu3 }
 0x171   : > { %v2493_v26 = vpack.c.bf16 %v1676_v23, %v1675_v22  ;;  %v1023_v28 = vpop.f32.mrf.mxu0  ;;  %v1271_v30 = vadd.f32 %v1270_v25, %v1101_v24  ;;  %v1645_v38 = vmax.f32 %v1581_v32, 0.0  ;;  %v2588_v23 = vld [vmem:[%s3023_s2] ss:$0 sm:$0xff] }
 0x172   : > { %v1192_v29 = vpop.f32.mrf.mxu1 }
 0x173   : > { %2541 = vst [vmem:[%s2815_s15 + $0xd8] sm:$0xff] %v2493_v26   ;;  %v1193_v31 = vadd.f32 %v1192_v29, %v1023_v28  ;;  %v1545_v34 = vmul.f32 %v2791_v63, %v1271_v30  ;;  %v2589_v26 = vld [vmem:[%s3024_s3] ss:$0 sm:$0xff] }
 0x175   : > { %v1514_v33 = vmul.f32 %v2791_v63, %v1193_v31  ;;  %v1613_v43 = vadd.f32 %v2797_v3, %v1545_v34 }
 0x177   : > { %v1582_v35 = vadd.f32 %v2797_v3, %v1514_v33  ;;  %v1103_v36 = vpop.f32.mrf.mxu2  ;;  %v1677_v48 = vmax.f32 %v1613_v43, 0.0 }
 0x178   : > { %v1272_v37 = vpop.f32.mrf.mxu3 }
 0x179   : > { %v1646_v39 = vmax.f32 %v1582_v35, 0.0  ;;  %v1273_v40 = vadd.f32 %v1272_v37, %v1103_v36  ;;  %v1026_v41 = vpop.f32.mrf.mxu0 }
 0x17a   : > { %v1195_v42 = vpop.f32.mrf.mxu1 }
 0x17b   : > { %v2418_v44 = vpack.c.bf16 %v1646_v39, %v1645_v38  ;;  %v1546_v45 = vmul.f32 %v2791_v63, %v1273_v40  ;;  %v1196_v47 = vadd.f32 %v1195_v42, %v1026_v41 }
 0x17d   : > { %2526 = vst [vmem:[%s2815_s15 + $0x60] sm:$0xff] %v2418_v44   ;;  %v1614_v46 = vadd.f32 %v2797_v3, %v1546_v45  ;;  %v1515_v53 = vmul.f32 %v2791_v63, %v1196_v47 }
 0x17f   : > { %v1678_v49 = vmax.f32 %v1614_v46, 0.0  ;;  %v1106_v50 = vpop.f32.mrf.mxu2  ;;  %v1583_v58 = vadd.f32 %v2797_v3, %v1515_v53 }
 0x180   : > { %v1275_v51 = vpop.f32.mrf.mxu3 }
 0x181   : > { %v2498_v52 = vpack.c.bf16 %v1678_v49, %v1677_v48  ;;  %v1028_v54 = vpop.f32.mrf.mxu0  ;;  %v1276_v56 = vadd.f32 %v1275_v51, %v1106_v50  ;;  %v1647_v1 = vmax.f32 %v1583_v58, 0.0 }
 0x182   : > { %v1197_v55 = vpop.f32.mrf.mxu1 }
 0x183   : > { %2542 = vst [vmem:[%s2815_s15 + $0xe0] sm:$0xff] %v2498_v52   ;;  %v1198_v57 = vadd.f32 %v1197_v55, %v1028_v54  ;;  %v1547_v60 = vmul.f32 %v2791_v63, %v1276_v56 }
 0x185   : > { %v1516_v59 = vmul.f32 %v2791_v63, %v1198_v57  ;;  %v1615_v7 = vadd.f32 %v2797_v3, %v1547_v60 }
 0x187   : > { %v1584_v61 = vadd.f32 %v2797_v3, %v1516_v59  ;;  %v1108_v62 = vpop.f32.mrf.mxu2  ;;  %v1679_v12 = vmax.f32 %v1615_v7, 0.0 }
 0x188   : > { %v1277_v0 = vpop.f32.mrf.mxu3 }
 0x189   : > { %v1648_v2 = vmax.f32 %v1584_v61, 0.0  ;;  %v1278_v4 = vadd.f32 %v1277_v0, %v1108_v62  ;;  %v1031_v5 = vpop.f32.mrf.mxu0 }
 0x18a   : > { %v1200_v6 = vpop.f32.mrf.mxu1 }
 0x18b   : > { %v2423_v8 = vpack.c.bf16 %v1648_v2, %v1647_v1  ;;  %v1548_v9 = vmul.f32 %v2791_v63, %v1278_v4  ;;  %v1201_v11 = vadd.f32 %v1200_v6, %v1031_v5 }
 0x18d   : > { %2527 = vst [vmem:[%s2815_s15 + $0x68] sm:$0xff] %v2423_v8   ;;  %v1616_v10 = vadd.f32 %v2797_v3, %v1548_v9  ;;  %v1517_v17 = vmul.f32 %v2791_v63, %v1201_v11 }
 0x18f   : > { %v1680_v13 = vmax.f32 %v1616_v10, 0.0  ;;  %v1111_v14 = vpop.f32.mrf.mxu2  ;;  %v1585_v22 = vadd.f32 %v2797_v3, %v1517_v17 }
 0x190   : > { %v1280_v15 = vpop.f32.mrf.mxu3 }
 0x191   : > { %v2503_v16 = vpack.c.bf16 %v1680_v13, %v1679_v12  ;;  %v1033_v18 = vpop.f32.mrf.mxu0  ;;  %v1281_v20 = vadd.f32 %v1280_v15, %v1111_v14  ;;  %v1649_v29 = vmax.f32 %v1585_v22, 0.0 }
 0x192   : > { %v1202_v19 = vpop.f32.mrf.mxu1 }
 0x193   : > { %2543 = vst [vmem:[%s2815_s15 + $0xe8] sm:$0xff] %v2503_v16   ;;  %v1203_v21 = vadd.f32 %v1202_v19, %v1033_v18  ;;  %v1549_v25 = vmul.f32 %v2588_v23, %v1281_v20 }
 0x195   : > { %v1518_v24 = vmul.f32 %v2588_v23, %v1203_v21  ;;  %v1617_v33 = vadd.f32 %v2589_v26, %v1549_v25 }
 0x197   : > { %v1586_v27 = vadd.f32 %v2589_v26, %v1518_v24  ;;  %v1113_v63 = vpop.f32.mrf.mxu2  ;;  %v1681_v38 = vmax.f32 %v1617_v33, 0.0 }
 0x198   : > { %v1282_v28 = vpop.f32.mrf.mxu3 }
 0x199   : > { %v1650_v30 = vmax.f32 %v1586_v27, 0.0  ;;  %v1283_v31 = vadd.f32 %v1282_v28, %v1113_v63  ;;  %v1036_v32 = vpop.f32.mrf.mxu0 }
 0x19a   : > { %v1205_v3 = vpop.f32.mrf.mxu1 }
 0x19b   : > { %v2428_v34 = vpack.c.bf16 %v1650_v30, %v1649_v29  ;;  %v1550_v35 = vmul.f32 %v2588_v23, %v1283_v31  ;;  %v1206_v37 = vadd.f32 %v1205_v3, %v1036_v32 }
 0x19d   : > { %2528 = vst [vmem:[%s2815_s15 + $0x70] sm:$0xff] %v2428_v34   ;;  %v1618_v36 = vadd.f32 %v2589_v26, %v1550_v35  ;;  %v1519_v43 = vmul.f32 %v2588_v23, %v1206_v37 }
 0x19f   : > { %v1682_v39 = vmax.f32 %v1618_v36, 0.0  ;;  %v1116_v40 = vpop.f32.mrf.mxu2  ;;  %v1587_v48 = vadd.f32 %v2589_v26, %v1519_v43 }
 0x1a0   : > { %v1285_v41 = vpop.f32.mrf.mxu3 }
 0x1a1   : > { %v2508_v42 = vpack.c.bf16 %v1682_v39, %v1681_v38  ;;  %v1038_v44 = vpop.f32.mrf.mxu0  ;;  %v1286_v46 = vadd.f32 %v1285_v41, %v1116_v40  ;;  %v1651_v54 = vmax.f32 %v1587_v48, 0.0 }
 0x1a2   : > { %v1207_v45 = vpop.f32.mrf.mxu1 }
 0x1a3   : > { %2544 = vst [vmem:[%s2815_s15 + $0xf0] sm:$0xff] %v2508_v42   ;;  %v1208_v47 = vadd.f32 %v1207_v45, %v1038_v44  ;;  %v1551_v50 = vmul.f32 %v2588_v23, %v1286_v46 }
 0x1a5   : > { %v1520_v49 = vmul.f32 %v2588_v23, %v1208_v47  ;;  %v1619_v57 = vadd.f32 %v2589_v26, %v1551_v50 }
 0x1a7   : > { %v1588_v51 = vadd.f32 %v2589_v26, %v1520_v49  ;;  %v1118_v52 = vpop.f32.mrf.mxu2  ;;  %v1683_v61 = vmax.f32 %v1619_v57, 0.0 }
 0x1a8   : > { %v1287_v53 = vpop.f32.mrf.mxu3 }
 0x1a9   : > { %v1652_v55 = vmax.f32 %v1588_v51, 0.0  ;;  %v1288_v56 = vadd.f32 %v1287_v53, %v1118_v52 }
 0x1ab   : > { %v2433_v58 = vpack.c.bf16 %v1652_v55, %v1651_v54  ;;  %v1552_v59 = vmul.f32 %v2588_v23, %v1288_v56 }
 0x1ad   : > { %2529 = vst [vmem:[%s2815_s15 + $0x78] sm:$0xff] %v2433_v58   ;;  %v1620_v60 = vadd.f32 %v2589_v26, %v1552_v59 }
 0x1af   : > { %v1684_v62 = vmax.f32 %v1620_v60, 0.0 }
 0x1b1   : > { %v2513_v0 = vpack.c.bf16 %v1684_v62, %v1683_v61 }
 0x1b3   : > { %2545 = vst [vmem:[%s2815_s15 + $0xf8] sm:$0xff] %v2513_v0  }
 0x1b4 PF: > { %s14_s17 = sadd.s32 1, %s2612_s17   ;;  %s3026_s15 = smov %s2608_s16 }
 0x1b5   : > { %p11_p5 = scmp.ge.s32.totalorder %s14_s17, 6   ;;  %s3027_s16 = smov %s3029_s18 }
 0x1b7   :  { %13 = sbr.rel (!%p11_p5) target bundleno = 2 (0x2), region = 83 }

// kernel: resnext_forward.31
= control target key start
LH: loop header
LB: loop body
LE: loop exit
PB: predicated region body
PF: predicated region fallthrough
CT: control target
= control target key end

     0   :  { %s1897_s1 = inlined_call_operand.vmem [shape: bf16[128,128], index: 1, kind: input, shape index: {}]   ;;  %s1898_s2 = inlined_call_operand.vmem [shape: f32[1,128], index: 2, kind: input, shape index: {}]   ;;  %s1899_s3 = inlined_call_operand.vmem [shape: f32[1,128], index: 3, kind: input, shape index: {}]   ;;  %s1900_s0 = inlined_call_operand.vmem [shape: bf16[512,128], index: 0, kind: input, shape index: {}]   ;;  %s1901_s4 = inlined_call_operand.vmem [shape: bf16[512,128], index: 4, kind: output, shape index: {}]  }
   0x1   :  { %v1300_v0 = vld [vmem:[%s1897_s1 + $0x38] sm:$0xff]  ;;  %v1299_v1 = vld [vmem:[%s1897_s1 + $0x30] sm:$0xff]  ;;  %v1298_v2 = vld [vmem:[%s1897_s1 + $0x28] sm:$0xff] }
   0x2   :  { %469 = vmatpush.bf16.msra.mxu0 %v1300_v0  ;;  %1492 = vmatpush.bf16.msra.mxu1 %v1300_v0  ;;  %v1297_v3 = vld [vmem:[%s1897_s1 + $0x20] sm:$0xff]  ;;  %v1296_v4 = vld [vmem:[%s1897_s1 + $0x18] sm:$0xff]  ;;  %v1295_v5 = vld [vmem:[%s1897_s1 + $0x10] sm:$0xff] }
   0x3   :  { %1493 = vmatpush.bf16.msra.mxu2 %v1300_v0  ;;  %1494 = vmatpush.bf16.msra.mxu3 %v1300_v0  ;;  %v1294_v6 = vld [vmem:[%s1897_s1 + $0x8] sm:$0xff]  ;;  %v1293_v7 = vld [vmem:[%s1897_s1] sm:$0xff]  ;;  %v1263_v16 = vld [vmem:[%s1900_s0 + $0x10] sm:$0xff] }
   0x4   :  { %v1261_v8 = vld [vmem:[%s1900_s0] sm:$0xff]  ;;  %v1262_v12 = vld [vmem:[%s1900_s0 + $0x8] sm:$0xff]  ;;  %v1271_v17 = vld [vmem:[%s1900_s0 + $0x50] sm:$0xff] }
   0x5   :  { %v1269_v9 = vld [vmem:[%s1900_s0 + $0x40] sm:$0xff]  ;;  %v1270_v13 = vld [vmem:[%s1900_s0 + $0x48] sm:$0xff]  ;;  %v1279_v18 = vld [vmem:[%s1900_s0 + $0x90] sm:$0xff] }
   0x6   :  { %470 = vmatpush.bf16.msra.mxu0 %v1299_v1  ;;  %1495 = vmatpush.bf16.msra.mxu1 %v1299_v1  ;;  %v1277_v10 = vld [vmem:[%s1900_s0 + $0x80] sm:$0xff]  ;;  %v1278_v14 = vld [vmem:[%s1900_s0 + $0x88] sm:$0xff]  ;;  %v1287_v19 = vld [vmem:[%s1900_s0 + $0xd0] sm:$0xff] }
   0x7   :  { %1496 = vmatpush.bf16.msra.mxu2 %v1299_v1  ;;  %1497 = vmatpush.bf16.msra.mxu3 %v1299_v1  ;;  %v1285_v11 = vld [vmem:[%s1900_s0 + $0xc0] sm:$0xff]  ;;  %v1286_v15 = vld [vmem:[%s1900_s0 + $0xc8] sm:$0xff]  ;;  %v1264_v20 = vld [vmem:[%s1900_s0 + $0x18] sm:$0xff] }
   0x8   :  { %v1272_v21 = vld [vmem:[%s1900_s0 + $0x58] sm:$0xff]  ;;  %v1265_v24 = vld [vmem:[%s1900_s0 + $0x20] sm:$0xff]  ;;  %v1266_v28 = vld [vmem:[%s1900_s0 + $0x28] sm:$0xff] }
   0x9   :  { %v1280_v22 = vld [vmem:[%s1900_s0 + $0x98] sm:$0xff]  ;;  %v1273_v25 = vld [vmem:[%s1900_s0 + $0x60] sm:$0xff]  ;;  %v1274_v29 = vld [vmem:[%s1900_s0 + $0x68] sm:$0xff] }
   0xa   :  { %471 = vmatpush.bf16.msra.mxu0 %v1298_v2  ;;  %1498 = vmatpush.bf16.msra.mxu1 %v1298_v2  ;;  %v1288_v23 = vld [vmem:[%s1900_s0 + $0xd8] sm:$0xff]  ;;  %v1281_v26 = vld [vmem:[%s1900_s0 + $0xa0] sm:$0xff]  ;;  %v1282_v30 = vld [vmem:[%s1900_s0 + $0xa8] sm:$0xff] }
   0xb   :  { %1499 = vmatpush.bf16.msra.mxu2 %v1298_v2  ;;  %1500 = vmatpush.bf16.msra.mxu3 %v1298_v2  ;;  %v1289_v27 = vld [vmem:[%s1900_s0 + $0xe0] sm:$0xff]  ;;  %v1290_v31 = vld [vmem:[%s1900_s0 + $0xe8] sm:$0xff]  ;;  %v1267_v32 = vld [vmem:[%s1900_s0 + $0x30] sm:$0xff] }
   0xc   :  { %v1275_v33 = vld [vmem:[%s1900_s0 + $0x70] sm:$0xff]  ;;  %v1268_v36 = vld [vmem:[%s1900_s0 + $0x38] sm:$0xff]  ;;  %v1666_v42 = vld [vmem:[%s1898_s2] ss:$0 sm:$0xff] }
   0xd   :  { %v1283_v34 = vld [vmem:[%s1900_s0 + $0xb0] sm:$0xff]  ;;  %v1276_v37 = vld [vmem:[%s1900_s0 + $0x78] sm:$0xff]  ;;  %v1672_v44 = vld [vmem:[%s1899_s3] ss:$0 sm:$0xff] }
   0xe   :  { %472 = vmatpush.bf16.msra.mxu0 %v1297_v3  ;;  %1501 = vmatpush.bf16.msra.mxu1 %v1297_v3  ;;  %v1291_v35 = vld [vmem:[%s1900_s0 + $0xf0] sm:$0xff]  ;;  %v1284_v38 = vld [vmem:[%s1900_s0 + $0xb8] sm:$0xff] }
   0xf   :  { %1502 = vmatpush.bf16.msra.mxu2 %v1297_v3  ;;  %1503 = vmatpush.bf16.msra.mxu3 %v1297_v3  ;;  %v1292_v39 = vld [vmem:[%s1900_s0 + $0xf8] sm:$0xff] }
  0x12   :  { %473 = vmatpush.bf16.msra.mxu0 %v1296_v4  ;;  %1504 = vmatpush.bf16.msra.mxu1 %v1296_v4 }
  0x13   :  { %1505 = vmatpush.bf16.msra.mxu2 %v1296_v4  ;;  %1506 = vmatpush.bf16.msra.mxu3 %v1296_v4 }
  0x16   :  { %474 = vmatpush.bf16.msra.mxu0 %v1295_v5  ;;  %1507 = vmatpush.bf16.msra.mxu1 %v1295_v5 }
  0x17   :  { %1508 = vmatpush.bf16.msra.mxu2 %v1295_v5  ;;  %1509 = vmatpush.bf16.msra.mxu3 %v1295_v5 }
  0x1a   :  { %475 = vmatpush.bf16.msra.mxu0 %v1294_v6  ;;  %1510 = vmatpush.bf16.msra.mxu1 %v1294_v6 }
  0x1b   :  { %1511 = vmatpush.bf16.msra.mxu2 %v1294_v6  ;;  %1512 = vmatpush.bf16.msra.mxu3 %v1294_v6 }
  0x1e   :  { %476 = vmatpush.bf16.msra.mxu0 %v1293_v7  ;;  %1513 = vmatpush.bf16.msra.mxu1 %v1293_v7 }
  0x1f   :  { %1514 = vmatpush.bf16.msra.mxu2 %v1293_v7  ;;  %1515 = vmatpush.bf16.msra.mxu3 %v1293_v7 }
  0x21   :  { %477 = vmatmul.bf16.vlgmr.msra.gmra.mxu0 %v1261_v8  ;;  %517 = vmatmul.bf16.vlgmr.msra.gmra.mxu1 %v1269_v9 }
  0x22   :  { %557 = vmatmul.bf16.vlgmr.msra.gmra.mxu2 %v1277_v10  ;;  %597 = vmatmul.bf16.vlgmr.msra.gmra.mxu3 %v1285_v11 }
  0x31   :  { %482 = vmatmul.bf16.gmra.mxu0 %v1262_v12  ;;  %522 = vmatmul.bf16.gmra.mxu1 %v1270_v13 }
  0x32   :  { %562 = vmatmul.bf16.gmra.mxu2 %v1278_v14  ;;  %602 = vmatmul.bf16.gmra.mxu3 %v1286_v15 }
  0x41   :  { %487 = vmatmul.bf16.gmra.mxu0 %v1263_v16  ;;  %527 = vmatmul.bf16.gmra.mxu1 %v1271_v17 }
  0x42   :  { %567 = vmatmul.bf16.gmra.mxu2 %v1279_v18  ;;  %607 = vmatmul.bf16.gmra.mxu3 %v1287_v19 }
  0x51   :  { %492 = vmatmul.bf16.gmra.mxu0 %v1264_v20  ;;  %532 = vmatmul.bf16.gmra.mxu1 %v1272_v21 }
  0x52   :  { %572 = vmatmul.bf16.gmra.mxu2 %v1280_v22  ;;  %612 = vmatmul.bf16.gmra.mxu3 %v1288_v23 }
  0x61   :  { %497 = vmatmul.bf16.gmra.mxu0 %v1265_v24  ;;  %537 = vmatmul.bf16.gmra.mxu1 %v1273_v25 }
  0x62   :  { %577 = vmatmul.bf16.gmra.mxu2 %v1281_v26  ;;  %617 = vmatmul.bf16.gmra.mxu3 %v1289_v27 }
  0x71   :  { %502 = vmatmul.bf16.gmra.mxu0 %v1266_v28  ;;  %542 = vmatmul.bf16.gmra.mxu1 %v1274_v29 }
  0x72   :  { %582 = vmatmul.bf16.gmra.mxu2 %v1282_v30  ;;  %622 = vmatmul.bf16.gmra.mxu3 %v1290_v31 }
  0x81   :  { %507 = vmatmul.bf16.gmra.mxu0 %v1267_v32  ;;  %547 = vmatmul.bf16.gmra.mxu1 %v1275_v33 }
  0x82   :  { %587 = vmatmul.bf16.gmra.mxu2 %v1283_v34  ;;  %627 = vmatmul.bf16.gmra.mxu3 %v1291_v35 }
  0x91   :  { %512 = vmatmul.bf16.gmra.mxu0 %v1268_v36  ;;  %552 = vmatmul.bf16.gmra.mxu1 %v1276_v37 }
  0x92   :  { %592 = vmatmul.bf16.gmra.mxu2 %v1284_v38  ;;  %632 = vmatmul.bf16.gmra.mxu3 %v1292_v39 }
  0x9e   :  { %v478_v40 = vpop.f32.mrf.mxu0  ;;  %v518_v41 = vpop.f32.mrf.mxu1 }
  0x9f   :  { %v837_v43 = vmul.f32 %v1666_v42, %v478_v40  ;;  %v853_v45 = vmul.f32 %v1666_v42, %v518_v41 }
  0xa1   :  { %v905_v52 = vadd.f32 %v1672_v44, %v837_v43  ;;  %v921_v53 = vadd.f32 %v1672_v44, %v853_v45 }
  0xa5   :  { %v558_v46 = vpop.f32.mrf.mxu2  ;;  %v598_v47 = vpop.f32.mrf.mxu3 }
  0xa6   :  { %v480_v48 = vpop.f32.mrf.mxu0  ;;  %v520_v49 = vpop.f32.mrf.mxu1  ;;  %v869_v58 = vmul.f32 %v1666_v42, %v558_v46  ;;  %v885_v59 = vmul.f32 %v1666_v42, %v598_v47 }
  0xa7   :  { %v838_v50 = vmul.f32 %v1666_v42, %v480_v48  ;;  %v854_v51 = vmul.f32 %v1666_v42, %v520_v49 }
  0xa8   :  { %v937_v2 = vadd.f32 %v1672_v44, %v869_v58  ;;  %v953_v3 = vadd.f32 %v1672_v44, %v885_v59 }
  0xa9   :  { %v906_v54 = vadd.f32 %v1672_v44, %v838_v50  ;;  %v922_v55 = vadd.f32 %v1672_v44, %v854_v51 }
  0xab   :  { %v1304_v56 = vpack.c.bf16 %v906_v54, %v905_v52  ;;  %v1344_v57 = vpack.c.bf16 %v922_v55, %v921_v53 }
  0xad   :  { %1305 = vst [vmem:[%s1901_s4] sm:$0xff] %v1304_v56   ;;  %v560_v60 = vpop.f32.mrf.mxu2  ;;  %v600_v61 = vpop.f32.mrf.mxu3 }
  0xae   :  { %1468 = vst [vmem:[%s1901_s4 + $0x40] sm:$0xff] %v1344_v57   ;;  %v870_v62 = vmul.f32 %v1666_v42, %v560_v60  ;;  %v886_v63 = vmul.f32 %v1666_v42, %v600_v61  ;;  %v483_v0 = vpop.f32.mrf.mxu0  ;;  %v523_v1 = vpop.f32.mrf.mxu1 }
  0xaf   :  { %v839_v8 = vmul.f32 %v1666_v42, %v483_v0  ;;  %v855_v9 = vmul.f32 %v1666_v42, %v523_v1 }
  0xb0   :  { %v938_v4 = vadd.f32 %v1672_v44, %v870_v62  ;;  %v954_v5 = vadd.f32 %v1672_v44, %v886_v63 }
  0xb1   :  { %v907_v16 = vadd.f32 %v1672_v44, %v839_v8  ;;  %v923_v17 = vadd.f32 %v1672_v44, %v855_v9 }
  0xb2   :  { %v1384_v6 = vpack.c.bf16 %v938_v4, %v937_v2  ;;  %v1424_v7 = vpack.c.bf16 %v954_v5, %v953_v3 }
  0xb4   :  { %1476 = vst [vmem:[%s1901_s4 + $0x80] sm:$0xff] %v1384_v6  }
  0xb5   :  { %1484 = vst [vmem:[%s1901_s4 + $0xc0] sm:$0xff] %v1424_v7   ;;  %v563_v10 = vpop.f32.mrf.mxu2  ;;  %v603_v11 = vpop.f32.mrf.mxu3 }
  0xb6   :  { %v485_v12 = vpop.f32.mrf.mxu0  ;;  %v525_v13 = vpop.f32.mrf.mxu1  ;;  %v871_v22 = vmul.f32 %v1666_v42, %v563_v10  ;;  %v887_v23 = vmul.f32 %v1666_v42, %v603_v11 }
  0xb7   :  { %v840_v14 = vmul.f32 %v1666_v42, %v485_v12  ;;  %v856_v15 = vmul.f32 %v1666_v42, %v525_v13 }
  0xb8   :  { %v939_v30 = vadd.f32 %v1672_v44, %v871_v22  ;;  %v955_v31 = vadd.f32 %v1672_v44, %v887_v23 }
  0xb9   :  { %v908_v18 = vadd.f32 %v1672_v44, %v840_v14  ;;  %v924_v19 = vadd.f32 %v1672_v44, %v856_v15 }
  0xbb   :  { %v1309_v20 = vpack.c.bf16 %v908_v18, %v907_v16  ;;  %v1349_v21 = vpack.c.bf16 %v924_v19, %v923_v17 }
  0xbd   :  { %1461 = vst [vmem:[%s1901_s4 + $0x8] sm:$0xff] %v1309_v20   ;;  %v565_v24 = vpop.f32.mrf.mxu2  ;;  %v605_v25 = vpop.f32.mrf.mxu3 }
  0xbe   :  { %1469 = vst [vmem:[%s1901_s4 + $0x48] sm:$0xff] %v1349_v21   ;;  %v872_v26 = vmul.f32 %v1666_v42, %v565_v24  ;;  %v888_v27 = vmul.f32 %v1666_v42, %v605_v25  ;;  %v488_v28 = vpop.f32.mrf.mxu0  ;;  %v528_v29 = vpop.f32.mrf.mxu1 }
  0xbf   :  { %v841_v36 = vmul.f32 %v1666_v42, %v488_v28  ;;  %v857_v37 = vmul.f32 %v1666_v42, %v528_v29 }
  0xc0   :  { %v940_v32 = vadd.f32 %v1672_v44, %v872_v26  ;;  %v956_v33 = vadd.f32 %v1672_v44, %v888_v27 }
  0xc1   :  { %v909_v46 = vadd.f32 %v1672_v44, %v841_v36  ;;  %v925_v47 = vadd.f32 %v1672_v44, %v857_v37 }
  0xc2   :  { %v1389_v34 = vpack.c.bf16 %v940_v32, %v939_v30  ;;  %v1429_v35 = vpack.c.bf16 %v956_v33, %v955_v31 }
  0xc4   :  { %1477 = vst [vmem:[%s1901_s4 + $0x88] sm:$0xff] %v1389_v34  }
  0xc5   :  { %1485 = vst [vmem:[%s1901_s4 + $0xc8] sm:$0xff] %v1429_v35   ;;  %v568_v38 = vpop.f32.mrf.mxu2  ;;  %v608_v39 = vpop.f32.mrf.mxu3 }
  0xc6   :  { %v490_v40 = vpop.f32.mrf.mxu0  ;;  %v530_v41 = vpop.f32.mrf.mxu1  ;;  %v873_v52 = vmul.f32 %v1666_v42, %v568_v38  ;;  %v889_v53 = vmul.f32 %v1666_v42, %v608_v39 }
  0xc7   :  { %v842_v43 = vmul.f32 %v1666_v42, %v490_v40  ;;  %v858_v45 = vmul.f32 %v1666_v42, %v530_v41 }
  0xc8   :  { %v941_v60 = vadd.f32 %v1672_v44, %v873_v52  ;;  %v957_v61 = vadd.f32 %v1672_v44, %v889_v53 }
  0xc9   :  { %v910_v48 = vadd.f32 %v1672_v44, %v842_v43  ;;  %v926_v49 = vadd.f32 %v1672_v44, %v858_v45 }
  0xcb   :  { %v1314_v50 = vpack.c.bf16 %v910_v48, %v909_v46  ;;  %v1354_v51 = vpack.c.bf16 %v926_v49, %v925_v47 }
  0xcd   :  { %1462 = vst [vmem:[%s1901_s4 + $0x10] sm:$0xff] %v1314_v50   ;;  %v570_v54 = vpop.f32.mrf.mxu2  ;;  %v610_v55 = vpop.f32.mrf.mxu3 }
  0xce   :  { %1470 = vst [vmem:[%s1901_s4 + $0x50] sm:$0xff] %v1354_v51   ;;  %v874_v56 = vmul.f32 %v1666_v42, %v570_v54  ;;  %v890_v57 = vmul.f32 %v1666_v42, %v610_v55  ;;  %v493_v58 = vpop.f32.mrf.mxu0  ;;  %v533_v59 = vpop.f32.mrf.mxu1 }
  0xcf   :  { %v843_v2 = vmul.f32 %v1666_v42, %v493_v58  ;;  %v859_v3 = vmul.f32 %v1666_v42, %v533_v59 }
  0xd0   :  { %v942_v62 = vadd.f32 %v1672_v44, %v874_v56  ;;  %v958_v63 = vadd.f32 %v1672_v44, %v890_v57 }
  0xd1   :  { %v911_v10 = vadd.f32 %v1672_v44, %v843_v2  ;;  %v927_v11 = vadd.f32 %v1672_v44, %v859_v3 }
  0xd2   :  { %v1394_v0 = vpack.c.bf16 %v942_v62, %v941_v60  ;;  %v1434_v1 = vpack.c.bf16 %v958_v63, %v957_v61 }
  0xd4   :  { %1478 = vst [vmem:[%s1901_s4 + $0x90] sm:$0xff] %v1394_v0  }
  0xd5   :  { %1486 = vst [vmem:[%s1901_s4 + $0xd0] sm:$0xff] %v1434_v1   ;;  %v573_v4 = vpop.f32.mrf.mxu2  ;;  %v613_v5 = vpop.f32.mrf.mxu3 }
  0xd6   :  { %v495_v6 = vpop.f32.mrf.mxu0  ;;  %v535_v7 = vpop.f32.mrf.mxu1  ;;  %v875_v16 = vmul.f32 %v1666_v42, %v573_v4  ;;  %v891_v17 = vmul.f32 %v1666_v42, %v613_v5 }
  0xd7   :  { %v844_v8 = vmul.f32 %v1666_v42, %v495_v6  ;;  %v860_v9 = vmul.f32 %v1666_v42, %v535_v7 }
  0xd8   :  { %v943_v24 = vadd.f32 %v1672_v44, %v875_v16  ;;  %v959_v25 = vadd.f32 %v1672_v44, %v891_v17 }
  0xd9   :  { %v912_v12 = vadd.f32 %v1672_v44, %v844_v8  ;;  %v928_v13 = vadd.f32 %v1672_v44, %v860_v9 }
  0xdb   :  { %v1319_v14 = vpack.c.bf16 %v912_v12, %v911_v10  ;;  %v1359_v15 = vpack.c.bf16 %v928_v13, %v927_v11 }
  0xdd   :  { %1463 = vst [vmem:[%s1901_s4 + $0x18] sm:$0xff] %v1319_v14   ;;  %v575_v18 = vpop.f32.mrf.mxu2  ;;  %v615_v19 = vpop.f32.mrf.mxu3 }
  0xde   :  { %1471 = vst [vmem:[%s1901_s4 + $0x58] sm:$0xff] %v1359_v15   ;;  %v876_v20 = vmul.f32 %v1666_v42, %v575_v18  ;;  %v892_v21 = vmul.f32 %v1666_v42, %v615_v19  ;;  %v498_v22 = vpop.f32.mrf.mxu0  ;;  %v538_v23 = vpop.f32.mrf.mxu1 }
  0xdf   :  { %v845_v30 = vmul.f32 %v1666_v42, %v498_v22  ;;  %v861_v31 = vmul.f32 %v1666_v42, %v538_v23 }
  0xe0   :  { %v944_v26 = vadd.f32 %v1672_v44, %v876_v20  ;;  %v960_v27 = vadd.f32 %v1672_v44, %v892_v21 }
  0xe1   :  { %v913_v38 = vadd.f32 %v1672_v44, %v845_v30  ;;  %v929_v39 = vadd.f32 %v1672_v44, %v861_v31 }
  0xe2   :  { %v1399_v28 = vpack.c.bf16 %v944_v26, %v943_v24  ;;  %v1439_v29 = vpack.c.bf16 %v960_v27, %v959_v25 }
  0xe4   :  { %1479 = vst [vmem:[%s1901_s4 + $0x98] sm:$0xff] %v1399_v28  }
  0xe5   :  { %1487 = vst [vmem:[%s1901_s4 + $0xd8] sm:$0xff] %v1439_v29   ;;  %v578_v32 = vpop.f32.mrf.mxu2  ;;  %v618_v33 = vpop.f32.mrf.mxu3 }
  0xe6   :  { %v500_v34 = vpop.f32.mrf.mxu0  ;;  %v540_v35 = vpop.f32.mrf.mxu1  ;;  %v877_v46 = vmul.f32 %v1666_v42, %v578_v32  ;;  %v893_v47 = vmul.f32 %v1666_v42, %v618_v33 }
  0xe7   :  { %v846_v36 = vmul.f32 %v1666_v42, %v500_v34  ;;  %v862_v37 = vmul.f32 %v1666_v42, %v540_v35 }
  0xe8   :  { %v945_v54 = vadd.f32 %v1672_v44, %v877_v46  ;;  %v961_v55 = vadd.f32 %v1672_v44, %v893_v47 }
  0xe9   :  { %v914_v40 = vadd.f32 %v1672_v44, %v846_v36  ;;  %v930_v41 = vadd.f32 %v1672_v44, %v862_v37 }
  0xeb   :  { %v1324_v43 = vpack.c.bf16 %v914_v40, %v913_v38  ;;  %v1364_v45 = vpack.c.bf16 %v930_v41, %v929_v39 }
  0xed   :  { %1464 = vst [vmem:[%s1901_s4 + $0x20] sm:$0xff] %v1324_v43   ;;  %v580_v48 = vpop.f32.mrf.mxu2  ;;  %v620_v49 = vpop.f32.mrf.mxu3 }
  0xee   :  { %1472 = vst [vmem:[%s1901_s4 + $0x60] sm:$0xff] %v1364_v45   ;;  %v878_v50 = vmul.f32 %v1666_v42, %v580_v48  ;;  %v894_v51 = vmul.f32 %v1666_v42, %v620_v49  ;;  %v503_v52 = vpop.f32.mrf.mxu0  ;;  %v543_v53 = vpop.f32.mrf.mxu1 }
  0xef   :  { %v847_v60 = vmul.f32 %v1666_v42, %v503_v52  ;;  %v863_v61 = vmul.f32 %v1666_v42, %v543_v53 }
  0xf0   :  { %v946_v56 = vadd.f32 %v1672_v44, %v878_v50  ;;  %v962_v57 = vadd.f32 %v1672_v44, %v894_v51 }
  0xf1   :  { %v915_v4 = vadd.f32 %v1672_v44, %v847_v60  ;;  %v931_v5 = vadd.f32 %v1672_v44, %v863_v61 }
  0xf2   :  { %v1404_v58 = vpack.c.bf16 %v946_v56, %v945_v54  ;;  %v1444_v59 = vpack.c.bf16 %v962_v57, %v961_v55 }
  0xf4   :  { %1480 = vst [vmem:[%s1901_s4 + $0xa0] sm:$0xff] %v1404_v58  }
  0xf5   :  { %1488 = vst [vmem:[%s1901_s4 + $0xe0] sm:$0xff] %v1444_v59   ;;  %v583_v62 = vpop.f32.mrf.mxu2  ;;  %v623_v63 = vpop.f32.mrf.mxu3 }
  0xf6   :  { %v505_v0 = vpop.f32.mrf.mxu0  ;;  %v545_v1 = vpop.f32.mrf.mxu1  ;;  %v879_v10 = vmul.f32 %v1666_v42, %v583_v62  ;;  %v895_v11 = vmul.f32 %v1666_v42, %v623_v63 }
  0xf7   :  { %v848_v2 = vmul.f32 %v1666_v42, %v505_v0  ;;  %v864_v3 = vmul.f32 %v1666_v42, %v545_v1 }
  0xf8   :  { %v947_v18 = vadd.f32 %v1672_v44, %v879_v10  ;;  %v963_v19 = vadd.f32 %v1672_v44, %v895_v11 }
  0xf9   :  { %v916_v6 = vadd.f32 %v1672_v44, %v848_v2  ;;  %v932_v7 = vadd.f32 %v1672_v44, %v864_v3 }
  0xfb   :  { %v1329_v8 = vpack.c.bf16 %v916_v6, %v915_v4  ;;  %v1369_v9 = vpack.c.bf16 %v932_v7, %v931_v5 }
  0xfd   :  { %1465 = vst [vmem:[%s1901_s4 + $0x28] sm:$0xff] %v1329_v8   ;;  %v585_v12 = vpop.f32.mrf.mxu2  ;;  %v625_v13 = vpop.f32.mrf.mxu3 }
  0xfe   :  { %1473 = vst [vmem:[%s1901_s4 + $0x68] sm:$0xff] %v1369_v9   ;;  %v880_v14 = vmul.f32 %v1666_v42, %v585_v12  ;;  %v896_v15 = vmul.f32 %v1666_v42, %v625_v13  ;;  %v508_v16 = vpop.f32.mrf.mxu0  ;;  %v548_v17 = vpop.f32.mrf.mxu1 }
  0xff   :  { %v849_v24 = vmul.f32 %v1666_v42, %v508_v16  ;;  %v865_v25 = vmul.f32 %v1666_v42, %v548_v17 }
 0x100   :  { %v948_v20 = vadd.f32 %v1672_v44, %v880_v14  ;;  %v964_v21 = vadd.f32 %v1672_v44, %v896_v15 }
 0x101   :  { %v917_v32 = vadd.f32 %v1672_v44, %v849_v24  ;;  %v933_v33 = vadd.f32 %v1672_v44, %v865_v25 }
 0x102   :  { %v1409_v22 = vpack.c.bf16 %v948_v20, %v947_v18  ;;  %v1449_v23 = vpack.c.bf16 %v964_v21, %v963_v19 }
 0x104   :  { %1481 = vst [vmem:[%s1901_s4 + $0xa8] sm:$0xff] %v1409_v22  }
 0x105   :  { %1489 = vst [vmem:[%s1901_s4 + $0xe8] sm:$0xff] %v1449_v23   ;;  %v588_v26 = vpop.f32.mrf.mxu2  ;;  %v628_v27 = vpop.f32.mrf.mxu3 }
 0x106   :  { %v510_v28 = vpop.f32.mrf.mxu0  ;;  %v550_v29 = vpop.f32.mrf.mxu1  ;;  %v881_v38 = vmul.f32 %v1666_v42, %v588_v26  ;;  %v897_v39 = vmul.f32 %v1666_v42, %v628_v27 }
 0x107   :  { %v850_v30 = vmul.f32 %v1666_v42, %v510_v28  ;;  %v866_v31 = vmul.f32 %v1666_v42, %v550_v29 }
 0x108   :  { %v949_v48 = vadd.f32 %v1672_v44, %v881_v38  ;;  %v965_v49 = vadd.f32 %v1672_v44, %v897_v39 }
 0x109   :  { %v918_v34 = vadd.f32 %v1672_v44, %v850_v30  ;;  %v934_v35 = vadd.f32 %v1672_v44, %v866_v31 }
 0x10b   :  { %v1334_v36 = vpack.c.bf16 %v918_v34, %v917_v32  ;;  %v1374_v37 = vpack.c.bf16 %v934_v35, %v933_v33 }
 0x10d   :  { %1466 = vst [vmem:[%s1901_s4 + $0x30] sm:$0xff] %v1334_v36   ;;  %v590_v40 = vpop.f32.mrf.mxu2  ;;  %v630_v41 = vpop.f32.mrf.mxu3 }
 0x10e   :  { %1474 = vst [vmem:[%s1901_s4 + $0x70] sm:$0xff] %v1374_v37   ;;  %v882_v43 = vmul.f32 %v1666_v42, %v590_v40  ;;  %v898_v45 = vmul.f32 %v1666_v42, %v630_v41  ;;  %v513_v46 = vpop.f32.mrf.mxu0  ;;  %v553_v47 = vpop.f32.mrf.mxu1 }
 0x10f   :  { %v851_v54 = vmul.f32 %v1666_v42, %v513_v46  ;;  %v867_v55 = vmul.f32 %v1666_v42, %v553_v47 }
 0x110   :  { %v950_v50 = vadd.f32 %v1672_v44, %v882_v43  ;;  %v966_v51 = vadd.f32 %v1672_v44, %v898_v45 }
 0x111   :  { %v919_v62 = vadd.f32 %v1672_v44, %v851_v54  ;;  %v935_v63 = vadd.f32 %v1672_v44, %v867_v55 }
 0x112   :  { %v1414_v52 = vpack.c.bf16 %v950_v50, %v949_v48  ;;  %v1454_v53 = vpack.c.bf16 %v966_v51, %v965_v49 }
 0x114   :  { %1482 = vst [vmem:[%s1901_s4 + $0xb0] sm:$0xff] %v1414_v52  }
 0x115   :  { %1490 = vst [vmem:[%s1901_s4 + $0xf0] sm:$0xff] %v1454_v53   ;;  %v593_v56 = vpop.f32.mrf.mxu2  ;;  %v633_v57 = vpop.f32.mrf.mxu3 }
 0x116   :  { %v515_v58 = vpop.f32.mrf.mxu0  ;;  %v555_v59 = vpop.f32.mrf.mxu1  ;;  %v883_v4 = vmul.f32 %v1666_v42, %v593_v56  ;;  %v899_v5 = vmul.f32 %v1666_v42, %v633_v57 }
 0x117   :  { %v852_v60 = vmul.f32 %v1666_v42, %v515_v58  ;;  %v868_v61 = vmul.f32 %v1666_v42, %v555_v59 }
 0x118   :  { %v951_v10 = vadd.f32 %v1672_v44, %v883_v4  ;;  %v967_v11 = vadd.f32 %v1672_v44, %v899_v5 }
 0x119   :  { %v920_v0 = vadd.f32 %v1672_v44, %v852_v60  ;;  %v936_v1 = vadd.f32 %v1672_v44, %v868_v61 }
 0x11b   :  { %v1339_v2 = vpack.c.bf16 %v920_v0, %v919_v62  ;;  %v1379_v3 = vpack.c.bf16 %v936_v1, %v935_v63 }
 0x11d   :  { %1467 = vst [vmem:[%s1901_s4 + $0x38] sm:$0xff] %v1339_v2   ;;  %v595_v6 = vpop.f32.mrf.mxu2  ;;  %v635_v7 = vpop.f32.mrf.mxu3 }
 0x11e   :  { %1475 = vst [vmem:[%s1901_s4 + $0x78] sm:$0xff] %v1379_v3   ;;  %v884_v8 = vmul.f32 %v1666_v42, %v595_v6  ;;  %v900_v9 = vmul.f32 %v1666_v42, %v635_v7 }
 0x120   :  { %v952_v12 = vadd.f32 %v1672_v44, %v884_v8  ;;  %v968_v13 = vadd.f32 %v1672_v44, %v900_v9 }
 0x122   :  { %v1419_v14 = vpack.c.bf16 %v952_v12, %v951_v10  ;;  %v1459_v15 = vpack.c.bf16 %v968_v13, %v967_v11 }
 0x124   :  { %1483 = vst [vmem:[%s1901_s4 + $0xb8] sm:$0xff] %v1419_v14  }
 0x125   :  { %1491 = vst [vmem:[%s1901_s4 + $0xf8] sm:$0xff] %v1459_v15  }

// kernel: resnext_forward.27
= control target key start
LH: loop header
LB: loop body
LE: loop exit
PB: predicated region body
PF: predicated region fallthrough
CT: control target
= control target key end

     0   :  { %s1961_s1 = inlined_call_operand.vmem [shape: bf16[128,128], index: 1, kind: input, shape index: {}]   ;;  %s1962_s2 = inlined_call_operand.vmem [shape: f32[1,128], index: 2, kind: input, shape index: {}]   ;;  %s1963_s3 = inlined_call_operand.vmem [shape: f32[1,128], index: 3, kind: input, shape index: {}]   ;;  %s1964_s0 = inlined_call_operand.vmem [shape: bf16[512,128], index: 0, kind: input, shape index: {}]   ;;  %s1965_s4 = inlined_call_operand.vmem [shape: bf16[512,128], index: 4, kind: output, shape index: {}]  }
   0x1   :  { %v1364_v0 = vld [vmem:[%s1961_s1 + $0x38] sm:$0xff]  ;;  %v1363_v1 = vld [vmem:[%s1961_s1 + $0x30] sm:$0xff]  ;;  %v1362_v2 = vld [vmem:[%s1961_s1 + $0x28] sm:$0xff] }
   0x2   :  { %469 = vmatpush.bf16.msra.mxu0 %v1364_v0  ;;  %1556 = vmatpush.bf16.msra.mxu1 %v1364_v0  ;;  %v1361_v3 = vld [vmem:[%s1961_s1 + $0x20] sm:$0xff]  ;;  %v1360_v4 = vld [vmem:[%s1961_s1 + $0x18] sm:$0xff]  ;;  %v1359_v5 = vld [vmem:[%s1961_s1 + $0x10] sm:$0xff] }
   0x3   :  { %1557 = vmatpush.bf16.msra.mxu2 %v1364_v0  ;;  %1558 = vmatpush.bf16.msra.mxu3 %v1364_v0  ;;  %v1358_v6 = vld [vmem:[%s1961_s1 + $0x8] sm:$0xff]  ;;  %v1357_v7 = vld [vmem:[%s1961_s1] sm:$0xff]  ;;  %v1327_v16 = vld [vmem:[%s1964_s0 + $0x10] sm:$0xff] }
   0x4   :  { %v1325_v8 = vld [vmem:[%s1964_s0] sm:$0xff]  ;;  %v1326_v12 = vld [vmem:[%s1964_s0 + $0x8] sm:$0xff]  ;;  %v1335_v17 = vld [vmem:[%s1964_s0 + $0x50] sm:$0xff] }
   0x5   :  { %v1333_v9 = vld [vmem:[%s1964_s0 + $0x40] sm:$0xff]  ;;  %v1334_v13 = vld [vmem:[%s1964_s0 + $0x48] sm:$0xff]  ;;  %v1343_v18 = vld [vmem:[%s1964_s0 + $0x90] sm:$0xff] }
   0x6   :  { %470 = vmatpush.bf16.msra.mxu0 %v1363_v1  ;;  %1559 = vmatpush.bf16.msra.mxu1 %v1363_v1  ;;  %v1341_v10 = vld [vmem:[%s1964_s0 + $0x80] sm:$0xff]  ;;  %v1342_v14 = vld [vmem:[%s1964_s0 + $0x88] sm:$0xff]  ;;  %v1351_v19 = vld [vmem:[%s1964_s0 + $0xd0] sm:$0xff] }
   0x7   :  { %1560 = vmatpush.bf16.msra.mxu2 %v1363_v1  ;;  %1561 = vmatpush.bf16.msra.mxu3 %v1363_v1  ;;  %v1349_v11 = vld [vmem:[%s1964_s0 + $0xc0] sm:$0xff]  ;;  %v1350_v15 = vld [vmem:[%s1964_s0 + $0xc8] sm:$0xff]  ;;  %v1328_v20 = vld [vmem:[%s1964_s0 + $0x18] sm:$0xff] }
   0x8   :  { %v1336_v21 = vld [vmem:[%s1964_s0 + $0x58] sm:$0xff]  ;;  %v1329_v24 = vld [vmem:[%s1964_s0 + $0x20] sm:$0xff]  ;;  %v1330_v28 = vld [vmem:[%s1964_s0 + $0x28] sm:$0xff] }
   0x9   :  { %v1344_v22 = vld [vmem:[%s1964_s0 + $0x98] sm:$0xff]  ;;  %v1337_v25 = vld [vmem:[%s1964_s0 + $0x60] sm:$0xff]  ;;  %v1338_v29 = vld [vmem:[%s1964_s0 + $0x68] sm:$0xff] }
   0xa   :  { %471 = vmatpush.bf16.msra.mxu0 %v1362_v2  ;;  %1562 = vmatpush.bf16.msra.mxu1 %v1362_v2  ;;  %v1352_v23 = vld [vmem:[%s1964_s0 + $0xd8] sm:$0xff]  ;;  %v1345_v26 = vld [vmem:[%s1964_s0 + $0xa0] sm:$0xff]  ;;  %v1346_v30 = vld [vmem:[%s1964_s0 + $0xa8] sm:$0xff] }
   0xb   :  { %1563 = vmatpush.bf16.msra.mxu2 %v1362_v2  ;;  %1564 = vmatpush.bf16.msra.mxu3 %v1362_v2  ;;  %v1353_v27 = vld [vmem:[%s1964_s0 + $0xe0] sm:$0xff]  ;;  %v1354_v31 = vld [vmem:[%s1964_s0 + $0xe8] sm:$0xff]  ;;  %v1331_v32 = vld [vmem:[%s1964_s0 + $0x30] sm:$0xff] }
   0xc   :  { %v1339_v33 = vld [vmem:[%s1964_s0 + $0x70] sm:$0xff]  ;;  %v1332_v36 = vld [vmem:[%s1964_s0 + $0x38] sm:$0xff]  ;;  %v1730_v42 = vld [vmem:[%s1962_s2] ss:$0 sm:$0xff] }
   0xd   :  { %v1347_v34 = vld [vmem:[%s1964_s0 + $0xb0] sm:$0xff]  ;;  %v1340_v37 = vld [vmem:[%s1964_s0 + $0x78] sm:$0xff]  ;;  %v1736_v44 = vld [vmem:[%s1963_s3] ss:$0 sm:$0xff] }
   0xe   :  { %472 = vmatpush.bf16.msra.mxu0 %v1361_v3  ;;  %1565 = vmatpush.bf16.msra.mxu1 %v1361_v3  ;;  %v1355_v35 = vld [vmem:[%s1964_s0 + $0xf0] sm:$0xff]  ;;  %v1348_v38 = vld [vmem:[%s1964_s0 + $0xb8] sm:$0xff] }
   0xf   :  { %1566 = vmatpush.bf16.msra.mxu2 %v1361_v3  ;;  %1567 = vmatpush.bf16.msra.mxu3 %v1361_v3  ;;  %v1356_v39 = vld [vmem:[%s1964_s0 + $0xf8] sm:$0xff] }
  0x12   :  { %473 = vmatpush.bf16.msra.mxu0 %v1360_v4  ;;  %1568 = vmatpush.bf16.msra.mxu1 %v1360_v4 }
  0x13   :  { %1569 = vmatpush.bf16.msra.mxu2 %v1360_v4  ;;  %1570 = vmatpush.bf16.msra.mxu3 %v1360_v4 }
  0x16   :  { %474 = vmatpush.bf16.msra.mxu0 %v1359_v5  ;;  %1571 = vmatpush.bf16.msra.mxu1 %v1359_v5 }
  0x17   :  { %1572 = vmatpush.bf16.msra.mxu2 %v1359_v5  ;;  %1573 = vmatpush.bf16.msra.mxu3 %v1359_v5 }
  0x1a   :  { %475 = vmatpush.bf16.msra.mxu0 %v1358_v6  ;;  %1574 = vmatpush.bf16.msra.mxu1 %v1358_v6 }
  0x1b   :  { %1575 = vmatpush.bf16.msra.mxu2 %v1358_v6  ;;  %1576 = vmatpush.bf16.msra.mxu3 %v1358_v6 }
  0x1e   :  { %476 = vmatpush.bf16.msra.mxu0 %v1357_v7  ;;  %1577 = vmatpush.bf16.msra.mxu1 %v1357_v7 }
  0x1f   :  { %1578 = vmatpush.bf16.msra.mxu2 %v1357_v7  ;;  %1579 = vmatpush.bf16.msra.mxu3 %v1357_v7 }
  0x21   :  { %477 = vmatmul.bf16.vlgmr.msra.gmra.mxu0 %v1325_v8  ;;  %517 = vmatmul.bf16.vlgmr.msra.gmra.mxu1 %v1333_v9 }
  0x22   :  { %557 = vmatmul.bf16.vlgmr.msra.gmra.mxu2 %v1341_v10  ;;  %597 = vmatmul.bf16.vlgmr.msra.gmra.mxu3 %v1349_v11 }
  0x31   :  { %482 = vmatmul.bf16.gmra.mxu0 %v1326_v12  ;;  %522 = vmatmul.bf16.gmra.mxu1 %v1334_v13 }
  0x32   :  { %562 = vmatmul.bf16.gmra.mxu2 %v1342_v14  ;;  %602 = vmatmul.bf16.gmra.mxu3 %v1350_v15 }
  0x41   :  { %487 = vmatmul.bf16.gmra.mxu0 %v1327_v16  ;;  %527 = vmatmul.bf16.gmra.mxu1 %v1335_v17 }
  0x42   :  { %567 = vmatmul.bf16.gmra.mxu2 %v1343_v18  ;;  %607 = vmatmul.bf16.gmra.mxu3 %v1351_v19 }
  0x51   :  { %492 = vmatmul.bf16.gmra.mxu0 %v1328_v20  ;;  %532 = vmatmul.bf16.gmra.mxu1 %v1336_v21 }
  0x52   :  { %572 = vmatmul.bf16.gmra.mxu2 %v1344_v22  ;;  %612 = vmatmul.bf16.gmra.mxu3 %v1352_v23 }
  0x61   :  { %497 = vmatmul.bf16.gmra.mxu0 %v1329_v24  ;;  %537 = vmatmul.bf16.gmra.mxu1 %v1337_v25 }
  0x62   :  { %577 = vmatmul.bf16.gmra.mxu2 %v1345_v26  ;;  %617 = vmatmul.bf16.gmra.mxu3 %v1353_v27 }
  0x71   :  { %502 = vmatmul.bf16.gmra.mxu0 %v1330_v28  ;;  %542 = vmatmul.bf16.gmra.mxu1 %v1338_v29 }
  0x72   :  { %582 = vmatmul.bf16.gmra.mxu2 %v1346_v30  ;;  %622 = vmatmul.bf16.gmra.mxu3 %v1354_v31 }
  0x81   :  { %507 = vmatmul.bf16.gmra.mxu0 %v1331_v32  ;;  %547 = vmatmul.bf16.gmra.mxu1 %v1339_v33 }
  0x82   :  { %587 = vmatmul.bf16.gmra.mxu2 %v1347_v34  ;;  %627 = vmatmul.bf16.gmra.mxu3 %v1355_v35 }
  0x91   :  { %512 = vmatmul.bf16.gmra.mxu0 %v1332_v36  ;;  %552 = vmatmul.bf16.gmra.mxu1 %v1340_v37 }
  0x92   :  { %592 = vmatmul.bf16.gmra.mxu2 %v1348_v38  ;;  %632 = vmatmul.bf16.gmra.mxu3 %v1356_v39 }
  0x9e   :  { %v478_v40 = vpop.f32.mrf.mxu0  ;;  %v518_v41 = vpop.f32.mrf.mxu1 }
  0x9f   :  { %v837_v43 = vmul.f32 %v1730_v42, %v478_v40  ;;  %v853_v45 = vmul.f32 %v1730_v42, %v518_v41 }
  0xa1   :  { %v905_v50 = vadd.f32 %v1736_v44, %v837_v43  ;;  %v921_v51 = vadd.f32 %v1736_v44, %v853_v45 }
  0xa3   :  { %v969_v58 = vmax.f32 %v905_v50, 0.0  ;;  %v985_v59 = vmax.f32 %v921_v51, 0.0 }
  0xa5   :  { %v558_v46 = vpop.f32.mrf.mxu2  ;;  %v598_v47 = vpop.f32.mrf.mxu3 }
  0xa6   :  { %v480_v48 = vpop.f32.mrf.mxu0  ;;  %v520_v49 = vpop.f32.mrf.mxu1  ;;  %v869_v56 = vmul.f32 %v1730_v42, %v558_v46  ;;  %v885_v57 = vmul.f32 %v1730_v42, %v598_v47 }
  0xa7   :  { %v838_v52 = vmul.f32 %v1730_v42, %v480_v48  ;;  %v854_v53 = vmul.f32 %v1730_v42, %v520_v49 }
  0xa8   :  { %v937_v2 = vadd.f32 %v1736_v44, %v869_v56  ;;  %v953_v3 = vadd.f32 %v1736_v44, %v885_v57 }
  0xa9   :  { %v906_v54 = vadd.f32 %v1736_v44, %v838_v52  ;;  %v922_v55 = vadd.f32 %v1736_v44, %v854_v53 }
  0xaa   :  { %v1001_v10 = vmax.f32 %v937_v2, 0.0  ;;  %v1017_v11 = vmax.f32 %v953_v3, 0.0 }
  0xab   :  { %v970_v60 = vmax.f32 %v906_v54, 0.0  ;;  %v986_v61 = vmax.f32 %v922_v55, 0.0 }
  0xad   :  { %v1368_v62 = vpack.c.bf16 %v970_v60, %v969_v58  ;;  %v1408_v63 = vpack.c.bf16 %v986_v61, %v985_v59  ;;  %v560_v0 = vpop.f32.mrf.mxu2  ;;  %v600_v1 = vpop.f32.mrf.mxu3 }
  0xae   :  { %v870_v4 = vmul.f32 %v1730_v42, %v560_v0  ;;  %v886_v5 = vmul.f32 %v1730_v42, %v600_v1  ;;  %v483_v6 = vpop.f32.mrf.mxu0  ;;  %v523_v7 = vpop.f32.mrf.mxu1 }
  0xaf   :  { %1369 = vst [vmem:[%s1965_s4] sm:$0xff] %v1368_v62   ;;  %v839_v14 = vmul.f32 %v1730_v42, %v483_v6  ;;  %v855_v15 = vmul.f32 %v1730_v42, %v523_v7 }
  0xb0   :  { %1532 = vst [vmem:[%s1965_s4 + $0x40] sm:$0xff] %v1408_v63   ;;  %v938_v8 = vadd.f32 %v1736_v44, %v870_v4  ;;  %v954_v9 = vadd.f32 %v1736_v44, %v886_v5 }
  0xb1   :  { %v907_v22 = vadd.f32 %v1736_v44, %v839_v14  ;;  %v923_v23 = vadd.f32 %v1736_v44, %v855_v15 }
  0xb2   :  { %v1002_v12 = vmax.f32 %v938_v8, 0.0  ;;  %v1018_v13 = vmax.f32 %v954_v9, 0.0 }
  0xb3   :  { %v971_v30 = vmax.f32 %v907_v22, 0.0  ;;  %v987_v31 = vmax.f32 %v923_v23, 0.0 }
  0xb4   :  { %v1448_v16 = vpack.c.bf16 %v1002_v12, %v1001_v10  ;;  %v1488_v17 = vpack.c.bf16 %v1018_v13, %v1017_v11 }
  0xb5   :  { %v563_v18 = vpop.f32.mrf.mxu2  ;;  %v603_v19 = vpop.f32.mrf.mxu3 }
  0xb6   :  { %1540 = vst [vmem:[%s1965_s4 + $0x80] sm:$0xff] %v1448_v16   ;;  %v485_v20 = vpop.f32.mrf.mxu0  ;;  %v525_v21 = vpop.f32.mrf.mxu1  ;;  %v871_v28 = vmul.f32 %v1730_v42, %v563_v18  ;;  %v887_v29 = vmul.f32 %v1730_v42, %v603_v19 }
  0xb7   :  { %1548 = vst [vmem:[%s1965_s4 + $0xc0] sm:$0xff] %v1488_v17   ;;  %v840_v24 = vmul.f32 %v1730_v42, %v485_v20  ;;  %v856_v25 = vmul.f32 %v1730_v42, %v525_v21 }
  0xb8   :  { %v939_v38 = vadd.f32 %v1736_v44, %v871_v28  ;;  %v955_v39 = vadd.f32 %v1736_v44, %v887_v29 }
  0xb9   :  { %v908_v26 = vadd.f32 %v1736_v44, %v840_v24  ;;  %v924_v27 = vadd.f32 %v1736_v44, %v856_v25 }
  0xba   :  { %v1003_v48 = vmax.f32 %v939_v38, 0.0  ;;  %v1019_v49 = vmax.f32 %v955_v39, 0.0 }
  0xbb   :  { %v972_v32 = vmax.f32 %v908_v26, 0.0  ;;  %v988_v33 = vmax.f32 %v924_v27, 0.0 }
  0xbd   :  { %v1373_v34 = vpack.c.bf16 %v972_v32, %v971_v30  ;;  %v1413_v35 = vpack.c.bf16 %v988_v33, %v987_v31  ;;  %v565_v36 = vpop.f32.mrf.mxu2  ;;  %v605_v37 = vpop.f32.mrf.mxu3 }
  0xbe   :  { %v872_v40 = vmul.f32 %v1730_v42, %v565_v36  ;;  %v888_v41 = vmul.f32 %v1730_v42, %v605_v37  ;;  %v488_v43 = vpop.f32.mrf.mxu0  ;;  %v528_v45 = vpop.f32.mrf.mxu1 }
  0xbf   :  { %1525 = vst [vmem:[%s1965_s4 + $0x8] sm:$0xff] %v1373_v34   ;;  %v841_v52 = vmul.f32 %v1730_v42, %v488_v43  ;;  %v857_v53 = vmul.f32 %v1730_v42, %v528_v45 }
  0xc0   :  { %1533 = vst [vmem:[%s1965_s4 + $0x48] sm:$0xff] %v1413_v35   ;;  %v940_v46 = vadd.f32 %v1736_v44, %v872_v40  ;;  %v956_v47 = vadd.f32 %v1736_v44, %v888_v41 }
  0xc1   :  { %v909_v60 = vadd.f32 %v1736_v44, %v841_v52  ;;  %v925_v61 = vadd.f32 %v1736_v44, %v857_v53 }
  0xc2   :  { %v1004_v50 = vmax.f32 %v940_v46, 0.0  ;;  %v1020_v51 = vmax.f32 %v956_v47, 0.0 }
  0xc3   :  { %v973_v4 = vmax.f32 %v909_v60, 0.0  ;;  %v989_v5 = vmax.f32 %v925_v61, 0.0 }
  0xc4   :  { %v1453_v54 = vpack.c.bf16 %v1004_v50, %v1003_v48  ;;  %v1493_v55 = vpack.c.bf16 %v1020_v51, %v1019_v49 }
  0xc5   :  { %v568_v56 = vpop.f32.mrf.mxu2  ;;  %v608_v57 = vpop.f32.mrf.mxu3 }
  0xc6   :  { %1541 = vst [vmem:[%s1965_s4 + $0x88] sm:$0xff] %v1453_v54   ;;  %v490_v58 = vpop.f32.mrf.mxu0  ;;  %v530_v59 = vpop.f32.mrf.mxu1  ;;  %v873_v2 = vmul.f32 %v1730_v42, %v568_v56  ;;  %v889_v3 = vmul.f32 %v1730_v42, %v608_v57 }
  0xc7   :  { %1549 = vst [vmem:[%s1965_s4 + $0xc8] sm:$0xff] %v1493_v55   ;;  %v842_v62 = vmul.f32 %v1730_v42, %v490_v58  ;;  %v858_v63 = vmul.f32 %v1730_v42, %v530_v59 }
  0xc8   :  { %v941_v12 = vadd.f32 %v1736_v44, %v873_v2  ;;  %v957_v13 = vadd.f32 %v1736_v44, %v889_v3 }
  0xc9   :  { %v910_v0 = vadd.f32 %v1736_v44, %v842_v62  ;;  %v926_v1 = vadd.f32 %v1736_v44, %v858_v63 }
  0xca   :  { %v1005_v20 = vmax.f32 %v941_v12, 0.0  ;;  %v1021_v21 = vmax.f32 %v957_v13, 0.0 }
  0xcb   :  { %v974_v6 = vmax.f32 %v910_v0, 0.0  ;;  %v990_v7 = vmax.f32 %v926_v1, 0.0 }
  0xcd   :  { %v1378_v8 = vpack.c.bf16 %v974_v6, %v973_v4  ;;  %v1418_v9 = vpack.c.bf16 %v990_v7, %v989_v5  ;;  %v570_v10 = vpop.f32.mrf.mxu2  ;;  %v610_v11 = vpop.f32.mrf.mxu3 }
  0xce   :  { %v874_v14 = vmul.f32 %v1730_v42, %v570_v10  ;;  %v890_v15 = vmul.f32 %v1730_v42, %v610_v11  ;;  %v493_v16 = vpop.f32.mrf.mxu0  ;;  %v533_v17 = vpop.f32.mrf.mxu1 }
  0xcf   :  { %1526 = vst [vmem:[%s1965_s4 + $0x10] sm:$0xff] %v1378_v8   ;;  %v843_v24 = vmul.f32 %v1730_v42, %v493_v16  ;;  %v859_v25 = vmul.f32 %v1730_v42, %v533_v17 }
  0xd0   :  { %1534 = vst [vmem:[%s1965_s4 + $0x50] sm:$0xff] %v1418_v9   ;;  %v942_v18 = vadd.f32 %v1736_v44, %v874_v14  ;;  %v958_v19 = vadd.f32 %v1736_v44, %v890_v15 }
  0xd1   :  { %v911_v32 = vadd.f32 %v1736_v44, %v843_v24  ;;  %v927_v33 = vadd.f32 %v1736_v44, %v859_v25 }
  0xd2   :  { %v1006_v22 = vmax.f32 %v942_v18, 0.0  ;;  %v1022_v23 = vmax.f32 %v958_v19, 0.0 }
  0xd3   :  { %v975_v40 = vmax.f32 %v911_v32, 0.0  ;;  %v991_v41 = vmax.f32 %v927_v33, 0.0 }
  0xd4   :  { %v1458_v26 = vpack.c.bf16 %v1006_v22, %v1005_v20  ;;  %v1498_v27 = vpack.c.bf16 %v1022_v23, %v1021_v21 }
  0xd5   :  { %v573_v28 = vpop.f32.mrf.mxu2  ;;  %v613_v29 = vpop.f32.mrf.mxu3 }
  0xd6   :  { %1542 = vst [vmem:[%s1965_s4 + $0x90] sm:$0xff] %v1458_v26   ;;  %v495_v30 = vpop.f32.mrf.mxu0  ;;  %v535_v31 = vpop.f32.mrf.mxu1  ;;  %v875_v38 = vmul.f32 %v1730_v42, %v573_v28  ;;  %v891_v39 = vmul.f32 %v1730_v42, %v613_v29 }
  0xd7   :  { %1550 = vst [vmem:[%s1965_s4 + $0xd0] sm:$0xff] %v1498_v27   ;;  %v844_v34 = vmul.f32 %v1730_v42, %v495_v30  ;;  %v860_v35 = vmul.f32 %v1730_v42, %v535_v31 }
  0xd8   :  { %v943_v50 = vadd.f32 %v1736_v44, %v875_v38  ;;  %v959_v51 = vadd.f32 %v1736_v44, %v891_v39 }
  0xd9   :  { %v912_v36 = vadd.f32 %v1736_v44, %v844_v34  ;;  %v928_v37 = vadd.f32 %v1736_v44, %v860_v35 }
  0xda   :  { %v1007_v58 = vmax.f32 %v943_v50, 0.0  ;;  %v1023_v59 = vmax.f32 %v959_v51, 0.0 }
  0xdb   :  { %v976_v43 = vmax.f32 %v912_v36, 0.0  ;;  %v992_v45 = vmax.f32 %v928_v37, 0.0 }
  0xdd   :  { %v1383_v46 = vpack.c.bf16 %v976_v43, %v975_v40  ;;  %v1423_v47 = vpack.c.bf16 %v992_v45, %v991_v41  ;;  %v575_v48 = vpop.f32.mrf.mxu2  ;;  %v615_v49 = vpop.f32.mrf.mxu3 }
  0xde   :  { %v876_v52 = vmul.f32 %v1730_v42, %v575_v48  ;;  %v892_v53 = vmul.f32 %v1730_v42, %v615_v49  ;;  %v498_v54 = vpop.f32.mrf.mxu0  ;;  %v538_v55 = vpop.f32.mrf.mxu1 }
  0xdf   :  { %1527 = vst [vmem:[%s1965_s4 + $0x18] sm:$0xff] %v1383_v46   ;;  %v845_v62 = vmul.f32 %v1730_v42, %v498_v54  ;;  %v861_v63 = vmul.f32 %v1730_v42, %v538_v55 }
  0xe0   :  { %1535 = vst [vmem:[%s1965_s4 + $0x58] sm:$0xff] %v1423_v47   ;;  %v944_v56 = vadd.f32 %v1736_v44, %v876_v52  ;;  %v960_v57 = vadd.f32 %v1736_v44, %v892_v53 }
  0xe1   :  { %v913_v6 = vadd.f32 %v1736_v44, %v845_v62  ;;  %v929_v7 = vadd.f32 %v1736_v44, %v861_v63 }
  0xe2   :  { %v1008_v60 = vmax.f32 %v944_v56, 0.0  ;;  %v1024_v61 = vmax.f32 %v960_v57, 0.0 }
  0xe3   :  { %v977_v14 = vmax.f32 %v913_v6, 0.0  ;;  %v993_v15 = vmax.f32 %v929_v7, 0.0 }
  0xe4   :  { %v1463_v0 = vpack.c.bf16 %v1008_v60, %v1007_v58  ;;  %v1503_v1 = vpack.c.bf16 %v1024_v61, %v1023_v59 }
  0xe5   :  { %v578_v2 = vpop.f32.mrf.mxu2  ;;  %v618_v3 = vpop.f32.mrf.mxu3 }
  0xe6   :  { %1543 = vst [vmem:[%s1965_s4 + $0x98] sm:$0xff] %v1463_v0   ;;  %v500_v4 = vpop.f32.mrf.mxu0  ;;  %v540_v5 = vpop.f32.mrf.mxu1  ;;  %v877_v12 = vmul.f32 %v1730_v42, %v578_v2  ;;  %v893_v13 = vmul.f32 %v1730_v42, %v618_v3 }
  0xe7   :  { %1551 = vst [vmem:[%s1965_s4 + $0xd8] sm:$0xff] %v1503_v1   ;;  %v846_v8 = vmul.f32 %v1730_v42, %v500_v4  ;;  %v862_v9 = vmul.f32 %v1730_v42, %v540_v5 }
  0xe8   :  { %v945_v22 = vadd.f32 %v1736_v44, %v877_v12  ;;  %v961_v23 = vadd.f32 %v1736_v44, %v893_v13 }
  0xe9   :  { %v914_v10 = vadd.f32 %v1736_v44, %v846_v8  ;;  %v930_v11 = vadd.f32 %v1736_v44, %v862_v9 }
  0xea   :  { %v1009_v30 = vmax.f32 %v945_v22, 0.0  ;;  %v1025_v31 = vmax.f32 %v961_v23, 0.0 }
  0xeb   :  { %v978_v16 = vmax.f32 %v914_v10, 0.0  ;;  %v994_v17 = vmax.f32 %v930_v11, 0.0 }
  0xed   :  { %v1388_v18 = vpack.c.bf16 %v978_v16, %v977_v14  ;;  %v1428_v19 = vpack.c.bf16 %v994_v17, %v993_v15  ;;  %v580_v20 = vpop.f32.mrf.mxu2  ;;  %v620_v21 = vpop.f32.mrf.mxu3 }
  0xee   :  { %v878_v24 = vmul.f32 %v1730_v42, %v580_v20  ;;  %v894_v25 = vmul.f32 %v1730_v42, %v620_v21  ;;  %v503_v26 = vpop.f32.mrf.mxu0  ;;  %v543_v27 = vpop.f32.mrf.mxu1 }
  0xef   :  { %1528 = vst [vmem:[%s1965_s4 + $0x20] sm:$0xff] %v1388_v18   ;;  %v847_v34 = vmul.f32 %v1730_v42, %v503_v26  ;;  %v863_v35 = vmul.f32 %v1730_v42, %v543_v27 }
  0xf0   :  { %1536 = vst [vmem:[%s1965_s4 + $0x60] sm:$0xff] %v1428_v19   ;;  %v946_v28 = vadd.f32 %v1736_v44, %v878_v24  ;;  %v962_v29 = vadd.f32 %v1736_v44, %v894_v25 }
  0xf1   :  { %v915_v43 = vadd.f32 %v1736_v44, %v847_v34  ;;  %v931_v45 = vadd.f32 %v1736_v44, %v863_v35 }
  0xf2   :  { %v1010_v32 = vmax.f32 %v946_v28, 0.0  ;;  %v1026_v33 = vmax.f32 %v962_v29, 0.0 }
  0xf3   :  { %v979_v52 = vmax.f32 %v915_v43, 0.0  ;;  %v995_v53 = vmax.f32 %v931_v45, 0.0 }
  0xf4   :  { %v1468_v36 = vpack.c.bf16 %v1010_v32, %v1009_v30  ;;  %v1508_v37 = vpack.c.bf16 %v1026_v33, %v1025_v31 }
  0xf5   :  { %v583_v38 = vpop.f32.mrf.mxu2  ;;  %v623_v39 = vpop.f32.mrf.mxu3 }
  0xf6   :  { %1544 = vst [vmem:[%s1965_s4 + $0xa0] sm:$0xff] %v1468_v36   ;;  %v505_v40 = vpop.f32.mrf.mxu0  ;;  %v545_v41 = vpop.f32.mrf.mxu1  ;;  %v879_v50 = vmul.f32 %v1730_v42, %v583_v38  ;;  %v895_v51 = vmul.f32 %v1730_v42, %v623_v39 }
  0xf7   :  { %1552 = vst [vmem:[%s1965_s4 + $0xe0] sm:$0xff] %v1508_v37   ;;  %v848_v46 = vmul.f32 %v1730_v42, %v505_v40  ;;  %v864_v47 = vmul.f32 %v1730_v42, %v545_v41 }
  0xf8   :  { %v947_v60 = vadd.f32 %v1736_v44, %v879_v50  ;;  %v963_v61 = vadd.f32 %v1736_v44, %v895_v51 }
  0xf9   :  { %v916_v48 = vadd.f32 %v1736_v44, %v848_v46  ;;  %v932_v49 = vadd.f32 %v1736_v44, %v864_v47 }
  0xfa   :  { %v1011_v4 = vmax.f32 %v947_v60, 0.0  ;;  %v1027_v5 = vmax.f32 %v963_v61, 0.0 }
  0xfb   :  { %v980_v54 = vmax.f32 %v916_v48, 0.0  ;;  %v996_v55 = vmax.f32 %v932_v49, 0.0 }
  0xfd   :  { %v1393_v56 = vpack.c.bf16 %v980_v54, %v979_v52  ;;  %v1433_v57 = vpack.c.bf16 %v996_v55, %v995_v53  ;;  %v585_v58 = vpop.f32.mrf.mxu2  ;;  %v625_v59 = vpop.f32.mrf.mxu3 }
  0xfe   :  { %v880_v62 = vmul.f32 %v1730_v42, %v585_v58  ;;  %v896_v63 = vmul.f32 %v1730_v42, %v625_v59  ;;  %v508_v0 = vpop.f32.mrf.mxu0  ;;  %v548_v1 = vpop.f32.mrf.mxu1 }
  0xff   :  { %1529 = vst [vmem:[%s1965_s4 + $0x28] sm:$0xff] %v1393_v56   ;;  %v849_v8 = vmul.f32 %v1730_v42, %v508_v0  ;;  %v865_v9 = vmul.f32 %v1730_v42, %v548_v1 }
 0x100   :  { %1537 = vst [vmem:[%s1965_s4 + $0x68] sm:$0xff] %v1433_v57   ;;  %v948_v2 = vadd.f32 %v1736_v44, %v880_v62  ;;  %v964_v3 = vadd.f32 %v1736_v44, %v896_v63 }
 0x101   :  { %v917_v16 = vadd.f32 %v1736_v44, %v849_v8  ;;  %v933_v17 = vadd.f32 %v1736_v44, %v865_v9 }
 0x102   :  { %v1012_v6 = vmax.f32 %v948_v2, 0.0  ;;  %v1028_v7 = vmax.f32 %v964_v3, 0.0 }
 0x103   :  { %v981_v24 = vmax.f32 %v917_v16, 0.0  ;;  %v997_v25 = vmax.f32 %v933_v17, 0.0 }
 0x104   :  { %v1473_v10 = vpack.c.bf16 %v1012_v6, %v1011_v4  ;;  %v1513_v11 = vpack.c.bf16 %v1028_v7, %v1027_v5 }
 0x105   :  { %v588_v12 = vpop.f32.mrf.mxu2  ;;  %v628_v13 = vpop.f32.mrf.mxu3 }
 0x106   :  { %1545 = vst [vmem:[%s1965_s4 + $0xa8] sm:$0xff] %v1473_v10   ;;  %v510_v14 = vpop.f32.mrf.mxu0  ;;  %v550_v15 = vpop.f32.mrf.mxu1  ;;  %v881_v22 = vmul.f32 %v1730_v42, %v588_v12  ;;  %v897_v23 = vmul.f32 %v1730_v42, %v628_v13 }
 0x107   :  { %1553 = vst [vmem:[%s1965_s4 + $0xe8] sm:$0xff] %v1513_v11   ;;  %v850_v18 = vmul.f32 %v1730_v42, %v510_v14  ;;  %v866_v19 = vmul.f32 %v1730_v42, %v550_v15 }
 0x108   :  { %v949_v32 = vadd.f32 %v1736_v44, %v881_v22  ;;  %v965_v33 = vadd.f32 %v1736_v44, %v897_v23 }
 0x109   :  { %v918_v20 = vadd.f32 %v1736_v44, %v850_v18  ;;  %v934_v21 = vadd.f32 %v1736_v44, %v866_v19 }
 0x10a   :  { %v1013_v40 = vmax.f32 %v949_v32, 0.0  ;;  %v1029_v41 = vmax.f32 %v965_v33, 0.0 }
 0x10b   :  { %v982_v26 = vmax.f32 %v918_v20, 0.0  ;;  %v998_v27 = vmax.f32 %v934_v21, 0.0 }
 0x10d   :  { %v1398_v28 = vpack.c.bf16 %v982_v26, %v981_v24  ;;  %v1438_v29 = vpack.c.bf16 %v998_v27, %v997_v25  ;;  %v590_v30 = vpop.f32.mrf.mxu2  ;;  %v630_v31 = vpop.f32.mrf.mxu3 }
 0x10e   :  { %v882_v34 = vmul.f32 %v1730_v42, %v590_v30  ;;  %v898_v35 = vmul.f32 %v1730_v42, %v630_v31  ;;  %v513_v36 = vpop.f32.mrf.mxu0  ;;  %v553_v37 = vpop.f32.mrf.mxu1 }
 0x10f   :  { %1530 = vst [vmem:[%s1965_s4 + $0x30] sm:$0xff] %v1398_v28   ;;  %v851_v46 = vmul.f32 %v1730_v42, %v513_v36  ;;  %v867_v47 = vmul.f32 %v1730_v42, %v553_v37 }
 0x110   :  { %1538 = vst [vmem:[%s1965_s4 + $0x70] sm:$0xff] %v1438_v29   ;;  %v950_v38 = vadd.f32 %v1736_v44, %v882_v34  ;;  %v966_v39 = vadd.f32 %v1736_v44, %v898_v35 }
 0x111   :  { %v919_v54 = vadd.f32 %v1736_v44, %v851_v46  ;;  %v935_v55 = vadd.f32 %v1736_v44, %v867_v47 }
 0x112   :  { %v1014_v43 = vmax.f32 %v950_v38, 0.0  ;;  %v1030_v45 = vmax.f32 %v966_v39, 0.0 }
 0x113   :  { %v983_v62 = vmax.f32 %v919_v54, 0.0  ;;  %v999_v63 = vmax.f32 %v935_v55, 0.0 }
 0x114   :  { %v1478_v48 = vpack.c.bf16 %v1014_v43, %v1013_v40  ;;  %v1518_v49 = vpack.c.bf16 %v1030_v45, %v1029_v41 }
 0x115   :  { %v593_v50 = vpop.f32.mrf.mxu2  ;;  %v633_v51 = vpop.f32.mrf.mxu3 }
 0x116   :  { %1546 = vst [vmem:[%s1965_s4 + $0xb0] sm:$0xff] %v1478_v48   ;;  %v515_v52 = vpop.f32.mrf.mxu0  ;;  %v555_v53 = vpop.f32.mrf.mxu1  ;;  %v883_v60 = vmul.f32 %v1730_v42, %v593_v50  ;;  %v899_v61 = vmul.f32 %v1730_v42, %v633_v51 }
 0x117   :  { %1554 = vst [vmem:[%s1965_s4 + $0xf0] sm:$0xff] %v1518_v49   ;;  %v852_v56 = vmul.f32 %v1730_v42, %v515_v52  ;;  %v868_v57 = vmul.f32 %v1730_v42, %v555_v53 }
 0x118   :  { %v951_v6 = vadd.f32 %v1736_v44, %v883_v60  ;;  %v967_v7 = vadd.f32 %v1736_v44, %v899_v61 }
 0x119   :  { %v920_v58 = vadd.f32 %v1736_v44, %v852_v56  ;;  %v936_v59 = vadd.f32 %v1736_v44, %v868_v57 }
 0x11a   :  { %v1015_v12 = vmax.f32 %v951_v6, 0.0  ;;  %v1031_v13 = vmax.f32 %v967_v7, 0.0 }
 0x11b   :  { %v984_v0 = vmax.f32 %v920_v58, 0.0  ;;  %v1000_v1 = vmax.f32 %v936_v59, 0.0 }
 0x11d   :  { %v1403_v2 = vpack.c.bf16 %v984_v0, %v983_v62  ;;  %v1443_v3 = vpack.c.bf16 %v1000_v1, %v999_v63  ;;  %v595_v4 = vpop.f32.mrf.mxu2  ;;  %v635_v5 = vpop.f32.mrf.mxu3 }
 0x11e   :  { %v884_v8 = vmul.f32 %v1730_v42, %v595_v4  ;;  %v900_v9 = vmul.f32 %v1730_v42, %v635_v5 }
 0x11f   :  { %1531 = vst [vmem:[%s1965_s4 + $0x38] sm:$0xff] %v1403_v2  }
 0x120   :  { %1539 = vst [vmem:[%s1965_s4 + $0x78] sm:$0xff] %v1443_v3   ;;  %v952_v10 = vadd.f32 %v1736_v44, %v884_v8  ;;  %v968_v11 = vadd.f32 %v1736_v44, %v900_v9 }
 0x122   :  { %v1016_v14 = vmax.f32 %v952_v10, 0.0  ;;  %v1032_v15 = vmax.f32 %v968_v11, 0.0 }
 0x124   :  { %v1483_v16 = vpack.c.bf16 %v1016_v14, %v1015_v12  ;;  %v1523_v17 = vpack.c.bf16 %v1032_v15, %v1031_v13 }
 0x126   :  { %1547 = vst [vmem:[%s1965_s4 + $0xb8] sm:$0xff] %v1483_v16  }
 0x127   :  { %1555 = vst [vmem:[%s1965_s4 + $0xf8] sm:$0xff] %v1523_v17  }

// kernel: resnext_forward.28
= control target key start
LH: loop header
LB: loop body
LE: loop exit
PB: predicated region body
PF: predicated region fallthrough
CT: control target
= control target key end

     0   :  { %9 = vsyncpa [#allocation4], 0  ;;  %s2900_s0 = inlined_call_operand.vmem [shape: bf16[512,256], index: 0, kind: input, shape index: {}]   ;;  %s2901_s1 = inlined_call_operand.vmem [shape: bf16[256,128], index: 1, kind: input, shape index: {}]   ;;  %s2902_s2 = inlined_call_operand.hbm [shape: f32[1,128], index: 2, kind: input, shape index: {}]   ;;  %s2903_s3 = inlined_call_operand.hbm [shape: f32[1,128], index: 3, kind: input, shape index: {}]   ;;  %s2904_s4 = inlined_call_operand.vmem [shape: bf16[512,128], index: 4, kind: output, shape index: {}]  }
   0x1   :  { %s20_s17 = sshll.u32 %s2902_s2, 4  ;;  %s21_s17 = int_to_ptr.hbm [resolvable:$true] %s20_s17 }
   0x2   :  { %10 = vsyncpa [#allocation6], 0  ;;  %s2221_s18 = smov [#allocation3]   ;;  %s31_s22 = sshll.u32 %s2903_s3, 4  ;;  %s32_s22 = int_to_ptr.hbm [resolvable:$true] %s31_s22 }
   0x3   :  { %s22_s19 = sshll.u32 %s2221_s18, 4  ;;  %s2222_s23 = smov [#allocation5]   ;;  %s23_s19 = int_to_ptr.vmem [resolvable:$true] %s22_s19 }
   0x4   :  { %25 = dma.hbm_to_vmem [thread:$0]  %s21_s17, 16, %s23_s19, [#allocation4]  }
   0x5   :  { %s33_s24 = sshll.u32 %s2222_s23, 4  ;;  %s34_s24 = int_to_ptr.vmem [resolvable:$true] %s33_s24 }
   0x6   :  { %36 = dma.hbm_to_vmem [thread:$0]  %s32_s22, 16, %s34_s24, [#allocation6]  }
   0x7   :  { %2217 = dma.done.wait [#allocation4], 16  }
   0x8   :  { %2218 = vsyncadd [#allocation4], 4294967280 }
   0x9   :  { %2219 = dma.done.wait [#allocation6], 16  }
   0xa   :  { %2220 = vsyncadd [#allocation6], 4294967280  ;;  %v1947_v0 = vld [vmem:[%s2901_s1 + $0x38] sm:$0xff]  ;;  %v1946_v2 = vld [vmem:[%s2901_s1 + $0x30] sm:$0xff] }
   0xb   :  { %v1955_v1 = vld [vmem:[%s2901_s1 + $0x78] sm:$0xff]  ;;  %689 = vmatpush.bf16.msra.mxu0 %v1947_v0  ;;  %2147 = vmatpush.bf16.msra.mxu2 %v1947_v0  ;;  %v1954_v3 = vld [vmem:[%s2901_s1 + $0x70] sm:$0xff]  ;;  %v1945_v4 = vld [vmem:[%s2901_s1 + $0x28] sm:$0xff] }
   0xc   :  { %858 = vmatpush.bf16.msra.mxu1 %v1955_v1  ;;  %2155 = vmatpush.bf16.msra.mxu3 %v1955_v1  ;;  %v1953_v5 = vld [vmem:[%s2901_s1 + $0x68] sm:$0xff]  ;;  %v1944_v6 = vld [vmem:[%s2901_s1 + $0x20] sm:$0xff]  ;;  %v1943_v8 = vld [vmem:[%s2901_s1 + $0x18] sm:$0xff] }
   0xd   :  { %v1952_v7 = vld [vmem:[%s2901_s1 + $0x60] sm:$0xff]  ;;  %v1951_v9 = vld [vmem:[%s2901_s1 + $0x58] sm:$0xff]  ;;  %v1942_v10 = vld [vmem:[%s2901_s1 + $0x10] sm:$0xff] }
   0xe   :  { %v1950_v11 = vld [vmem:[%s2901_s1 + $0x50] sm:$0xff]  ;;  %v1941_v12 = vld [vmem:[%s2901_s1 + $0x8] sm:$0xff]  ;;  %v1940_v14 = vld [vmem:[%s2901_s1] sm:$0xff] }
   0xf   :  { %690 = vmatpush.bf16.msra.mxu0 %v1946_v2  ;;  %2148 = vmatpush.bf16.msra.mxu2 %v1946_v2  ;;  %v1949_v13 = vld [vmem:[%s2901_s1 + $0x48] sm:$0xff]  ;;  %v1948_v15 = vld [vmem:[%s2901_s1 + $0x40] sm:$0xff]  ;;  %v1566_v28 = vld [vmem:[%s2900_s0 + $0x10] sm:$0xf] }
  0x10   :  { %859 = vmatpush.bf16.msra.mxu1 %v1954_v3  ;;  %2156 = vmatpush.bf16.msra.mxu3 %v1954_v3  ;;  %v1558_v16 = vld [vmem:[%s2900_s0] sm:$0xf]  ;;  %v1877_v17 = vld [vmem:[%s2900_s0 + $0x4] sm:$0xf0]  ;;  %v1876_v20 = vld [vmem:[%s2900_s0 + $0x4] sm:$0xf] }
  0x11   :  { %v1686_v18 = vld [vmem:[%s2900_s0 + $0x100] sm:$0xf]  ;;  %v1909_v19 = vld [vmem:[%s2900_s0 + $0x104] sm:$0xf0]  ;;  %v1560_v21 = vld [vmem:[%s2900_s0 + $0x8] sm:$0xf0]  ;;  %v1559_v24 = vor.u32 %v1877_v17, %v1558_v16 }
  0x12   :  { %v1908_v22 = vld [vmem:[%s2900_s0 + $0x104] sm:$0xf]  ;;  %v1688_v23 = vld [vmem:[%s2900_s0 + $0x108] sm:$0xf0]  ;;  %v1687_v25 = vor.u32 %v1909_v19, %v1686_v18  ;;  %v1563_v26 = vor.u32 %v1876_v20, %v1560_v21  ;;  %v1879_v29 = vld [vmem:[%s2900_s0 + $0x14] sm:$0xf0] }
  0x13   :  { %691 = vmatpush.bf16.msra.mxu0 %v1945_v4  ;;  %2149 = vmatpush.bf16.msra.mxu2 %v1945_v4  ;;  %v1691_v27 = vor.u32 %v1908_v22, %v1688_v23  ;;  %v1694_v30 = vld [vmem:[%s2900_s0 + $0x110] sm:$0xf]  ;;  %v1911_v31 = vld [vmem:[%s2900_s0 + $0x114] sm:$0xf0]  ;;  %v1878_v32 = vld [vmem:[%s2900_s0 + $0x14] sm:$0xf]  ;;  %v1567_v36 = vor.u32 %v1879_v29, %v1566_v28 }
  0x14   :  { %860 = vmatpush.bf16.msra.mxu1 %v1953_v5  ;;  %2157 = vmatpush.bf16.msra.mxu3 %v1953_v5  ;;  %v1568_v33 = vld [vmem:[%s2900_s0 + $0x18] sm:$0xf0]  ;;  %v1910_v34 = vld [vmem:[%s2900_s0 + $0x114] sm:$0xf]  ;;  %v1695_v37 = vor.u32 %v1911_v31, %v1694_v30  ;;  %v1574_v40 = vld [vmem:[%s2900_s0 + $0x20] sm:$0xf] }
  0x15   :  { %v1696_v35 = vld [vmem:[%s2900_s0 + $0x118] sm:$0xf0]  ;;  %v1571_v38 = vor.u32 %v1878_v32, %v1568_v33  ;;  %v1881_v41 = vld [vmem:[%s2900_s0 + $0x24] sm:$0xf0]  ;;  %v1702_v42 = vld [vmem:[%s2900_s0 + $0x120] sm:$0xf] }
  0x16   :  { %v1699_v39 = vor.u32 %v1910_v34, %v1696_v35  ;;  %v1913_v43 = vld [vmem:[%s2900_s0 + $0x124] sm:$0xf0]  ;;  %v1880_v44 = vld [vmem:[%s2900_s0 + $0x24] sm:$0xf]  ;;  %v1576_v45 = vld [vmem:[%s2900_s0 + $0x28] sm:$0xf0]  ;;  %v1575_v48 = vor.u32 %v1881_v41, %v1574_v40 }
  0x17   :  { %692 = vmatpush.bf16.msra.mxu0 %v1944_v6  ;;  %2150 = vmatpush.bf16.msra.mxu2 %v1944_v6  ;;  %v1912_v46 = vld [vmem:[%s2900_s0 + $0x124] sm:$0xf]  ;;  %v1704_v47 = vld [vmem:[%s2900_s0 + $0x128] sm:$0xf0]  ;;  %v1703_v49 = vor.u32 %v1913_v43, %v1702_v42  ;;  %v1579_v50 = vor.u32 %v1880_v44, %v1576_v45  ;;  %v1582_v52 = vld [vmem:[%s2900_s0 + $0x30] sm:$0xf] }
  0x18   :  { %861 = vmatpush.bf16.msra.mxu1 %v1952_v7  ;;  %2158 = vmatpush.bf16.msra.mxu3 %v1952_v7  ;;  %v1707_v51 = vor.u32 %v1912_v46, %v1704_v47  ;;  %v1883_v53 = vld [vmem:[%s2900_s0 + $0x34] sm:$0xf0]  ;;  %v1710_v54 = vld [vmem:[%s2900_s0 + $0x130] sm:$0xf]  ;;  %v1882_v56 = vld [vmem:[%s2900_s0 + $0x34] sm:$0xf] }
  0x19   :  { %v1915_v55 = vld [vmem:[%s2900_s0 + $0x134] sm:$0xf0]  ;;  %v1584_v57 = vld [vmem:[%s2900_s0 + $0x38] sm:$0xf0]  ;;  %v1914_v58 = vld [vmem:[%s2900_s0 + $0x134] sm:$0xf]  ;;  %v1583_v60 = vor.u32 %v1883_v53, %v1582_v52 }
  0x1a   :  { %v1712_v59 = vld [vmem:[%s2900_s0 + $0x138] sm:$0xf0]  ;;  %v1711_v61 = vor.u32 %v1915_v55, %v1710_v54  ;;  %v1587_v62 = vor.u32 %v1882_v56, %v1584_v57  ;;  %v1590_v0 = vld [vmem:[%s2900_s0 + $0x40] sm:$0xf]  ;;  %v1885_v1 = vld [vmem:[%s2900_s0 + $0x44] sm:$0xf0] }
  0x1b   :  { %693 = vmatpush.bf16.msra.mxu0 %v1943_v8  ;;  %2151 = vmatpush.bf16.msra.mxu2 %v1943_v8  ;;  %v1715_v63 = vor.u32 %v1914_v58, %v1712_v59  ;;  %v1718_v2 = vld [vmem:[%s2900_s0 + $0x140] sm:$0xf]  ;;  %v1917_v3 = vld [vmem:[%s2900_s0 + $0x144] sm:$0xf0]  ;;  %v1884_v4 = vld [vmem:[%s2900_s0 + $0x44] sm:$0xf]  ;;  %v1591_v8 = vor.u32 %v1885_v1, %v1590_v0 }
  0x1c   :  { %862 = vmatpush.bf16.msra.mxu1 %v1951_v9  ;;  %2159 = vmatpush.bf16.msra.mxu3 %v1951_v9  ;;  %v1592_v5 = vld [vmem:[%s2900_s0 + $0x48] sm:$0xf0]  ;;  %v1916_v6 = vld [vmem:[%s2900_s0 + $0x144] sm:$0xf]  ;;  %v1719_v9 = vor.u32 %v1917_v3, %v1718_v2  ;;  %v1886_v16 = vld [vmem:[%s2900_s0 + $0x54] sm:$0xf] }
  0x1d   :  { %v1720_v7 = vld [vmem:[%s2900_s0 + $0x148] sm:$0xf0]  ;;  %v1600_v17 = vld [vmem:[%s2900_s0 + $0x58] sm:$0xf0]  ;;  %v1918_v18 = vld [vmem:[%s2900_s0 + $0x154] sm:$0xf] }
  0x1e   :  { %v1728_v19 = vld [vmem:[%s2900_s0 + $0x158] sm:$0xf0]  ;;  %v1603_v22 = vor.u32 %v1886_v16, %v1600_v17  ;;  %v1888_v28 = vld [vmem:[%s2900_s0 + $0x64] sm:$0xf]  ;;  %v1608_v29 = vld [vmem:[%s2900_s0 + $0x68] sm:$0xf0] }
  0x1f   :  { %694 = vmatpush.bf16.msra.mxu0 %v1942_v10  ;;  %2152 = vmatpush.bf16.msra.mxu2 %v1942_v10  ;;  %v1595_v10 = vor.u32 %v1884_v4, %v1592_v5  ;;  %v1731_v23 = vor.u32 %v1918_v18, %v1728_v19  ;;  %v1920_v30 = vld [vmem:[%s2900_s0 + $0x164] sm:$0xf]  ;;  %v1736_v31 = vld [vmem:[%s2900_s0 + $0x168] sm:$0xf0]  ;;  %v1611_v34 = vor.u32 %v1888_v28, %v1608_v29  ;;  %v1890_v40 = vld [vmem:[%s2900_s0 + $0x74] sm:$0xf] }
  0x20   :  { %863 = vmatpush.bf16.msra.mxu1 %v1950_v11  ;;  %2160 = vmatpush.bf16.msra.mxu3 %v1950_v11  ;;  %v1723_v11 = vor.u32 %v1916_v6, %v1720_v7  ;;  %v1739_v35 = vor.u32 %v1920_v30, %v1736_v31  ;;  %v1616_v41 = vld [vmem:[%s2900_s0 + $0x78] sm:$0xf0]  ;;  %v1922_v42 = vld [vmem:[%s2900_s0 + $0x174] sm:$0xf]  ;;  %v1892_v52 = vld [vmem:[%s2900_s0 + $0x84] sm:$0xf] }
  0x21   :  { %v1744_v43 = vld [vmem:[%s2900_s0 + $0x178] sm:$0xf0]  ;;  %v1619_v46 = vor.u32 %v1890_v40, %v1616_v41  ;;  %v1624_v53 = vld [vmem:[%s2900_s0 + $0x88] sm:$0xf0]  ;;  %v1924_v54 = vld [vmem:[%s2900_s0 + $0x184] sm:$0xf] }
  0x22   :  { %v1747_v47 = vor.u32 %v1922_v42, %v1744_v43  ;;  %v1752_v55 = vld [vmem:[%s2900_s0 + $0x188] sm:$0xf0]  ;;  %v1627_v59 = vor.u32 %v1892_v52, %v1624_v53  ;;  %v2521_v3 = vld [vmem:[#allocation5] ss:$0 sm:$0xff]  ;;  %v1926_v16 = vld [vmem:[%s2900_s0 + $0x194] sm:$0xf] }
  0x23   :  { %695 = vmatpush.bf16.msra.mxu0 %v1941_v12  ;;  %2153 = vmatpush.bf16.msra.mxu2 %v1941_v12  ;;  %v1598_v12 = vld [vmem:[%s2900_s0 + $0x50] sm:$0xf]  ;;  %v1760_v17 = vld [vmem:[%s2900_s0 + $0x198] sm:$0xf0]  ;;  %v1896_v52 = vld [vmem:[%s2900_s0 + $0xa4] sm:$0xf] }
  0x24   :  { %864 = vmatpush.bf16.msra.mxu1 %v1949_v13  ;;  %2161 = vmatpush.bf16.msra.mxu3 %v1949_v13  ;;  %v1887_v13 = vld [vmem:[%s2900_s0 + $0x54] sm:$0xf0]  ;;  %v1763_v29 = vor.u32 %v1926_v16, %v1760_v17  ;;  %v1640_v53 = vld [vmem:[%s2900_s0 + $0xa8] sm:$0xf0] }
  0x25   :  { %v1599_v20 = vor.u32 %v1887_v13, %v1598_v12  ;;  %v1927_v13 = vld [vmem:[%s2900_s0 + $0x194] sm:$0xf0] }
  0x27   :  { %696 = vmatpush.bf16.msra.mxu0 %v1940_v14  ;;  %2154 = vmatpush.bf16.msra.mxu2 %v1940_v14  ;;  %v1726_v14 = vld [vmem:[%s2900_s0 + $0x150] sm:$0xf] }
  0x28   :  { %865 = vmatpush.bf16.msra.mxu1 %v1948_v15  ;;  %2162 = vmatpush.bf16.msra.mxu3 %v1948_v15  ;;  %v1919_v15 = vld [vmem:[%s2900_s0 + $0x154] sm:$0xf0] }
  0x29   :  { %v1727_v21 = vor.u32 %v1919_v15, %v1726_v14  ;;  %v1894_v14 = vld [vmem:[%s2900_s0 + $0x94] sm:$0xf]  ;;  %v1632_v15 = vld [vmem:[%s2900_s0 + $0x98] sm:$0xf0] }
  0x2a   :  { %697 = vmatmul.bf16.vlgmr.msra.gmra.mxu0 %v1559_v24  ;;  %777 = vmatmul.bf16.vlgmr.msra.gmra.mxu2 %v1687_v25  ;;  %v1606_v24 = vld [vmem:[%s2900_s0 + $0x60] sm:$0xf]  ;;  %v1889_v25 = vld [vmem:[%s2900_s0 + $0x64] sm:$0xf0] }
  0x2b   :  { %866 = vmatmul.bf16.vlgmr.msra.gmra.mxu1 %v1563_v26  ;;  %946 = vmatmul.bf16.vlgmr.msra.gmra.mxu3 %v1691_v27  ;;  %v1734_v26 = vld [vmem:[%s2900_s0 + $0x160] sm:$0xf]  ;;  %v1921_v27 = vld [vmem:[%s2900_s0 + $0x164] sm:$0xf0]  ;;  %v1607_v32 = vor.u32 %v1889_v25, %v1606_v24  ;;  %v1635_v24 = vor.u32 %v1894_v14, %v1632_v15 }
  0x2c   :  { %v1735_v33 = vor.u32 %v1921_v27, %v1734_v26 }
  0x3a   :  { %702 = vmatmul.bf16.gmra.mxu0 %v1567_v36  ;;  %782 = vmatmul.bf16.gmra.mxu2 %v1695_v37  ;;  %v1614_v36 = vld [vmem:[%s2900_s0 + $0x70] sm:$0xf]  ;;  %v1891_v37 = vld [vmem:[%s2900_s0 + $0x74] sm:$0xf0] }
  0x3b   :  { %871 = vmatmul.bf16.gmra.mxu1 %v1571_v38  ;;  %951 = vmatmul.bf16.gmra.mxu3 %v1699_v39  ;;  %v1742_v38 = vld [vmem:[%s2900_s0 + $0x170] sm:$0xf]  ;;  %v1923_v39 = vld [vmem:[%s2900_s0 + $0x174] sm:$0xf0]  ;;  %v1615_v44 = vor.u32 %v1891_v37, %v1614_v36 }
  0x3c   :  { %v1743_v45 = vor.u32 %v1923_v39, %v1742_v38 }
  0x4a   :  { %707 = vmatmul.bf16.gmra.mxu0 %v1575_v48  ;;  %787 = vmatmul.bf16.gmra.mxu2 %v1703_v49  ;;  %v1622_v48 = vld [vmem:[%s2900_s0 + $0x80] sm:$0xf]  ;;  %v1893_v49 = vld [vmem:[%s2900_s0 + $0x84] sm:$0xf0] }
  0x4b   :  { %876 = vmatmul.bf16.gmra.mxu1 %v1579_v50  ;;  %956 = vmatmul.bf16.gmra.mxu3 %v1707_v51  ;;  %v1750_v50 = vld [vmem:[%s2900_s0 + $0x180] sm:$0xf]  ;;  %v1925_v51 = vld [vmem:[%s2900_s0 + $0x184] sm:$0xf0]  ;;  %v1623_v56 = vor.u32 %v1893_v49, %v1622_v48 }
  0x4c   :  { %v1751_v57 = vor.u32 %v1925_v51, %v1750_v50  ;;  %v1766_v48 = vld [vmem:[%s2900_s0 + $0x1a0] sm:$0xf]  ;;  %v1929_v51 = vld [vmem:[%s2900_s0 + $0x1a4] sm:$0xf0] }
  0x5a   :  { %712 = vmatmul.bf16.gmra.mxu0 %v1583_v60  ;;  %792 = vmatmul.bf16.gmra.mxu2 %v1711_v61  ;;  %v1755_v60 = vor.u32 %v1924_v54, %v1752_v55  ;;  %v1928_v54 = vld [vmem:[%s2900_s0 + $0x1a4] sm:$0xf]  ;;  %v1768_v55 = vld [vmem:[%s2900_s0 + $0x1a8] sm:$0xf0] }
  0x5b   :  { %881 = vmatmul.bf16.gmra.mxu1 %v1587_v62  ;;  %961 = vmatmul.bf16.gmra.mxu3 %v1715_v63  ;;  %v2518_v63 = vld [vmem:[#allocation3] ss:$0 sm:$0xff] }
  0x6a   :  { %717 = vmatmul.bf16.gmra.mxu0 %v1591_v8  ;;  %797 = vmatmul.bf16.gmra.mxu2 %v1719_v9  ;;  %v1630_v8 = vld [vmem:[%s2900_s0 + $0x90] sm:$0xf]  ;;  %v1895_v9 = vld [vmem:[%s2900_s0 + $0x94] sm:$0xf0] }
  0x6b   :  { %886 = vmatmul.bf16.gmra.mxu1 %v1595_v10  ;;  %966 = vmatmul.bf16.gmra.mxu3 %v1723_v11  ;;  %v1758_v10 = vld [vmem:[%s2900_s0 + $0x190] sm:$0xf] }
  0x7a   :  { %722 = vmatmul.bf16.gmra.mxu0 %v1599_v20  ;;  %802 = vmatmul.bf16.gmra.mxu2 %v1727_v21 }
  0x7b   :  { %891 = vmatmul.bf16.gmra.mxu1 %v1603_v22  ;;  %971 = vmatmul.bf16.gmra.mxu3 %v1731_v23  ;;  %v1631_v22 = vor.u32 %v1895_v9, %v1630_v8  ;;  %v1759_v23 = vor.u32 %v1927_v13, %v1758_v10 }
  0x8a   :  { %727 = vmatmul.bf16.gmra.mxu0 %v1607_v32  ;;  %807 = vmatmul.bf16.gmra.mxu2 %v1735_v33 }
  0x8b   :  { %896 = vmatmul.bf16.gmra.mxu1 %v1611_v34  ;;  %976 = vmatmul.bf16.gmra.mxu3 %v1739_v35 }
  0x9a   :  { %732 = vmatmul.bf16.gmra.mxu0 %v1615_v44  ;;  %812 = vmatmul.bf16.gmra.mxu2 %v1743_v45 }
  0x9b   :  { %901 = vmatmul.bf16.gmra.mxu1 %v1619_v46  ;;  %981 = vmatmul.bf16.gmra.mxu3 %v1747_v47  ;;  %v1638_v46 = vld [vmem:[%s2900_s0 + $0xa0] sm:$0xf]  ;;  %v1897_v47 = vld [vmem:[%s2900_s0 + $0xa4] sm:$0xf0] }
  0xa7   :  { %v698_v58 = vpop.f32.mrf.mxu0 }
  0xa8   :  { %v867_v61 = vpop.f32.mrf.mxu1 }
  0xa9   :  { %v868_v62 = vadd.f32 %v867_v61, %v698_v58  ;;  %v1767_v61 = vor.u32 %v1929_v51, %v1766_v48 }
  0xaa   :  { %737 = vmatmul.bf16.gmra.mxu0 %v1623_v56  ;;  %817 = vmatmul.bf16.gmra.mxu2 %v1751_v57 }
  0xab   :  { %906 = vmatmul.bf16.gmra.mxu1 %v1627_v59  ;;  %986 = vmatmul.bf16.gmra.mxu3 %v1755_v60  ;;  %v1226_v2 = vmul.f32 %v2518_v63, %v868_v62  ;;  %v1639_v60 = vor.u32 %v1897_v47, %v1638_v46  ;;  %v1643_v62 = vor.u32 %v1896_v52, %v1640_v53 }
  0xad   :  { %v778_v0 = vpop.f32.mrf.mxu2  ;;  %v1294_v11 = vadd.f32 %v2521_v3, %v1226_v2 }
  0xae   :  { %v947_v1 = vpop.f32.mrf.mxu3 }
  0xaf   :  { %v700_v4 = vpop.f32.mrf.mxu0  ;;  %v948_v6 = vadd.f32 %v947_v1, %v778_v0  ;;  %v1358_v25 = vmax.f32 %v1294_v11, 0.0 }
  0xb0   :  { %v869_v5 = vpop.f32.mrf.mxu1 }
  0xb1   :  { %v870_v7 = vadd.f32 %v869_v5, %v700_v4  ;;  %v1258_v18 = vmul.f32 %v2518_v63, %v948_v6  ;;  %v1771_v5 = vor.u32 %v1928_v54, %v1768_v55 }
  0xb3   :  { %v1227_v12 = vmul.f32 %v2518_v63, %v870_v7  ;;  %v1326_v31 = vadd.f32 %v2521_v3, %v1258_v18 }
  0xb5   :  { %v1295_v19 = vadd.f32 %v2521_v3, %v1227_v12  ;;  %v780_v20 = vpop.f32.mrf.mxu2  ;;  %v1390_v36 = vmax.f32 %v1326_v31, 0.0  ;;  %v1776_v31 = vld [vmem:[%s2900_s0 + $0x1b8] sm:$0xf0] }
  0xb6   :  { %v949_v21 = vpop.f32.mrf.mxu3 }
  0xb7   :  { %v1359_v26 = vmax.f32 %v1295_v19, 0.0  ;;  %v950_v27 = vadd.f32 %v949_v21, %v780_v20  ;;  %v703_v28 = vpop.f32.mrf.mxu0 }
  0xb8   :  { %v872_v30 = vpop.f32.mrf.mxu1 }
  0xb9   :  { %v1959_v32 = vpack.c.bf16 %v1359_v26, %v1358_v25  ;;  %v1259_v33 = vmul.f32 %v2518_v63, %v950_v27  ;;  %v873_v35 = vadd.f32 %v872_v30, %v703_v28  ;;  %v1931_v27 = vld [vmem:[%s2900_s0 + $0x1b4] sm:$0xf0]  ;;  %v1898_v28 = vld [vmem:[%s2900_s0 + $0xb4] sm:$0xf] }
  0xba   :  { %742 = vmatmul.bf16.gmra.mxu0 %v1631_v22  ;;  %822 = vmatmul.bf16.gmra.mxu2 %v1759_v23  ;;  %v1646_v22 = vld [vmem:[%s2900_s0 + $0xb0] sm:$0xf]  ;;  %v1899_v23 = vld [vmem:[%s2900_s0 + $0xb4] sm:$0xf0]  ;;  %v1930_v30 = vld [vmem:[%s2900_s0 + $0x1b4] sm:$0xf] }
  0xbb   :  { %1960 = vst [vmem:[%s2904_s4] sm:$0xff] %v1959_v32   ;;  %v1327_v34 = vadd.f32 %v2521_v3, %v1259_v33  ;;  %911 = vmatmul.bf16.gmra.mxu1 %v1635_v24  ;;  %991 = vmatmul.bf16.gmra.mxu3 %v1763_v29  ;;  %v1228_v41 = vmul.f32 %v2518_v63, %v873_v35  ;;  %v1774_v24 = vld [vmem:[%s2900_s0 + $0x1b0] sm:$0xf]  ;;  %v1648_v29 = vld [vmem:[%s2900_s0 + $0xb8] sm:$0xf0] }
  0xbd   :  { %v1391_v37 = vmax.f32 %v1327_v34, 0.0  ;;  %v783_v38 = vpop.f32.mrf.mxu2  ;;  %v1296_v49 = vadd.f32 %v2521_v3, %v1228_v41 }
  0xbe   :  { %v952_v39 = vpop.f32.mrf.mxu3 }
  0xbf   :  { %v2039_v40 = vpack.c.bf16 %v1391_v37, %v1390_v36  ;;  %v705_v42 = vpop.f32.mrf.mxu0  ;;  %v953_v44 = vadd.f32 %v952_v39, %v783_v38  ;;  %v1360_v0 = vmax.f32 %v1296_v49, 0.0  ;;  %v1647_v36 = vor.u32 %v1899_v23, %v1646_v22 }
  0xc0   :  { %v874_v43 = vpop.f32.mrf.mxu1  ;;  %v1775_v37 = vor.u32 %v1931_v27, %v1774_v24  ;;  %v1651_v38 = vor.u32 %v1898_v28, %v1648_v29 }
  0xc1   :  { %2131 = vst [vmem:[%s2904_s4 + $0x80] sm:$0xff] %v2039_v40   ;;  %v875_v45 = vadd.f32 %v874_v43, %v705_v42  ;;  %v1260_v56 = vmul.f32 %v2518_v63, %v953_v44  ;;  %v1779_v43 = vor.u32 %v1930_v30, %v1776_v31 }
  0xc3   :  { %v1229_v50 = vmul.f32 %v2518_v63, %v875_v45  ;;  %v1328_v7 = vadd.f32 %v2521_v3, %v1260_v56 }
  0xc5   :  { %v1297_v57 = vadd.f32 %v2521_v3, %v1229_v50  ;;  %v785_v58 = vpop.f32.mrf.mxu2  ;;  %v1392_v12 = vmax.f32 %v1328_v7, 0.0  ;;  %v1784_v7 = vld [vmem:[%s2900_s0 + $0x1c8] sm:$0xf0] }
  0xc6   :  { %v954_v59 = vpop.f32.mrf.mxu3 }
  0xc7   :  { %v1361_v1 = vmax.f32 %v1297_v57, 0.0  ;;  %v955_v2 = vadd.f32 %v954_v59, %v785_v58  ;;  %v708_v4 = vpop.f32.mrf.mxu0 }
  0xc8   :  { %v877_v6 = vpop.f32.mrf.mxu1 }
  0xc9   :  { %v1964_v8 = vpack.c.bf16 %v1361_v1, %v1360_v0  ;;  %v1261_v9 = vmul.f32 %v2518_v63, %v955_v2  ;;  %v878_v11 = vadd.f32 %v877_v6, %v708_v4  ;;  %v1933_v2 = vld [vmem:[%s2900_s0 + $0x1c4] sm:$0xf0]  ;;  %v1900_v4 = vld [vmem:[%s2900_s0 + $0xc4] sm:$0xf] }
  0xca   :  { %747 = vmatmul.bf16.gmra.mxu0 %v1639_v60  ;;  %827 = vmatmul.bf16.gmra.mxu2 %v1767_v61  ;;  %v1654_v60 = vld [vmem:[%s2900_s0 + $0xc0] sm:$0xf]  ;;  %v1901_v61 = vld [vmem:[%s2900_s0 + $0xc4] sm:$0xf0]  ;;  %v1932_v6 = vld [vmem:[%s2900_s0 + $0x1c4] sm:$0xf] }
  0xcb   :  { %2116 = vst [vmem:[%s2904_s4 + $0x8] sm:$0xff] %v1964_v8   ;;  %v1329_v10 = vadd.f32 %v2521_v3, %v1261_v9  ;;  %916 = vmatmul.bf16.gmra.mxu1 %v1643_v62  ;;  %996 = vmatmul.bf16.gmra.mxu3 %v1771_v5  ;;  %v1230_v17 = vmul.f32 %v2518_v63, %v878_v11  ;;  %v1782_v62 = vld [vmem:[%s2900_s0 + $0x1c0] sm:$0xf]  ;;  %v1656_v5 = vld [vmem:[%s2900_s0 + $0xc8] sm:$0xf0] }
  0xcd   :  { %v1393_v13 = vmax.f32 %v1329_v10, 0.0  ;;  %v788_v14 = vpop.f32.mrf.mxu2  ;;  %v1298_v25 = vadd.f32 %v2521_v3, %v1230_v17 }
  0xce   :  { %v957_v15 = vpop.f32.mrf.mxu3 }
  0xcf   :  { %v2044_v16 = vpack.c.bf16 %v1393_v13, %v1392_v12  ;;  %v710_v18 = vpop.f32.mrf.mxu0  ;;  %v958_v20 = vadd.f32 %v957_v15, %v788_v14  ;;  %v1362_v39 = vmax.f32 %v1298_v25, 0.0  ;;  %v1655_v12 = vor.u32 %v1901_v61, %v1654_v60 }
  0xd0   :  { %v879_v19 = vpop.f32.mrf.mxu1  ;;  %v1783_v13 = vor.u32 %v1933_v2, %v1782_v62  ;;  %v1659_v14 = vor.u32 %v1900_v4, %v1656_v5 }
  0xd1   :  { %2132 = vst [vmem:[%s2904_s4 + $0x88] sm:$0xff] %v2044_v16   ;;  %v880_v21 = vadd.f32 %v879_v19, %v710_v18  ;;  %v1262_v32 = vmul.f32 %v2518_v63, %v958_v20  ;;  %v1787_v19 = vor.u32 %v1932_v6, %v1784_v7 }
  0xd3   :  { %v1231_v26 = vmul.f32 %v2518_v63, %v880_v21  ;;  %v1330_v45 = vadd.f32 %v2521_v3, %v1262_v32 }
  0xd5   :  { %v1299_v33 = vadd.f32 %v2521_v3, %v1231_v26  ;;  %v790_v34 = vpop.f32.mrf.mxu2  ;;  %v1394_v50 = vmax.f32 %v1330_v45, 0.0  ;;  %v1792_v45 = vld [vmem:[%s2900_s0 + $0x1d8] sm:$0xf0] }
  0xd6   :  { %v959_v35 = vpop.f32.mrf.mxu3 }
  0xd7   :  { %v1363_v40 = vmax.f32 %v1299_v33, 0.0  ;;  %v960_v41 = vadd.f32 %v959_v35, %v790_v34  ;;  %v713_v42 = vpop.f32.mrf.mxu0 }
  0xd8   :  { %v882_v44 = vpop.f32.mrf.mxu1 }
  0xd9   :  { %v1969_v46 = vpack.c.bf16 %v1363_v40, %v1362_v39  ;;  %v1263_v47 = vmul.f32 %v2518_v63, %v960_v41  ;;  %v883_v49 = vadd.f32 %v882_v44, %v713_v42  ;;  %v1935_v41 = vld [vmem:[%s2900_s0 + $0x1d4] sm:$0xf0]  ;;  %v1902_v42 = vld [vmem:[%s2900_s0 + $0xd4] sm:$0xf] }
  0xda   :  { %752 = vmatmul.bf16.gmra.mxu0 %v1647_v36  ;;  %832 = vmatmul.bf16.gmra.mxu2 %v1775_v37  ;;  %v1662_v36 = vld [vmem:[%s2900_s0 + $0xd0] sm:$0xf]  ;;  %v1903_v37 = vld [vmem:[%s2900_s0 + $0xd4] sm:$0xf0]  ;;  %v1934_v44 = vld [vmem:[%s2900_s0 + $0x1d4] sm:$0xf] }
  0xdb   :  { %2117 = vst [vmem:[%s2904_s4 + $0x10] sm:$0xff] %v1969_v46   ;;  %v1331_v48 = vadd.f32 %v2521_v3, %v1263_v47  ;;  %921 = vmatmul.bf16.gmra.mxu1 %v1651_v38  ;;  %1001 = vmatmul.bf16.gmra.mxu3 %v1779_v43  ;;  %v1232_v55 = vmul.f32 %v2518_v63, %v883_v49  ;;  %v1790_v38 = vld [vmem:[%s2900_s0 + $0x1d0] sm:$0xf]  ;;  %v1664_v43 = vld [vmem:[%s2900_s0 + $0xd8] sm:$0xf0] }
  0xdd   :  { %v1395_v51 = vmax.f32 %v1331_v48, 0.0  ;;  %v793_v52 = vpop.f32.mrf.mxu2  ;;  %v1300_v0 = vadd.f32 %v2521_v3, %v1232_v55 }
  0xde   :  { %v962_v53 = vpop.f32.mrf.mxu3 }
  0xdf   :  { %v2049_v54 = vpack.c.bf16 %v1395_v51, %v1394_v50  ;;  %v715_v56 = vpop.f32.mrf.mxu0  ;;  %v963_v58 = vadd.f32 %v962_v53, %v793_v52  ;;  %v1364_v15 = vmax.f32 %v1300_v0, 0.0  ;;  %v1663_v50 = vor.u32 %v1903_v37, %v1662_v36 }
  0xe0   :  { %v884_v57 = vpop.f32.mrf.mxu1  ;;  %v1791_v51 = vor.u32 %v1935_v41, %v1790_v38  ;;  %v1667_v52 = vor.u32 %v1902_v42, %v1664_v43 }
  0xe1   :  { %2133 = vst [vmem:[%s2904_s4 + $0x90] sm:$0xff] %v2049_v54   ;;  %v885_v59 = vadd.f32 %v884_v57, %v715_v56  ;;  %v1264_v8 = vmul.f32 %v2518_v63, %v963_v58  ;;  %v1795_v57 = vor.u32 %v1934_v44, %v1792_v45 }
  0xe3   :  { %v1233_v1 = vmul.f32 %v2518_v63, %v885_v59  ;;  %v1332_v21 = vadd.f32 %v2521_v3, %v1264_v8 }
  0xe5   :  { %v1301_v9 = vadd.f32 %v2521_v3, %v1233_v1  ;;  %v795_v10 = vpop.f32.mrf.mxu2  ;;  %v1396_v26 = vmax.f32 %v1332_v21, 0.0  ;;  %v1800_v21 = vld [vmem:[%s2900_s0 + $0x1e8] sm:$0xf0] }
  0xe6   :  { %v964_v11 = vpop.f32.mrf.mxu3 }
  0xe7   :  { %v1365_v16 = vmax.f32 %v1301_v9, 0.0  ;;  %v965_v17 = vadd.f32 %v964_v11, %v795_v10  ;;  %v718_v18 = vpop.f32.mrf.mxu0 }
  0xe8   :  { %v887_v20 = vpop.f32.mrf.mxu1 }
  0xe9   :  { %v1974_v22 = vpack.c.bf16 %v1365_v16, %v1364_v15  ;;  %v1265_v23 = vmul.f32 %v2518_v63, %v965_v17  ;;  %v888_v25 = vadd.f32 %v887_v20, %v718_v18  ;;  %v1937_v17 = vld [vmem:[%s2900_s0 + $0x1e4] sm:$0xf0]  ;;  %v1904_v18 = vld [vmem:[%s2900_s0 + $0xe4] sm:$0xf] }
  0xea   :  { %757 = vmatmul.bf16.gmra.mxu0 %v1655_v12  ;;  %837 = vmatmul.bf16.gmra.mxu2 %v1783_v13  ;;  %v1670_v12 = vld [vmem:[%s2900_s0 + $0xe0] sm:$0xf]  ;;  %v1905_v13 = vld [vmem:[%s2900_s0 + $0xe4] sm:$0xf0]  ;;  %v1936_v20 = vld [vmem:[%s2900_s0 + $0x1e4] sm:$0xf] }
  0xeb   :  { %2118 = vst [vmem:[%s2904_s4 + $0x18] sm:$0xff] %v1974_v22   ;;  %v1333_v24 = vadd.f32 %v2521_v3, %v1265_v23  ;;  %926 = vmatmul.bf16.gmra.mxu1 %v1659_v14  ;;  %1006 = vmatmul.bf16.gmra.mxu3 %v1787_v19  ;;  %v1234_v31 = vmul.f32 %v2518_v63, %v888_v25  ;;  %v1798_v14 = vld [vmem:[%s2900_s0 + $0x1e0] sm:$0xf]  ;;  %v1672_v19 = vld [vmem:[%s2900_s0 + $0xe8] sm:$0xf0] }
  0xed   :  { %v1397_v27 = vmax.f32 %v1333_v24, 0.0  ;;  %v798_v28 = vpop.f32.mrf.mxu2  ;;  %v1302_v39 = vadd.f32 %v2521_v3, %v1234_v31 }
  0xee   :  { %v967_v29 = vpop.f32.mrf.mxu3 }
  0xef   :  { %v2054_v30 = vpack.c.bf16 %v1397_v27, %v1396_v26  ;;  %v720_v32 = vpop.f32.mrf.mxu0  ;;  %v968_v34 = vadd.f32 %v967_v29, %v798_v28  ;;  %v1366_v53 = vmax.f32 %v1302_v39, 0.0  ;;  %v1671_v26 = vor.u32 %v1905_v13, %v1670_v12 }
  0xf0   :  { %v889_v33 = vpop.f32.mrf.mxu1  ;;  %v1799_v27 = vor.u32 %v1937_v17, %v1798_v14  ;;  %v1675_v28 = vor.u32 %v1904_v18, %v1672_v19 }
  0xf1   :  { %2134 = vst [vmem:[%s2904_s4 + $0x98] sm:$0xff] %v2054_v30   ;;  %v890_v35 = vadd.f32 %v889_v33, %v720_v32  ;;  %v1266_v46 = vmul.f32 %v2518_v63, %v968_v34  ;;  %v1803_v33 = vor.u32 %v1936_v20, %v1800_v21 }
  0xf3   :  { %v1235_v40 = vmul.f32 %v2518_v63, %v890_v35  ;;  %v1334_v59 = vadd.f32 %v2521_v3, %v1266_v46 }
  0xf5   :  { %v1303_v47 = vadd.f32 %v2521_v3, %v1235_v40  ;;  %v800_v48 = vpop.f32.mrf.mxu2  ;;  %v1398_v1 = vmax.f32 %v1334_v59, 0.0  ;;  %v1808_v59 = vld [vmem:[%s2900_s0 + $0x1f8] sm:$0xf0] }
  0xf6   :  { %v969_v49 = vpop.f32.mrf.mxu3 }
  0xf7   :  { %v1367_v54 = vmax.f32 %v1303_v47, 0.0  ;;  %v970_v55 = vadd.f32 %v969_v49, %v800_v48  ;;  %v723_v56 = vpop.f32.mrf.mxu0 }
  0xf8   :  { %v892_v58 = vpop.f32.mrf.mxu1 }
  0xf9   :  { %v1979_v60 = vpack.c.bf16 %v1367_v54, %v1366_v53  ;;  %v1267_v61 = vmul.f32 %v2518_v63, %v970_v55  ;;  %v893_v0 = vadd.f32 %v892_v58, %v723_v56  ;;  %v1939_v55 = vld [vmem:[%s2900_s0 + $0x1f4] sm:$0xf0]  ;;  %v1906_v56 = vld [vmem:[%s2900_s0 + $0xf4] sm:$0xf] }
  0xfa   :  { %762 = vmatmul.bf16.gmra.mxu0 %v1663_v50  ;;  %842 = vmatmul.bf16.gmra.mxu2 %v1791_v51  ;;  %v1678_v50 = vld [vmem:[%s2900_s0 + $0xf0] sm:$0xf]  ;;  %v1907_v51 = vld [vmem:[%s2900_s0 + $0xf4] sm:$0xf0]  ;;  %v1938_v58 = vld [vmem:[%s2900_s0 + $0x1f4] sm:$0xf] }
  0xfb   :  { %2119 = vst [vmem:[%s2904_s4 + $0x20] sm:$0xff] %v1979_v60   ;;  %v1335_v62 = vadd.f32 %v2521_v3, %v1267_v61  ;;  %931 = vmatmul.bf16.gmra.mxu1 %v1667_v52  ;;  %1011 = vmatmul.bf16.gmra.mxu3 %v1795_v57  ;;  %v1236_v7 = vmul.f32 %v2518_v63, %v893_v0  ;;  %v1806_v52 = vld [vmem:[%s2900_s0 + $0x1f0] sm:$0xf]  ;;  %v1680_v57 = vld [vmem:[%s2900_s0 + $0xf8] sm:$0xf0] }
  0xfd   :  { %v1399_v2 = vmax.f32 %v1335_v62, 0.0  ;;  %v803_v4 = vpop.f32.mrf.mxu2  ;;  %v1304_v15 = vadd.f32 %v2521_v3, %v1236_v7 }
  0xfe   :  { %v972_v5 = vpop.f32.mrf.mxu3 }
  0xff   :  { %v2059_v6 = vpack.c.bf16 %v1399_v2, %v1398_v1  ;;  %v725_v8 = vpop.f32.mrf.mxu0  ;;  %v973_v10 = vadd.f32 %v972_v5, %v803_v4  ;;  %v1368_v29 = vmax.f32 %v1304_v15, 0.0  ;;  %v1679_v1 = vor.u32 %v1907_v51, %v1678_v50 }
 0x100   :  { %v894_v9 = vpop.f32.mrf.mxu1  ;;  %v1807_v2 = vor.u32 %v1939_v55, %v1806_v52  ;;  %v1683_v4 = vor.u32 %v1906_v56, %v1680_v57 }
 0x101   :  { %2135 = vst [vmem:[%s2904_s4 + $0xa0] sm:$0xff] %v2059_v6   ;;  %v895_v11 = vadd.f32 %v894_v9, %v725_v8  ;;  %v1268_v22 = vmul.f32 %v2518_v63, %v973_v10  ;;  %v1811_v9 = vor.u32 %v1938_v58, %v1808_v59 }
 0x103   :  { %v1237_v16 = vmul.f32 %v2518_v63, %v895_v11  ;;  %v1336_v35 = vadd.f32 %v2521_v3, %v1268_v22 }
 0x105   :  { %v1305_v23 = vadd.f32 %v2521_v3, %v1237_v16  ;;  %v805_v24 = vpop.f32.mrf.mxu2  ;;  %v1400_v40 = vmax.f32 %v1336_v35, 0.0 }
 0x106   :  { %v974_v25 = vpop.f32.mrf.mxu3 }
 0x107   :  { %v1369_v30 = vmax.f32 %v1305_v23, 0.0  ;;  %v975_v31 = vadd.f32 %v974_v25, %v805_v24  ;;  %v728_v32 = vpop.f32.mrf.mxu0 }
 0x108   :  { %v897_v34 = vpop.f32.mrf.mxu1 }
 0x109   :  { %v1984_v36 = vpack.c.bf16 %v1369_v30, %v1368_v29  ;;  %v1269_v37 = vmul.f32 %v2518_v63, %v975_v31  ;;  %v898_v39 = vadd.f32 %v897_v34, %v728_v32 }
 0x10a   :  { %767 = vmatmul.bf16.gmra.mxu0 %v1671_v26  ;;  %847 = vmatmul.bf16.gmra.mxu2 %v1799_v27 }
 0x10b   :  { %2120 = vst [vmem:[%s2904_s4 + $0x28] sm:$0xff] %v1984_v36   ;;  %v1337_v38 = vadd.f32 %v2521_v3, %v1269_v37  ;;  %936 = vmatmul.bf16.gmra.mxu1 %v1675_v28  ;;  %1016 = vmatmul.bf16.gmra.mxu3 %v1803_v33  ;;  %v1238_v45 = vmul.f32 %v2518_v63, %v898_v39 }
 0x10d   :  { %v1401_v41 = vmax.f32 %v1337_v38, 0.0  ;;  %v808_v42 = vpop.f32.mrf.mxu2  ;;  %v1306_v53 = vadd.f32 %v2521_v3, %v1238_v45 }
 0x10e   :  { %v977_v43 = vpop.f32.mrf.mxu3 }
 0x10f   :  { %v2064_v44 = vpack.c.bf16 %v1401_v41, %v1400_v40  ;;  %v730_v46 = vpop.f32.mrf.mxu0  ;;  %v978_v48 = vadd.f32 %v977_v43, %v808_v42  ;;  %v1370_v5 = vmax.f32 %v1306_v53, 0.0 }
 0x110   :  { %v899_v47 = vpop.f32.mrf.mxu1 }
 0x111   :  { %2136 = vst [vmem:[%s2904_s4 + $0xa8] sm:$0xff] %v2064_v44   ;;  %v900_v49 = vadd.f32 %v899_v47, %v730_v46  ;;  %v1270_v60 = vmul.f32 %v2518_v63, %v978_v48 }
 0x113   :  { %v1239_v54 = vmul.f32 %v2518_v63, %v900_v49  ;;  %v1338_v11 = vadd.f32 %v2521_v3, %v1270_v60 }
 0x115   :  { %v1307_v61 = vadd.f32 %v2521_v3, %v1239_v54  ;;  %v810_v62 = vpop.f32.mrf.mxu2  ;;  %v1402_v16 = vmax.f32 %v1338_v11, 0.0 }
 0x116   :  { %v979_v0 = vpop.f32.mrf.mxu3 }
 0x117   :  { %v1371_v6 = vmax.f32 %v1307_v61, 0.0  ;;  %v980_v7 = vadd.f32 %v979_v0, %v810_v62  ;;  %v733_v8 = vpop.f32.mrf.mxu0 }
 0x118   :  { %v902_v10 = vpop.f32.mrf.mxu1 }
 0x119   :  { %v1989_v12 = vpack.c.bf16 %v1371_v6, %v1370_v5  ;;  %v1271_v13 = vmul.f32 %v2518_v63, %v980_v7  ;;  %v903_v15 = vadd.f32 %v902_v10, %v733_v8 }
 0x11a   :  { %772 = vmatmul.bf16.gmra.mxu0 %v1679_v1  ;;  %852 = vmatmul.bf16.gmra.mxu2 %v1807_v2 }
 0x11b   :  { %2121 = vst [vmem:[%s2904_s4 + $0x30] sm:$0xff] %v1989_v12   ;;  %v1339_v14 = vadd.f32 %v2521_v3, %v1271_v13  ;;  %941 = vmatmul.bf16.gmra.mxu1 %v1683_v4  ;;  %1021 = vmatmul.bf16.gmra.mxu3 %v1811_v9  ;;  %v1240_v21 = vmul.f32 %v2518_v63, %v903_v15 }
 0x11d   :  { %v1403_v17 = vmax.f32 %v1339_v14, 0.0  ;;  %v813_v18 = vpop.f32.mrf.mxu2  ;;  %v1308_v26 = vadd.f32 %v2521_v3, %v1240_v21 }
 0x11e   :  { %v982_v19 = vpop.f32.mrf.mxu3 }
 0x11f   :  { %v2069_v20 = vpack.c.bf16 %v1403_v17, %v1402_v16  ;;  %v735_v22 = vpop.f32.mrf.mxu0  ;;  %v983_v24 = vadd.f32 %v982_v19, %v813_v18  ;;  %v1372_v32 = vmax.f32 %v1308_v26, 0.0 }
 0x120   :  { %v904_v23 = vpop.f32.mrf.mxu1 }
 0x121   :  { %2137 = vst [vmem:[%s2904_s4 + $0xb0] sm:$0xff] %v2069_v20   ;;  %v905_v25 = vadd.f32 %v904_v23, %v735_v22  ;;  %v1272_v28 = vmul.f32 %v2518_v63, %v983_v24 }
 0x123   :  { %v1241_v27 = vmul.f32 %v2518_v63, %v905_v25  ;;  %v1340_v37 = vadd.f32 %v2521_v3, %v1272_v28 }
 0x125   :  { %v1309_v29 = vadd.f32 %v2521_v3, %v1241_v27  ;;  %v815_v30 = vpop.f32.mrf.mxu2  ;;  %v1404_v42 = vmax.f32 %v1340_v37, 0.0 }
 0x126   :  { %v984_v31 = vpop.f32.mrf.mxu3 }
 0x127   :  { %v1373_v33 = vmax.f32 %v1309_v29, 0.0  ;;  %v985_v34 = vadd.f32 %v984_v31, %v815_v30  ;;  %v738_v35 = vpop.f32.mrf.mxu0 }
 0x128   :  { %v907_v36 = vpop.f32.mrf.mxu1 }
 0x129   :  { %v1994_v38 = vpack.c.bf16 %v1373_v33, %v1372_v32  ;;  %v1273_v39 = vmul.f32 %v2518_v63, %v985_v34  ;;  %v908_v41 = vadd.f32 %v907_v36, %v738_v35 }
 0x12b   :  { %2122 = vst [vmem:[%s2904_s4 + $0x38] sm:$0xff] %v1994_v38   ;;  %v1341_v40 = vadd.f32 %v2521_v3, %v1273_v39  ;;  %v1242_v47 = vmul.f32 %v2518_v63, %v908_v41 }
 0x12d   :  { %v1405_v43 = vmax.f32 %v1341_v40, 0.0  ;;  %v818_v44 = vpop.f32.mrf.mxu2  ;;  %v1310_v52 = vadd.f32 %v2521_v3, %v1242_v47 }
 0x12e   :  { %v987_v45 = vpop.f32.mrf.mxu3 }
 0x12f   :  { %v2074_v46 = vpack.c.bf16 %v1405_v43, %v1404_v42  ;;  %v740_v48 = vpop.f32.mrf.mxu0  ;;  %v988_v50 = vadd.f32 %v987_v45, %v818_v44  ;;  %v1374_v58 = vmax.f32 %v1310_v52, 0.0 }
 0x130   :  { %v909_v49 = vpop.f32.mrf.mxu1 }
 0x131   :  { %2138 = vst [vmem:[%s2904_s4 + $0xb8] sm:$0xff] %v2074_v46   ;;  %v910_v51 = vadd.f32 %v909_v49, %v740_v48  ;;  %v1274_v54 = vmul.f32 %v2518_v63, %v988_v50 }
 0x133   :  { %v1243_v53 = vmul.f32 %v2518_v63, %v910_v51  ;;  %v1342_v0 = vadd.f32 %v2521_v3, %v1274_v54 }
 0x135   :  { %v1311_v55 = vadd.f32 %v2521_v3, %v1243_v53  ;;  %v820_v56 = vpop.f32.mrf.mxu2  ;;  %v1406_v6 = vmax.f32 %v1342_v0, 0.0 }
 0x136   :  { %v989_v57 = vpop.f32.mrf.mxu3 }
 0x137   :  { %v1375_v59 = vmax.f32 %v1311_v55, 0.0  ;;  %v990_v60 = vadd.f32 %v989_v57, %v820_v56  ;;  %v743_v61 = vpop.f32.mrf.mxu0 }
 0x138   :  { %v912_v62 = vpop.f32.mrf.mxu1 }
 0x139   :  { %v1999_v1 = vpack.c.bf16 %v1375_v59, %v1374_v58  ;;  %v1275_v2 = vmul.f32 %v2518_v63, %v990_v60  ;;  %v913_v5 = vadd.f32 %v912_v62, %v743_v61 }
 0x13b   :  { %2123 = vst [vmem:[%s2904_s4 + $0x40] sm:$0xff] %v1999_v1   ;;  %v1343_v4 = vadd.f32 %v2521_v3, %v1275_v2  ;;  %v1244_v11 = vmul.f32 %v2518_v63, %v913_v5 }
 0x13d   :  { %v1407_v7 = vmax.f32 %v1343_v4, 0.0  ;;  %v823_v8 = vpop.f32.mrf.mxu2  ;;  %v1312_v16 = vadd.f32 %v2521_v3, %v1244_v11 }
 0x13e   :  { %v992_v9 = vpop.f32.mrf.mxu3 }
 0x13f   :  { %v2079_v10 = vpack.c.bf16 %v1407_v7, %v1406_v6  ;;  %v745_v12 = vpop.f32.mrf.mxu0  ;;  %v993_v14 = vadd.f32 %v992_v9, %v823_v8  ;;  %v1376_v22 = vmax.f32 %v1312_v16, 0.0 }
 0x140   :  { %v914_v13 = vpop.f32.mrf.mxu1 }
 0x141   :  { %2139 = vst [vmem:[%s2904_s4 + $0xc0] sm:$0xff] %v2079_v10   ;;  %v915_v15 = vadd.f32 %v914_v13, %v745_v12  ;;  %v1276_v18 = vmul.f32 %v2518_v63, %v993_v14 }
 0x143   :  { %v1245_v17 = vmul.f32 %v2518_v63, %v915_v15  ;;  %v1344_v27 = vadd.f32 %v2521_v3, %v1276_v18 }
 0x145   :  { %v1313_v19 = vadd.f32 %v2521_v3, %v1245_v17  ;;  %v825_v20 = vpop.f32.mrf.mxu2  ;;  %v1408_v32 = vmax.f32 %v1344_v27, 0.0 }
 0x146   :  { %v994_v21 = vpop.f32.mrf.mxu3 }
 0x147   :  { %v1377_v23 = vmax.f32 %v1313_v19, 0.0  ;;  %v995_v24 = vadd.f32 %v994_v21, %v825_v20  ;;  %v748_v25 = vpop.f32.mrf.mxu0 }
 0x148   :  { %v917_v26 = vpop.f32.mrf.mxu1 }
 0x149   :  { %v2004_v28 = vpack.c.bf16 %v1377_v23, %v1376_v22  ;;  %v1277_v29 = vmul.f32 %v2518_v63, %v995_v24  ;;  %v918_v31 = vadd.f32 %v917_v26, %v748_v25 }
 0x14b   :  { %2124 = vst [vmem:[%s2904_s4 + $0x48] sm:$0xff] %v2004_v28   ;;  %v1345_v30 = vadd.f32 %v2521_v3, %v1277_v29  ;;  %v1246_v37 = vmul.f32 %v2518_v63, %v918_v31 }
 0x14d   :  { %v1409_v33 = vmax.f32 %v1345_v30, 0.0  ;;  %v828_v34 = vpop.f32.mrf.mxu2  ;;  %v1314_v42 = vadd.f32 %v2521_v3, %v1246_v37 }
 0x14e   :  { %v997_v35 = vpop.f32.mrf.mxu3 }
 0x14f   :  { %v2084_v36 = vpack.c.bf16 %v1409_v33, %v1408_v32  ;;  %v750_v38 = vpop.f32.mrf.mxu0  ;;  %v998_v40 = vadd.f32 %v997_v35, %v828_v34  ;;  %v1378_v48 = vmax.f32 %v1314_v42, 0.0 }
 0x150   :  { %v919_v39 = vpop.f32.mrf.mxu1 }
 0x151   :  { %2140 = vst [vmem:[%s2904_s4 + $0xc8] sm:$0xff] %v2084_v36   ;;  %v920_v41 = vadd.f32 %v919_v39, %v750_v38  ;;  %v1278_v44 = vmul.f32 %v2518_v63, %v998_v40 }
 0x153   :  { %v1247_v43 = vmul.f32 %v2518_v63, %v920_v41  ;;  %v1346_v53 = vadd.f32 %v2521_v3, %v1278_v44 }
 0x155   :  { %v1315_v45 = vadd.f32 %v2521_v3, %v1247_v43  ;;  %v830_v46 = vpop.f32.mrf.mxu2  ;;  %v1410_v58 = vmax.f32 %v1346_v53, 0.0 }
 0x156   :  { %v999_v47 = vpop.f32.mrf.mxu3 }
 0x157   :  { %v1379_v49 = vmax.f32 %v1315_v45, 0.0  ;;  %v1000_v50 = vadd.f32 %v999_v47, %v830_v46  ;;  %v753_v51 = vpop.f32.mrf.mxu0 }
 0x158   :  { %v922_v52 = vpop.f32.mrf.mxu1 }
 0x159   :  { %v2009_v54 = vpack.c.bf16 %v1379_v49, %v1378_v48  ;;  %v1279_v55 = vmul.f32 %v2518_v63, %v1000_v50  ;;  %v923_v57 = vadd.f32 %v922_v52, %v753_v51 }
 0x15b   :  { %2125 = vst [vmem:[%s2904_s4 + $0x50] sm:$0xff] %v2009_v54   ;;  %v1347_v56 = vadd.f32 %v2521_v3, %v1279_v55  ;;  %v1248_v0 = vmul.f32 %v2518_v63, %v923_v57 }
 0x15d   :  { %v1411_v59 = vmax.f32 %v1347_v56, 0.0  ;;  %v833_v60 = vpop.f32.mrf.mxu2  ;;  %v1316_v6 = vadd.f32 %v2521_v3, %v1248_v0 }
 0x15e   :  { %v1002_v61 = vpop.f32.mrf.mxu3 }
 0x15f   :  { %v2089_v62 = vpack.c.bf16 %v1411_v59, %v1410_v58  ;;  %v755_v1 = vpop.f32.mrf.mxu0  ;;  %v1003_v4 = vadd.f32 %v1002_v61, %v833_v60  ;;  %v1380_v12 = vmax.f32 %v1316_v6, 0.0 }
 0x160   :  { %v924_v2 = vpop.f32.mrf.mxu1 }
 0x161   :  { %2141 = vst [vmem:[%s2904_s4 + $0xd0] sm:$0xff] %v2089_v62   ;;  %v925_v5 = vadd.f32 %v924_v2, %v755_v1  ;;  %v1280_v8 = vmul.f32 %v2518_v63, %v1003_v4 }
 0x163   :  { %v1249_v7 = vmul.f32 %v2518_v63, %v925_v5  ;;  %v1348_v17 = vadd.f32 %v2521_v3, %v1280_v8 }
 0x165   :  { %v1317_v9 = vadd.f32 %v2521_v3, %v1249_v7  ;;  %v835_v10 = vpop.f32.mrf.mxu2  ;;  %v1412_v22 = vmax.f32 %v1348_v17, 0.0 }
 0x166   :  { %v1004_v11 = vpop.f32.mrf.mxu3 }
 0x167   :  { %v1381_v13 = vmax.f32 %v1317_v9, 0.0  ;;  %v1005_v14 = vadd.f32 %v1004_v11, %v835_v10  ;;  %v758_v15 = vpop.f32.mrf.mxu0 }
 0x168   :  { %v927_v16 = vpop.f32.mrf.mxu1 }
 0x169   :  { %v2014_v18 = vpack.c.bf16 %v1381_v13, %v1380_v12  ;;  %v1281_v19 = vmul.f32 %v2518_v63, %v1005_v14  ;;  %v928_v21 = vadd.f32 %v927_v16, %v758_v15 }
 0x16b   :  { %2126 = vst [vmem:[%s2904_s4 + $0x58] sm:$0xff] %v2014_v18   ;;  %v1349_v20 = vadd.f32 %v2521_v3, %v1281_v19  ;;  %v1250_v27 = vmul.f32 %v2518_v63, %v928_v21 }
 0x16d   :  { %v1413_v23 = vmax.f32 %v1349_v20, 0.0  ;;  %v838_v24 = vpop.f32.mrf.mxu2  ;;  %v1318_v32 = vadd.f32 %v2521_v3, %v1250_v27 }
 0x16e   :  { %v1007_v25 = vpop.f32.mrf.mxu3 }
 0x16f   :  { %v2094_v26 = vpack.c.bf16 %v1413_v23, %v1412_v22  ;;  %v760_v28 = vpop.f32.mrf.mxu0  ;;  %v1008_v30 = vadd.f32 %v1007_v25, %v838_v24  ;;  %v1382_v38 = vmax.f32 %v1318_v32, 0.0  ;;  %v2167_v23 = vld [vmem:[#allocation3] ss:$0 sm:$0xff] }
 0x170   :  { %v929_v29 = vpop.f32.mrf.mxu1 }
 0x171   :  { %2142 = vst [vmem:[%s2904_s4 + $0xd8] sm:$0xff] %v2094_v26   ;;  %v930_v31 = vadd.f32 %v929_v29, %v760_v28  ;;  %v1282_v34 = vmul.f32 %v2518_v63, %v1008_v30  ;;  %v2168_v26 = vld [vmem:[#allocation5] ss:$0 sm:$0xff] }
 0x173   :  { %v1251_v33 = vmul.f32 %v2518_v63, %v930_v31  ;;  %v1350_v43 = vadd.f32 %v2521_v3, %v1282_v34 }
 0x175   :  { %v1319_v35 = vadd.f32 %v2521_v3, %v1251_v33  ;;  %v840_v36 = vpop.f32.mrf.mxu2  ;;  %v1414_v48 = vmax.f32 %v1350_v43, 0.0 }
 0x176   :  { %v1009_v37 = vpop.f32.mrf.mxu3 }
 0x177   :  { %v1383_v39 = vmax.f32 %v1319_v35, 0.0  ;;  %v1010_v40 = vadd.f32 %v1009_v37, %v840_v36  ;;  %v763_v41 = vpop.f32.mrf.mxu0 }
 0x178   :  { %v932_v42 = vpop.f32.mrf.mxu1 }
 0x179   :  { %v2019_v44 = vpack.c.bf16 %v1383_v39, %v1382_v38  ;;  %v1283_v45 = vmul.f32 %v2518_v63, %v1010_v40  ;;  %v933_v47 = vadd.f32 %v932_v42, %v763_v41 }
 0x17b   :  { %2127 = vst [vmem:[%s2904_s4 + $0x60] sm:$0xff] %v2019_v44   ;;  %v1351_v46 = vadd.f32 %v2521_v3, %v1283_v45  ;;  %v1252_v53 = vmul.f32 %v2518_v63, %v933_v47 }
 0x17d   :  { %v1415_v49 = vmax.f32 %v1351_v46, 0.0  ;;  %v843_v50 = vpop.f32.mrf.mxu2  ;;  %v1320_v58 = vadd.f32 %v2521_v3, %v1252_v53 }
 0x17e   :  { %v1012_v51 = vpop.f32.mrf.mxu3 }
 0x17f   :  { %v2099_v52 = vpack.c.bf16 %v1415_v49, %v1414_v48  ;;  %v765_v54 = vpop.f32.mrf.mxu0  ;;  %v1013_v56 = vadd.f32 %v1012_v51, %v843_v50  ;;  %v1384_v1 = vmax.f32 %v1320_v58, 0.0 }
 0x180   :  { %v934_v55 = vpop.f32.mrf.mxu1 }
 0x181   :  { %2143 = vst [vmem:[%s2904_s4 + $0xe0] sm:$0xff] %v2099_v52   ;;  %v935_v57 = vadd.f32 %v934_v55, %v765_v54  ;;  %v1284_v60 = vmul.f32 %v2518_v63, %v1013_v56 }
 0x183   :  { %v1253_v59 = vmul.f32 %v2518_v63, %v935_v57  ;;  %v1352_v7 = vadd.f32 %v2521_v3, %v1284_v60 }
 0x185   :  { %v1321_v61 = vadd.f32 %v2521_v3, %v1253_v59  ;;  %v845_v62 = vpop.f32.mrf.mxu2  ;;  %v1416_v12 = vmax.f32 %v1352_v7, 0.0 }
 0x186   :  { %v1014_v0 = vpop.f32.mrf.mxu3 }
 0x187   :  { %v1385_v2 = vmax.f32 %v1321_v61, 0.0  ;;  %v1015_v4 = vadd.f32 %v1014_v0, %v845_v62  ;;  %v768_v5 = vpop.f32.mrf.mxu0 }
 0x188   :  { %v937_v6 = vpop.f32.mrf.mxu1 }
 0x189   :  { %v2024_v8 = vpack.c.bf16 %v1385_v2, %v1384_v1  ;;  %v1285_v9 = vmul.f32 %v2518_v63, %v1015_v4  ;;  %v938_v11 = vadd.f32 %v937_v6, %v768_v5 }
 0x18b   :  { %2128 = vst [vmem:[%s2904_s4 + $0x68] sm:$0xff] %v2024_v8   ;;  %v1353_v10 = vadd.f32 %v2521_v3, %v1285_v9  ;;  %v1254_v17 = vmul.f32 %v2518_v63, %v938_v11 }
 0x18d   :  { %v1417_v13 = vmax.f32 %v1353_v10, 0.0  ;;  %v848_v14 = vpop.f32.mrf.mxu2  ;;  %v1322_v22 = vadd.f32 %v2521_v3, %v1254_v17 }
 0x18e   :  { %v1017_v15 = vpop.f32.mrf.mxu3 }
 0x18f   :  { %v2104_v16 = vpack.c.bf16 %v1417_v13, %v1416_v12  ;;  %v770_v18 = vpop.f32.mrf.mxu0  ;;  %v1018_v20 = vadd.f32 %v1017_v15, %v848_v14  ;;  %v1386_v30 = vmax.f32 %v1322_v22, 0.0 }
 0x190   :  { %v939_v19 = vpop.f32.mrf.mxu1 }
 0x191   :  { %2144 = vst [vmem:[%s2904_s4 + $0xe8] sm:$0xff] %v2104_v16   ;;  %v940_v21 = vadd.f32 %v939_v19, %v770_v18  ;;  %v1286_v25 = vmul.f32 %v2167_v23, %v1018_v20 }
 0x193   :  { %v1255_v24 = vmul.f32 %v2167_v23, %v940_v21  ;;  %v1354_v34 = vadd.f32 %v2168_v26, %v1286_v25 }
 0x195   :  { %v1323_v27 = vadd.f32 %v2168_v26, %v1255_v24  ;;  %v850_v28 = vpop.f32.mrf.mxu2  ;;  %v1418_v38 = vmax.f32 %v1354_v34, 0.0 }
 0x196   :  { %v1019_v29 = vpop.f32.mrf.mxu3 }
 0x197   :  { %v1387_v31 = vmax.f32 %v1323_v27, 0.0  ;;  %v1020_v63 = vadd.f32 %v1019_v29, %v850_v28  ;;  %v773_v32 = vpop.f32.mrf.mxu0 }
 0x198   :  { %v942_v33 = vpop.f32.mrf.mxu1 }
 0x199   :  { %v2029_v35 = vpack.c.bf16 %v1387_v31, %v1386_v30  ;;  %v1287_v36 = vmul.f32 %v2167_v23, %v1020_v63  ;;  %v943_v37 = vadd.f32 %v942_v33, %v773_v32 }
 0x19b   :  { %2129 = vst [vmem:[%s2904_s4 + $0x70] sm:$0xff] %v2029_v35   ;;  %v1355_v3 = vadd.f32 %v2168_v26, %v1287_v36  ;;  %v1256_v43 = vmul.f32 %v2167_v23, %v943_v37 }
 0x19d   :  { %v1419_v39 = vmax.f32 %v1355_v3, 0.0  ;;  %v853_v40 = vpop.f32.mrf.mxu2  ;;  %v1324_v48 = vadd.f32 %v2168_v26, %v1256_v43 }
 0x19e   :  { %v1022_v41 = vpop.f32.mrf.mxu3 }
 0x19f   :  { %v2109_v42 = vpack.c.bf16 %v1419_v39, %v1418_v38  ;;  %v775_v44 = vpop.f32.mrf.mxu0  ;;  %v1023_v46 = vadd.f32 %v1022_v41, %v853_v40  ;;  %v1388_v54 = vmax.f32 %v1324_v48, 0.0 }
 0x1a0   :  { %v944_v45 = vpop.f32.mrf.mxu1 }
 0x1a1   :  { %2145 = vst [vmem:[%s2904_s4 + $0xf0] sm:$0xff] %v2109_v42   ;;  %v945_v47 = vadd.f32 %v944_v45, %v775_v44  ;;  %v1288_v50 = vmul.f32 %v2167_v23, %v1023_v46 }
 0x1a3   :  { %v1257_v49 = vmul.f32 %v2167_v23, %v945_v47  ;;  %v1356_v57 = vadd.f32 %v2168_v26, %v1288_v50 }
 0x1a5   :  { %v1325_v51 = vadd.f32 %v2168_v26, %v1257_v49  ;;  %v855_v52 = vpop.f32.mrf.mxu2  ;;  %v1420_v61 = vmax.f32 %v1356_v57, 0.0 }
 0x1a6   :  { %v1024_v53 = vpop.f32.mrf.mxu3 }
 0x1a7   :  { %v1389_v55 = vmax.f32 %v1325_v51, 0.0  ;;  %v1025_v56 = vadd.f32 %v1024_v53, %v855_v52 }
 0x1a9   :  { %v2034_v58 = vpack.c.bf16 %v1389_v55, %v1388_v54  ;;  %v1289_v59 = vmul.f32 %v2167_v23, %v1025_v56 }
 0x1ab   :  { %2130 = vst [vmem:[%s2904_s4 + $0x78] sm:$0xff] %v2034_v58   ;;  %v1357_v60 = vadd.f32 %v2168_v26, %v1289_v59 }
 0x1ad   :  { %v1421_v62 = vmax.f32 %v1357_v60, 0.0 }
 0x1af   :  { %v2114_v0 = vpack.c.bf16 %v1421_v62, %v1420_v61 }
 0x1b1   :  { %2146 = vst [vmem:[%s2904_s4 + $0xf8] sm:$0xff] %v2114_v0  }
 0x1b2   :  { %1554 = vsyncpa [#allocation4], 1 }
 0x1b3   :  { %1555 = vsyncpa [#allocation6], 1 }

// kernel: resnext_forward.29
= control target key start
LH: loop header
LB: loop body
LE: loop exit
PB: predicated region body
PF: predicated region fallthrough
CT: control target
= control target key end

     0   :  { %9 = vsyncpa [#allocation4], 0  ;;  %s1983_s0 = inlined_call_operand.vmem [shape: bf16[512,128], index: 0, kind: input, shape index: {}]   ;;  %s1984_s1 = inlined_call_operand.vmem [shape: bf16[128,128], index: 1, kind: input, shape index: {}]   ;;  %s1985_s2 = inlined_call_operand.hbm [shape: f32[1,128], index: 2, kind: input, shape index: {}]   ;;  %s1986_s3 = inlined_call_operand.hbm [shape: f32[1,128], index: 3, kind: input, shape index: {}]   ;;  %s1987_s4 = inlined_call_operand.vmem [shape: bf16[512,128], index: 4, kind: output, shape index: {}]  }
   0x1   :  { %s20_s17 = sshll.u32 %s1985_s2, 4  ;;  %s21_s17 = int_to_ptr.hbm [resolvable:$true] %s20_s17 }
   0x2   :  { %10 = vsyncpa [#allocation6], 0  ;;  %s1602_s18 = smov [#allocation3]   ;;  %s31_s22 = sshll.u32 %s1986_s3, 4  ;;  %s32_s22 = int_to_ptr.hbm [resolvable:$true] %s31_s22 }
   0x3   :  { %s22_s19 = sshll.u32 %s1602_s18, 4  ;;  %s1603_s23 = smov [#allocation5]   ;;  %s23_s19 = int_to_ptr.vmem [resolvable:$true] %s22_s19 }
   0x4   :  { %25 = dma.hbm_to_vmem [thread:$0]  %s21_s17, 16, %s23_s19, [#allocation4]  }
   0x5   :  { %s33_s24 = sshll.u32 %s1603_s23, 4  ;;  %s34_s24 = int_to_ptr.vmem [resolvable:$true] %s33_s24 }
   0x6   :  { %36 = dma.hbm_to_vmem [thread:$0]  %s32_s22, 16, %s34_s24, [#allocation6]  }
   0x7   :  { %1598 = dma.done.wait [#allocation4], 16  }
   0x8   :  { %1599 = vsyncadd [#allocation4], 4294967280 }
   0x9   :  { %1600 = dma.done.wait [#allocation6], 16  }
   0xa   :  { %1601 = vsyncadd [#allocation6], 4294967280  ;;  %v1330_v0 = vld [vmem:[%s1984_s1 + $0x38] sm:$0xff]  ;;  %v1329_v1 = vld [vmem:[%s1984_s1 + $0x30] sm:$0xff] }
   0xb   :  { %497 = vmatpush.bf16.msra.mxu0 %v1330_v0  ;;  %1522 = vmatpush.bf16.msra.mxu1 %v1330_v0  ;;  %v1328_v2 = vld [vmem:[%s1984_s1 + $0x28] sm:$0xff]  ;;  %v1327_v3 = vld [vmem:[%s1984_s1 + $0x20] sm:$0xff]  ;;  %v1326_v4 = vld [vmem:[%s1984_s1 + $0x18] sm:$0xff] }
   0xc   :  { %1523 = vmatpush.bf16.msra.mxu2 %v1330_v0  ;;  %1524 = vmatpush.bf16.msra.mxu3 %v1330_v0  ;;  %v1325_v5 = vld [vmem:[%s1984_s1 + $0x10] sm:$0xff]  ;;  %v1324_v6 = vld [vmem:[%s1984_s1 + $0x8] sm:$0xff]  ;;  %v1323_v7 = vld [vmem:[%s1984_s1] sm:$0xff] }
   0xd   :  { %v1291_v8 = vld [vmem:[%s1983_s0] sm:$0xff]  ;;  %v1292_v12 = vld [vmem:[%s1983_s0 + $0x8] sm:$0xff]  ;;  %v1293_v16 = vld [vmem:[%s1983_s0 + $0x10] sm:$0xff] }
   0xe   :  { %v1299_v9 = vld [vmem:[%s1983_s0 + $0x40] sm:$0xff]  ;;  %v1300_v13 = vld [vmem:[%s1983_s0 + $0x48] sm:$0xff]  ;;  %v1301_v17 = vld [vmem:[%s1983_s0 + $0x50] sm:$0xff] }
   0xf   :  { %498 = vmatpush.bf16.msra.mxu0 %v1329_v1  ;;  %1525 = vmatpush.bf16.msra.mxu1 %v1329_v1  ;;  %v1307_v10 = vld [vmem:[%s1983_s0 + $0x80] sm:$0xff]  ;;  %v1308_v14 = vld [vmem:[%s1983_s0 + $0x88] sm:$0xff]  ;;  %v1309_v18 = vld [vmem:[%s1983_s0 + $0x90] sm:$0xff] }
  0x10   :  { %1526 = vmatpush.bf16.msra.mxu2 %v1329_v1  ;;  %1527 = vmatpush.bf16.msra.mxu3 %v1329_v1  ;;  %v1315_v11 = vld [vmem:[%s1983_s0 + $0xc0] sm:$0xff]  ;;  %v1316_v15 = vld [vmem:[%s1983_s0 + $0xc8] sm:$0xff]  ;;  %v1317_v19 = vld [vmem:[%s1983_s0 + $0xd0] sm:$0xff] }
  0x11   :  { %v1294_v20 = vld [vmem:[%s1983_s0 + $0x18] sm:$0xff]  ;;  %v1295_v24 = vld [vmem:[%s1983_s0 + $0x20] sm:$0xff]  ;;  %v1296_v28 = vld [vmem:[%s1983_s0 + $0x28] sm:$0xff] }
  0x12   :  { %v1302_v21 = vld [vmem:[%s1983_s0 + $0x58] sm:$0xff]  ;;  %v1303_v25 = vld [vmem:[%s1983_s0 + $0x60] sm:$0xff]  ;;  %v1304_v29 = vld [vmem:[%s1983_s0 + $0x68] sm:$0xff] }
  0x13   :  { %499 = vmatpush.bf16.msra.mxu0 %v1328_v2  ;;  %1528 = vmatpush.bf16.msra.mxu1 %v1328_v2  ;;  %v1310_v22 = vld [vmem:[%s1983_s0 + $0x98] sm:$0xff]  ;;  %v1311_v26 = vld [vmem:[%s1983_s0 + $0xa0] sm:$0xff]  ;;  %v1312_v30 = vld [vmem:[%s1983_s0 + $0xa8] sm:$0xff] }
  0x14   :  { %1529 = vmatpush.bf16.msra.mxu2 %v1328_v2  ;;  %1530 = vmatpush.bf16.msra.mxu3 %v1328_v2  ;;  %v1318_v23 = vld [vmem:[%s1983_s0 + $0xd8] sm:$0xff]  ;;  %v1319_v27 = vld [vmem:[%s1983_s0 + $0xe0] sm:$0xff]  ;;  %v1320_v31 = vld [vmem:[%s1983_s0 + $0xe8] sm:$0xff] }
  0x15   :  { %v1297_v32 = vld [vmem:[%s1983_s0 + $0x30] sm:$0xff]  ;;  %v1298_v36 = vld [vmem:[%s1983_s0 + $0x38] sm:$0xff]  ;;  %v1755_v42 = vld [vmem:[#allocation3] ss:$0 sm:$0xff] }
  0x16   :  { %v1305_v33 = vld [vmem:[%s1983_s0 + $0x70] sm:$0xff]  ;;  %v1306_v37 = vld [vmem:[%s1983_s0 + $0x78] sm:$0xff]  ;;  %v1758_v44 = vld [vmem:[#allocation5] ss:$0 sm:$0xff] }
  0x17   :  { %500 = vmatpush.bf16.msra.mxu0 %v1327_v3  ;;  %1531 = vmatpush.bf16.msra.mxu1 %v1327_v3  ;;  %v1313_v34 = vld [vmem:[%s1983_s0 + $0xb0] sm:$0xff]  ;;  %v1314_v38 = vld [vmem:[%s1983_s0 + $0xb8] sm:$0xff] }
  0x18   :  { %1532 = vmatpush.bf16.msra.mxu2 %v1327_v3  ;;  %1533 = vmatpush.bf16.msra.mxu3 %v1327_v3  ;;  %v1321_v35 = vld [vmem:[%s1983_s0 + $0xf0] sm:$0xff]  ;;  %v1322_v39 = vld [vmem:[%s1983_s0 + $0xf8] sm:$0xff] }
  0x1b   :  { %501 = vmatpush.bf16.msra.mxu0 %v1326_v4  ;;  %1534 = vmatpush.bf16.msra.mxu1 %v1326_v4 }
  0x1c   :  { %1535 = vmatpush.bf16.msra.mxu2 %v1326_v4  ;;  %1536 = vmatpush.bf16.msra.mxu3 %v1326_v4 }
  0x1f   :  { %502 = vmatpush.bf16.msra.mxu0 %v1325_v5  ;;  %1537 = vmatpush.bf16.msra.mxu1 %v1325_v5 }
  0x20   :  { %1538 = vmatpush.bf16.msra.mxu2 %v1325_v5  ;;  %1539 = vmatpush.bf16.msra.mxu3 %v1325_v5 }
  0x23   :  { %503 = vmatpush.bf16.msra.mxu0 %v1324_v6  ;;  %1540 = vmatpush.bf16.msra.mxu1 %v1324_v6 }
  0x24   :  { %1541 = vmatpush.bf16.msra.mxu2 %v1324_v6  ;;  %1542 = vmatpush.bf16.msra.mxu3 %v1324_v6 }
  0x27   :  { %504 = vmatpush.bf16.msra.mxu0 %v1323_v7  ;;  %1543 = vmatpush.bf16.msra.mxu1 %v1323_v7 }
  0x28   :  { %1544 = vmatpush.bf16.msra.mxu2 %v1323_v7  ;;  %1545 = vmatpush.bf16.msra.mxu3 %v1323_v7 }
  0x2a   :  { %505 = vmatmul.bf16.vlgmr.msra.gmra.mxu0 %v1291_v8  ;;  %545 = vmatmul.bf16.vlgmr.msra.gmra.mxu1 %v1299_v9 }
  0x2b   :  { %585 = vmatmul.bf16.vlgmr.msra.gmra.mxu2 %v1307_v10  ;;  %625 = vmatmul.bf16.vlgmr.msra.gmra.mxu3 %v1315_v11 }
  0x3a   :  { %510 = vmatmul.bf16.gmra.mxu0 %v1292_v12  ;;  %550 = vmatmul.bf16.gmra.mxu1 %v1300_v13 }
  0x3b   :  { %590 = vmatmul.bf16.gmra.mxu2 %v1308_v14  ;;  %630 = vmatmul.bf16.gmra.mxu3 %v1316_v15 }
  0x4a   :  { %515 = vmatmul.bf16.gmra.mxu0 %v1293_v16  ;;  %555 = vmatmul.bf16.gmra.mxu1 %v1301_v17 }
  0x4b   :  { %595 = vmatmul.bf16.gmra.mxu2 %v1309_v18  ;;  %635 = vmatmul.bf16.gmra.mxu3 %v1317_v19 }
  0x5a   :  { %520 = vmatmul.bf16.gmra.mxu0 %v1294_v20  ;;  %560 = vmatmul.bf16.gmra.mxu1 %v1302_v21 }
  0x5b   :  { %600 = vmatmul.bf16.gmra.mxu2 %v1310_v22  ;;  %640 = vmatmul.bf16.gmra.mxu3 %v1318_v23 }
  0x6a   :  { %525 = vmatmul.bf16.gmra.mxu0 %v1295_v24  ;;  %565 = vmatmul.bf16.gmra.mxu1 %v1303_v25 }
  0x6b   :  { %605 = vmatmul.bf16.gmra.mxu2 %v1311_v26  ;;  %645 = vmatmul.bf16.gmra.mxu3 %v1319_v27 }
  0x7a   :  { %530 = vmatmul.bf16.gmra.mxu0 %v1296_v28  ;;  %570 = vmatmul.bf16.gmra.mxu1 %v1304_v29 }
  0x7b   :  { %610 = vmatmul.bf16.gmra.mxu2 %v1312_v30  ;;  %650 = vmatmul.bf16.gmra.mxu3 %v1320_v31 }
  0x8a   :  { %535 = vmatmul.bf16.gmra.mxu0 %v1297_v32  ;;  %575 = vmatmul.bf16.gmra.mxu1 %v1305_v33 }
  0x8b   :  { %615 = vmatmul.bf16.gmra.mxu2 %v1313_v34  ;;  %655 = vmatmul.bf16.gmra.mxu3 %v1321_v35 }
  0x9a   :  { %540 = vmatmul.bf16.gmra.mxu0 %v1298_v36  ;;  %580 = vmatmul.bf16.gmra.mxu1 %v1306_v37 }
  0x9b   :  { %620 = vmatmul.bf16.gmra.mxu2 %v1314_v38  ;;  %660 = vmatmul.bf16.gmra.mxu3 %v1322_v39 }
  0xa7   :  { %v506_v40 = vpop.f32.mrf.mxu0  ;;  %v546_v41 = vpop.f32.mrf.mxu1 }
  0xa8   :  { %v865_v43 = vmul.f32 %v1755_v42, %v506_v40  ;;  %v881_v45 = vmul.f32 %v1755_v42, %v546_v41 }
  0xaa   :  { %v933_v52 = vadd.f32 %v1758_v44, %v865_v43  ;;  %v949_v53 = vadd.f32 %v1758_v44, %v881_v45 }
  0xae   :  { %v586_v46 = vpop.f32.mrf.mxu2  ;;  %v626_v47 = vpop.f32.mrf.mxu3 }
  0xaf   :  { %v508_v48 = vpop.f32.mrf.mxu0  ;;  %v548_v49 = vpop.f32.mrf.mxu1  ;;  %v897_v58 = vmul.f32 %v1755_v42, %v586_v46  ;;  %v913_v59 = vmul.f32 %v1755_v42, %v626_v47 }
  0xb0   :  { %v866_v50 = vmul.f32 %v1755_v42, %v508_v48  ;;  %v882_v51 = vmul.f32 %v1755_v42, %v548_v49 }
  0xb1   :  { %v965_v2 = vadd.f32 %v1758_v44, %v897_v58  ;;  %v981_v3 = vadd.f32 %v1758_v44, %v913_v59 }
  0xb2   :  { %v934_v54 = vadd.f32 %v1758_v44, %v866_v50  ;;  %v950_v55 = vadd.f32 %v1758_v44, %v882_v51 }
  0xb4   :  { %v1334_v56 = vpack.c.bf16 %v934_v54, %v933_v52  ;;  %v1374_v57 = vpack.c.bf16 %v950_v55, %v949_v53 }
  0xb6   :  { %1335 = vst [vmem:[%s1987_s4] sm:$0xff] %v1334_v56   ;;  %v588_v60 = vpop.f32.mrf.mxu2  ;;  %v628_v61 = vpop.f32.mrf.mxu3 }
  0xb7   :  { %1498 = vst [vmem:[%s1987_s4 + $0x40] sm:$0xff] %v1374_v57   ;;  %v898_v62 = vmul.f32 %v1755_v42, %v588_v60  ;;  %v914_v63 = vmul.f32 %v1755_v42, %v628_v61  ;;  %v511_v0 = vpop.f32.mrf.mxu0  ;;  %v551_v1 = vpop.f32.mrf.mxu1 }
  0xb8   :  { %v867_v8 = vmul.f32 %v1755_v42, %v511_v0  ;;  %v883_v9 = vmul.f32 %v1755_v42, %v551_v1 }
  0xb9   :  { %v966_v4 = vadd.f32 %v1758_v44, %v898_v62  ;;  %v982_v5 = vadd.f32 %v1758_v44, %v914_v63 }
  0xba   :  { %v935_v16 = vadd.f32 %v1758_v44, %v867_v8  ;;  %v951_v17 = vadd.f32 %v1758_v44, %v883_v9 }
  0xbb   :  { %v1414_v6 = vpack.c.bf16 %v966_v4, %v965_v2  ;;  %v1454_v7 = vpack.c.bf16 %v982_v5, %v981_v3 }
  0xbd   :  { %1506 = vst [vmem:[%s1987_s4 + $0x80] sm:$0xff] %v1414_v6  }
  0xbe   :  { %1514 = vst [vmem:[%s1987_s4 + $0xc0] sm:$0xff] %v1454_v7   ;;  %v591_v10 = vpop.f32.mrf.mxu2  ;;  %v631_v11 = vpop.f32.mrf.mxu3 }
  0xbf   :  { %v513_v12 = vpop.f32.mrf.mxu0  ;;  %v553_v13 = vpop.f32.mrf.mxu1  ;;  %v899_v22 = vmul.f32 %v1755_v42, %v591_v10  ;;  %v915_v23 = vmul.f32 %v1755_v42, %v631_v11 }
  0xc0   :  { %v868_v14 = vmul.f32 %v1755_v42, %v513_v12  ;;  %v884_v15 = vmul.f32 %v1755_v42, %v553_v13 }
  0xc1   :  { %v967_v30 = vadd.f32 %v1758_v44, %v899_v22  ;;  %v983_v31 = vadd.f32 %v1758_v44, %v915_v23 }
  0xc2   :  { %v936_v18 = vadd.f32 %v1758_v44, %v868_v14  ;;  %v952_v19 = vadd.f32 %v1758_v44, %v884_v15 }
  0xc4   :  { %v1339_v20 = vpack.c.bf16 %v936_v18, %v935_v16  ;;  %v1379_v21 = vpack.c.bf16 %v952_v19, %v951_v17 }
  0xc6   :  { %1491 = vst [vmem:[%s1987_s4 + $0x8] sm:$0xff] %v1339_v20   ;;  %v593_v24 = vpop.f32.mrf.mxu2  ;;  %v633_v25 = vpop.f32.mrf.mxu3 }
  0xc7   :  { %1499 = vst [vmem:[%s1987_s4 + $0x48] sm:$0xff] %v1379_v21   ;;  %v900_v26 = vmul.f32 %v1755_v42, %v593_v24  ;;  %v916_v27 = vmul.f32 %v1755_v42, %v633_v25  ;;  %v516_v28 = vpop.f32.mrf.mxu0  ;;  %v556_v29 = vpop.f32.mrf.mxu1 }
  0xc8   :  { %v869_v36 = vmul.f32 %v1755_v42, %v516_v28  ;;  %v885_v37 = vmul.f32 %v1755_v42, %v556_v29 }
  0xc9   :  { %v968_v32 = vadd.f32 %v1758_v44, %v900_v26  ;;  %v984_v33 = vadd.f32 %v1758_v44, %v916_v27 }
  0xca   :  { %v937_v46 = vadd.f32 %v1758_v44, %v869_v36  ;;  %v953_v47 = vadd.f32 %v1758_v44, %v885_v37 }
  0xcb   :  { %v1419_v34 = vpack.c.bf16 %v968_v32, %v967_v30  ;;  %v1459_v35 = vpack.c.bf16 %v984_v33, %v983_v31 }
  0xcd   :  { %1507 = vst [vmem:[%s1987_s4 + $0x88] sm:$0xff] %v1419_v34  }
  0xce   :  { %1515 = vst [vmem:[%s1987_s4 + $0xc8] sm:$0xff] %v1459_v35   ;;  %v596_v38 = vpop.f32.mrf.mxu2  ;;  %v636_v39 = vpop.f32.mrf.mxu3 }
  0xcf   :  { %v518_v40 = vpop.f32.mrf.mxu0  ;;  %v558_v41 = vpop.f32.mrf.mxu1  ;;  %v901_v52 = vmul.f32 %v1755_v42, %v596_v38  ;;  %v917_v53 = vmul.f32 %v1755_v42, %v636_v39 }
  0xd0   :  { %v870_v43 = vmul.f32 %v1755_v42, %v518_v40  ;;  %v886_v45 = vmul.f32 %v1755_v42, %v558_v41 }
  0xd1   :  { %v969_v60 = vadd.f32 %v1758_v44, %v901_v52  ;;  %v985_v61 = vadd.f32 %v1758_v44, %v917_v53 }
  0xd2   :  { %v938_v48 = vadd.f32 %v1758_v44, %v870_v43  ;;  %v954_v49 = vadd.f32 %v1758_v44, %v886_v45 }
  0xd4   :  { %v1344_v50 = vpack.c.bf16 %v938_v48, %v937_v46  ;;  %v1384_v51 = vpack.c.bf16 %v954_v49, %v953_v47 }
  0xd6   :  { %1492 = vst [vmem:[%s1987_s4 + $0x10] sm:$0xff] %v1344_v50   ;;  %v598_v54 = vpop.f32.mrf.mxu2  ;;  %v638_v55 = vpop.f32.mrf.mxu3 }
  0xd7   :  { %1500 = vst [vmem:[%s1987_s4 + $0x50] sm:$0xff] %v1384_v51   ;;  %v902_v56 = vmul.f32 %v1755_v42, %v598_v54  ;;  %v918_v57 = vmul.f32 %v1755_v42, %v638_v55  ;;  %v521_v58 = vpop.f32.mrf.mxu0  ;;  %v561_v59 = vpop.f32.mrf.mxu1 }
  0xd8   :  { %v871_v2 = vmul.f32 %v1755_v42, %v521_v58  ;;  %v887_v3 = vmul.f32 %v1755_v42, %v561_v59 }
  0xd9   :  { %v970_v62 = vadd.f32 %v1758_v44, %v902_v56  ;;  %v986_v63 = vadd.f32 %v1758_v44, %v918_v57 }
  0xda   :  { %v939_v10 = vadd.f32 %v1758_v44, %v871_v2  ;;  %v955_v11 = vadd.f32 %v1758_v44, %v887_v3 }
  0xdb   :  { %v1424_v0 = vpack.c.bf16 %v970_v62, %v969_v60  ;;  %v1464_v1 = vpack.c.bf16 %v986_v63, %v985_v61 }
  0xdd   :  { %1508 = vst [vmem:[%s1987_s4 + $0x90] sm:$0xff] %v1424_v0  }
  0xde   :  { %1516 = vst [vmem:[%s1987_s4 + $0xd0] sm:$0xff] %v1464_v1   ;;  %v601_v4 = vpop.f32.mrf.mxu2  ;;  %v641_v5 = vpop.f32.mrf.mxu3 }
  0xdf   :  { %v523_v6 = vpop.f32.mrf.mxu0  ;;  %v563_v7 = vpop.f32.mrf.mxu1  ;;  %v903_v16 = vmul.f32 %v1755_v42, %v601_v4  ;;  %v919_v17 = vmul.f32 %v1755_v42, %v641_v5 }
  0xe0   :  { %v872_v8 = vmul.f32 %v1755_v42, %v523_v6  ;;  %v888_v9 = vmul.f32 %v1755_v42, %v563_v7 }
  0xe1   :  { %v971_v24 = vadd.f32 %v1758_v44, %v903_v16  ;;  %v987_v25 = vadd.f32 %v1758_v44, %v919_v17 }
  0xe2   :  { %v940_v12 = vadd.f32 %v1758_v44, %v872_v8  ;;  %v956_v13 = vadd.f32 %v1758_v44, %v888_v9 }
  0xe4   :  { %v1349_v14 = vpack.c.bf16 %v940_v12, %v939_v10  ;;  %v1389_v15 = vpack.c.bf16 %v956_v13, %v955_v11 }
  0xe6   :  { %1493 = vst [vmem:[%s1987_s4 + $0x18] sm:$0xff] %v1349_v14   ;;  %v603_v18 = vpop.f32.mrf.mxu2  ;;  %v643_v19 = vpop.f32.mrf.mxu3 }
  0xe7   :  { %1501 = vst [vmem:[%s1987_s4 + $0x58] sm:$0xff] %v1389_v15   ;;  %v904_v20 = vmul.f32 %v1755_v42, %v603_v18  ;;  %v920_v21 = vmul.f32 %v1755_v42, %v643_v19  ;;  %v526_v22 = vpop.f32.mrf.mxu0  ;;  %v566_v23 = vpop.f32.mrf.mxu1 }
  0xe8   :  { %v873_v30 = vmul.f32 %v1755_v42, %v526_v22  ;;  %v889_v31 = vmul.f32 %v1755_v42, %v566_v23 }
  0xe9   :  { %v972_v26 = vadd.f32 %v1758_v44, %v904_v20  ;;  %v988_v27 = vadd.f32 %v1758_v44, %v920_v21 }
  0xea   :  { %v941_v38 = vadd.f32 %v1758_v44, %v873_v30  ;;  %v957_v39 = vadd.f32 %v1758_v44, %v889_v31 }
  0xeb   :  { %v1429_v28 = vpack.c.bf16 %v972_v26, %v971_v24  ;;  %v1469_v29 = vpack.c.bf16 %v988_v27, %v987_v25 }
  0xed   :  { %1509 = vst [vmem:[%s1987_s4 + $0x98] sm:$0xff] %v1429_v28  }
  0xee   :  { %1517 = vst [vmem:[%s1987_s4 + $0xd8] sm:$0xff] %v1469_v29   ;;  %v606_v32 = vpop.f32.mrf.mxu2  ;;  %v646_v33 = vpop.f32.mrf.mxu3 }
  0xef   :  { %v528_v34 = vpop.f32.mrf.mxu0  ;;  %v568_v35 = vpop.f32.mrf.mxu1  ;;  %v905_v46 = vmul.f32 %v1755_v42, %v606_v32  ;;  %v921_v47 = vmul.f32 %v1755_v42, %v646_v33 }
  0xf0   :  { %v874_v36 = vmul.f32 %v1755_v42, %v528_v34  ;;  %v890_v37 = vmul.f32 %v1755_v42, %v568_v35 }
  0xf1   :  { %v973_v54 = vadd.f32 %v1758_v44, %v905_v46  ;;  %v989_v55 = vadd.f32 %v1758_v44, %v921_v47 }
  0xf2   :  { %v942_v40 = vadd.f32 %v1758_v44, %v874_v36  ;;  %v958_v41 = vadd.f32 %v1758_v44, %v890_v37 }
  0xf4   :  { %v1354_v43 = vpack.c.bf16 %v942_v40, %v941_v38  ;;  %v1394_v45 = vpack.c.bf16 %v958_v41, %v957_v39 }
  0xf6   :  { %1494 = vst [vmem:[%s1987_s4 + $0x20] sm:$0xff] %v1354_v43   ;;  %v608_v48 = vpop.f32.mrf.mxu2  ;;  %v648_v49 = vpop.f32.mrf.mxu3 }
  0xf7   :  { %1502 = vst [vmem:[%s1987_s4 + $0x60] sm:$0xff] %v1394_v45   ;;  %v906_v50 = vmul.f32 %v1755_v42, %v608_v48  ;;  %v922_v51 = vmul.f32 %v1755_v42, %v648_v49  ;;  %v531_v52 = vpop.f32.mrf.mxu0  ;;  %v571_v53 = vpop.f32.mrf.mxu1 }
  0xf8   :  { %v875_v60 = vmul.f32 %v1755_v42, %v531_v52  ;;  %v891_v61 = vmul.f32 %v1755_v42, %v571_v53 }
  0xf9   :  { %v974_v56 = vadd.f32 %v1758_v44, %v906_v50  ;;  %v990_v57 = vadd.f32 %v1758_v44, %v922_v51 }
  0xfa   :  { %v943_v4 = vadd.f32 %v1758_v44, %v875_v60  ;;  %v959_v5 = vadd.f32 %v1758_v44, %v891_v61 }
  0xfb   :  { %v1434_v58 = vpack.c.bf16 %v974_v56, %v973_v54  ;;  %v1474_v59 = vpack.c.bf16 %v990_v57, %v989_v55 }
  0xfd   :  { %1510 = vst [vmem:[%s1987_s4 + $0xa0] sm:$0xff] %v1434_v58  }
  0xfe   :  { %1518 = vst [vmem:[%s1987_s4 + $0xe0] sm:$0xff] %v1474_v59   ;;  %v611_v62 = vpop.f32.mrf.mxu2  ;;  %v651_v63 = vpop.f32.mrf.mxu3 }
  0xff   :  { %v533_v0 = vpop.f32.mrf.mxu0  ;;  %v573_v1 = vpop.f32.mrf.mxu1  ;;  %v907_v10 = vmul.f32 %v1755_v42, %v611_v62  ;;  %v923_v11 = vmul.f32 %v1755_v42, %v651_v63 }
 0x100   :  { %v876_v2 = vmul.f32 %v1755_v42, %v533_v0  ;;  %v892_v3 = vmul.f32 %v1755_v42, %v573_v1 }
 0x101   :  { %v975_v18 = vadd.f32 %v1758_v44, %v907_v10  ;;  %v991_v19 = vadd.f32 %v1758_v44, %v923_v11 }
 0x102   :  { %v944_v6 = vadd.f32 %v1758_v44, %v876_v2  ;;  %v960_v7 = vadd.f32 %v1758_v44, %v892_v3 }
 0x104   :  { %v1359_v8 = vpack.c.bf16 %v944_v6, %v943_v4  ;;  %v1399_v9 = vpack.c.bf16 %v960_v7, %v959_v5 }
 0x106   :  { %1495 = vst [vmem:[%s1987_s4 + $0x28] sm:$0xff] %v1359_v8   ;;  %v613_v12 = vpop.f32.mrf.mxu2  ;;  %v653_v13 = vpop.f32.mrf.mxu3 }
 0x107   :  { %1503 = vst [vmem:[%s1987_s4 + $0x68] sm:$0xff] %v1399_v9   ;;  %v908_v14 = vmul.f32 %v1755_v42, %v613_v12  ;;  %v924_v15 = vmul.f32 %v1755_v42, %v653_v13  ;;  %v536_v16 = vpop.f32.mrf.mxu0  ;;  %v576_v17 = vpop.f32.mrf.mxu1 }
 0x108   :  { %v877_v24 = vmul.f32 %v1755_v42, %v536_v16  ;;  %v893_v25 = vmul.f32 %v1755_v42, %v576_v17 }
 0x109   :  { %v976_v20 = vadd.f32 %v1758_v44, %v908_v14  ;;  %v992_v21 = vadd.f32 %v1758_v44, %v924_v15 }
 0x10a   :  { %v945_v32 = vadd.f32 %v1758_v44, %v877_v24  ;;  %v961_v33 = vadd.f32 %v1758_v44, %v893_v25 }
 0x10b   :  { %v1439_v22 = vpack.c.bf16 %v976_v20, %v975_v18  ;;  %v1479_v23 = vpack.c.bf16 %v992_v21, %v991_v19 }
 0x10d   :  { %1511 = vst [vmem:[%s1987_s4 + $0xa8] sm:$0xff] %v1439_v22  }
 0x10e   :  { %1519 = vst [vmem:[%s1987_s4 + $0xe8] sm:$0xff] %v1479_v23   ;;  %v616_v26 = vpop.f32.mrf.mxu2  ;;  %v656_v27 = vpop.f32.mrf.mxu3 }
 0x10f   :  { %v538_v28 = vpop.f32.mrf.mxu0  ;;  %v578_v29 = vpop.f32.mrf.mxu1  ;;  %v909_v38 = vmul.f32 %v1755_v42, %v616_v26  ;;  %v925_v39 = vmul.f32 %v1755_v42, %v656_v27 }
 0x110   :  { %v878_v30 = vmul.f32 %v1755_v42, %v538_v28  ;;  %v894_v31 = vmul.f32 %v1755_v42, %v578_v29 }
 0x111   :  { %v977_v48 = vadd.f32 %v1758_v44, %v909_v38  ;;  %v993_v49 = vadd.f32 %v1758_v44, %v925_v39 }
 0x112   :  { %v946_v34 = vadd.f32 %v1758_v44, %v878_v30  ;;  %v962_v35 = vadd.f32 %v1758_v44, %v894_v31 }
 0x114   :  { %v1364_v36 = vpack.c.bf16 %v946_v34, %v945_v32  ;;  %v1404_v37 = vpack.c.bf16 %v962_v35, %v961_v33 }
 0x116   :  { %1496 = vst [vmem:[%s1987_s4 + $0x30] sm:$0xff] %v1364_v36   ;;  %v618_v40 = vpop.f32.mrf.mxu2  ;;  %v658_v41 = vpop.f32.mrf.mxu3 }
 0x117   :  { %1504 = vst [vmem:[%s1987_s4 + $0x70] sm:$0xff] %v1404_v37   ;;  %v910_v43 = vmul.f32 %v1755_v42, %v618_v40  ;;  %v926_v45 = vmul.f32 %v1755_v42, %v658_v41  ;;  %v541_v46 = vpop.f32.mrf.mxu0  ;;  %v581_v47 = vpop.f32.mrf.mxu1 }
 0x118   :  { %v879_v54 = vmul.f32 %v1755_v42, %v541_v46  ;;  %v895_v55 = vmul.f32 %v1755_v42, %v581_v47 }
 0x119   :  { %v978_v50 = vadd.f32 %v1758_v44, %v910_v43  ;;  %v994_v51 = vadd.f32 %v1758_v44, %v926_v45 }
 0x11a   :  { %v947_v62 = vadd.f32 %v1758_v44, %v879_v54  ;;  %v963_v63 = vadd.f32 %v1758_v44, %v895_v55 }
 0x11b   :  { %v1444_v52 = vpack.c.bf16 %v978_v50, %v977_v48  ;;  %v1484_v53 = vpack.c.bf16 %v994_v51, %v993_v49 }
 0x11d   :  { %1512 = vst [vmem:[%s1987_s4 + $0xb0] sm:$0xff] %v1444_v52  }
 0x11e   :  { %1520 = vst [vmem:[%s1987_s4 + $0xf0] sm:$0xff] %v1484_v53   ;;  %v621_v56 = vpop.f32.mrf.mxu2  ;;  %v661_v57 = vpop.f32.mrf.mxu3 }
 0x11f   :  { %v543_v58 = vpop.f32.mrf.mxu0  ;;  %v583_v59 = vpop.f32.mrf.mxu1  ;;  %v911_v4 = vmul.f32 %v1755_v42, %v621_v56  ;;  %v927_v5 = vmul.f32 %v1755_v42, %v661_v57 }
 0x120   :  { %v880_v60 = vmul.f32 %v1755_v42, %v543_v58  ;;  %v896_v61 = vmul.f32 %v1755_v42, %v583_v59 }
 0x121   :  { %v979_v10 = vadd.f32 %v1758_v44, %v911_v4  ;;  %v995_v11 = vadd.f32 %v1758_v44, %v927_v5 }
 0x122   :  { %v948_v0 = vadd.f32 %v1758_v44, %v880_v60  ;;  %v964_v1 = vadd.f32 %v1758_v44, %v896_v61 }
 0x124   :  { %v1369_v2 = vpack.c.bf16 %v948_v0, %v947_v62  ;;  %v1409_v3 = vpack.c.bf16 %v964_v1, %v963_v63 }
 0x126   :  { %1497 = vst [vmem:[%s1987_s4 + $0x38] sm:$0xff] %v1369_v2   ;;  %v623_v6 = vpop.f32.mrf.mxu2  ;;  %v663_v7 = vpop.f32.mrf.mxu3 }
 0x127   :  { %1505 = vst [vmem:[%s1987_s4 + $0x78] sm:$0xff] %v1409_v3   ;;  %v912_v8 = vmul.f32 %v1755_v42, %v623_v6  ;;  %v928_v9 = vmul.f32 %v1755_v42, %v663_v7 }
 0x129   :  { %v980_v12 = vadd.f32 %v1758_v44, %v912_v8  ;;  %v996_v13 = vadd.f32 %v1758_v44, %v928_v9 }
 0x12b   :  { %v1449_v14 = vpack.c.bf16 %v980_v12, %v979_v10  ;;  %v1489_v15 = vpack.c.bf16 %v996_v13, %v995_v11 }
 0x12d   :  { %1513 = vst [vmem:[%s1987_s4 + $0xb8] sm:$0xff] %v1449_v14  }
 0x12e   :  { %1521 = vst [vmem:[%s1987_s4 + $0xf8] sm:$0xff] %v1489_v15  }
 0x12f   :  { %1129 = vsyncpa [#allocation4], 1 }
 0x130   :  { %1130 = vsyncpa [#allocation6], 1 }

// kernel: resnext_forward.30
= control target key start
LH: loop header
LB: loop body
LE: loop exit
PB: predicated region body
PF: predicated region fallthrough
CT: control target
= control target key end

     0   :  { %10 = vsyncpa [#allocation3], 0  ;;  %s267_s0 = inlined_call_operand.vmem [shape: bf16[2,32], index: 0, kind: input, shape index: {}]   ;;  %s268_s1 = inlined_call_operand.vmem [shape: bf16[32,8], index: 1, kind: input, shape index: {}]   ;;  %s269_s2 = inlined_call_operand.hbm [shape: f32[1,8], index: 2, kind: input, shape index: {}]   ;;  %s270_s3 = inlined_call_operand.vmem [shape: bf16[8,32], index: 3, kind: input, shape index: {}]   ;;  %s271_s4 = inlined_call_operand.hbm [shape: f32[1,32], index: 4, kind: input, shape index: {}]   ;;  %s272_s5 = inlined_call_operand.vmem [shape: f32[2,32], index: 5, kind: output, shape index: {}]  }
   0x1   :  { %s21_s20 = sshll.u32 %s269_s2, 4  ;;  %s22_s20 = int_to_ptr.hbm [resolvable:$true] %s21_s20 }
   0x2   :  { %11 = vsyncpa [#allocation5], 0  ;;  %s214_s21 = smov [#allocation2]   ;;  %s34_s25 = sshll.u32 %s271_s4, 4  ;;  %s35_s25 = int_to_ptr.hbm [resolvable:$true] %s34_s25 }
   0x3   :  { %s23_s22 = sshll.u32 %s214_s21, 4  ;;  %s215_s26 = smov [#allocation4]   ;;  %s24_s22 = int_to_ptr.vmem [resolvable:$true] %s23_s22 }
   0x4   :  { %26 = dma.hbm_to_vmem [thread:$0]  %s22_s20, 16, %s24_s22, [#allocation3]  }
   0x5   :  { %s36_s27 = sshll.u32 %s215_s26, 4  ;;  %s37_s27 = int_to_ptr.vmem [resolvable:$true] %s36_s27 }
   0x6   :  { %39 = dma.hbm_to_vmem [thread:$0]  %s35_s25, 16, %s37_s27, [#allocation5]  }
   0x7   :  { %210 = dma.done.wait [#allocation3], 16  }
   0x8   :  { %211 = vsyncadd [#allocation3], 4294967280 }
   0x9   :  { %212 = dma.done.wait [#allocation5], 16  }
   0xa   :  { %213 = vsyncadd [#allocation5], 4294967280  ;;  %v153_v0 = vld [vmem:[%s268_s1 + $0x8] sm:$0xff]  ;;  %v152_v1 = vld [vmem:[%s268_s1] sm:$0xff]  ;;  %vm70_vm0 = vcmask 261120   ;;  %vm98_vm1 = vcmask 1043456  }
   0xb   :  { %80 = vmatpush.bf16.msra.mxu0 %v153_v0  ;;  %v49_v2 = vld [vmem:[%s267_s0] sm:$0x1]  ;;  %vm94_vm2 = vcmask 64512   ;;  %v157_v11 = vld [vmem:[#allocation4] ss:$0 sm:$0xff]  ;;  %vm134_vm6 = vcmask 254976  }
   0xc   :  { %v89_v3 = vld [vmem:[%s270_s3] sm:$0xf] }
   0xd   :  { %v100_v4 = vsel %vm98_vm1, %v89_v3, 0  ;;  %v156_v5 = vld [vmem:[#allocation2] ss:$0 sm:$0xff] }
   0xe   :  { %109 = vmatpush.bf16.msra.mxu1 %v100_v4 }
   0xf   :  { %81 = vmatpush.bf16.msra.mxu0 %v152_v1 }
  0x12   :  { %150 = vmatmul.msk.bf16.vlgmr.msra.gmra.mxu0 %vm70_vm0, %v49_v2 }
  0x8f   :  { %v83_v6 = vpop.f32.mrf.mxu0 }
  0x90   :  { %v84_v7 = vadd.f32 %v156_v5, %v83_v6 }
  0x92   :  { %v87_v8 = vmax.f32 %v84_v7, 0.0 }
  0x94   :  { %v88_v9 = vpack.c.bf16 %v87_v8, %v87_v8 }
  0x96   :  { %151 = vmatmul.msk.bf16.vlgmr.msra.gmra.mxu1 %vm94_vm2, %v88_v9 }
  0x97   :  { %v85_v10 = vpop.f32.mrf.mxu0 }
 0x113   :  { %v111_v12 = vpop.f32.mrf.mxu1 }
 0x114   :  { %v112_v13 = vadd.f32 %v157_v11, %v111_v12 }
 0x116   :  { %v115_v14 = vsub.f32 0.0, %v112_v13 }
 0x118   :  { %v116_v15 = vmul.f32 1.442695, %v115_v14 }
 0x11a   :  { %158 = vpow2.f32 %v116_v15 }
 0x11b   :  { %v113_v16 = vpop.f32.mrf.mxu1 }
 0x120   :  { %v159_v17 = vpop.eup %158 }
 0x121   :  { %v118_v18 = vadd.f32 1.0, %v159_v17 }
 0x123   :  { %160 = vrcp.f32 %v118_v18  ;;  %v130_v22 = vand.u32 2147483648, %v118_v18  ;;  %v128_v24 = vand.u32 2147483647, %v118_v18  ;;  %vm124_vm4 = vweird.f32 %v118_v18 }
 0x125   :  { %v131_v26 = vor.u32 1.1754944e-38, %v130_v22  ;;  %vm129_vm7 = vcmp.eq.f32.partialorder %v128_v24, 8.507059e+37 }
 0x129   :  { %v161_v19 = vpop.eup %160 }
 0x12a   :  { %v120_v20 = vmul.f32 %v161_v19, %v118_v18  ;;  %vm125_vm3 = vweird.f32 %v161_v19 }
 0x12b   :  { %vm126_vm5 = vmor %vm124_vm4, %vm125_vm3 }
 0x12c   :  { %v121_v21 = vsub.f32 1.0, %v120_v20 }
 0x12e   :  { %v122_v23 = vmul.f32 %v161_v19, %v121_v21 }
 0x130   :  { %v123_v25 = vadd.f32 %v161_v19, %v122_v23 }
 0x132   :  { %v127_v27 = vsel %vm126_vm5, %v161_v19, %v123_v25 }
 0x133   :  { %v132_v28 = vsel %vm129_vm7, %v131_v26, %v127_v27 }
 0x134   :  { %135 = vst.msk [vmem:[%s272_s5] sm:$0x3] %vm134_vm6, %v132_v28 }
 0x135   :  { %140 = vsyncpa [#allocation3], 1 }
 0x136   :  { %141 = vsyncpa [#allocation5], 1 }

// kernel: resnext_forward.37
= control target key start
LH: loop header
LB: loop body
LE: loop exit
PB: predicated region body
PF: predicated region fallthrough
CT: control target
= control target key end

     0   :  { %9 = vsyncpa [#allocation4], 0  ;;  %s699_s0 = inlined_call_operand.vmem [shape: bf16[128,128], index: 0, kind: input, shape index: {}]   ;;  %s700_s1 = inlined_call_operand.vmem [shape: bf16[128,128], index: 1, kind: input, shape index: {}]   ;;  %s701_s2 = inlined_call_operand.hbm [shape: f32[1,128], index: 2, kind: input, shape index: {}]   ;;  %s702_s3 = inlined_call_operand.hbm [shape: f32[1,128], index: 3, kind: input, shape index: {}]   ;;  %s703_s4 = inlined_call_operand.vmem [shape: bf16[128,128], index: 4, kind: output, shape index: {}]  }
   0x1   :  { %s20_s17 = sshll.u32 %s701_s2, 4  ;;  %s21_s17 = int_to_ptr.hbm [resolvable:$true] %s20_s17 }
   0x2   :  { %10 = vsyncpa [#allocation6], 0  ;;  %s594_s18 = smov [#allocation3]   ;;  %s31_s22 = sshll.u32 %s702_s3, 4  ;;  %s32_s22 = int_to_ptr.hbm [resolvable:$true] %s31_s22 }
   0x3   :  { %s22_s19 = sshll.u32 %s594_s18, 4  ;;  %s595_s23 = smov [#allocation5]   ;;  %s23_s19 = int_to_ptr.vmem [resolvable:$true] %s22_s19 }
   0x4   :  { %25 = dma.hbm_to_vmem [thread:$0]  %s21_s17, 16, %s23_s19, [#allocation4]  }
   0x5   :  { %s33_s24 = sshll.u32 %s595_s23, 4  ;;  %s34_s24 = int_to_ptr.vmem [resolvable:$true] %s33_s24 }
   0x6   :  { %36 = dma.hbm_to_vmem [thread:$0]  %s32_s22, 16, %s34_s24, [#allocation6]  }
   0x7   :  { %590 = dma.done.wait [#allocation4], 16  }
   0x8   :  { %591 = vsyncadd [#allocation4], 4294967280 }
   0x9   :  { %592 = dma.done.wait [#allocation6], 16  }
   0xa   :  { %593 = vsyncadd [#allocation6], 4294967280  ;;  %v466_v0 = vld [vmem:[%s700_s1 + $0x38] sm:$0xff]  ;;  %v465_v1 = vld [vmem:[%s700_s1 + $0x30] sm:$0xff] }
   0xb   :  { %209 = vmatpush.bf16.msra.mxu0 %v466_v0  ;;  %514 = vmatpush.bf16.msra.mxu1 %v466_v0  ;;  %v464_v2 = vld [vmem:[%s700_s1 + $0x28] sm:$0xff]  ;;  %v463_v3 = vld [vmem:[%s700_s1 + $0x20] sm:$0xff]  ;;  %v462_v4 = vld [vmem:[%s700_s1 + $0x18] sm:$0xff] }
   0xc   :  { %515 = vmatpush.bf16.msra.mxu2 %v466_v0  ;;  %516 = vmatpush.bf16.msra.mxu3 %v466_v0  ;;  %v461_v5 = vld [vmem:[%s700_s1 + $0x10] sm:$0xff]  ;;  %v460_v6 = vld [vmem:[%s700_s1 + $0x8] sm:$0xff]  ;;  %v459_v7 = vld [vmem:[%s700_s1] sm:$0xff] }
   0xd   :  { %v451_v8 = vld [vmem:[%s699_s0] sm:$0xff]  ;;  %v453_v9 = vld [vmem:[%s699_s0 + $0x10] sm:$0xff]  ;;  %v452_v12 = vld [vmem:[%s699_s0 + $0x8] sm:$0xff] }
   0xe   :  { %v455_v10 = vld [vmem:[%s699_s0 + $0x20] sm:$0xff]  ;;  %v457_v11 = vld [vmem:[%s699_s0 + $0x30] sm:$0xff]  ;;  %v454_v13 = vld [vmem:[%s699_s0 + $0x18] sm:$0xff] }
   0xf   :  { %210 = vmatpush.bf16.msra.mxu0 %v465_v1  ;;  %517 = vmatpush.bf16.msra.mxu1 %v465_v1  ;;  %v456_v14 = vld [vmem:[%s699_s0 + $0x28] sm:$0xff]  ;;  %v458_v15 = vld [vmem:[%s699_s0 + $0x38] sm:$0xff]  ;;  %v540_v18 = vld [vmem:[#allocation3] ss:$0 sm:$0xff] }
  0x10   :  { %518 = vmatpush.bf16.msra.mxu2 %v465_v1  ;;  %519 = vmatpush.bf16.msra.mxu3 %v465_v1  ;;  %v541_v20 = vld [vmem:[#allocation5] ss:$0 sm:$0xff] }
  0x13   :  { %211 = vmatpush.bf16.msra.mxu0 %v464_v2  ;;  %520 = vmatpush.bf16.msra.mxu1 %v464_v2 }
  0x14   :  { %521 = vmatpush.bf16.msra.mxu2 %v464_v2  ;;  %522 = vmatpush.bf16.msra.mxu3 %v464_v2 }
  0x17   :  { %212 = vmatpush.bf16.msra.mxu0 %v463_v3  ;;  %523 = vmatpush.bf16.msra.mxu1 %v463_v3 }
  0x18   :  { %524 = vmatpush.bf16.msra.mxu2 %v463_v3  ;;  %525 = vmatpush.bf16.msra.mxu3 %v463_v3 }
  0x1b   :  { %213 = vmatpush.bf16.msra.mxu0 %v462_v4  ;;  %526 = vmatpush.bf16.msra.mxu1 %v462_v4 }
  0x1c   :  { %527 = vmatpush.bf16.msra.mxu2 %v462_v4  ;;  %528 = vmatpush.bf16.msra.mxu3 %v462_v4 }
  0x1f   :  { %214 = vmatpush.bf16.msra.mxu0 %v461_v5  ;;  %529 = vmatpush.bf16.msra.mxu1 %v461_v5 }
  0x20   :  { %530 = vmatpush.bf16.msra.mxu2 %v461_v5  ;;  %531 = vmatpush.bf16.msra.mxu3 %v461_v5 }
  0x23   :  { %215 = vmatpush.bf16.msra.mxu0 %v460_v6  ;;  %532 = vmatpush.bf16.msra.mxu1 %v460_v6 }
  0x24   :  { %533 = vmatpush.bf16.msra.mxu2 %v460_v6  ;;  %534 = vmatpush.bf16.msra.mxu3 %v460_v6 }
  0x27   :  { %216 = vmatpush.bf16.msra.mxu0 %v459_v7  ;;  %535 = vmatpush.bf16.msra.mxu1 %v459_v7 }
  0x28   :  { %536 = vmatpush.bf16.msra.mxu2 %v459_v7  ;;  %537 = vmatpush.bf16.msra.mxu3 %v459_v7 }
  0x2a   :  { %217 = vmatmul.bf16.vlgmr.msra.gmra.mxu0 %v451_v8  ;;  %227 = vmatmul.bf16.vlgmr.msra.gmra.mxu1 %v453_v9 }
  0x2b   :  { %237 = vmatmul.bf16.vlgmr.msra.gmra.mxu2 %v455_v10  ;;  %247 = vmatmul.bf16.vlgmr.msra.gmra.mxu3 %v457_v11 }
  0x3a   :  { %222 = vmatmul.bf16.gmra.mxu0 %v452_v12  ;;  %232 = vmatmul.bf16.gmra.mxu1 %v454_v13 }
  0x3b   :  { %242 = vmatmul.bf16.gmra.mxu2 %v456_v14  ;;  %252 = vmatmul.bf16.gmra.mxu3 %v458_v15 }
  0xa7   :  { %v218_v16 = vpop.f32.mrf.mxu0  ;;  %v228_v17 = vpop.f32.mrf.mxu1 }
  0xa8   :  { %v313_v19 = vmul.f32 %v540_v18, %v218_v16  ;;  %v317_v21 = vmul.f32 %v540_v18, %v228_v17 }
  0xaa   :  { %v333_v28 = vadd.f32 %v541_v20, %v313_v19  ;;  %v337_v29 = vadd.f32 %v541_v20, %v317_v21 }
  0xae   :  { %v238_v22 = vpop.f32.mrf.mxu2  ;;  %v248_v23 = vpop.f32.mrf.mxu3 }
  0xaf   :  { %v220_v24 = vpop.f32.mrf.mxu0  ;;  %v230_v25 = vpop.f32.mrf.mxu1  ;;  %v321_v34 = vmul.f32 %v540_v18, %v238_v22  ;;  %v325_v35 = vmul.f32 %v540_v18, %v248_v23 }
  0xb0   :  { %v314_v26 = vmul.f32 %v540_v18, %v220_v24  ;;  %v318_v27 = vmul.f32 %v540_v18, %v230_v25 }
  0xb1   :  { %v341_v42 = vadd.f32 %v541_v20, %v321_v34  ;;  %v345_v43 = vadd.f32 %v541_v20, %v325_v35 }
  0xb2   :  { %v334_v30 = vadd.f32 %v541_v20, %v314_v26  ;;  %v338_v31 = vadd.f32 %v541_v20, %v318_v27 }
  0xb4   :  { %v470_v32 = vpack.c.bf16 %v334_v30, %v333_v28  ;;  %v480_v33 = vpack.c.bf16 %v338_v31, %v337_v29 }
  0xb6   :  { %471 = vst [vmem:[%s703_s4] sm:$0xff] %v470_v32   ;;  %v240_v36 = vpop.f32.mrf.mxu2  ;;  %v250_v37 = vpop.f32.mrf.mxu3 }
  0xb7   :  { %508 = vst [vmem:[%s703_s4 + $0x10] sm:$0xff] %v480_v33   ;;  %v322_v38 = vmul.f32 %v540_v18, %v240_v36  ;;  %v326_v39 = vmul.f32 %v540_v18, %v250_v37  ;;  %v223_v40 = vpop.f32.mrf.mxu0  ;;  %v233_v41 = vpop.f32.mrf.mxu1 }
  0xb8   :  { %v315_v48 = vmul.f32 %v540_v18, %v223_v40  ;;  %v319_v49 = vmul.f32 %v540_v18, %v233_v41 }
  0xb9   :  { %v342_v44 = vadd.f32 %v541_v20, %v322_v38  ;;  %v346_v45 = vadd.f32 %v541_v20, %v326_v39 }
  0xba   :  { %v335_v56 = vadd.f32 %v541_v20, %v315_v48  ;;  %v339_v57 = vadd.f32 %v541_v20, %v319_v49 }
  0xbb   :  { %v490_v46 = vpack.c.bf16 %v342_v44, %v341_v42  ;;  %v500_v47 = vpack.c.bf16 %v346_v45, %v345_v43 }
  0xbd   :  { %510 = vst [vmem:[%s703_s4 + $0x20] sm:$0xff] %v490_v46  }
  0xbe   :  { %512 = vst [vmem:[%s703_s4 + $0x30] sm:$0xff] %v500_v47   ;;  %v243_v50 = vpop.f32.mrf.mxu2  ;;  %v253_v51 = vpop.f32.mrf.mxu3 }
  0xbf   :  { %v225_v52 = vpop.f32.mrf.mxu0  ;;  %v235_v53 = vpop.f32.mrf.mxu1  ;;  %v323_v62 = vmul.f32 %v540_v18, %v243_v50  ;;  %v327_v63 = vmul.f32 %v540_v18, %v253_v51 }
  0xc0   :  { %v316_v54 = vmul.f32 %v540_v18, %v225_v52  ;;  %v320_v55 = vmul.f32 %v540_v18, %v235_v53 }
  0xc1   :  { %v343_v4 = vadd.f32 %v541_v20, %v323_v62  ;;  %v347_v5 = vadd.f32 %v541_v20, %v327_v63 }
  0xc2   :  { %v336_v58 = vadd.f32 %v541_v20, %v316_v54  ;;  %v340_v59 = vadd.f32 %v541_v20, %v320_v55 }
  0xc4   :  { %v475_v60 = vpack.c.bf16 %v336_v58, %v335_v56  ;;  %v485_v61 = vpack.c.bf16 %v340_v59, %v339_v57 }
  0xc6   :  { %507 = vst [vmem:[%s703_s4 + $0x8] sm:$0xff] %v475_v60   ;;  %v245_v0 = vpop.f32.mrf.mxu2  ;;  %v255_v1 = vpop.f32.mrf.mxu3 }
  0xc7   :  { %509 = vst [vmem:[%s703_s4 + $0x18] sm:$0xff] %v485_v61   ;;  %v324_v2 = vmul.f32 %v540_v18, %v245_v0  ;;  %v328_v3 = vmul.f32 %v540_v18, %v255_v1 }
  0xc9   :  { %v344_v6 = vadd.f32 %v541_v20, %v324_v2  ;;  %v348_v7 = vadd.f32 %v541_v20, %v328_v3 }
  0xcb   :  { %v495_v8 = vpack.c.bf16 %v344_v6, %v343_v4  ;;  %v505_v9 = vpack.c.bf16 %v348_v7, %v347_v5 }
  0xcd   :  { %511 = vst [vmem:[%s703_s4 + $0x28] sm:$0xff] %v495_v8  }
  0xce   :  { %513 = vst [vmem:[%s703_s4 + $0x38] sm:$0xff] %v505_v9  }
  0xcf   :  { %385 = vsyncpa [#allocation4], 1 }
  0xd0   :  { %386 = vsyncpa [#allocation6], 1 }

// kernel: resnext_forward.32
= control target key start
LH: loop header
LB: loop body
LE: loop exit
PB: predicated region body
PF: predicated region fallthrough
CT: control target
= control target key end

     0   :  { %s910_s12 = smov 0   ;;  %s912_s13 = smov 0   ;;  %s1090_s0 = inlined_call_operand.vmem [shape: bf16[2,256,32], index: 0, kind: input, shape index: {}]   ;;  %s1091_s1 = inlined_call_operand.vmem [shape: f32[2,1,32], index: 1, kind: input, shape index: {}]   ;;  %s1092_s2 = inlined_call_operand.vmem [shape: bf16[2,256,32], index: 2, kind: input, shape index: {}]   ;;  %s1093_s3 = inlined_call_operand.vmem [shape: bf16[2,256,32], index: 3, kind: output, shape index: {}]  }
   0x1   :  { %s914_s14 = smov 0  }
   0x2 LB: > { %s25_s15 = sadd.s32 1, %s884_s13  ;;  %p671_p0 = scmp.ge.s32.totalorder %s888_s14, 1  ;;  %s888_s14 = sphi %s914_s14, %s13_s14   ;;  %s884_s13 = sphi %s912_s13, %s1095_s13   ;;  %s880_s12 = sphi %s910_s12, %s1094_s12  }
   0x3   : > { %p27_p1 = scmp.ge.s32.totalorder %s25_s15, 2  ;;  %p183_p2 = scmp.lt.s32.totalorder %s888_s14, 3 }
   0x5   : > { %s1097_s15 = smov (%p27_p1, %s25_s15), 0  ;;  %p184_p3 = pnand %p671_p0, %p183_p2 }
   0x6   : > { %p228_p4 = scmp.lt.s32.totalorder (!%p184_p3), %s880_s12, 1 }
   0x7   : > { %187 = sbr.rel (%p184_p3) target bundleno = 70 (0x46), region = 32 }
   0xc   : > { %s1099_s12 = smov (!%p228_p4, %s880_s12), 1  ;;  %vm520_vm0 = vcmask 257024  }
   0xd   : > { %s928_s16 = sshll.u32 %s1099_s12, 7  ;;  %s239_s19 = scalar_lea.vmem %s1091_s1, %s1099_s12 }
   0xe   : > { %s937_s22 = scalar_lea.vmem %s1090_s0, %s928_s16  ;;  %s943_s25 = scalar_lea.vmem %s1092_s2, %s928_s16  ;;  %v945_v0 = vld [vmem:[%s239_s19] ss:$0 sm:$0xff] }
   0xf   : > { %v684_v1 = vld [vmem:[%s937_s22] sm:$0xff]   ;;  %v811_v3 = vld [vmem:[%s937_s22 + $0x8] sm:$0xff]   ;;  %v812_v9 = vld [vmem:[%s937_s22 + $0x10] sm:$0xff]   ;;  %s966_s28 = scalar_lea.vmem %s1093_s3, %s928_s16 }
  0x10   : > { %v748_v2 = vld [vmem:[%s943_s25] sm:$0xff]   ;;  %v685_v4 = vunpack.c.l.bf16 %v684_v1  ;;  %v686_v6 = vunpack.c.h.bf16 %v684_v1  ;;  %v826_v8 = vld [vmem:[%s943_s25 + $0x8] sm:$0xff]   ;;  %v827_v10 = vld [vmem:[%s943_s25 + $0x10] sm:$0xff]   ;;  %v689_v11 = vunpack.c.l.bf16 %v811_v3  ;;  %v690_v13 = vunpack.c.h.bf16 %v811_v3 }
  0x11   : > { %v749_v5 = vunpack.c.l.bf16 %v748_v2  ;;  %v750_v7 = vunpack.c.h.bf16 %v748_v2  ;;  %v753_v12 = vunpack.c.l.bf16 %v826_v8  ;;  %v754_v14 = vunpack.c.h.bf16 %v826_v8  ;;  %v813_v15 = vld [vmem:[%s937_s22 + $0x18] sm:$0xff]   ;;  %v814_v41 = vld [vmem:[%s937_s22 + $0x20] sm:$0xff]   ;;  %v815_v51 = vld [vmem:[%s937_s22 + $0x28] sm:$0xff]  }
  0x12   : > { %v392_v16 = vmul.f32 %v945_v0, %v685_v4  ;;  %v393_v17 = vmul.f32 %v945_v0, %v686_v6  ;;  %v693_v18 = vunpack.c.l.bf16 %v812_v9  ;;  %v757_v19 = vunpack.c.l.bf16 %v827_v10  ;;  %v828_v20 = vld [vmem:[%s943_s25 + $0x18] sm:$0xff]   ;;  %v829_v46 = vld [vmem:[%s943_s25 + $0x20] sm:$0xff]   ;;  %v830_v56 = vld [vmem:[%s943_s25 + $0x28] sm:$0xff]  }
  0x13   : > { %v394_v21 = vmul.f32 %v945_v0, %v689_v11  ;;  %v395_v22 = vmul.f32 %v945_v0, %v690_v13  ;;  %v694_v23 = vunpack.c.h.bf16 %v812_v9  ;;  %v758_v24 = vunpack.c.h.bf16 %v827_v10  ;;  %v816_v61 = vld [vmem:[%s937_s22 + $0x30] sm:$0xff]  }
  0x14   : > { %v424_v25 = vadd.f32 %v749_v5, %v392_v16  ;;  %v425_v26 = vadd.f32 %v750_v7, %v393_v17  ;;  %v396_v27 = vmul.f32 %v945_v0, %v693_v18  ;;  %v697_v28 = vunpack.c.l.bf16 %v813_v15  ;;  %v831_v3 = vld [vmem:[%s943_s25 + $0x30] sm:$0xff]   ;;  %v817_v16 = vld [vmem:[%s937_s22 + $0x38] sm:$0xff]  }
  0x15   : > { %v426_v29 = vadd.f32 %v753_v12, %v394_v21  ;;  %v427_v30 = vadd.f32 %v754_v14, %v395_v22  ;;  %v397_v31 = vmul.f32 %v945_v0, %v694_v23  ;;  %v761_v32 = vunpack.c.l.bf16 %v828_v20  ;;  %v832_v21 = vld [vmem:[%s943_s25 + $0x38] sm:$0xff]  }
  0x16   : > { %v456_v33 = vmax.f32 %v424_v25, 0.0  ;;  %v457_v34 = vmax.f32 %v425_v26, 0.0  ;;  %v428_v35 = vadd.f32 %v757_v19, %v396_v27  ;;  %v398_v36 = vmul.f32 %v945_v0, %v697_v28 }
  0x17   : > { %v458_v37 = vmax.f32 %v426_v29, 0.0  ;;  %v459_v38 = vmax.f32 %v427_v30, 0.0  ;;  %v429_v39 = vadd.f32 %v758_v24, %v397_v31  ;;  %v698_v40 = vunpack.c.h.bf16 %v813_v15  ;;  %v818_v30 = vld [vmem:[%s937_s22 + $0x40] sm:$0xff]  }
  0x18   : > { %v488_v42 = vpack.c.bf16 %v456_v33, %v456_v33  ;;  %v489_v43 = vpack.c.bf16 %v457_v34, %v457_v34  ;;  %v460_v44 = vmax.f32 %v428_v35, 0.0  ;;  %v430_v45 = vadd.f32 %v761_v32, %v398_v36  ;;  %v833_v35 = vld [vmem:[%s943_s25 + $0x40] sm:$0xff]  }
  0x19   : > { %v490_v47 = vpack.c.bf16 %v458_v37, %v458_v37  ;;  %v491_v48 = vpack.c.bf16 %v459_v38, %v459_v38  ;;  %v461_v49 = vmax.f32 %v429_v39, 0.0  ;;  %v762_v50 = vunpack.c.h.bf16 %v828_v20 }
  0x1a   : > { %521 = vst.msk [vmem:[%s966_s28] sm:$0xf] %vm520_vm0, %v488_v42  ;;  %v492_v52 = vpack.c.bf16 %v460_v44, %v460_v44  ;;  %v462_v53 = vmax.f32 %v430_v45, 0.0  ;;  %v399_v54 = vmul.f32 %v945_v0, %v698_v40  ;;  %v701_v55 = vunpack.c.l.bf16 %v814_v41  ;;  %v819_v44 = vld [vmem:[%s937_s22 + $0x48] sm:$0xff]  }
  0x1b   : > { %522 = vst.msk [vmem:[%s966_s28 + $0x4] sm:$0xf] %vm520_vm0, %v489_v43  ;;  %v493_v57 = vpack.c.bf16 %v461_v49, %v461_v49  ;;  %v765_v58 = vunpack.c.l.bf16 %v829_v46  ;;  %v702_v59 = vunpack.c.h.bf16 %v814_v41  ;;  %v766_v60 = vunpack.c.h.bf16 %v829_v46  ;;  %v834_v45 = vld [vmem:[%s943_s25 + $0x48] sm:$0xff]  }
  0x1c   : > { %523 = vst.msk [vmem:[%s966_s28 + $0x8] sm:$0xf] %vm520_vm0, %v490_v47  ;;  %v494_v62 = vpack.c.bf16 %v462_v53, %v462_v53  ;;  %v431_v63 = vadd.f32 %v762_v50, %v399_v54  ;;  %v400_v1 = vmul.f32 %v945_v0, %v701_v55  ;;  %v705_v2 = vunpack.c.l.bf16 %v815_v51  ;;  %v820_v54 = vld [vmem:[%s937_s22 + $0x50] sm:$0xff]  }
  0x1d   : > { %524 = vst.msk [vmem:[%s966_s28 + $0xc] sm:$0xf] %vm520_vm0, %v491_v48  ;;  %v401_v4 = vmul.f32 %v945_v0, %v702_v59  ;;  %v769_v5 = vunpack.c.l.bf16 %v830_v56  ;;  %v706_v6 = vunpack.c.h.bf16 %v815_v51  ;;  %v770_v7 = vunpack.c.h.bf16 %v830_v56  ;;  %v835_v59 = vld [vmem:[%s943_s25 + $0x50] sm:$0xff]  }
  0x1e   : > { %525 = vst.msk [vmem:[%s966_s28 + $0x10] sm:$0xf] %vm520_vm0, %v492_v52  ;;  %v463_v8 = vmax.f32 %v431_v63, 0.0  ;;  %v432_v9 = vadd.f32 %v765_v58, %v400_v1  ;;  %v402_v10 = vmul.f32 %v945_v0, %v705_v2  ;;  %v709_v11 = vunpack.c.l.bf16 %v816_v61 }
  0x1f   : > { %526 = vst.msk [vmem:[%s966_s28 + $0x14] sm:$0xf] %vm520_vm0, %v493_v57  ;;  %v433_v12 = vadd.f32 %v766_v60, %v401_v4  ;;  %v403_v13 = vmul.f32 %v945_v0, %v706_v6  ;;  %v773_v14 = vunpack.c.l.bf16 %v831_v3  ;;  %v710_v15 = vunpack.c.h.bf16 %v816_v61 }
  0x20   : > { %527 = vst.msk [vmem:[%s966_s28 + $0x18] sm:$0xf] %vm520_vm0, %v494_v62  ;;  %v495_v17 = vpack.c.bf16 %v463_v8, %v463_v8  ;;  %v464_v18 = vmax.f32 %v432_v9, 0.0  ;;  %v434_v19 = vadd.f32 %v769_v5, %v402_v10  ;;  %v404_v20 = vmul.f32 %v945_v0, %v709_v11  ;;  %v821_v9 = vld [vmem:[%s937_s22 + $0x58] sm:$0xff]  }
  0x21   : > { %v465_v22 = vmax.f32 %v433_v12, 0.0  ;;  %v435_v23 = vadd.f32 %v770_v7, %v403_v13  ;;  %v774_v24 = vunpack.c.h.bf16 %v831_v3  ;;  %v405_v25 = vmul.f32 %v945_v0, %v710_v15 }
  0x22   : > { %528 = vst.msk [vmem:[%s966_s28 + $0x1c] sm:$0xf] %vm520_vm0, %v495_v17  ;;  %v496_v26 = vpack.c.bf16 %v464_v18, %v464_v18  ;;  %v466_v27 = vmax.f32 %v434_v19, 0.0  ;;  %v436_v28 = vadd.f32 %v773_v14, %v404_v20  ;;  %v713_v29 = vunpack.c.l.bf16 %v817_v16  ;;  %v836_v14 = vld [vmem:[%s943_s25 + $0x58] sm:$0xff]  }
  0x23   : > { %v497_v31 = vpack.c.bf16 %v465_v22, %v465_v22  ;;  %v467_v32 = vmax.f32 %v435_v23, 0.0  ;;  %v437_v33 = vadd.f32 %v774_v24, %v405_v25  ;;  %v777_v34 = vunpack.c.l.bf16 %v832_v21  ;;  %v822_v23 = vld [vmem:[%s937_s22 + $0x60] sm:$0xff]  }
  0x24   : > { %529 = vst.msk [vmem:[%s966_s28 + $0x20] sm:$0xf] %vm520_vm0, %v496_v26  ;;  %v498_v36 = vpack.c.bf16 %v466_v27, %v466_v27  ;;  %v468_v37 = vmax.f32 %v436_v28, 0.0  ;;  %v406_v38 = vmul.f32 %v945_v0, %v713_v29  ;;  %v714_v39 = vunpack.c.h.bf16 %v817_v16  ;;  %v837_v28 = vld [vmem:[%s943_s25 + $0x60] sm:$0xff]  }
  0x25   : > { %530 = vst.msk [vmem:[%s966_s28 + $0x24] sm:$0xf] %vm520_vm0, %v497_v31  ;;  %v499_v40 = vpack.c.bf16 %v467_v32, %v467_v32  ;;  %v469_v41 = vmax.f32 %v437_v33, 0.0  ;;  %v778_v42 = vunpack.c.h.bf16 %v832_v21  ;;  %v717_v43 = vunpack.c.l.bf16 %v818_v30 }
  0x26   : > { %531 = vst.msk [vmem:[%s966_s28 + $0x28] sm:$0xf] %vm520_vm0, %v498_v36  ;;  %v500_v46 = vpack.c.bf16 %v468_v37, %v468_v37  ;;  %v438_v47 = vadd.f32 %v777_v34, %v406_v38  ;;  %v407_v48 = vmul.f32 %v945_v0, %v714_v39  ;;  %v781_v49 = vunpack.c.l.bf16 %v833_v35  ;;  %v823_v37 = vld [vmem:[%s937_s22 + $0x68] sm:$0xff]  }
  0x27   : > { %532 = vst.msk [vmem:[%s966_s28 + $0x2c] sm:$0xf] %vm520_vm0, %v499_v40  ;;  %v501_v50 = vpack.c.bf16 %v469_v41, %v469_v41  ;;  %v408_v51 = vmul.f32 %v945_v0, %v717_v43  ;;  %v718_v52 = vunpack.c.h.bf16 %v818_v30  ;;  %v782_v53 = vunpack.c.h.bf16 %v833_v35  ;;  %v838_v38 = vld [vmem:[%s943_s25 + $0x68] sm:$0xff]  }
  0x28   : > { %533 = vst.msk [vmem:[%s966_s28 + $0x30] sm:$0xf] %vm520_vm0, %v500_v46  ;;  %v470_v55 = vmax.f32 %v438_v47, 0.0  ;;  %v439_v56 = vadd.f32 %v778_v42, %v407_v48  ;;  %v721_v57 = vunpack.c.l.bf16 %v819_v44  ;;  %v785_v58 = vunpack.c.l.bf16 %v834_v45  ;;  %v824_v47 = vld [vmem:[%s937_s22 + $0x70] sm:$0xff]  }
  0x29   : > { %534 = vst.msk [vmem:[%s966_s28 + $0x34] sm:$0xf] %vm520_vm0, %v501_v50  ;;  %v440_v60 = vadd.f32 %v781_v49, %v408_v51  ;;  %v409_v61 = vmul.f32 %v945_v0, %v718_v52  ;;  %v722_v62 = vunpack.c.h.bf16 %v819_v44  ;;  %v786_v63 = vunpack.c.h.bf16 %v834_v45 }
  0x2a   : > { %v502_v1 = vpack.c.bf16 %v470_v55, %v470_v55  ;;  %v471_v2 = vmax.f32 %v439_v56, 0.0  ;;  %v410_v3 = vmul.f32 %v945_v0, %v721_v57  ;;  %v725_v4 = vunpack.c.l.bf16 %v820_v54  ;;  %v839_v56 = vld [vmem:[%s943_s25 + $0x70] sm:$0xff]  }
  0x2b   : > { %v472_v5 = vmax.f32 %v440_v60, 0.0  ;;  %v441_v6 = vadd.f32 %v782_v53, %v409_v61  ;;  %v411_v7 = vmul.f32 %v945_v0, %v722_v62  ;;  %v789_v8 = vunpack.c.l.bf16 %v835_v59 }
  0x2c   : > { %535 = vst.msk [vmem:[%s966_s28 + $0x38] sm:$0xf] %vm520_vm0, %v502_v1  ;;  %v503_v10 = vpack.c.bf16 %v471_v2, %v471_v2  ;;  %v442_v11 = vadd.f32 %v785_v58, %v410_v3  ;;  %v412_v12 = vmul.f32 %v945_v0, %v725_v4  ;;  %v726_v13 = vunpack.c.h.bf16 %v820_v54  ;;  %v825_v2 = vld [vmem:[%s937_s22 + $0x78] sm:$0xff]  }
  0x2d   : > { %v504_v15 = vpack.c.bf16 %v472_v5, %v472_v5  ;;  %v473_v16 = vmax.f32 %v441_v6, 0.0  ;;  %v443_v17 = vadd.f32 %v786_v63, %v411_v7  ;;  %v790_v18 = vunpack.c.h.bf16 %v835_v59  ;;  %v840_v7 = vld [vmem:[%s943_s25 + $0x78] sm:$0xff]  }
  0x2e   : > { %536 = vst.msk [vmem:[%s966_s28 + $0x3c] sm:$0xf] %vm520_vm0, %v503_v10  ;;  %v474_v19 = vmax.f32 %v442_v11, 0.0  ;;  %v444_v20 = vadd.f32 %v789_v8, %v412_v12  ;;  %v413_v21 = vmul.f32 %v945_v0, %v726_v13  ;;  %v729_v22 = vunpack.c.l.bf16 %v821_v9 }
  0x2f   : > { %537 = vst.msk [vmem:[%s966_s28 + $0x40] sm:$0xf] %vm520_vm0, %v504_v15  ;;  %v505_v24 = vpack.c.bf16 %v473_v16, %v473_v16  ;;  %v475_v25 = vmax.f32 %v443_v17, 0.0  ;;  %v793_v26 = vunpack.c.l.bf16 %v836_v14  ;;  %v730_v27 = vunpack.c.h.bf16 %v821_v9 }
  0x30   : > { %v506_v29 = vpack.c.bf16 %v474_v19, %v474_v19  ;;  %v476_v30 = vmax.f32 %v444_v20, 0.0  ;;  %v445_v31 = vadd.f32 %v790_v18, %v413_v21  ;;  %v414_v32 = vmul.f32 %v945_v0, %v729_v22 }
  0x31   : > { %538 = vst.msk [vmem:[%s966_s28 + $0x44] sm:$0xf] %vm520_vm0, %v505_v24  ;;  %v507_v33 = vpack.c.bf16 %v475_v25, %v475_v25  ;;  %v794_v34 = vunpack.c.h.bf16 %v836_v14  ;;  %v415_v35 = vmul.f32 %v945_v0, %v730_v27  ;;  %v733_v36 = vunpack.c.l.bf16 %v822_v23 }
  0x32   : > { %539 = vst.msk [vmem:[%s966_s28 + $0x48] sm:$0xf] %vm520_vm0, %v506_v29  ;;  %v508_v39 = vpack.c.bf16 %v476_v30, %v476_v30  ;;  %v477_v40 = vmax.f32 %v445_v31, 0.0  ;;  %v446_v41 = vadd.f32 %v793_v26, %v414_v32  ;;  %v797_v42 = vunpack.c.l.bf16 %v837_v28 }
  0x33   : > { %540 = vst.msk [vmem:[%s966_s28 + $0x4c] sm:$0xf] %vm520_vm0, %v507_v33  ;;  %v447_v43 = vadd.f32 %v794_v34, %v415_v35  ;;  %v416_v44 = vmul.f32 %v945_v0, %v733_v36  ;;  %v734_v45 = vunpack.c.h.bf16 %v822_v23  ;;  %v798_v46 = vunpack.c.h.bf16 %v837_v28 }
  0x34   : > { %541 = vst.msk [vmem:[%s966_s28 + $0x50] sm:$0xf] %vm520_vm0, %v508_v39  ;;  %v509_v48 = vpack.c.bf16 %v477_v40, %v477_v40  ;;  %v478_v49 = vmax.f32 %v446_v41, 0.0  ;;  %v737_v50 = vunpack.c.l.bf16 %v823_v37  ;;  %v801_v51 = vunpack.c.l.bf16 %v838_v38 }
  0x35   : > { %v479_v52 = vmax.f32 %v447_v43, 0.0  ;;  %v448_v53 = vadd.f32 %v797_v42, %v416_v44  ;;  %v417_v54 = vmul.f32 %v945_v0, %v734_v45  ;;  %v738_v55 = vunpack.c.h.bf16 %v823_v37 }
  0x36   : > { %542 = vst.msk [vmem:[%s966_s28 + $0x54] sm:$0xf] %vm520_vm0, %v509_v48  ;;  %v510_v57 = vpack.c.bf16 %v478_v49, %v478_v49  ;;  %v418_v58 = vmul.f32 %v945_v0, %v737_v50  ;;  %v802_v59 = vunpack.c.h.bf16 %v838_v38  ;;  %v741_v60 = vunpack.c.l.bf16 %v824_v47 }
  0x37   : > { %v511_v61 = vpack.c.bf16 %v479_v52, %v479_v52  ;;  %v480_v62 = vmax.f32 %v448_v53, 0.0  ;;  %v449_v63 = vadd.f32 %v798_v46, %v417_v54  ;;  %v419_v1 = vmul.f32 %v945_v0, %v738_v55 }
  0x38   : > { %543 = vst.msk [vmem:[%s966_s28 + $0x58] sm:$0xf] %vm520_vm0, %v510_v57  ;;  %v450_v3 = vadd.f32 %v801_v51, %v418_v58  ;;  %v805_v4 = vunpack.c.l.bf16 %v839_v56  ;;  %v420_v5 = vmul.f32 %v945_v0, %v741_v60  ;;  %v742_v6 = vunpack.c.h.bf16 %v824_v47 }
  0x39   : > { %544 = vst.msk [vmem:[%s966_s28 + $0x5c] sm:$0xf] %vm520_vm0, %v511_v61  ;;  %v512_v8 = vpack.c.bf16 %v480_v62, %v480_v62  ;;  %v481_v9 = vmax.f32 %v449_v63, 0.0  ;;  %v451_v10 = vadd.f32 %v802_v59, %v419_v1  ;;  %v806_v11 = vunpack.c.h.bf16 %v839_v56 }
  0x3a   : > { %v482_v12 = vmax.f32 %v450_v3, 0.0  ;;  %v452_v13 = vadd.f32 %v805_v4, %v420_v5  ;;  %v421_v14 = vmul.f32 %v945_v0, %v742_v6  ;;  %v745_v15 = vunpack.c.l.bf16 %v825_v2 }
  0x3b   : > { %545 = vst.msk [vmem:[%s966_s28 + $0x60] sm:$0xf] %vm520_vm0, %v512_v8  ;;  %v513_v16 = vpack.c.bf16 %v481_v9, %v481_v9  ;;  %v483_v17 = vmax.f32 %v451_v10, 0.0  ;;  %v809_v18 = vunpack.c.l.bf16 %v840_v7  ;;  %v746_v19 = vunpack.c.h.bf16 %v825_v2 }
  0x3c   : > { %v514_v20 = vpack.c.bf16 %v482_v12, %v482_v12  ;;  %v484_v21 = vmax.f32 %v452_v13, 0.0  ;;  %v453_v22 = vadd.f32 %v806_v11, %v421_v14  ;;  %v422_v23 = vmul.f32 %v945_v0, %v745_v15 }
  0x3d   : > { %546 = vst.msk [vmem:[%s966_s28 + $0x64] sm:$0xf] %vm520_vm0, %v513_v16  ;;  %v515_v24 = vpack.c.bf16 %v483_v17, %v483_v17  ;;  %v810_v25 = vunpack.c.h.bf16 %v840_v7  ;;  %v423_v26 = vmul.f32 %v945_v0, %v746_v19 }
  0x3e   : > { %547 = vst.msk [vmem:[%s966_s28 + $0x68] sm:$0xf] %vm520_vm0, %v514_v20  ;;  %v516_v27 = vpack.c.bf16 %v484_v21, %v484_v21  ;;  %v485_v28 = vmax.f32 %v453_v22, 0.0  ;;  %v454_v29 = vadd.f32 %v809_v18, %v422_v23 }
  0x3f   : > { %548 = vst.msk [vmem:[%s966_s28 + $0x6c] sm:$0xf] %vm520_vm0, %v515_v24  ;;  %v455_v30 = vadd.f32 %v810_v25, %v423_v26 }
  0x40   : > { %549 = vst.msk [vmem:[%s966_s28 + $0x70] sm:$0xf] %vm520_vm0, %v516_v27  ;;  %v517_v31 = vpack.c.bf16 %v485_v28, %v485_v28  ;;  %v486_v32 = vmax.f32 %v454_v29, 0.0 }
  0x41   : > { %v487_v33 = vmax.f32 %v455_v30, 0.0 }
  0x42   : > { %550 = vst.msk [vmem:[%s966_s28 + $0x74] sm:$0xf] %vm520_vm0, %v517_v31  ;;  %v518_v34 = vpack.c.bf16 %v486_v32, %v486_v32 }
  0x43   : > { %v519_v35 = vpack.c.bf16 %v487_v33, %v487_v33 }
  0x44   : > { %551 = vst.msk [vmem:[%s966_s28 + $0x78] sm:$0xf] %vm520_vm0, %v518_v34 }
  0x45   : > { %552 = vst.msk [vmem:[%s966_s28 + $0x7c] sm:$0xf] %vm520_vm0, %v519_v35 }
  0x46 PF: > { %s13_s14 = sadd.s32 1, %s888_s14   ;;  %s1094_s12 = smov %s884_s13 }
  0x47   : > { %p10_p5 = scmp.ge.s32.totalorder %s13_s14, 4   ;;  %s1095_s13 = smov %s1097_s15 }
  0x49   :  { %12 = sbr.rel (!%p10_p5) target bundleno = 2 (0x2), region = 68 }

// kernel: resnext_forward.33
= control target key start
LH: loop header
LB: loop body
LE: loop exit
PB: predicated region body
PF: predicated region fallthrough
CT: control target
= control target key end

     0   :  { %9 = vsyncpa [#allocation4], 0  ;;  %s2047_s0 = inlined_call_operand.vmem [shape: bf16[512,128], index: 0, kind: input, shape index: {}]   ;;  %s2048_s1 = inlined_call_operand.vmem [shape: bf16[128,128], index: 1, kind: input, shape index: {}]   ;;  %s2049_s2 = inlined_call_operand.hbm [shape: f32[1,128], index: 2, kind: input, shape index: {}]   ;;  %s2050_s3 = inlined_call_operand.hbm [shape: f32[1,128], index: 3, kind: input, shape index: {}]   ;;  %s2051_s4 = inlined_call_operand.vmem [shape: bf16[512,128], index: 4, kind: output, shape index: {}]  }
   0x1   :  { %s20_s17 = sshll.u32 %s2049_s2, 4  ;;  %s21_s17 = int_to_ptr.hbm [resolvable:$true] %s20_s17 }
   0x2   :  { %10 = vsyncpa [#allocation6], 0  ;;  %s1666_s18 = smov [#allocation3]   ;;  %s31_s22 = sshll.u32 %s2050_s3, 4  ;;  %s32_s22 = int_to_ptr.hbm [resolvable:$true] %s31_s22 }
   0x3   :  { %s22_s19 = sshll.u32 %s1666_s18, 4  ;;  %s1667_s23 = smov [#allocation5]   ;;  %s23_s19 = int_to_ptr.vmem [resolvable:$true] %s22_s19 }
   0x4   :  { %25 = dma.hbm_to_vmem [thread:$0]  %s21_s17, 16, %s23_s19, [#allocation4]  }
   0x5   :  { %s33_s24 = sshll.u32 %s1667_s23, 4  ;;  %s34_s24 = int_to_ptr.vmem [resolvable:$true] %s33_s24 }
   0x6   :  { %36 = dma.hbm_to_vmem [thread:$0]  %s32_s22, 16, %s34_s24, [#allocation6]  }
   0x7   :  { %1662 = dma.done.wait [#allocation4], 16  }
   0x8   :  { %1663 = vsyncadd [#allocation4], 4294967280 }
   0x9   :  { %1664 = dma.done.wait [#allocation6], 16  }
   0xa   :  { %1665 = vsyncadd [#allocation6], 4294967280  ;;  %v1394_v0 = vld [vmem:[%s2048_s1 + $0x38] sm:$0xff]  ;;  %v1393_v1 = vld [vmem:[%s2048_s1 + $0x30] sm:$0xff] }
   0xb   :  { %497 = vmatpush.bf16.msra.mxu0 %v1394_v0  ;;  %1586 = vmatpush.bf16.msra.mxu1 %v1394_v0  ;;  %v1392_v2 = vld [vmem:[%s2048_s1 + $0x28] sm:$0xff]  ;;  %v1391_v3 = vld [vmem:[%s2048_s1 + $0x20] sm:$0xff]  ;;  %v1390_v4 = vld [vmem:[%s2048_s1 + $0x18] sm:$0xff] }
   0xc   :  { %1587 = vmatpush.bf16.msra.mxu2 %v1394_v0  ;;  %1588 = vmatpush.bf16.msra.mxu3 %v1394_v0  ;;  %v1389_v5 = vld [vmem:[%s2048_s1 + $0x10] sm:$0xff]  ;;  %v1388_v6 = vld [vmem:[%s2048_s1 + $0x8] sm:$0xff]  ;;  %v1387_v7 = vld [vmem:[%s2048_s1] sm:$0xff] }
   0xd   :  { %v1355_v8 = vld [vmem:[%s2047_s0] sm:$0xff]  ;;  %v1356_v12 = vld [vmem:[%s2047_s0 + $0x8] sm:$0xff]  ;;  %v1357_v16 = vld [vmem:[%s2047_s0 + $0x10] sm:$0xff] }
   0xe   :  { %v1363_v9 = vld [vmem:[%s2047_s0 + $0x40] sm:$0xff]  ;;  %v1364_v13 = vld [vmem:[%s2047_s0 + $0x48] sm:$0xff]  ;;  %v1365_v17 = vld [vmem:[%s2047_s0 + $0x50] sm:$0xff] }
   0xf   :  { %498 = vmatpush.bf16.msra.mxu0 %v1393_v1  ;;  %1589 = vmatpush.bf16.msra.mxu1 %v1393_v1  ;;  %v1371_v10 = vld [vmem:[%s2047_s0 + $0x80] sm:$0xff]  ;;  %v1372_v14 = vld [vmem:[%s2047_s0 + $0x88] sm:$0xff]  ;;  %v1373_v18 = vld [vmem:[%s2047_s0 + $0x90] sm:$0xff] }
  0x10   :  { %1590 = vmatpush.bf16.msra.mxu2 %v1393_v1  ;;  %1591 = vmatpush.bf16.msra.mxu3 %v1393_v1  ;;  %v1379_v11 = vld [vmem:[%s2047_s0 + $0xc0] sm:$0xff]  ;;  %v1380_v15 = vld [vmem:[%s2047_s0 + $0xc8] sm:$0xff]  ;;  %v1381_v19 = vld [vmem:[%s2047_s0 + $0xd0] sm:$0xff] }
  0x11   :  { %v1358_v20 = vld [vmem:[%s2047_s0 + $0x18] sm:$0xff]  ;;  %v1359_v24 = vld [vmem:[%s2047_s0 + $0x20] sm:$0xff]  ;;  %v1360_v28 = vld [vmem:[%s2047_s0 + $0x28] sm:$0xff] }
  0x12   :  { %v1366_v21 = vld [vmem:[%s2047_s0 + $0x58] sm:$0xff]  ;;  %v1367_v25 = vld [vmem:[%s2047_s0 + $0x60] sm:$0xff]  ;;  %v1368_v29 = vld [vmem:[%s2047_s0 + $0x68] sm:$0xff] }
  0x13   :  { %499 = vmatpush.bf16.msra.mxu0 %v1392_v2  ;;  %1592 = vmatpush.bf16.msra.mxu1 %v1392_v2  ;;  %v1374_v22 = vld [vmem:[%s2047_s0 + $0x98] sm:$0xff]  ;;  %v1375_v26 = vld [vmem:[%s2047_s0 + $0xa0] sm:$0xff]  ;;  %v1376_v30 = vld [vmem:[%s2047_s0 + $0xa8] sm:$0xff] }
  0x14   :  { %1593 = vmatpush.bf16.msra.mxu2 %v1392_v2  ;;  %1594 = vmatpush.bf16.msra.mxu3 %v1392_v2  ;;  %v1382_v23 = vld [vmem:[%s2047_s0 + $0xd8] sm:$0xff]  ;;  %v1383_v27 = vld [vmem:[%s2047_s0 + $0xe0] sm:$0xff]  ;;  %v1384_v31 = vld [vmem:[%s2047_s0 + $0xe8] sm:$0xff] }
  0x15   :  { %v1361_v32 = vld [vmem:[%s2047_s0 + $0x30] sm:$0xff]  ;;  %v1362_v36 = vld [vmem:[%s2047_s0 + $0x38] sm:$0xff]  ;;  %v1819_v42 = vld [vmem:[#allocation3] ss:$0 sm:$0xff] }
  0x16   :  { %v1369_v33 = vld [vmem:[%s2047_s0 + $0x70] sm:$0xff]  ;;  %v1370_v37 = vld [vmem:[%s2047_s0 + $0x78] sm:$0xff]  ;;  %v1822_v44 = vld [vmem:[#allocation5] ss:$0 sm:$0xff] }
  0x17   :  { %500 = vmatpush.bf16.msra.mxu0 %v1391_v3  ;;  %1595 = vmatpush.bf16.msra.mxu1 %v1391_v3  ;;  %v1377_v34 = vld [vmem:[%s2047_s0 + $0xb0] sm:$0xff]  ;;  %v1378_v38 = vld [vmem:[%s2047_s0 + $0xb8] sm:$0xff] }
  0x18   :  { %1596 = vmatpush.bf16.msra.mxu2 %v1391_v3  ;;  %1597 = vmatpush.bf16.msra.mxu3 %v1391_v3  ;;  %v1385_v35 = vld [vmem:[%s2047_s0 + $0xf0] sm:$0xff]  ;;  %v1386_v39 = vld [vmem:[%s2047_s0 + $0xf8] sm:$0xff] }
  0x1b   :  { %501 = vmatpush.bf16.msra.mxu0 %v1390_v4  ;;  %1598 = vmatpush.bf16.msra.mxu1 %v1390_v4 }
  0x1c   :  { %1599 = vmatpush.bf16.msra.mxu2 %v1390_v4  ;;  %1600 = vmatpush.bf16.msra.mxu3 %v1390_v4 }
  0x1f   :  { %502 = vmatpush.bf16.msra.mxu0 %v1389_v5  ;;  %1601 = vmatpush.bf16.msra.mxu1 %v1389_v5 }
  0x20   :  { %1602 = vmatpush.bf16.msra.mxu2 %v1389_v5  ;;  %1603 = vmatpush.bf16.msra.mxu3 %v1389_v5 }
  0x23   :  { %503 = vmatpush.bf16.msra.mxu0 %v1388_v6  ;;  %1604 = vmatpush.bf16.msra.mxu1 %v1388_v6 }
  0x24   :  { %1605 = vmatpush.bf16.msra.mxu2 %v1388_v6  ;;  %1606 = vmatpush.bf16.msra.mxu3 %v1388_v6 }
  0x27   :  { %504 = vmatpush.bf16.msra.mxu0 %v1387_v7  ;;  %1607 = vmatpush.bf16.msra.mxu1 %v1387_v7 }
  0x28   :  { %1608 = vmatpush.bf16.msra.mxu2 %v1387_v7  ;;  %1609 = vmatpush.bf16.msra.mxu3 %v1387_v7 }
  0x2a   :  { %505 = vmatmul.bf16.vlgmr.msra.gmra.mxu0 %v1355_v8  ;;  %545 = vmatmul.bf16.vlgmr.msra.gmra.mxu1 %v1363_v9 }
  0x2b   :  { %585 = vmatmul.bf16.vlgmr.msra.gmra.mxu2 %v1371_v10  ;;  %625 = vmatmul.bf16.vlgmr.msra.gmra.mxu3 %v1379_v11 }
  0x3a   :  { %510 = vmatmul.bf16.gmra.mxu0 %v1356_v12  ;;  %550 = vmatmul.bf16.gmra.mxu1 %v1364_v13 }
  0x3b   :  { %590 = vmatmul.bf16.gmra.mxu2 %v1372_v14  ;;  %630 = vmatmul.bf16.gmra.mxu3 %v1380_v15 }
  0x4a   :  { %515 = vmatmul.bf16.gmra.mxu0 %v1357_v16  ;;  %555 = vmatmul.bf16.gmra.mxu1 %v1365_v17 }
  0x4b   :  { %595 = vmatmul.bf16.gmra.mxu2 %v1373_v18  ;;  %635 = vmatmul.bf16.gmra.mxu3 %v1381_v19 }
  0x5a   :  { %520 = vmatmul.bf16.gmra.mxu0 %v1358_v20  ;;  %560 = vmatmul.bf16.gmra.mxu1 %v1366_v21 }
  0x5b   :  { %600 = vmatmul.bf16.gmra.mxu2 %v1374_v22  ;;  %640 = vmatmul.bf16.gmra.mxu3 %v1382_v23 }
  0x6a   :  { %525 = vmatmul.bf16.gmra.mxu0 %v1359_v24  ;;  %565 = vmatmul.bf16.gmra.mxu1 %v1367_v25 }
  0x6b   :  { %605 = vmatmul.bf16.gmra.mxu2 %v1375_v26  ;;  %645 = vmatmul.bf16.gmra.mxu3 %v1383_v27 }
  0x7a   :  { %530 = vmatmul.bf16.gmra.mxu0 %v1360_v28  ;;  %570 = vmatmul.bf16.gmra.mxu1 %v1368_v29 }
  0x7b   :  { %610 = vmatmul.bf16.gmra.mxu2 %v1376_v30  ;;  %650 = vmatmul.bf16.gmra.mxu3 %v1384_v31 }
  0x8a   :  { %535 = vmatmul.bf16.gmra.mxu0 %v1361_v32  ;;  %575 = vmatmul.bf16.gmra.mxu1 %v1369_v33 }
  0x8b   :  { %615 = vmatmul.bf16.gmra.mxu2 %v1377_v34  ;;  %655 = vmatmul.bf16.gmra.mxu3 %v1385_v35 }
  0x9a   :  { %540 = vmatmul.bf16.gmra.mxu0 %v1362_v36  ;;  %580 = vmatmul.bf16.gmra.mxu1 %v1370_v37 }
  0x9b   :  { %620 = vmatmul.bf16.gmra.mxu2 %v1378_v38  ;;  %660 = vmatmul.bf16.gmra.mxu3 %v1386_v39 }
  0xa7   :  { %v506_v40 = vpop.f32.mrf.mxu0  ;;  %v546_v41 = vpop.f32.mrf.mxu1 }
  0xa8   :  { %v865_v43 = vmul.f32 %v1819_v42, %v506_v40  ;;  %v881_v45 = vmul.f32 %v1819_v42, %v546_v41 }
  0xaa   :  { %v933_v50 = vadd.f32 %v1822_v44, %v865_v43  ;;  %v949_v51 = vadd.f32 %v1822_v44, %v881_v45 }
  0xac   :  { %v997_v58 = vmax.f32 %v933_v50, 0.0  ;;  %v1013_v59 = vmax.f32 %v949_v51, 0.0 }
  0xae   :  { %v586_v46 = vpop.f32.mrf.mxu2  ;;  %v626_v47 = vpop.f32.mrf.mxu3 }
  0xaf   :  { %v508_v48 = vpop.f32.mrf.mxu0  ;;  %v548_v49 = vpop.f32.mrf.mxu1  ;;  %v897_v56 = vmul.f32 %v1819_v42, %v586_v46  ;;  %v913_v57 = vmul.f32 %v1819_v42, %v626_v47 }
  0xb0   :  { %v866_v52 = vmul.f32 %v1819_v42, %v508_v48  ;;  %v882_v53 = vmul.f32 %v1819_v42, %v548_v49 }
  0xb1   :  { %v965_v2 = vadd.f32 %v1822_v44, %v897_v56  ;;  %v981_v3 = vadd.f32 %v1822_v44, %v913_v57 }
  0xb2   :  { %v934_v54 = vadd.f32 %v1822_v44, %v866_v52  ;;  %v950_v55 = vadd.f32 %v1822_v44, %v882_v53 }
  0xb3   :  { %v1029_v10 = vmax.f32 %v965_v2, 0.0  ;;  %v1045_v11 = vmax.f32 %v981_v3, 0.0 }
  0xb4   :  { %v998_v60 = vmax.f32 %v934_v54, 0.0  ;;  %v1014_v61 = vmax.f32 %v950_v55, 0.0 }
  0xb6   :  { %v1398_v62 = vpack.c.bf16 %v998_v60, %v997_v58  ;;  %v1438_v63 = vpack.c.bf16 %v1014_v61, %v1013_v59  ;;  %v588_v0 = vpop.f32.mrf.mxu2  ;;  %v628_v1 = vpop.f32.mrf.mxu3 }
  0xb7   :  { %v898_v4 = vmul.f32 %v1819_v42, %v588_v0  ;;  %v914_v5 = vmul.f32 %v1819_v42, %v628_v1  ;;  %v511_v6 = vpop.f32.mrf.mxu0  ;;  %v551_v7 = vpop.f32.mrf.mxu1 }
  0xb8   :  { %1399 = vst [vmem:[%s2051_s4] sm:$0xff] %v1398_v62   ;;  %v867_v14 = vmul.f32 %v1819_v42, %v511_v6  ;;  %v883_v15 = vmul.f32 %v1819_v42, %v551_v7 }
  0xb9   :  { %1562 = vst [vmem:[%s2051_s4 + $0x40] sm:$0xff] %v1438_v63   ;;  %v966_v8 = vadd.f32 %v1822_v44, %v898_v4  ;;  %v982_v9 = vadd.f32 %v1822_v44, %v914_v5 }
  0xba   :  { %v935_v22 = vadd.f32 %v1822_v44, %v867_v14  ;;  %v951_v23 = vadd.f32 %v1822_v44, %v883_v15 }
  0xbb   :  { %v1030_v12 = vmax.f32 %v966_v8, 0.0  ;;  %v1046_v13 = vmax.f32 %v982_v9, 0.0 }
  0xbc   :  { %v999_v30 = vmax.f32 %v935_v22, 0.0  ;;  %v1015_v31 = vmax.f32 %v951_v23, 0.0 }
  0xbd   :  { %v1478_v16 = vpack.c.bf16 %v1030_v12, %v1029_v10  ;;  %v1518_v17 = vpack.c.bf16 %v1046_v13, %v1045_v11 }
  0xbe   :  { %v591_v18 = vpop.f32.mrf.mxu2  ;;  %v631_v19 = vpop.f32.mrf.mxu3 }
  0xbf   :  { %1570 = vst [vmem:[%s2051_s4 + $0x80] sm:$0xff] %v1478_v16   ;;  %v513_v20 = vpop.f32.mrf.mxu0  ;;  %v553_v21 = vpop.f32.mrf.mxu1  ;;  %v899_v28 = vmul.f32 %v1819_v42, %v591_v18  ;;  %v915_v29 = vmul.f32 %v1819_v42, %v631_v19 }
  0xc0   :  { %1578 = vst [vmem:[%s2051_s4 + $0xc0] sm:$0xff] %v1518_v17   ;;  %v868_v24 = vmul.f32 %v1819_v42, %v513_v20  ;;  %v884_v25 = vmul.f32 %v1819_v42, %v553_v21 }
  0xc1   :  { %v967_v38 = vadd.f32 %v1822_v44, %v899_v28  ;;  %v983_v39 = vadd.f32 %v1822_v44, %v915_v29 }
  0xc2   :  { %v936_v26 = vadd.f32 %v1822_v44, %v868_v24  ;;  %v952_v27 = vadd.f32 %v1822_v44, %v884_v25 }
  0xc3   :  { %v1031_v48 = vmax.f32 %v967_v38, 0.0  ;;  %v1047_v49 = vmax.f32 %v983_v39, 0.0 }
  0xc4   :  { %v1000_v32 = vmax.f32 %v936_v26, 0.0  ;;  %v1016_v33 = vmax.f32 %v952_v27, 0.0 }
  0xc6   :  { %v1403_v34 = vpack.c.bf16 %v1000_v32, %v999_v30  ;;  %v1443_v35 = vpack.c.bf16 %v1016_v33, %v1015_v31  ;;  %v593_v36 = vpop.f32.mrf.mxu2  ;;  %v633_v37 = vpop.f32.mrf.mxu3 }
  0xc7   :  { %v900_v40 = vmul.f32 %v1819_v42, %v593_v36  ;;  %v916_v41 = vmul.f32 %v1819_v42, %v633_v37  ;;  %v516_v43 = vpop.f32.mrf.mxu0  ;;  %v556_v45 = vpop.f32.mrf.mxu1 }
  0xc8   :  { %1555 = vst [vmem:[%s2051_s4 + $0x8] sm:$0xff] %v1403_v34   ;;  %v869_v52 = vmul.f32 %v1819_v42, %v516_v43  ;;  %v885_v53 = vmul.f32 %v1819_v42, %v556_v45 }
  0xc9   :  { %1563 = vst [vmem:[%s2051_s4 + $0x48] sm:$0xff] %v1443_v35   ;;  %v968_v46 = vadd.f32 %v1822_v44, %v900_v40  ;;  %v984_v47 = vadd.f32 %v1822_v44, %v916_v41 }
  0xca   :  { %v937_v60 = vadd.f32 %v1822_v44, %v869_v52  ;;  %v953_v61 = vadd.f32 %v1822_v44, %v885_v53 }
  0xcb   :  { %v1032_v50 = vmax.f32 %v968_v46, 0.0  ;;  %v1048_v51 = vmax.f32 %v984_v47, 0.0 }
  0xcc   :  { %v1001_v4 = vmax.f32 %v937_v60, 0.0  ;;  %v1017_v5 = vmax.f32 %v953_v61, 0.0 }
  0xcd   :  { %v1483_v54 = vpack.c.bf16 %v1032_v50, %v1031_v48  ;;  %v1523_v55 = vpack.c.bf16 %v1048_v51, %v1047_v49 }
  0xce   :  { %v596_v56 = vpop.f32.mrf.mxu2  ;;  %v636_v57 = vpop.f32.mrf.mxu3 }
  0xcf   :  { %1571 = vst [vmem:[%s2051_s4 + $0x88] sm:$0xff] %v1483_v54   ;;  %v518_v58 = vpop.f32.mrf.mxu0  ;;  %v558_v59 = vpop.f32.mrf.mxu1  ;;  %v901_v2 = vmul.f32 %v1819_v42, %v596_v56  ;;  %v917_v3 = vmul.f32 %v1819_v42, %v636_v57 }
  0xd0   :  { %1579 = vst [vmem:[%s2051_s4 + $0xc8] sm:$0xff] %v1523_v55   ;;  %v870_v62 = vmul.f32 %v1819_v42, %v518_v58  ;;  %v886_v63 = vmul.f32 %v1819_v42, %v558_v59 }
  0xd1   :  { %v969_v12 = vadd.f32 %v1822_v44, %v901_v2  ;;  %v985_v13 = vadd.f32 %v1822_v44, %v917_v3 }
  0xd2   :  { %v938_v0 = vadd.f32 %v1822_v44, %v870_v62  ;;  %v954_v1 = vadd.f32 %v1822_v44, %v886_v63 }
  0xd3   :  { %v1033_v20 = vmax.f32 %v969_v12, 0.0  ;;  %v1049_v21 = vmax.f32 %v985_v13, 0.0 }
  0xd4   :  { %v1002_v6 = vmax.f32 %v938_v0, 0.0  ;;  %v1018_v7 = vmax.f32 %v954_v1, 0.0 }
  0xd6   :  { %v1408_v8 = vpack.c.bf16 %v1002_v6, %v1001_v4  ;;  %v1448_v9 = vpack.c.bf16 %v1018_v7, %v1017_v5  ;;  %v598_v10 = vpop.f32.mrf.mxu2  ;;  %v638_v11 = vpop.f32.mrf.mxu3 }
  0xd7   :  { %v902_v14 = vmul.f32 %v1819_v42, %v598_v10  ;;  %v918_v15 = vmul.f32 %v1819_v42, %v638_v11  ;;  %v521_v16 = vpop.f32.mrf.mxu0  ;;  %v561_v17 = vpop.f32.mrf.mxu1 }
  0xd8   :  { %1556 = vst [vmem:[%s2051_s4 + $0x10] sm:$0xff] %v1408_v8   ;;  %v871_v24 = vmul.f32 %v1819_v42, %v521_v16  ;;  %v887_v25 = vmul.f32 %v1819_v42, %v561_v17 }
  0xd9   :  { %1564 = vst [vmem:[%s2051_s4 + $0x50] sm:$0xff] %v1448_v9   ;;  %v970_v18 = vadd.f32 %v1822_v44, %v902_v14  ;;  %v986_v19 = vadd.f32 %v1822_v44, %v918_v15 }
  0xda   :  { %v939_v32 = vadd.f32 %v1822_v44, %v871_v24  ;;  %v955_v33 = vadd.f32 %v1822_v44, %v887_v25 }
  0xdb   :  { %v1034_v22 = vmax.f32 %v970_v18, 0.0  ;;  %v1050_v23 = vmax.f32 %v986_v19, 0.0 }
  0xdc   :  { %v1003_v40 = vmax.f32 %v939_v32, 0.0  ;;  %v1019_v41 = vmax.f32 %v955_v33, 0.0 }
  0xdd   :  { %v1488_v26 = vpack.c.bf16 %v1034_v22, %v1033_v20  ;;  %v1528_v27 = vpack.c.bf16 %v1050_v23, %v1049_v21 }
  0xde   :  { %v601_v28 = vpop.f32.mrf.mxu2  ;;  %v641_v29 = vpop.f32.mrf.mxu3 }
  0xdf   :  { %1572 = vst [vmem:[%s2051_s4 + $0x90] sm:$0xff] %v1488_v26   ;;  %v523_v30 = vpop.f32.mrf.mxu0  ;;  %v563_v31 = vpop.f32.mrf.mxu1  ;;  %v903_v38 = vmul.f32 %v1819_v42, %v601_v28  ;;  %v919_v39 = vmul.f32 %v1819_v42, %v641_v29 }
  0xe0   :  { %1580 = vst [vmem:[%s2051_s4 + $0xd0] sm:$0xff] %v1528_v27   ;;  %v872_v34 = vmul.f32 %v1819_v42, %v523_v30  ;;  %v888_v35 = vmul.f32 %v1819_v42, %v563_v31 }
  0xe1   :  { %v971_v50 = vadd.f32 %v1822_v44, %v903_v38  ;;  %v987_v51 = vadd.f32 %v1822_v44, %v919_v39 }
  0xe2   :  { %v940_v36 = vadd.f32 %v1822_v44, %v872_v34  ;;  %v956_v37 = vadd.f32 %v1822_v44, %v888_v35 }
  0xe3   :  { %v1035_v58 = vmax.f32 %v971_v50, 0.0  ;;  %v1051_v59 = vmax.f32 %v987_v51, 0.0 }
  0xe4   :  { %v1004_v43 = vmax.f32 %v940_v36, 0.0  ;;  %v1020_v45 = vmax.f32 %v956_v37, 0.0 }
  0xe6   :  { %v1413_v46 = vpack.c.bf16 %v1004_v43, %v1003_v40  ;;  %v1453_v47 = vpack.c.bf16 %v1020_v45, %v1019_v41  ;;  %v603_v48 = vpop.f32.mrf.mxu2  ;;  %v643_v49 = vpop.f32.mrf.mxu3 }
  0xe7   :  { %v904_v52 = vmul.f32 %v1819_v42, %v603_v48  ;;  %v920_v53 = vmul.f32 %v1819_v42, %v643_v49  ;;  %v526_v54 = vpop.f32.mrf.mxu0  ;;  %v566_v55 = vpop.f32.mrf.mxu1 }
  0xe8   :  { %1557 = vst [vmem:[%s2051_s4 + $0x18] sm:$0xff] %v1413_v46   ;;  %v873_v62 = vmul.f32 %v1819_v42, %v526_v54  ;;  %v889_v63 = vmul.f32 %v1819_v42, %v566_v55 }
  0xe9   :  { %1565 = vst [vmem:[%s2051_s4 + $0x58] sm:$0xff] %v1453_v47   ;;  %v972_v56 = vadd.f32 %v1822_v44, %v904_v52  ;;  %v988_v57 = vadd.f32 %v1822_v44, %v920_v53 }
  0xea   :  { %v941_v6 = vadd.f32 %v1822_v44, %v873_v62  ;;  %v957_v7 = vadd.f32 %v1822_v44, %v889_v63 }
  0xeb   :  { %v1036_v60 = vmax.f32 %v972_v56, 0.0  ;;  %v1052_v61 = vmax.f32 %v988_v57, 0.0 }
  0xec   :  { %v1005_v14 = vmax.f32 %v941_v6, 0.0  ;;  %v1021_v15 = vmax.f32 %v957_v7, 0.0 }
  0xed   :  { %v1493_v0 = vpack.c.bf16 %v1036_v60, %v1035_v58  ;;  %v1533_v1 = vpack.c.bf16 %v1052_v61, %v1051_v59 }
  0xee   :  { %v606_v2 = vpop.f32.mrf.mxu2  ;;  %v646_v3 = vpop.f32.mrf.mxu3 }
  0xef   :  { %1573 = vst [vmem:[%s2051_s4 + $0x98] sm:$0xff] %v1493_v0   ;;  %v528_v4 = vpop.f32.mrf.mxu0  ;;  %v568_v5 = vpop.f32.mrf.mxu1  ;;  %v905_v12 = vmul.f32 %v1819_v42, %v606_v2  ;;  %v921_v13 = vmul.f32 %v1819_v42, %v646_v3 }
  0xf0   :  { %1581 = vst [vmem:[%s2051_s4 + $0xd8] sm:$0xff] %v1533_v1   ;;  %v874_v8 = vmul.f32 %v1819_v42, %v528_v4  ;;  %v890_v9 = vmul.f32 %v1819_v42, %v568_v5 }
  0xf1   :  { %v973_v22 = vadd.f32 %v1822_v44, %v905_v12  ;;  %v989_v23 = vadd.f32 %v1822_v44, %v921_v13 }
  0xf2   :  { %v942_v10 = vadd.f32 %v1822_v44, %v874_v8  ;;  %v958_v11 = vadd.f32 %v1822_v44, %v890_v9 }
  0xf3   :  { %v1037_v30 = vmax.f32 %v973_v22, 0.0  ;;  %v1053_v31 = vmax.f32 %v989_v23, 0.0 }
  0xf4   :  { %v1006_v16 = vmax.f32 %v942_v10, 0.0  ;;  %v1022_v17 = vmax.f32 %v958_v11, 0.0 }
  0xf6   :  { %v1418_v18 = vpack.c.bf16 %v1006_v16, %v1005_v14  ;;  %v1458_v19 = vpack.c.bf16 %v1022_v17, %v1021_v15  ;;  %v608_v20 = vpop.f32.mrf.mxu2  ;;  %v648_v21 = vpop.f32.mrf.mxu3 }
  0xf7   :  { %v906_v24 = vmul.f32 %v1819_v42, %v608_v20  ;;  %v922_v25 = vmul.f32 %v1819_v42, %v648_v21  ;;  %v531_v26 = vpop.f32.mrf.mxu0  ;;  %v571_v27 = vpop.f32.mrf.mxu1 }
  0xf8   :  { %1558 = vst [vmem:[%s2051_s4 + $0x20] sm:$0xff] %v1418_v18   ;;  %v875_v34 = vmul.f32 %v1819_v42, %v531_v26  ;;  %v891_v35 = vmul.f32 %v1819_v42, %v571_v27 }
  0xf9   :  { %1566 = vst [vmem:[%s2051_s4 + $0x60] sm:$0xff] %v1458_v19   ;;  %v974_v28 = vadd.f32 %v1822_v44, %v906_v24  ;;  %v990_v29 = vadd.f32 %v1822_v44, %v922_v25 }
  0xfa   :  { %v943_v43 = vadd.f32 %v1822_v44, %v875_v34  ;;  %v959_v45 = vadd.f32 %v1822_v44, %v891_v35 }
  0xfb   :  { %v1038_v32 = vmax.f32 %v974_v28, 0.0  ;;  %v1054_v33 = vmax.f32 %v990_v29, 0.0 }
  0xfc   :  { %v1007_v52 = vmax.f32 %v943_v43, 0.0  ;;  %v1023_v53 = vmax.f32 %v959_v45, 0.0 }
  0xfd   :  { %v1498_v36 = vpack.c.bf16 %v1038_v32, %v1037_v30  ;;  %v1538_v37 = vpack.c.bf16 %v1054_v33, %v1053_v31 }
  0xfe   :  { %v611_v38 = vpop.f32.mrf.mxu2  ;;  %v651_v39 = vpop.f32.mrf.mxu3 }
  0xff   :  { %1574 = vst [vmem:[%s2051_s4 + $0xa0] sm:$0xff] %v1498_v36   ;;  %v533_v40 = vpop.f32.mrf.mxu0  ;;  %v573_v41 = vpop.f32.mrf.mxu1  ;;  %v907_v50 = vmul.f32 %v1819_v42, %v611_v38  ;;  %v923_v51 = vmul.f32 %v1819_v42, %v651_v39 }
 0x100   :  { %1582 = vst [vmem:[%s2051_s4 + $0xe0] sm:$0xff] %v1538_v37   ;;  %v876_v46 = vmul.f32 %v1819_v42, %v533_v40  ;;  %v892_v47 = vmul.f32 %v1819_v42, %v573_v41 }
 0x101   :  { %v975_v60 = vadd.f32 %v1822_v44, %v907_v50  ;;  %v991_v61 = vadd.f32 %v1822_v44, %v923_v51 }
 0x102   :  { %v944_v48 = vadd.f32 %v1822_v44, %v876_v46  ;;  %v960_v49 = vadd.f32 %v1822_v44, %v892_v47 }
 0x103   :  { %v1039_v4 = vmax.f32 %v975_v60, 0.0  ;;  %v1055_v5 = vmax.f32 %v991_v61, 0.0 }
 0x104   :  { %v1008_v54 = vmax.f32 %v944_v48, 0.0  ;;  %v1024_v55 = vmax.f32 %v960_v49, 0.0 }
 0x106   :  { %v1423_v56 = vpack.c.bf16 %v1008_v54, %v1007_v52  ;;  %v1463_v57 = vpack.c.bf16 %v1024_v55, %v1023_v53  ;;  %v613_v58 = vpop.f32.mrf.mxu2  ;;  %v653_v59 = vpop.f32.mrf.mxu3 }
 0x107   :  { %v908_v62 = vmul.f32 %v1819_v42, %v613_v58  ;;  %v924_v63 = vmul.f32 %v1819_v42, %v653_v59  ;;  %v536_v0 = vpop.f32.mrf.mxu0  ;;  %v576_v1 = vpop.f32.mrf.mxu1 }
 0x108   :  { %1559 = vst [vmem:[%s2051_s4 + $0x28] sm:$0xff] %v1423_v56   ;;  %v877_v8 = vmul.f32 %v1819_v42, %v536_v0  ;;  %v893_v9 = vmul.f32 %v1819_v42, %v576_v1 }
 0x109   :  { %1567 = vst [vmem:[%s2051_s4 + $0x68] sm:$0xff] %v1463_v57   ;;  %v976_v2 = vadd.f32 %v1822_v44, %v908_v62  ;;  %v992_v3 = vadd.f32 %v1822_v44, %v924_v63 }
 0x10a   :  { %v945_v16 = vadd.f32 %v1822_v44, %v877_v8  ;;  %v961_v17 = vadd.f32 %v1822_v44, %v893_v9 }
 0x10b   :  { %v1040_v6 = vmax.f32 %v976_v2, 0.0  ;;  %v1056_v7 = vmax.f32 %v992_v3, 0.0 }
 0x10c   :  { %v1009_v24 = vmax.f32 %v945_v16, 0.0  ;;  %v1025_v25 = vmax.f32 %v961_v17, 0.0 }
 0x10d   :  { %v1503_v10 = vpack.c.bf16 %v1040_v6, %v1039_v4  ;;  %v1543_v11 = vpack.c.bf16 %v1056_v7, %v1055_v5 }
 0x10e   :  { %v616_v12 = vpop.f32.mrf.mxu2  ;;  %v656_v13 = vpop.f32.mrf.mxu3 }
 0x10f   :  { %1575 = vst [vmem:[%s2051_s4 + $0xa8] sm:$0xff] %v1503_v10   ;;  %v538_v14 = vpop.f32.mrf.mxu0  ;;  %v578_v15 = vpop.f32.mrf.mxu1  ;;  %v909_v22 = vmul.f32 %v1819_v42, %v616_v12  ;;  %v925_v23 = vmul.f32 %v1819_v42, %v656_v13 }
 0x110   :  { %1583 = vst [vmem:[%s2051_s4 + $0xe8] sm:$0xff] %v1543_v11   ;;  %v878_v18 = vmul.f32 %v1819_v42, %v538_v14  ;;  %v894_v19 = vmul.f32 %v1819_v42, %v578_v15 }
 0x111   :  { %v977_v32 = vadd.f32 %v1822_v44, %v909_v22  ;;  %v993_v33 = vadd.f32 %v1822_v44, %v925_v23 }
 0x112   :  { %v946_v20 = vadd.f32 %v1822_v44, %v878_v18  ;;  %v962_v21 = vadd.f32 %v1822_v44, %v894_v19 }
 0x113   :  { %v1041_v40 = vmax.f32 %v977_v32, 0.0  ;;  %v1057_v41 = vmax.f32 %v993_v33, 0.0 }
 0x114   :  { %v1010_v26 = vmax.f32 %v946_v20, 0.0  ;;  %v1026_v27 = vmax.f32 %v962_v21, 0.0 }
 0x116   :  { %v1428_v28 = vpack.c.bf16 %v1010_v26, %v1009_v24  ;;  %v1468_v29 = vpack.c.bf16 %v1026_v27, %v1025_v25  ;;  %v618_v30 = vpop.f32.mrf.mxu2  ;;  %v658_v31 = vpop.f32.mrf.mxu3 }
 0x117   :  { %v910_v34 = vmul.f32 %v1819_v42, %v618_v30  ;;  %v926_v35 = vmul.f32 %v1819_v42, %v658_v31  ;;  %v541_v36 = vpop.f32.mrf.mxu0  ;;  %v581_v37 = vpop.f32.mrf.mxu1 }
 0x118   :  { %1560 = vst [vmem:[%s2051_s4 + $0x30] sm:$0xff] %v1428_v28   ;;  %v879_v46 = vmul.f32 %v1819_v42, %v541_v36  ;;  %v895_v47 = vmul.f32 %v1819_v42, %v581_v37 }
 0x119   :  { %1568 = vst [vmem:[%s2051_s4 + $0x70] sm:$0xff] %v1468_v29   ;;  %v978_v38 = vadd.f32 %v1822_v44, %v910_v34  ;;  %v994_v39 = vadd.f32 %v1822_v44, %v926_v35 }
 0x11a   :  { %v947_v54 = vadd.f32 %v1822_v44, %v879_v46  ;;  %v963_v55 = vadd.f32 %v1822_v44, %v895_v47 }
 0x11b   :  { %v1042_v43 = vmax.f32 %v978_v38, 0.0  ;;  %v1058_v45 = vmax.f32 %v994_v39, 0.0 }
 0x11c   :  { %v1011_v62 = vmax.f32 %v947_v54, 0.0  ;;  %v1027_v63 = vmax.f32 %v963_v55, 0.0 }
 0x11d   :  { %v1508_v48 = vpack.c.bf16 %v1042_v43, %v1041_v40  ;;  %v1548_v49 = vpack.c.bf16 %v1058_v45, %v1057_v41 }
 0x11e   :  { %v621_v50 = vpop.f32.mrf.mxu2  ;;  %v661_v51 = vpop.f32.mrf.mxu3 }
 0x11f   :  { %1576 = vst [vmem:[%s2051_s4 + $0xb0] sm:$0xff] %v1508_v48   ;;  %v543_v52 = vpop.f32.mrf.mxu0  ;;  %v583_v53 = vpop.f32.mrf.mxu1  ;;  %v911_v60 = vmul.f32 %v1819_v42, %v621_v50  ;;  %v927_v61 = vmul.f32 %v1819_v42, %v661_v51 }
 0x120   :  { %1584 = vst [vmem:[%s2051_s4 + $0xf0] sm:$0xff] %v1548_v49   ;;  %v880_v56 = vmul.f32 %v1819_v42, %v543_v52  ;;  %v896_v57 = vmul.f32 %v1819_v42, %v583_v53 }
 0x121   :  { %v979_v6 = vadd.f32 %v1822_v44, %v911_v60  ;;  %v995_v7 = vadd.f32 %v1822_v44, %v927_v61 }
 0x122   :  { %v948_v58 = vadd.f32 %v1822_v44, %v880_v56  ;;  %v964_v59 = vadd.f32 %v1822_v44, %v896_v57 }
 0x123   :  { %v1043_v12 = vmax.f32 %v979_v6, 0.0  ;;  %v1059_v13 = vmax.f32 %v995_v7, 0.0 }
 0x124   :  { %v1012_v0 = vmax.f32 %v948_v58, 0.0  ;;  %v1028_v1 = vmax.f32 %v964_v59, 0.0 }
 0x126   :  { %v1433_v2 = vpack.c.bf16 %v1012_v0, %v1011_v62  ;;  %v1473_v3 = vpack.c.bf16 %v1028_v1, %v1027_v63  ;;  %v623_v4 = vpop.f32.mrf.mxu2  ;;  %v663_v5 = vpop.f32.mrf.mxu3 }
 0x127   :  { %v912_v8 = vmul.f32 %v1819_v42, %v623_v4  ;;  %v928_v9 = vmul.f32 %v1819_v42, %v663_v5 }
 0x128   :  { %1561 = vst [vmem:[%s2051_s4 + $0x38] sm:$0xff] %v1433_v2  }
 0x129   :  { %1569 = vst [vmem:[%s2051_s4 + $0x78] sm:$0xff] %v1473_v3   ;;  %v980_v10 = vadd.f32 %v1822_v44, %v912_v8  ;;  %v996_v11 = vadd.f32 %v1822_v44, %v928_v9 }
 0x12b   :  { %v1044_v14 = vmax.f32 %v980_v10, 0.0  ;;  %v1060_v15 = vmax.f32 %v996_v11, 0.0 }
 0x12d   :  { %v1513_v16 = vpack.c.bf16 %v1044_v14, %v1043_v12  ;;  %v1553_v17 = vpack.c.bf16 %v1060_v15, %v1059_v13 }
 0x12f   :  { %1577 = vst [vmem:[%s2051_s4 + $0xb8] sm:$0xff] %v1513_v16  }
 0x130   :  { %1585 = vst [vmem:[%s2051_s4 + $0xf8] sm:$0xff] %v1553_v17  }
 0x131   :  { %1193 = vsyncpa [#allocation4], 1 }
 0x132   :  { %1194 = vsyncpa [#allocation6], 1 }

// kernel: resnext_forward.36
= control target key start
LH: loop header
LB: loop body
LE: loop exit
PB: predicated region body
PF: predicated region fallthrough
CT: control target
= control target key end

     0   :  { %10 = vsyncpa [#allocation3], 0  ;;  %s307_s0 = inlined_call_operand.vmem [shape: bf16[2,64], index: 0, kind: input, shape index: {}]   ;;  %s308_s1 = inlined_call_operand.vmem [shape: bf16[64,16], index: 1, kind: input, shape index: {}]   ;;  %s309_s2 = inlined_call_operand.hbm [shape: f32[1,16], index: 2, kind: input, shape index: {}]   ;;  %s310_s3 = inlined_call_operand.vmem [shape: bf16[16,64], index: 3, kind: input, shape index: {}]   ;;  %s311_s4 = inlined_call_operand.hbm [shape: f32[1,64], index: 4, kind: input, shape index: {}]   ;;  %s312_s5 = inlined_call_operand.vmem [shape: f32[2,64], index: 5, kind: output, shape index: {}]  }
   0x1   :  { %s21_s20 = sshll.u32 %s309_s2, 4  ;;  %s22_s20 = int_to_ptr.hbm [resolvable:$true] %s21_s20 }
   0x2   :  { %11 = vsyncpa [#allocation5], 0  ;;  %s248_s21 = smov [#allocation2]   ;;  %s34_s25 = sshll.u32 %s311_s4, 4  ;;  %s35_s25 = int_to_ptr.hbm [resolvable:$true] %s34_s25 }
   0x3   :  { %s23_s22 = sshll.u32 %s248_s21, 4  ;;  %s249_s26 = smov [#allocation4]   ;;  %s24_s22 = int_to_ptr.vmem [resolvable:$true] %s23_s22 }
   0x4   :  { %26 = dma.hbm_to_vmem [thread:$0]  %s22_s20, 16, %s24_s22, [#allocation3]  }
   0x5   :  { %s36_s27 = sshll.u32 %s249_s26, 4  ;;  %s37_s27 = int_to_ptr.vmem [resolvable:$true] %s36_s27 }
   0x6   :  { %39 = dma.hbm_to_vmem [thread:$0]  %s35_s25, 16, %s37_s27, [#allocation5]  }
   0x7   :  { %244 = dma.done.wait [#allocation3], 16  }
   0x8   :  { %245 = vsyncadd [#allocation3], 4294967280 }
   0x9   :  { %246 = dma.done.wait [#allocation5], 16  }
   0xa   :  { %247 = vsyncadd [#allocation5], 4294967280  ;;  %v186_v0 = vld [vmem:[%s308_s1 + $0x18] sm:$0xff]  ;;  %v185_v1 = vld [vmem:[%s308_s1 + $0x10] sm:$0xff]  ;;  %vm86_vm0 = vcmask 523264   ;;  %vm117_vm1 = vcmask 130048  }
   0xb   :  { %94 = vmatpush.bf16.msra.mxu0 %v186_v0  ;;  %v184_v2 = vld [vmem:[%s308_s1 + $0x8] sm:$0xff]  ;;  %v183_v3 = vld [vmem:[%s308_s1] sm:$0xff]  ;;  %vm153_vm5 = vcmask 517120  }
   0xc   :  { %v49_v4 = vld [vmem:[%s307_s0] sm:$0x1]  ;;  %v191_v12 = vld [vmem:[#allocation4] ss:$0 sm:$0xff] }
   0xd   :  { %v187_v5 = vld [vmem:[%s310_s3] sm:$0xff] }
   0xe   :  { %128 = vmatpush.bf16.msra.mxu1 %v187_v5  ;;  %v190_v6 = vld [vmem:[#allocation2] ss:$0 sm:$0xff] }
   0xf   :  { %95 = vmatpush.bf16.msra.mxu0 %v185_v1 }
  0x13   :  { %96 = vmatpush.bf16.msra.mxu0 %v184_v2 }
  0x17   :  { %97 = vmatpush.bf16.msra.mxu0 %v183_v3 }
  0x1a   :  { %177 = vmatmul.msk.bf16.vlgmr.msra.gmra.mxu0 %vm86_vm0, %v49_v4 }
  0x97   :  { %v99_v7 = vpop.f32.mrf.mxu0 }
  0x98   :  { %v100_v8 = vadd.f32 %v190_v6, %v99_v7 }
  0x9a   :  { %v103_v9 = vmax.f32 %v100_v8, 0.0 }
  0x9c   :  { %v104_v10 = vpack.c.bf16 %v103_v9, %v103_v9 }
  0x9e   :  { %182 = vmatmul.msk.bf16.vlgmr.msra.gmra.mxu1 %vm117_vm1, %v104_v10 }
  0x9f   :  { %v101_v11 = vpop.f32.mrf.mxu0 }
 0x11b   :  { %v130_v13 = vpop.f32.mrf.mxu1 }
 0x11c   :  { %v131_v14 = vadd.f32 %v191_v12, %v130_v13 }
 0x11e   :  { %v134_v15 = vsub.f32 0.0, %v131_v14 }
 0x120   :  { %v135_v16 = vmul.f32 1.442695, %v134_v15 }
 0x122   :  { %192 = vpow2.f32 %v135_v16 }
 0x123   :  { %v132_v17 = vpop.f32.mrf.mxu1 }
 0x128   :  { %v193_v18 = vpop.eup %192 }
 0x129   :  { %v137_v19 = vadd.f32 1.0, %v193_v18 }
 0x12b   :  { %194 = vrcp.f32 %v137_v19  ;;  %v149_v23 = vand.u32 2147483648, %v137_v19  ;;  %v147_v25 = vand.u32 2147483647, %v137_v19  ;;  %vm143_vm3 = vweird.f32 %v137_v19 }
 0x12d   :  { %v150_v27 = vor.u32 1.1754944e-38, %v149_v23  ;;  %vm148_vm6 = vcmp.eq.f32.partialorder %v147_v25, 8.507059e+37 }
 0x131   :  { %v195_v20 = vpop.eup %194 }
 0x132   :  { %v139_v21 = vmul.f32 %v195_v20, %v137_v19  ;;  %vm144_vm2 = vweird.f32 %v195_v20 }
 0x133   :  { %vm145_vm4 = vmor %vm143_vm3, %vm144_vm2 }
 0x134   :  { %v140_v22 = vsub.f32 1.0, %v139_v21 }
 0x136   :  { %v141_v24 = vmul.f32 %v195_v20, %v140_v22 }
 0x138   :  { %v142_v26 = vadd.f32 %v195_v20, %v141_v24 }
 0x13a   :  { %v146_v28 = vsel %vm145_vm4, %v195_v20, %v142_v26 }
 0x13b   :  { %v151_v29 = vsel %vm148_vm6, %v150_v27, %v146_v28 }
 0x13c   :  { %154 = vst.msk [vmem:[%s312_s5] sm:$0x3] %vm153_vm5, %v151_v29 }
 0x13d   :  { %159 = vsyncpa [#allocation3], 1 }
 0x13e   :  { %160 = vsyncpa [#allocation5], 1 }

// kernel: resnext_forward.38
= control target key start
LH: loop header
LB: loop body
LE: loop exit
PB: predicated region body
PF: predicated region fallthrough
CT: control target
= control target key end

     0   :  { %s574_s12 = smov 0   ;;  %s576_s13 = smov 0   ;;  %s626_s0 = inlined_call_operand.vmem [shape: bf16[2,64,64], index: 0, kind: input, shape index: {}]   ;;  %s627_s1 = inlined_call_operand.vmem [shape: f32[2,1,64], index: 1, kind: input, shape index: {}]   ;;  %s628_s2 = inlined_call_operand.vmem [shape: bf16[2,64,64], index: 2, kind: input, shape index: {}]   ;;  %s629_s3 = inlined_call_operand.vmem [shape: bf16[2,64,64], index: 3, kind: output, shape index: {}]  }
   0x1   :  { %s578_s14 = smov 0  }
   0x2 LB: > { %s25_s15 = sadd.s32 1, %s548_s13  ;;  %p455_p0 = scmp.ge.s32.totalorder %s552_s14, 1  ;;  %s552_s14 = sphi %s578_s14, %s13_s14   ;;  %s548_s13 = sphi %s576_s13, %s631_s13   ;;  %s544_s12 = sphi %s574_s12, %s630_s12  }
   0x3   : > { %p27_p1 = scmp.ge.s32.totalorder %s25_s15, 2  ;;  %p183_p2 = scmp.lt.s32.totalorder %s552_s14, 3 }
   0x5   : > { %s633_s15 = smov (%p27_p1, %s25_s15), 0  ;;  %p184_p3 = pnand %p455_p0, %p183_p2 }
   0x6   : > { %p228_p4 = scmp.lt.s32.totalorder (!%p184_p3), %s544_s12, 1 }
   0x7   : > { %187 = sbr.rel (%p184_p3) target bundleno = 35 (0x23), region = 32 }
   0xc   : > { %s635_s12 = smov (!%p228_p4, %s544_s12), 1  ;;  %vm328_vm0 = vcmask 519168  }
   0xd   : > { %s592_s16 = sshll.u32 %s635_s12, 5  ;;  %s239_s19 = scalar_lea.vmem %s627_s1, %s635_s12 }
   0xe   : > { %s235_s22 = scalar_lea.vmem %s626_s0, %s592_s16  ;;  %s248_s25 = scalar_lea.vmem %s628_s2, %s592_s16  ;;  %v529_v0 = vld [vmem:[%s239_s19] ss:$0 sm:$0xff] }
   0xf   : > { %v468_v1 = vld [vmem:[%s235_s22] sm:$0xff]   ;;  %v499_v3 = vld [vmem:[%s235_s22 + $0x8] sm:$0xff]   ;;  %v500_v9 = vld [vmem:[%s235_s22 + $0x10] sm:$0xff]   ;;  %s258_s28 = scalar_lea.vmem %s629_s3, %s592_s16 }
  0x10   : > { %v484_v2 = vld [vmem:[%s248_s25] sm:$0xff]   ;;  %v469_v4 = vunpack.c.l.bf16 %v468_v1  ;;  %v470_v6 = vunpack.c.h.bf16 %v468_v1  ;;  %v502_v8 = vld [vmem:[%s248_s25 + $0x8] sm:$0xff]   ;;  %v503_v10 = vld [vmem:[%s248_s25 + $0x10] sm:$0xff]   ;;  %v473_v11 = vunpack.c.l.bf16 %v499_v3  ;;  %v474_v13 = vunpack.c.h.bf16 %v499_v3 }
  0x11   : > { %v485_v5 = vunpack.c.l.bf16 %v484_v2  ;;  %v486_v7 = vunpack.c.h.bf16 %v484_v2  ;;  %v489_v12 = vunpack.c.l.bf16 %v502_v8  ;;  %v490_v14 = vunpack.c.h.bf16 %v502_v8  ;;  %v501_v15 = vld [vmem:[%s235_s22 + $0x18] sm:$0xff]  }
  0x12   : > { %v296_v16 = vmul.f32 %v529_v0, %v469_v4  ;;  %v297_v17 = vmul.f32 %v529_v0, %v470_v6  ;;  %v477_v18 = vunpack.c.l.bf16 %v500_v9  ;;  %v493_v19 = vunpack.c.l.bf16 %v503_v10  ;;  %v504_v20 = vld [vmem:[%s248_s25 + $0x18] sm:$0xff]  }
  0x13   : > { %v298_v21 = vmul.f32 %v529_v0, %v473_v11  ;;  %v299_v22 = vmul.f32 %v529_v0, %v474_v13  ;;  %v478_v23 = vunpack.c.h.bf16 %v500_v9  ;;  %v494_v24 = vunpack.c.h.bf16 %v503_v10 }
  0x14   : > { %v304_v25 = vadd.f32 %v485_v5, %v296_v16  ;;  %v305_v26 = vadd.f32 %v486_v7, %v297_v17  ;;  %v300_v27 = vmul.f32 %v529_v0, %v477_v18  ;;  %v481_v28 = vunpack.c.l.bf16 %v501_v15 }
  0x15   : > { %v306_v29 = vadd.f32 %v489_v12, %v298_v21  ;;  %v307_v30 = vadd.f32 %v490_v14, %v299_v22  ;;  %v301_v31 = vmul.f32 %v529_v0, %v478_v23  ;;  %v497_v32 = vunpack.c.l.bf16 %v504_v20 }
  0x16   : > { %v312_v33 = vmax.f32 %v304_v25, 0.0  ;;  %v313_v34 = vmax.f32 %v305_v26, 0.0  ;;  %v308_v35 = vadd.f32 %v493_v19, %v300_v27  ;;  %v302_v36 = vmul.f32 %v529_v0, %v481_v28 }
  0x17   : > { %v314_v37 = vmax.f32 %v306_v29, 0.0  ;;  %v315_v38 = vmax.f32 %v307_v30, 0.0  ;;  %v309_v39 = vadd.f32 %v494_v24, %v301_v31  ;;  %v482_v40 = vunpack.c.h.bf16 %v501_v15 }
  0x18   : > { %v320_v41 = vpack.c.bf16 %v312_v33, %v312_v33  ;;  %v321_v42 = vpack.c.bf16 %v313_v34, %v313_v34  ;;  %v316_v43 = vmax.f32 %v308_v35, 0.0  ;;  %v310_v44 = vadd.f32 %v497_v32, %v302_v36 }
  0x19   : > { %v322_v45 = vpack.c.bf16 %v314_v37, %v314_v37  ;;  %v323_v46 = vpack.c.bf16 %v315_v38, %v315_v38  ;;  %v317_v47 = vmax.f32 %v309_v39, 0.0  ;;  %v498_v48 = vunpack.c.h.bf16 %v504_v20 }
  0x1a   : > { %329 = vst.msk [vmem:[%s258_s28] sm:$0xf] %vm328_vm0, %v320_v41  ;;  %v324_v49 = vpack.c.bf16 %v316_v43, %v316_v43  ;;  %v318_v50 = vmax.f32 %v310_v44, 0.0  ;;  %v303_v51 = vmul.f32 %v529_v0, %v482_v40 }
  0x1b   : > { %330 = vst.msk [vmem:[%s258_s28 + $0x4] sm:$0xf] %vm328_vm0, %v321_v42  ;;  %v325_v52 = vpack.c.bf16 %v317_v47, %v317_v47 }
  0x1c   : > { %331 = vst.msk [vmem:[%s258_s28 + $0x8] sm:$0xf] %vm328_vm0, %v322_v45  ;;  %v326_v53 = vpack.c.bf16 %v318_v50, %v318_v50  ;;  %v311_v54 = vadd.f32 %v498_v48, %v303_v51 }
  0x1d   : > { %332 = vst.msk [vmem:[%s258_s28 + $0xc] sm:$0xf] %vm328_vm0, %v323_v46 }
  0x1e   : > { %333 = vst.msk [vmem:[%s258_s28 + $0x10] sm:$0xf] %vm328_vm0, %v324_v49  ;;  %v319_v55 = vmax.f32 %v311_v54, 0.0 }
  0x1f   : > { %334 = vst.msk [vmem:[%s258_s28 + $0x14] sm:$0xf] %vm328_vm0, %v325_v52 }
  0x20   : > { %335 = vst.msk [vmem:[%s258_s28 + $0x18] sm:$0xf] %vm328_vm0, %v326_v53  ;;  %v327_v56 = vpack.c.bf16 %v319_v55, %v319_v55 }
  0x22   : > { %336 = vst.msk [vmem:[%s258_s28 + $0x1c] sm:$0xf] %vm328_vm0, %v327_v56 }
  0x23 PF: > { %s13_s14 = sadd.s32 1, %s552_s14   ;;  %s630_s12 = smov %s548_s13 }
  0x24   : > { %p10_p5 = scmp.ge.s32.totalorder %s13_s14, 4   ;;  %s631_s13 = smov %s633_s15 }
  0x26   :  { %12 = sbr.rel (!%p10_p5) target bundleno = 2 (0x2), region = 68 }

// kernel: resnext_forward.34
= control target key start
LH: loop header
LB: loop body
LE: loop exit
PB: predicated region body
PF: predicated region fallthrough
CT: control target
= control target key end

     0   :  { %9 = vsyncpa [#allocation5], 0  ;;  %s1437_s0 = inlined_call_operand.vmem [shape: bf16[128,384], index: 0, kind: input, shape index: {}]   ;;  %s1438_s1 = inlined_call_operand.vmem [shape: bf16[384,128], index: 1, kind: input, shape index: {}]   ;;  %s1439_s2 = inlined_call_operand.hbm [shape: f32[1,128], index: 2, kind: input, shape index: {}]   ;;  %s1440_s3 = inlined_call_operand.hbm [shape: f32[1,128], index: 3, kind: input, shape index: {}]   ;;  %s1441_s4 = inlined_call_operand.vmem [shape: bf16[128,128], index: 4, kind: output, shape index: {}]  }
   0x1   :  { %10 = vsyncpa [#allocation7], 0  ;;  %s1255_s15 = smov 0   ;;  %s1257_s16 = smov 0  }
   0x2   :  { %s1259_s17 = smov 0   ;;  %s1261_s18 = smov 0  }
   0x3   :  { %s1263_s19 = smov 0  }
   0x4 LB: > { %s885_s20 = sadd.s32 4294967295, %s1225_s19   ;;  %s28_s21 = sadd.s32 1, %s1221_s18  ;;  %s1225_s19 = sphi %s1263_s19, %s16_s19   ;;  %s1221_s18 = sphi %s1261_s18, %s1448_s18   ;;  %s1217_s17 = sphi %s1259_s17, %s1447_s17   ;;  %s1213_s16 = sphi %s1257_s16, %s1446_s16   ;;  %s1209_s15 = sphi %s1255_s15, %s1445_s15  }
   0x5   : > { %p29_p0 = scmp.ge.s32.totalorder %s28_s21, 3  ;;  %s44_s22 = sadd.s32 1, %s1213_s16 }
   0x6   : > { %p51_p1 = scmp.ne.s32.totalorder %s1213_s16, %s1209_s15  ;;  %p52_p2 = scmp.eq.s32.totalorder %s1225_s19, 0 }
   0x7   : > { %s1450_s21 = smov (%p29_p0, %s28_s21), 0  ;;  %p886_p4 = scmp.ge.s32.totalorder %s1225_s19, 1 }
   0x8   : > { %p1288_p3 = por %p52_p2, %p51_p1  ;;  %s40_s24 = ssub.s32 %s1221_s18, %s1450_s21 }
   0x9   : > { %p176_p5 = scmp.lt.s32.totalorder %s1225_s19, 4  ;;  %p42_p6 = scmp.eq.s32.totalorder %s40_s24, 0 }
   0xa   : > { %p1300_p8 = scmp.eq.s32.totalorder %s885_s20, 0  ;;  %s189_s30 = sshll.u32 %s1439_s2, 4  ;;  %s190_s30 = int_to_ptr.hbm [resolvable:$true] %s189_s30 }
   0xb   : > { %p1296_p7 = pnand %p886_p4, %p176_p5  ;;  %s1227_s5 = smov [#allocation4]  }
   0xc   : > { %s1305_s27 = scalar_select %p42_p6, %s1213_s16, %s44_s22  }
   0xd   : > { %p1063_p9 = pneg %p1296_p7  ;;  %s191_s6 = sshll.u32 %s1227_s5, 4  ;;  %s192_s6 = int_to_ptr.vmem [resolvable:$true] %s191_s6 }
   0xe   : > { %s202_s9 = sshll.u32 %s1440_s3, 4  ;;  %s1228_s10 = smov [#allocation6]   ;;  %s203_s9 = int_to_ptr.hbm [resolvable:$true] %s202_s9 }
   0xf   : > { %p1064_p10 = pnand %p1300_p8, %p1063_p9  ;;  %s204_s11 = sshll.u32 %s1228_s10, 4  ;;  %s205_s11 = int_to_ptr.vmem [resolvable:$true] %s204_s11 }
  0x10   : > { %p889_p11 = scmp.ge.s32.totalorder %s1225_s19, 3 }
  0x11   : > { %1066 = dma.hbm_to_vmem [thread:$0]  (!%p1064_p10), %s190_s30, 16, %s192_s6, [#allocation5]  }
  0x12   : > { %1069 = dma.hbm_to_vmem [thread:$0]  (!%p1064_p10), %s203_s9, 16, %s205_s11, [#allocation7]  }
  0x13   : > { %211 = sbr.rel (%p889_p11) target bundleno = 44 (0x2c), region = 24 }
  0x18   : > { %214 = sbr.rel (!%p1288_p3) target bundleno = 44 (0x2c), region = 28  ;;  %s216_s12 = sand.u32 (%p1288_p3), 1, %s1213_s16  }
  0x19   : > { %s891_s13 = sshll.u32 (%p1288_p3), %s1221_s18, 2  ;;  %s890_s14 = sshll.u32 (%p1288_p3), %s216_s12, 6 }
  0x1a   : > { %s1325_s24 = scalar_lea.vmem (%p1288_p3), %s1437_s0, %s891_s13  ;;  %s218_s23 = scalar_lea.vmem (%p1288_p3), [#allocation3], %s890_s14 }
  0x1b   : > { %v240_v0 = vld [vmem:[%s1325_s24] sm:$0xf] (%p1288_p3)  ;;  %v242_v1 = vld [vmem:[%s1325_s24 + $0xc] sm:$0xf] (%p1288_p3)  ;;  %v244_v2 = vld [vmem:[%s1325_s24 + $0x18] sm:$0xf] (%p1288_p3) }
  0x1c   : > { %241 = vst [vmem:[%s218_s23] sm:$0xf] (%p1288_p3), %v240_v0  ;;  %v246_v3 = vld [vmem:[%s1325_s24 + $0x24] sm:$0xf] (%p1288_p3)  ;;  %v248_v4 = vld [vmem:[%s1325_s24 + $0x30] sm:$0xf] (%p1288_p3) }
  0x1d   : > { %243 = vst [vmem:[%s218_s23 + $0x4] sm:$0xf] %v242_v1  ;;  %v250_v5 = vld [vmem:[%s1325_s24 + $0x3c] sm:$0xf]  ;;  %v252_v6 = vld [vmem:[%s1325_s24 + $0x48] sm:$0xf] }
  0x1e   : > { %245 = vst [vmem:[%s218_s23 + $0x8] sm:$0xf] %v244_v2  ;;  %v254_v7 = vld [vmem:[%s1325_s24 + $0x54] sm:$0xf]  ;;  %v256_v8 = vld [vmem:[%s1325_s24 + $0x60] sm:$0xf] }
  0x1f   : > { %247 = vst [vmem:[%s218_s23 + $0xc] sm:$0xf] %v246_v3  ;;  %v258_v9 = vld [vmem:[%s1325_s24 + $0x6c] sm:$0xf]  ;;  %v260_v10 = vld [vmem:[%s1325_s24 + $0x78] sm:$0xf] }
  0x20   : > { %249 = vst [vmem:[%s218_s23 + $0x10] sm:$0xf] %v248_v4  ;;  %v262_v11 = vld [vmem:[%s1325_s24 + $0x84] sm:$0xf]  ;;  %v264_v12 = vld [vmem:[%s1325_s24 + $0x90] sm:$0xf] }
  0x21   : > { %251 = vst [vmem:[%s218_s23 + $0x14] sm:$0xf] %v250_v5  ;;  %v266_v13 = vld [vmem:[%s1325_s24 + $0x9c] sm:$0xf]  ;;  %v268_v14 = vld [vmem:[%s1325_s24 + $0xa8] sm:$0xf] }
  0x22   : > { %253 = vst [vmem:[%s218_s23 + $0x18] sm:$0xf] %v252_v6  ;;  %v270_v15 = vld [vmem:[%s1325_s24 + $0xb4] sm:$0xf] }
  0x23   : > { %255 = vst [vmem:[%s218_s23 + $0x1c] sm:$0xf] %v254_v7 }
  0x24   : > { %257 = vst [vmem:[%s218_s23 + $0x20] sm:$0xf] %v256_v8 }
  0x25   : > { %259 = vst [vmem:[%s218_s23 + $0x24] sm:$0xf] %v258_v9 }
  0x26   : > { %261 = vst [vmem:[%s218_s23 + $0x28] sm:$0xf] %v260_v10 }
  0x27   : > { %263 = vst [vmem:[%s218_s23 + $0x2c] sm:$0xf] %v262_v11 }
  0x28   : > { %265 = vst [vmem:[%s218_s23 + $0x30] sm:$0xf] %v264_v12 }
  0x29   : > { %267 = vst [vmem:[%s218_s23 + $0x34] sm:$0xf] %v266_v13 }
  0x2a   : > { %269 = vst [vmem:[%s218_s23 + $0x38] sm:$0xf] %v268_v14 }
  0x2b   : > { %271 = vst [vmem:[%s218_s23 + $0x3c] sm:$0xf] %v270_v15 }
  0x2c PF: > { %342 = sbr.rel (%p1296_p7) target bundleno = 290 (0x122), region = 73  ;;  %s345_s28 = sand.u32 (!%p1296_p7), 1, %s1209_s15  }
  0x2d   : > { %s893_s29 = sshll.u32 (!%p1296_p7), %s345_s28, 6 }
  0x2e   : > { %s1346_s30 = scalar_lea.vmem (!%p1296_p7), [#allocation3], %s893_s29 }
  0x31   : > { %1200 = dma.done.wait (%p1300_p8), [#allocation5], 16  }
  0x32   : > { %1202 = vsyncadd (%p1300_p8), [#allocation5], 4294967280 }
  0x33   : > { %1204 = dma.done.wait (%p1300_p8), [#allocation7], 16  }
  0x34   : > { %1206 = vsyncadd (%p1300_p8), [#allocation7], 4294967280  ;;  %s896_s25 = sshll.u32 %s1217_s17, 4  ;;  %p898_p13 = scmp.ne.s32.totalorder %s1217_s17, 0 }
  0x35   : > { %p393_p12 = scmp.lt.s32.totalorder %s896_s25, 47 }
  0x36   : > { %413 = sbr.rel (%p898_p13) target bundleno = 76 (0x4c), region = 89 }
  0x37   : > { %s1452_s25 = smov (!%p393_p12, %s896_s25), 47 }
  0x38   : > { %s897_s5 = sshll.u32 %s1452_s25, 2 }
  0x39   : > { %s1360_s7 = scalar_lea.vmem %s1438_s1, %s897_s5 }
  0x3b   : > { %v1229_v16 = vmov 0.0  }
  0x3c   : > { %414 = vst [vmem:[#allocation2 + $0x30] sm:$0xff] %v1229_v16 }
  0x3d   : > { %415 = vst [vmem:[#allocation2] sm:$0xff] %v1229_v16 }
  0x3e   : > { %416 = vst [vmem:[#allocation2 + $0x58] sm:$0xff] %v1229_v16 }
  0x3f   : > { %417 = vst [vmem:[#allocation2 + $0x18] sm:$0xff] %v1229_v16 }
  0x40   : > { %418 = vst [vmem:[#allocation2 + $0x50] sm:$0xff] %v1229_v16 }
  0x41   : > { %419 = vst [vmem:[#allocation2 + $0x68] sm:$0xff] %v1229_v16 }
  0x42   : > { %420 = vst [vmem:[#allocation2 + $0x8] sm:$0xff] %v1229_v16 }
  0x43   : > { %421 = vst [vmem:[#allocation2 + $0x48] sm:$0xff] %v1229_v16 }
  0x44   : > { %422 = vst [vmem:[#allocation2 + $0x40] sm:$0xff] %v1229_v16 }
  0x45   : > { %423 = vst [vmem:[#allocation2 + $0x20] sm:$0xff] %v1229_v16 }
  0x46   : > { %424 = vst [vmem:[#allocation2 + $0x10] sm:$0xff] %v1229_v16 }
  0x47   : > { %425 = vst [vmem:[#allocation2 + $0x38] sm:$0xff] %v1229_v16 }
  0x48   : > { %426 = vst [vmem:[#allocation2 + $0x60] sm:$0xff] %v1229_v16 }
  0x49   : > { %427 = vst [vmem:[#allocation2 + $0x70] sm:$0xff] %v1229_v16 }
  0x4a   : > { %428 = vst [vmem:[#allocation2 + $0x78] sm:$0xff] %v1229_v16 }
  0x4b   : > { %429 = vst [vmem:[#allocation2 + $0x28] sm:$0xff] %v1229_v16 }
  0x4c PF: > { %v983_v17 = vld [vmem:[%s1360_s7 + $0x38] sm:$0xff]  ;;  %v982_v18 = vld [vmem:[%s1360_s7 + $0x30] sm:$0xff]  ;;  %v981_v19 = vld [vmem:[%s1360_s7 + $0x28] sm:$0xff]  ;;  %p963_p0 = scmp.ne.s32.totalorder %s1217_s17, 2 }
  0x4d   : > { %574 = vmatpush.bf16.msra.mxu0 %v983_v17  ;;  %1031 = vmatpush.bf16.msra.mxu1 %v983_v17  ;;  %v980_v20 = vld [vmem:[%s1360_s7 + $0x20] sm:$0xff]  ;;  %v979_v21 = vld [vmem:[%s1360_s7 + $0x18] sm:$0xff]  ;;  %v978_v22 = vld [vmem:[%s1360_s7 + $0x10] sm:$0xff] }
  0x4e   : > { %1032 = vmatpush.bf16.msra.mxu2 %v983_v17  ;;  %1033 = vmatpush.bf16.msra.mxu3 %v983_v17  ;;  %v977_v23 = vld [vmem:[%s1360_s7 + $0x8] sm:$0xff]  ;;  %v976_v24 = vld [vmem:[%s1360_s7] sm:$0xff]  ;;  %v970_v26 = vld [vmem:[%s1346_s30 + $0x10] sm:$0xff] }
  0x4f   : > { %v968_v25 = vld [vmem:[%s1346_s30] sm:$0xff]  ;;  %v974_v28 = vld [vmem:[%s1346_s30 + $0x30] sm:$0xff]  ;;  %v969_v29 = vld [vmem:[%s1346_s30 + $0x8] sm:$0xff] }
  0x50   : > { %v972_v27 = vld [vmem:[%s1346_s30 + $0x20] sm:$0xff]  ;;  %v971_v30 = vld [vmem:[%s1346_s30 + $0x18] sm:$0xff]  ;;  %v973_v31 = vld [vmem:[%s1346_s30 + $0x28] sm:$0xff] }
  0x51   : > { %575 = vmatpush.bf16.msra.mxu0 %v982_v18  ;;  %1034 = vmatpush.bf16.msra.mxu1 %v982_v18  ;;  %v975_v32 = vld [vmem:[%s1346_s30 + $0x38] sm:$0xff]  ;;  %v430_v33 = vld [vmem:[#allocation2 + $0x30] sm:$0xff]  ;;  %v438_v39 = vld [vmem:[#allocation2 + $0x40] sm:$0xff] }
  0x52   : > { %1035 = vmatpush.bf16.msra.mxu2 %v982_v18  ;;  %1036 = vmatpush.bf16.msra.mxu3 %v982_v18  ;;  %v434_v34 = vld [vmem:[#allocation2 + $0x50] sm:$0xff]  ;;  %v442_v40 = vld [vmem:[#allocation2 + $0x60] sm:$0xff]  ;;  %v435_v42 = vld [vmem:[#allocation2 + $0x68] sm:$0xff] }
  0x53   : > { %v431_v41 = vld [vmem:[#allocation2] sm:$0xff]  ;;  %v443_v52 = vld [vmem:[#allocation2 + $0x70] sm:$0xff]  ;;  %v432_v53 = vld [vmem:[#allocation2 + $0x58] sm:$0xff] }
  0x54   : > { %v439_v51 = vld [vmem:[#allocation2 + $0x20] sm:$0xff]  ;;  %v436_v54 = vld [vmem:[#allocation2 + $0x8] sm:$0xff]  ;;  %v440_v63 = vld [vmem:[#allocation2 + $0x10] sm:$0xff] }
  0x55   : > { %576 = vmatpush.bf16.msra.mxu0 %v981_v19  ;;  %1037 = vmatpush.bf16.msra.mxu1 %v981_v19  ;;  %v444_v0 = vld [vmem:[#allocation2 + $0x78] sm:$0xff]  ;;  %v437_v2 = vld [vmem:[#allocation2 + $0x48] sm:$0xff] }
  0x56   : > { %1038 = vmatpush.bf16.msra.mxu2 %v981_v19  ;;  %1039 = vmatpush.bf16.msra.mxu3 %v981_v19  ;;  %v433_v1 = vld [vmem:[#allocation2 + $0x18] sm:$0xff]  ;;  %v445_v12 = vld [vmem:[#allocation2 + $0x28] sm:$0xff] }
  0x57   : > { %v441_v11 = vld [vmem:[#allocation2 + $0x38] sm:$0xff] }
  0x59   : > { %577 = vmatpush.bf16.msra.mxu0 %v980_v20  ;;  %1040 = vmatpush.bf16.msra.mxu1 %v980_v20 }
  0x5a   : > { %1041 = vmatpush.bf16.msra.mxu2 %v980_v20  ;;  %1042 = vmatpush.bf16.msra.mxu3 %v980_v20 }
  0x5d   : > { %578 = vmatpush.bf16.msra.mxu0 %v979_v21  ;;  %1043 = vmatpush.bf16.msra.mxu1 %v979_v21 }
  0x5e   : > { %1044 = vmatpush.bf16.msra.mxu2 %v979_v21  ;;  %1045 = vmatpush.bf16.msra.mxu3 %v979_v21 }
  0x61   : > { %579 = vmatpush.bf16.msra.mxu0 %v978_v22  ;;  %1046 = vmatpush.bf16.msra.mxu1 %v978_v22 }
  0x62   : > { %1047 = vmatpush.bf16.msra.mxu2 %v978_v22  ;;  %1048 = vmatpush.bf16.msra.mxu3 %v978_v22 }
  0x65   : > { %580 = vmatpush.bf16.msra.mxu0 %v977_v23  ;;  %1049 = vmatpush.bf16.msra.mxu1 %v977_v23 }
  0x66   : > { %1050 = vmatpush.bf16.msra.mxu2 %v977_v23  ;;  %1051 = vmatpush.bf16.msra.mxu3 %v977_v23 }
  0x69   : > { %581 = vmatpush.bf16.msra.mxu0 %v976_v24  ;;  %1052 = vmatpush.bf16.msra.mxu1 %v976_v24 }
  0x6a   : > { %1053 = vmatpush.bf16.msra.mxu2 %v976_v24  ;;  %1054 = vmatpush.bf16.msra.mxu3 %v976_v24 }
  0x6c   : > { %582 = vmatmul.bf16.vlgmr.msra.gmra.mxu0 %v968_v25  ;;  %592 = vmatmul.bf16.vlgmr.msra.gmra.mxu1 %v970_v26 }
  0x6d   : > { %602 = vmatmul.bf16.vlgmr.msra.gmra.mxu2 %v972_v27  ;;  %612 = vmatmul.bf16.vlgmr.msra.gmra.mxu3 %v974_v28 }
  0x7c   : > { %587 = vmatmul.bf16.gmra.mxu0 %v969_v29  ;;  %597 = vmatmul.bf16.gmra.mxu1 %v971_v30 }
  0x7d   : > { %607 = vmatmul.bf16.gmra.mxu2 %v973_v31  ;;  %617 = vmatmul.bf16.gmra.mxu3 %v975_v32 }
  0xe9   : > { %v583_v35 = vpop.f32.mrf.mxu0  ;;  %v593_v36 = vpop.f32.mrf.mxu1 }
  0xea   : > { %v623_v37 = vadd.f32 %v583_v35, %v430_v33  ;;  %v627_v38 = vadd.f32 %v593_v36, %v434_v34 }
  0xec   : > { %639 = vst [vmem:[#allocation2 + $0x30] sm:$0xff] %v623_v37 }
  0xed   : > { %643 = vst [vmem:[#allocation2 + $0x50] sm:$0xff] %v627_v38 }
  0xf0   : > { %v603_v43 = vpop.f32.mrf.mxu2  ;;  %v613_v44 = vpop.f32.mrf.mxu3 }
  0xf1   : > { %v631_v45 = vadd.f32 %v603_v43, %v438_v39  ;;  %v635_v46 = vadd.f32 %v613_v44, %v442_v40  ;;  %v585_v47 = vpop.f32.mrf.mxu0  ;;  %v595_v48 = vpop.f32.mrf.mxu1 }
  0xf2   : > { %v624_v49 = vadd.f32 %v585_v47, %v431_v41  ;;  %v628_v50 = vadd.f32 %v595_v48, %v435_v42 }
  0xf3   : > { %647 = vst [vmem:[#allocation2 + $0x40] sm:$0xff] %v631_v45 }
  0xf4   : > { %651 = vst [vmem:[#allocation2 + $0x60] sm:$0xff] %v635_v46 }
  0xf5   : > { %640 = vst [vmem:[#allocation2] sm:$0xff] %v624_v49 }
  0xf6   : > { %644 = vst [vmem:[#allocation2 + $0x68] sm:$0xff] %v628_v50 }
  0xf8   : > { %v605_v55 = vpop.f32.mrf.mxu2  ;;  %v615_v56 = vpop.f32.mrf.mxu3 }
  0xf9   : > { %v632_v57 = vadd.f32 %v605_v55, %v439_v51  ;;  %v636_v58 = vadd.f32 %v615_v56, %v443_v52  ;;  %v588_v59 = vpop.f32.mrf.mxu0  ;;  %v598_v60 = vpop.f32.mrf.mxu1 }
  0xfa   : > { %v625_v61 = vadd.f32 %v588_v59, %v432_v53  ;;  %v629_v62 = vadd.f32 %v598_v60, %v436_v54 }
  0xfb   : > { %648 = vst [vmem:[#allocation2 + $0x20] sm:$0xff] %v632_v57 }
  0xfc   : > { %652 = vst [vmem:[#allocation2 + $0x70] sm:$0xff] %v636_v58 }
  0xfd   : > { %641 = vst [vmem:[#allocation2 + $0x58] sm:$0xff] %v625_v61 }
  0xfe   : > { %645 = vst [vmem:[#allocation2 + $0x8] sm:$0xff] %v629_v62 }
 0x100   : > { %v608_v3 = vpop.f32.mrf.mxu2  ;;  %v618_v4 = vpop.f32.mrf.mxu3 }
 0x101   : > { %v633_v5 = vadd.f32 %v608_v3, %v440_v63  ;;  %v637_v6 = vadd.f32 %v618_v4, %v444_v0  ;;  %v590_v7 = vpop.f32.mrf.mxu0  ;;  %v600_v8 = vpop.f32.mrf.mxu1 }
 0x102   : > { %v626_v9 = vadd.f32 %v590_v7, %v433_v1  ;;  %v630_v10 = vadd.f32 %v600_v8, %v437_v2 }
 0x103   : > { %649 = vst [vmem:[#allocation2 + $0x10] sm:$0xff] %v633_v5 }
 0x104   : > { %653 = vst [vmem:[#allocation2 + $0x78] sm:$0xff] %v637_v6 }
 0x105   : > { %642 = vst [vmem:[#allocation2 + $0x18] sm:$0xff] %v626_v9 }
 0x106   : > { %646 = vst [vmem:[#allocation2 + $0x48] sm:$0xff] %v630_v10 }
 0x108   : > { %v610_v13 = vpop.f32.mrf.mxu2  ;;  %v620_v14 = vpop.f32.mrf.mxu3  ;;  %658 = sbr.rel (%p963_p0) target bundleno = 290 (0x122), region = 93 }
 0x109   : > { %v634_v15 = vadd.f32 %v610_v13, %v441_v11  ;;  %v638_v16 = vadd.f32 %v620_v14, %v445_v12 }
 0x10b   : > { %650 = vst [vmem:[#allocation2 + $0x38] sm:$0xff] %v634_v15 }
 0x10c   : > { %654 = vst [vmem:[#allocation2 + $0x28] sm:$0xff] %v638_v16 }
 0x10d   : > { %v659_v17 = vld [vmem:[#allocation2 + $0x30] sm:$0xff]  ;;  %v660_v18 = vld [vmem:[#allocation2] sm:$0xff]  ;;  %v661_v21 = vld [vmem:[#allocation2 + $0x58] sm:$0xff] }
 0x10e   : > { %v1117_v19 = vld [vmem:[#allocation4] ss:$0 sm:$0xff]  ;;  %v1380_v20 = vld [vmem:[#allocation6] ss:$0 sm:$0xff]  ;;  %v662_v22 = vld [vmem:[#allocation2 + $0x18] sm:$0xff] }
 0x10f   : > { %v663_v23 = vld [vmem:[#allocation2 + $0x50] sm:$0xff]  ;;  %v679_v24 = vmul.f32 %v1117_v19, %v659_v17  ;;  %v680_v25 = vmul.f32 %v1117_v19, %v660_v18  ;;  %v681_v26 = vmul.f32 %v1117_v19, %v661_v21  ;;  %v682_v27 = vmul.f32 %v1117_v19, %v662_v22  ;;  %v664_v28 = vld [vmem:[#allocation2 + $0x68] sm:$0xff]  ;;  %v667_v43 = vld [vmem:[#allocation2 + $0x40] sm:$0xff] }
 0x110   : > { %v665_v29 = vld [vmem:[#allocation2 + $0x8] sm:$0xff]  ;;  %v683_v31 = vmul.f32 %v1117_v19, %v663_v23  ;;  %v684_v32 = vmul.f32 %v1117_v19, %v664_v28  ;;  %v668_v44 = vld [vmem:[#allocation2 + $0x20] sm:$0xff]  ;;  %v669_v49 = vld [vmem:[#allocation2 + $0x10] sm:$0xff]  ;;  %v687_v59 = vmul.f32 %v1117_v19, %v667_v43 }
 0x111   : > { %v666_v30 = vld [vmem:[#allocation2 + $0x48] sm:$0xff]  ;;  %v685_v33 = vmul.f32 %v1117_v19, %v665_v29  ;;  %v699_v35 = vadd.f32 %v1380_v20, %v679_v24  ;;  %v700_v36 = vadd.f32 %v1380_v20, %v680_v25  ;;  %v701_v37 = vadd.f32 %v1380_v20, %v681_v26  ;;  %v671_v55 = vld [vmem:[#allocation2 + $0x60] sm:$0xff]  ;;  %v672_v56 = vld [vmem:[#allocation2 + $0x70] sm:$0xff] }
 0x112   : > { %v686_v34 = vmul.f32 %v1117_v19, %v666_v30  ;;  %v702_v38 = vadd.f32 %v1380_v20, %v682_v27  ;;  %v703_v39 = vadd.f32 %v1380_v20, %v683_v31  ;;  %v704_v40 = vadd.f32 %v1380_v20, %v684_v32  ;;  %v670_v50 = vld [vmem:[#allocation2 + $0x38] sm:$0xff] }
 0x113   : > { %v705_v41 = vadd.f32 %v1380_v20, %v685_v33  ;;  %v715_v45 = vmax.f32 %v699_v35, 0.0  ;;  %v716_v46 = vmax.f32 %v700_v36, 0.0  ;;  %v717_v47 = vmax.f32 %v701_v37, 0.0  ;;  %v673_v61 = vld [vmem:[#allocation2 + $0x78] sm:$0xff]  ;;  %v674_v62 = vld [vmem:[#allocation2 + $0x28] sm:$0xff] }
 0x114   : > { %v706_v42 = vadd.f32 %v1380_v20, %v686_v34  ;;  %v718_v48 = vmax.f32 %v702_v38, 0.0  ;;  %v719_v51 = vmax.f32 %v703_v39, 0.0  ;;  %v720_v52 = vmax.f32 %v704_v40, 0.0 }
 0x115   : > { %v721_v53 = vmax.f32 %v705_v41, 0.0  ;;  %v987_v57 = vpack.c.bf16 %v716_v46, %v715_v45  ;;  %v688_v60 = vmul.f32 %v1117_v19, %v668_v44  ;;  %v689_v1 = vmul.f32 %v1117_v19, %v669_v49 }
 0x116   : > { %v722_v54 = vmax.f32 %v706_v42, 0.0  ;;  %v992_v58 = vpack.c.bf16 %v718_v48, %v717_v47  ;;  %v997_v63 = vpack.c.bf16 %v720_v52, %v719_v51  ;;  %v690_v2 = vmul.f32 %v1117_v19, %v670_v50 }
 0x117   : > { %988 = vst [vmem:[%s1441_s4] sm:$0xff] %v987_v57   ;;  %v707_v3 = vadd.f32 %v1380_v20, %v687_v59  ;;  %v708_v4 = vadd.f32 %v1380_v20, %v688_v60  ;;  %v691_v5 = vmul.f32 %v1117_v19, %v671_v55  ;;  %v692_v6 = vmul.f32 %v1117_v19, %v672_v56 }
 0x118   : > { %v1002_v0 = vpack.c.bf16 %v722_v54, %v721_v53  ;;  %1024 = vst [vmem:[%s1441_s4 + $0x8] sm:$0xff] %v992_v58   ;;  %v709_v7 = vadd.f32 %v1380_v20, %v689_v1  ;;  %v710_v8 = vadd.f32 %v1380_v20, %v690_v2  ;;  %v693_v9 = vmul.f32 %v1117_v19, %v673_v61 }
 0x119   : > { %v694_v10 = vmul.f32 %v1117_v19, %v674_v62  ;;  %1025 = vst [vmem:[%s1441_s4 + $0x10] sm:$0xff] %v997_v63   ;;  %v723_v11 = vmax.f32 %v707_v3, 0.0  ;;  %v724_v12 = vmax.f32 %v708_v4, 0.0  ;;  %v711_v13 = vadd.f32 %v1380_v20, %v691_v5 }
 0x11a   : > { %v712_v14 = vadd.f32 %v1380_v20, %v692_v6  ;;  %1026 = vst [vmem:[%s1441_s4 + $0x18] sm:$0xff] %v1002_v0   ;;  %v725_v15 = vmax.f32 %v709_v7, 0.0  ;;  %v726_v16 = vmax.f32 %v710_v8, 0.0  ;;  %v713_v17 = vadd.f32 %v1380_v20, %v693_v9 }
 0x11b   : > { %v714_v18 = vadd.f32 %v1380_v20, %v694_v10  ;;  %v1007_v19 = vpack.c.bf16 %v724_v12, %v723_v11  ;;  %v727_v21 = vmax.f32 %v711_v13, 0.0 }
 0x11c   : > { %v728_v22 = vmax.f32 %v712_v14, 0.0  ;;  %v1012_v23 = vpack.c.bf16 %v726_v16, %v725_v15  ;;  %v729_v24 = vmax.f32 %v713_v17, 0.0 }
 0x11d   : > { %v730_v25 = vmax.f32 %v714_v18, 0.0  ;;  %1027 = vst [vmem:[%s1441_s4 + $0x20] sm:$0xff] %v1007_v19  }
 0x11e   : > { %v1017_v26 = vpack.c.bf16 %v728_v22, %v727_v21  ;;  %1028 = vst [vmem:[%s1441_s4 + $0x28] sm:$0xff] %v1012_v23  }
 0x11f   : > { %v1022_v27 = vpack.c.bf16 %v730_v25, %v729_v24 }
 0x120   : > { %1029 = vst [vmem:[%s1441_s4 + $0x30] sm:$0xff] %v1017_v26  }
 0x121   : > { %1030 = vst [vmem:[%s1441_s4 + $0x38] sm:$0xff] %v1022_v27  }
 0x122 PF: > { %s16_s19 = sadd.s32 1, %s1225_s19   ;;  %s1445_s15 = smov %s1213_s16 }
 0x123   : > { %p13_p1 = scmp.ge.s32.totalorder %s16_s19, 5   ;;  %s1446_s16 = smov %s1305_s27 }
 0x124   : > { %s1447_s17 = smov %s1221_s18  ;;  %s1448_s18 = smov %s1450_s21 }
 0x125   :  { %15 = sbr.rel (!%p13_p1) target bundleno = 4 (0x4), region = 134 }
 0x12a   :  { %791 = vsyncpa [#allocation5], 1 }
 0x12b   :  { %793 = vsyncpa [#allocation5 + $0x1], 1 }
 0x12c   :  { %794 = vsyncpa [#allocation7], 1 }

// kernel: resnext_forward.39
= control target key start
LH: loop header
LB: loop body
LE: loop exit
PB: predicated region body
PF: predicated region fallthrough
CT: control target
= control target key end

     0   :  { %9 = vsyncpa [#allocation4], 0  ;;  %s751_s0 = inlined_call_operand.vmem [shape: bf16[128,128], index: 0, kind: input, shape index: {}]   ;;  %s752_s1 = inlined_call_operand.vmem [shape: bf16[128,128], index: 1, kind: input, shape index: {}]   ;;  %s753_s2 = inlined_call_operand.hbm [shape: f32[1,128], index: 2, kind: input, shape index: {}]   ;;  %s754_s3 = inlined_call_operand.hbm [shape: f32[1,128], index: 3, kind: input, shape index: {}]   ;;  %s755_s4 = inlined_call_operand.vmem [shape: bf16[128,128], index: 4, kind: output, shape index: {}]  }
   0x1   :  { %s20_s17 = sshll.u32 %s753_s2, 4  ;;  %s21_s17 = int_to_ptr.hbm [resolvable:$true] %s20_s17 }
   0x2   :  { %10 = vsyncpa [#allocation6], 0  ;;  %s610_s18 = smov [#allocation3]   ;;  %s31_s22 = sshll.u32 %s754_s3, 4  ;;  %s32_s22 = int_to_ptr.hbm [resolvable:$true] %s31_s22 }
   0x3   :  { %s22_s19 = sshll.u32 %s610_s18, 4  ;;  %s611_s23 = smov [#allocation5]   ;;  %s23_s19 = int_to_ptr.vmem [resolvable:$true] %s22_s19 }
   0x4   :  { %25 = dma.hbm_to_vmem [thread:$0]  %s21_s17, 16, %s23_s19, [#allocation4]  }
   0x5   :  { %s33_s24 = sshll.u32 %s611_s23, 4  ;;  %s34_s24 = int_to_ptr.vmem [resolvable:$true] %s33_s24 }
   0x6   :  { %36 = dma.hbm_to_vmem [thread:$0]  %s32_s22, 16, %s34_s24, [#allocation6]  }
   0x7   :  { %606 = dma.done.wait [#allocation4], 16  }
   0x8   :  { %607 = vsyncadd [#allocation4], 4294967280 }
   0x9   :  { %608 = dma.done.wait [#allocation6], 16  }
   0xa   :  { %609 = vsyncadd [#allocation6], 4294967280  ;;  %v482_v0 = vld [vmem:[%s752_s1 + $0x38] sm:$0xff]  ;;  %v481_v1 = vld [vmem:[%s752_s1 + $0x30] sm:$0xff] }
   0xb   :  { %209 = vmatpush.bf16.msra.mxu0 %v482_v0  ;;  %530 = vmatpush.bf16.msra.mxu1 %v482_v0  ;;  %v480_v2 = vld [vmem:[%s752_s1 + $0x28] sm:$0xff]  ;;  %v479_v3 = vld [vmem:[%s752_s1 + $0x20] sm:$0xff]  ;;  %v478_v4 = vld [vmem:[%s752_s1 + $0x18] sm:$0xff] }
   0xc   :  { %531 = vmatpush.bf16.msra.mxu2 %v482_v0  ;;  %532 = vmatpush.bf16.msra.mxu3 %v482_v0  ;;  %v477_v5 = vld [vmem:[%s752_s1 + $0x10] sm:$0xff]  ;;  %v476_v6 = vld [vmem:[%s752_s1 + $0x8] sm:$0xff]  ;;  %v475_v7 = vld [vmem:[%s752_s1] sm:$0xff] }
   0xd   :  { %v467_v8 = vld [vmem:[%s751_s0] sm:$0xff]  ;;  %v469_v9 = vld [vmem:[%s751_s0 + $0x10] sm:$0xff]  ;;  %v468_v12 = vld [vmem:[%s751_s0 + $0x8] sm:$0xff] }
   0xe   :  { %v471_v10 = vld [vmem:[%s751_s0 + $0x20] sm:$0xff]  ;;  %v473_v11 = vld [vmem:[%s751_s0 + $0x30] sm:$0xff]  ;;  %v470_v13 = vld [vmem:[%s751_s0 + $0x18] sm:$0xff] }
   0xf   :  { %210 = vmatpush.bf16.msra.mxu0 %v481_v1  ;;  %533 = vmatpush.bf16.msra.mxu1 %v481_v1  ;;  %v472_v14 = vld [vmem:[%s751_s0 + $0x28] sm:$0xff]  ;;  %v474_v15 = vld [vmem:[%s751_s0 + $0x38] sm:$0xff]  ;;  %v691_v18 = vld [vmem:[#allocation3] ss:$0 sm:$0xff] }
  0x10   :  { %534 = vmatpush.bf16.msra.mxu2 %v481_v1  ;;  %535 = vmatpush.bf16.msra.mxu3 %v481_v1  ;;  %v694_v20 = vld [vmem:[#allocation5] ss:$0 sm:$0xff] }
  0x13   :  { %211 = vmatpush.bf16.msra.mxu0 %v480_v2  ;;  %536 = vmatpush.bf16.msra.mxu1 %v480_v2 }
  0x14   :  { %537 = vmatpush.bf16.msra.mxu2 %v480_v2  ;;  %538 = vmatpush.bf16.msra.mxu3 %v480_v2 }
  0x17   :  { %212 = vmatpush.bf16.msra.mxu0 %v479_v3  ;;  %539 = vmatpush.bf16.msra.mxu1 %v479_v3 }
  0x18   :  { %540 = vmatpush.bf16.msra.mxu2 %v479_v3  ;;  %541 = vmatpush.bf16.msra.mxu3 %v479_v3 }
  0x1b   :  { %213 = vmatpush.bf16.msra.mxu0 %v478_v4  ;;  %542 = vmatpush.bf16.msra.mxu1 %v478_v4 }
  0x1c   :  { %543 = vmatpush.bf16.msra.mxu2 %v478_v4  ;;  %544 = vmatpush.bf16.msra.mxu3 %v478_v4 }
  0x1f   :  { %214 = vmatpush.bf16.msra.mxu0 %v477_v5  ;;  %545 = vmatpush.bf16.msra.mxu1 %v477_v5 }
  0x20   :  { %546 = vmatpush.bf16.msra.mxu2 %v477_v5  ;;  %547 = vmatpush.bf16.msra.mxu3 %v477_v5 }
  0x23   :  { %215 = vmatpush.bf16.msra.mxu0 %v476_v6  ;;  %548 = vmatpush.bf16.msra.mxu1 %v476_v6 }
  0x24   :  { %549 = vmatpush.bf16.msra.mxu2 %v476_v6  ;;  %550 = vmatpush.bf16.msra.mxu3 %v476_v6 }
  0x27   :  { %216 = vmatpush.bf16.msra.mxu0 %v475_v7  ;;  %551 = vmatpush.bf16.msra.mxu1 %v475_v7 }
  0x28   :  { %552 = vmatpush.bf16.msra.mxu2 %v475_v7  ;;  %553 = vmatpush.bf16.msra.mxu3 %v475_v7 }
  0x2a   :  { %217 = vmatmul.bf16.vlgmr.msra.gmra.mxu0 %v467_v8  ;;  %227 = vmatmul.bf16.vlgmr.msra.gmra.mxu1 %v469_v9 }
  0x2b   :  { %237 = vmatmul.bf16.vlgmr.msra.gmra.mxu2 %v471_v10  ;;  %247 = vmatmul.bf16.vlgmr.msra.gmra.mxu3 %v473_v11 }
  0x3a   :  { %222 = vmatmul.bf16.gmra.mxu0 %v468_v12  ;;  %232 = vmatmul.bf16.gmra.mxu1 %v470_v13 }
  0x3b   :  { %242 = vmatmul.bf16.gmra.mxu2 %v472_v14  ;;  %252 = vmatmul.bf16.gmra.mxu3 %v474_v15 }
  0xa7   :  { %v218_v16 = vpop.f32.mrf.mxu0  ;;  %v228_v17 = vpop.f32.mrf.mxu1 }
  0xa8   :  { %v313_v19 = vmul.f32 %v691_v18, %v218_v16  ;;  %v317_v21 = vmul.f32 %v691_v18, %v228_v17 }
  0xaa   :  { %v333_v26 = vadd.f32 %v694_v20, %v313_v19  ;;  %v337_v27 = vadd.f32 %v694_v20, %v317_v21 }
  0xac   :  { %v349_v34 = vmax.f32 %v333_v26, 0.0  ;;  %v353_v35 = vmax.f32 %v337_v27, 0.0 }
  0xae   :  { %v238_v22 = vpop.f32.mrf.mxu2  ;;  %v248_v23 = vpop.f32.mrf.mxu3 }
  0xaf   :  { %v220_v24 = vpop.f32.mrf.mxu0  ;;  %v230_v25 = vpop.f32.mrf.mxu1  ;;  %v321_v32 = vmul.f32 %v691_v18, %v238_v22  ;;  %v325_v33 = vmul.f32 %v691_v18, %v248_v23 }
  0xb0   :  { %v314_v28 = vmul.f32 %v691_v18, %v220_v24  ;;  %v318_v29 = vmul.f32 %v691_v18, %v230_v25 }
  0xb1   :  { %v341_v42 = vadd.f32 %v694_v20, %v321_v32  ;;  %v345_v43 = vadd.f32 %v694_v20, %v325_v33 }
  0xb2   :  { %v334_v30 = vadd.f32 %v694_v20, %v314_v28  ;;  %v338_v31 = vadd.f32 %v694_v20, %v318_v29 }
  0xb3   :  { %v357_v50 = vmax.f32 %v341_v42, 0.0  ;;  %v361_v51 = vmax.f32 %v345_v43, 0.0 }
  0xb4   :  { %v350_v36 = vmax.f32 %v334_v30, 0.0  ;;  %v354_v37 = vmax.f32 %v338_v31, 0.0 }
  0xb6   :  { %v486_v38 = vpack.c.bf16 %v350_v36, %v349_v34  ;;  %v496_v39 = vpack.c.bf16 %v354_v37, %v353_v35  ;;  %v240_v40 = vpop.f32.mrf.mxu2  ;;  %v250_v41 = vpop.f32.mrf.mxu3 }
  0xb7   :  { %v322_v44 = vmul.f32 %v691_v18, %v240_v40  ;;  %v326_v45 = vmul.f32 %v691_v18, %v250_v41  ;;  %v223_v46 = vpop.f32.mrf.mxu0  ;;  %v233_v47 = vpop.f32.mrf.mxu1 }
  0xb8   :  { %487 = vst [vmem:[%s755_s4] sm:$0xff] %v486_v38   ;;  %v315_v54 = vmul.f32 %v691_v18, %v223_v46  ;;  %v319_v55 = vmul.f32 %v691_v18, %v233_v47 }
  0xb9   :  { %524 = vst [vmem:[%s755_s4 + $0x10] sm:$0xff] %v496_v39   ;;  %v342_v48 = vadd.f32 %v694_v20, %v322_v44  ;;  %v346_v49 = vadd.f32 %v694_v20, %v326_v45 }
  0xba   :  { %v335_v62 = vadd.f32 %v694_v20, %v315_v54  ;;  %v339_v63 = vadd.f32 %v694_v20, %v319_v55 }
  0xbb   :  { %v358_v52 = vmax.f32 %v342_v48, 0.0  ;;  %v362_v53 = vmax.f32 %v346_v49, 0.0 }
  0xbc   :  { %v351_v6 = vmax.f32 %v335_v62, 0.0  ;;  %v355_v7 = vmax.f32 %v339_v63, 0.0 }
  0xbd   :  { %v506_v56 = vpack.c.bf16 %v358_v52, %v357_v50  ;;  %v516_v57 = vpack.c.bf16 %v362_v53, %v361_v51 }
  0xbe   :  { %v243_v58 = vpop.f32.mrf.mxu2  ;;  %v253_v59 = vpop.f32.mrf.mxu3 }
  0xbf   :  { %526 = vst [vmem:[%s755_s4 + $0x20] sm:$0xff] %v506_v56   ;;  %v225_v60 = vpop.f32.mrf.mxu0  ;;  %v235_v61 = vpop.f32.mrf.mxu1  ;;  %v323_v4 = vmul.f32 %v691_v18, %v243_v58  ;;  %v327_v5 = vmul.f32 %v691_v18, %v253_v59 }
  0xc0   :  { %528 = vst [vmem:[%s755_s4 + $0x30] sm:$0xff] %v516_v57   ;;  %v316_v0 = vmul.f32 %v691_v18, %v225_v60  ;;  %v320_v1 = vmul.f32 %v691_v18, %v235_v61 }
  0xc1   :  { %v343_v14 = vadd.f32 %v694_v20, %v323_v4  ;;  %v347_v15 = vadd.f32 %v694_v20, %v327_v5 }
  0xc2   :  { %v336_v2 = vadd.f32 %v694_v20, %v316_v0  ;;  %v340_v3 = vadd.f32 %v694_v20, %v320_v1 }
  0xc3   :  { %v359_v22 = vmax.f32 %v343_v14, 0.0  ;;  %v363_v23 = vmax.f32 %v347_v15, 0.0 }
  0xc4   :  { %v352_v8 = vmax.f32 %v336_v2, 0.0  ;;  %v356_v9 = vmax.f32 %v340_v3, 0.0 }
  0xc6   :  { %v491_v10 = vpack.c.bf16 %v352_v8, %v351_v6  ;;  %v501_v11 = vpack.c.bf16 %v356_v9, %v355_v7  ;;  %v245_v12 = vpop.f32.mrf.mxu2  ;;  %v255_v13 = vpop.f32.mrf.mxu3 }
  0xc7   :  { %v324_v16 = vmul.f32 %v691_v18, %v245_v12  ;;  %v328_v17 = vmul.f32 %v691_v18, %v255_v13 }
  0xc8   :  { %523 = vst [vmem:[%s755_s4 + $0x8] sm:$0xff] %v491_v10  }
  0xc9   :  { %525 = vst [vmem:[%s755_s4 + $0x18] sm:$0xff] %v501_v11   ;;  %v344_v19 = vadd.f32 %v694_v20, %v324_v16  ;;  %v348_v21 = vadd.f32 %v694_v20, %v328_v17 }
  0xcb   :  { %v360_v24 = vmax.f32 %v344_v19, 0.0  ;;  %v364_v25 = vmax.f32 %v348_v21, 0.0 }
  0xcd   :  { %v511_v26 = vpack.c.bf16 %v360_v24, %v359_v22  ;;  %v521_v27 = vpack.c.bf16 %v364_v25, %v363_v23 }
  0xcf   :  { %527 = vst [vmem:[%s755_s4 + $0x28] sm:$0xff] %v511_v26  }
  0xd0   :  { %529 = vst [vmem:[%s755_s4 + $0x38] sm:$0xff] %v521_v27  }
  0xd1   :  { %401 = vsyncpa [#allocation4], 1 }
  0xd2   :  { %402 = vsyncpa [#allocation6], 1 }

// kernel: resnext_forward.43
= control target key start
LH: loop header
LB: loop body
LE: loop exit
PB: predicated region body
PF: predicated region fallthrough
CT: control target
= control target key end

     0   :  { %9 = vsyncpa [#allocation4], 0  ;;  %s395_s0 = inlined_call_operand.vmem [shape: bf16[32,128], index: 0, kind: input, shape index: {}]   ;;  %s396_s1 = inlined_call_operand.vmem [shape: bf16[128,128], index: 1, kind: input, shape index: {}]   ;;  %s397_s2 = inlined_call_operand.hbm [shape: f32[1,128], index: 2, kind: input, shape index: {}]   ;;  %s398_s3 = inlined_call_operand.hbm [shape: f32[1,128], index: 3, kind: input, shape index: {}]   ;;  %s399_s4 = inlined_call_operand.vmem [shape: bf16[32,128], index: 4, kind: output, shape index: {}]  }
   0x1   :  { %s20_s17 = sshll.u32 %s397_s2, 4  ;;  %s21_s17 = int_to_ptr.hbm [resolvable:$true] %s20_s17 }
   0x2   :  { %10 = vsyncpa [#allocation6], 0  ;;  %s326_s18 = smov [#allocation3]   ;;  %s31_s22 = sshll.u32 %s398_s3, 4  ;;  %s32_s22 = int_to_ptr.hbm [resolvable:$true] %s31_s22 }
   0x3   :  { %s22_s19 = sshll.u32 %s326_s18, 4  ;;  %s327_s23 = smov [#allocation5]   ;;  %s23_s19 = int_to_ptr.vmem [resolvable:$true] %s22_s19 }
   0x4   :  { %25 = dma.hbm_to_vmem [thread:$0]  %s21_s17, 16, %s23_s19, [#allocation4]  }
   0x5   :  { %s33_s24 = sshll.u32 %s327_s23, 4  ;;  %s34_s24 = int_to_ptr.vmem [resolvable:$true] %s33_s24 }
   0x6   :  { %36 = dma.hbm_to_vmem [thread:$0]  %s32_s22, 16, %s34_s24, [#allocation6]  }
   0x7   :  { %322 = dma.done.wait [#allocation4], 16  }
   0x8   :  { %323 = vsyncadd [#allocation4], 4294967280 }
   0x9   :  { %324 = dma.done.wait [#allocation6], 16  }
   0xa   :  { %325 = vsyncadd [#allocation6], 4294967280  ;;  %v250_v0 = vld [vmem:[%s396_s1 + $0x38] sm:$0xff]  ;;  %v249_v1 = vld [vmem:[%s396_s1 + $0x30] sm:$0xff] }
   0xb   :  { %137 = vmatpush.bf16.msra.mxu0 %v250_v0  ;;  %262 = vmatpush.bf16.msra.mxu1 %v250_v0  ;;  %v248_v2 = vld [vmem:[%s396_s1 + $0x28] sm:$0xff]  ;;  %v247_v3 = vld [vmem:[%s396_s1 + $0x20] sm:$0xff]  ;;  %v246_v4 = vld [vmem:[%s396_s1 + $0x18] sm:$0xff] }
   0xc   :  { %v245_v5 = vld [vmem:[%s396_s1 + $0x10] sm:$0xff]  ;;  %v244_v6 = vld [vmem:[%s396_s1 + $0x8] sm:$0xff]  ;;  %v243_v7 = vld [vmem:[%s396_s1] sm:$0xff] }
   0xd   :  { %v241_v8 = vld [vmem:[%s395_s0] sm:$0xff]  ;;  %v242_v9 = vld [vmem:[%s395_s0 + $0x8] sm:$0xff] }
   0xe   :  { %v272_v12 = vld [vmem:[#allocation3] ss:$0 sm:$0xff]  ;;  %v273_v14 = vld [vmem:[#allocation5] ss:$0 sm:$0xff] }
   0xf   :  { %138 = vmatpush.bf16.msra.mxu0 %v249_v1  ;;  %263 = vmatpush.bf16.msra.mxu1 %v249_v1 }
  0x13   :  { %139 = vmatpush.bf16.msra.mxu0 %v248_v2  ;;  %264 = vmatpush.bf16.msra.mxu1 %v248_v2 }
  0x17   :  { %140 = vmatpush.bf16.msra.mxu0 %v247_v3  ;;  %265 = vmatpush.bf16.msra.mxu1 %v247_v3 }
  0x1b   :  { %141 = vmatpush.bf16.msra.mxu0 %v246_v4  ;;  %266 = vmatpush.bf16.msra.mxu1 %v246_v4 }
  0x1f   :  { %142 = vmatpush.bf16.msra.mxu0 %v245_v5  ;;  %267 = vmatpush.bf16.msra.mxu1 %v245_v5 }
  0x23   :  { %143 = vmatpush.bf16.msra.mxu0 %v244_v6  ;;  %268 = vmatpush.bf16.msra.mxu1 %v244_v6 }
  0x27   :  { %144 = vmatpush.bf16.msra.mxu0 %v243_v7  ;;  %269 = vmatpush.bf16.msra.mxu1 %v243_v7 }
  0x2a   :  { %145 = vmatmul.bf16.vlgmr.msra.gmra.mxu0 %v241_v8  ;;  %150 = vmatmul.bf16.vlgmr.msra.gmra.mxu1 %v242_v9 }
  0xa7   :  { %v146_v10 = vpop.f32.mrf.mxu0  ;;  %v151_v11 = vpop.f32.mrf.mxu1 }
  0xa8   :  { %v175_v13 = vmul.f32 %v272_v12, %v146_v10  ;;  %v177_v15 = vmul.f32 %v272_v12, %v151_v11 }
  0xaa   :  { %v183_v20 = vadd.f32 %v273_v14, %v175_v13  ;;  %v185_v21 = vadd.f32 %v273_v14, %v177_v15 }
  0xaf   :  { %v148_v16 = vpop.f32.mrf.mxu0  ;;  %v153_v17 = vpop.f32.mrf.mxu1 }
  0xb0   :  { %v176_v18 = vmul.f32 %v272_v12, %v148_v16  ;;  %v178_v19 = vmul.f32 %v272_v12, %v153_v17 }
  0xb2   :  { %v184_v22 = vadd.f32 %v273_v14, %v176_v18  ;;  %v186_v23 = vadd.f32 %v273_v14, %v178_v19 }
  0xb4   :  { %v254_v24 = vpack.c.bf16 %v184_v22, %v183_v20  ;;  %v259_v25 = vpack.c.bf16 %v186_v23, %v185_v21 }
  0xb6   :  { %255 = vst [vmem:[%s399_s4] sm:$0xff] %v254_v24  }
  0xb7   :  { %261 = vst [vmem:[%s399_s4 + $0x8] sm:$0xff] %v259_v25  }
  0xb8   :  { %199 = vsyncpa [#allocation4], 1 }
  0xb9   :  { %200 = vsyncpa [#allocation6], 1 }

// kernel: resnext_forward.44
= control target key start
LH: loop header
LB: loop body
LE: loop exit
PB: predicated region body
PF: predicated region fallthrough
CT: control target
= control target key end

     0   :  { %s494_s12 = smov 0   ;;  %s496_s13 = smov 0   ;;  %s530_s0 = inlined_call_operand.vmem [shape: bf16[2,16,128], index: 0, kind: input, shape index: {}]   ;;  %s531_s1 = inlined_call_operand.vmem [shape: f32[2,1,128], index: 1, kind: input, shape index: {}]   ;;  %s532_s2 = inlined_call_operand.vmem [shape: bf16[2,16,128], index: 2, kind: input, shape index: {}]   ;;  %s533_s3 = inlined_call_operand.vmem [shape: bf16[2,16,128], index: 3, kind: output, shape index: {}]  }
   0x1   :  { %s498_s14 = smov 0  }
   0x2 LB: > { %s25_s15 = sadd.s32 1, %s468_s13  ;;  %p400_p0 = scmp.ge.s32.totalorder %s472_s14, 1  ;;  %s472_s14 = sphi %s498_s14, %s13_s14   ;;  %s468_s13 = sphi %s496_s13, %s535_s13   ;;  %s464_s12 = sphi %s494_s12, %s534_s12  }
   0x3   : > { %p27_p1 = scmp.ge.s32.totalorder %s25_s15, 2  ;;  %p183_p2 = scmp.lt.s32.totalorder %s472_s14, 3 }
   0x5   : > { %s537_s15 = smov (%p27_p1, %s25_s15), 0  ;;  %p184_p3 = pnand %p400_p0, %p183_p2 }
   0x6   : > { %p228_p4 = scmp.lt.s32.totalorder (!%p184_p3), %s464_s12, 1 }
   0x7   : > { %187 = sbr.rel (%p184_p3) target bundleno = 27 (0x1b), region = 32 }
   0xc   : > { %s539_s12 = smov (!%p228_p4, %s464_s12), 1 }
   0xd   : > { %s409_s16 = sshll.u32 %s539_s12, 3  ;;  %s239_s19 = scalar_lea.vmem %s531_s1, %s539_s12 }
   0xe   : > { %s235_s22 = scalar_lea.vmem %s530_s0, %s409_s16  ;;  %s248_s25 = scalar_lea.vmem %s532_s2, %s409_s16  ;;  %v449_v0 = vld [vmem:[%s239_s19] ss:$0 sm:$0xff] }
   0xf   : > { %v413_v1 = vld [vmem:[%s235_s22] sm:$0xff]   ;;  %s258_s28 = scalar_lea.vmem %s533_s3, %s409_s16 }
  0x10   : > { %v417_v2 = vld [vmem:[%s248_s25] sm:$0xff]   ;;  %v414_v3 = vunpack.c.l.bf16 %v413_v1  ;;  %v415_v4 = vunpack.c.h.bf16 %v413_v1 }
  0x11   : > { %v418_v5 = vunpack.c.l.bf16 %v417_v2  ;;  %v419_v6 = vunpack.c.h.bf16 %v417_v2 }
  0x12   : > { %v272_v7 = vmul.f32 %v449_v0, %v414_v3  ;;  %v273_v8 = vmul.f32 %v449_v0, %v415_v4 }
  0x14   : > { %v274_v9 = vadd.f32 %v418_v5, %v272_v7  ;;  %v275_v10 = vadd.f32 %v419_v6, %v273_v8 }
  0x16   : > { %v276_v11 = vmax.f32 %v274_v9, 0.0  ;;  %v277_v12 = vmax.f32 %v275_v10, 0.0 }
  0x18   : > { %v423_v13 = vpack.c.bf16 %v277_v12, %v276_v11 }
  0x1a   : > { %424 = vst [vmem:[%s258_s28] sm:$0xff] %v423_v13  }
  0x1b PF: > { %s13_s14 = sadd.s32 1, %s472_s14   ;;  %s534_s12 = smov %s468_s13 }
  0x1c   : > { %p10_p5 = scmp.ge.s32.totalorder %s13_s14, 4   ;;  %s535_s13 = smov %s537_s15 }
  0x1e   :  { %12 = sbr.rel (!%p10_p5) target bundleno = 2 (0x2), region = 68 }

// kernel: resnext_forward.40
= control target key start
LH: loop header
LB: loop body
LE: loop exit
PB: predicated region body
PF: predicated region fallthrough
CT: control target
= control target key end

     0   :  { %s820_s15 = smov 0   ;;  %s822_s16 = smov 0   ;;  %s916_s0 = inlined_call_operand.vmem [shape: bf16[32,640], index: 0, kind: input, shape index: {}]   ;;  %s917_s1 = inlined_call_operand.vmem [shape: bf16[640,128], index: 1, kind: input, shape index: {}]   ;;  %s918_s2 = inlined_call_operand.vmem [shape: f32[1,128], index: 2, kind: input, shape index: {}]   ;;  %s919_s3 = inlined_call_operand.vmem [shape: f32[1,128], index: 3, kind: input, shape index: {}]   ;;  %s920_s4 = inlined_call_operand.vmem [shape: bf16[32,128], index: 4, kind: output, shape index: {}]  }
   0x1   :  { %s824_s17 = smov 0   ;;  %s826_s18 = smov 0  }
   0x2   :  { %s828_s19 = smov 0  }
   0x3 LB: > { %s26_s20 = sadd.s32 1, %s788_s18  ;;  %p49_p1 = scmp.ne.s32.totalorder %s780_s16, %s776_s15  ;;  %s792_s19 = sphi %s828_s19, %s14_s19   ;;  %s788_s18 = sphi %s826_s18, %s924_s18   ;;  %s784_s17 = sphi %s824_s17, %s923_s17   ;;  %s780_s16 = sphi %s822_s16, %s922_s16   ;;  %s776_s15 = sphi %s820_s15, %s921_s15  }
   0x4   : > { %p27_p0 = scmp.ge.s32.totalorder %s26_s20, 5  ;;  %p50_p2 = scmp.eq.s32.totalorder %s792_s19, 0 }
   0x5   : > { %s42_s22 = sadd.s32 1, %s780_s16  ;;  %p629_p5 = scmp.ge.s32.totalorder %s792_s19, 5 }
   0x6   : > { %s926_s20 = smov (%p27_p0, %s26_s20), 0  ;;  %p51_p3 = por %p50_p2, %p49_p1 }
   0x7   : > { %s38_s21 = ssub.s32 %s788_s18, %s926_s20  ;;  %195 = sbr.rel (%p629_p5) target bundleno = 20 (0x14), region = 24 }
   0x8   : > { %p40_p4 = scmp.eq.s32.totalorder %s38_s21, 0 }
   0xa   : > { %s855_s23 = scalar_select %p40_p4, %s780_s16, %s42_s22  }
   0xc   : > { %198 = sbr.rel (!%p51_p3) target bundleno = 20 (0x14), region = 28  ;;  %s200_s24 = sand.u32 (%p51_p3), 1, %s780_s16  }
   0xd   : > { %s631_s25 = sshll.u32 (%p51_p3), %s788_s18, 2  ;;  %s630_s26 = sshll.u32 (%p51_p3), %s200_s24, 4 }
   0xe   : > { %s207_s29 = scalar_lea.vmem (%p51_p3), %s916_s0, %s631_s25  ;;  %s202_s30 = scalar_lea.vmem (%p51_p3), [#allocation3], %s630_s26 }
   0xf   : > { %v224_v0 = vld [vmem:[%s207_s29] sm:$0xf] (%p51_p3)  ;;  %v226_v1 = vld [vmem:[%s207_s29 + $0x14] sm:$0xf] (%p51_p3)  ;;  %v228_v2 = vld [vmem:[%s207_s29 + $0x28] sm:$0xf] (%p51_p3) }
  0x10   : > { %225 = vst [vmem:[%s202_s30] sm:$0xf] (%p51_p3), %v224_v0  ;;  %v230_v3 = vld [vmem:[%s207_s29 + $0x3c] sm:$0xf] (%p51_p3) }
  0x11   : > { %227 = vst [vmem:[%s202_s30 + $0x4] sm:$0xf] %v226_v1 }
  0x12   : > { %229 = vst [vmem:[%s202_s30 + $0x8] sm:$0xf] %v228_v2 }
  0x13   : > { %231 = vst [vmem:[%s202_s30 + $0xc] sm:$0xf] %v230_v3 }
  0x14 PF: > { %p632_p6 = scmp.ge.s32.totalorder %s792_s19, 1  ;;  %p274_p7 = scmp.lt.s32.totalorder %s792_s19, 6 }
  0x16   : > { %p275_p8 = pnand %p632_p6, %p274_p7 }
  0x17   : > { %s281_s5 = sand.u32 (!%p275_p8), 1, %s776_s15   ;;  %s634_s6 = sshll.u32 (!%p275_p8), %s784_s17, 4 }
  0x18   : > { %278 = sbr.rel (%p275_p8) target bundleno = 225 (0xe1), region = 73  ;;  %s867_s7 = sshll.u32 (!%p275_p8), %s281_s5, 4 }
  0x19   : > { %p325_p9 = scmp.lt.s32.totalorder (!%p275_p8), %s634_s6, 79  ;;  %s283_s12 = scalar_lea.vmem (!%p275_p8), [#allocation3], %s867_s7 }
  0x1a   : > { %p636_p10 = scmp.ne.s32.totalorder (!%p275_p8), %s784_s17, 0 }
  0x1d   : > { %s928_s6 = smov (!%p325_p9, %s634_s6), 79  ;;  %351 = sbr.rel (%p636_p10) target bundleno = 39 (0x27), region = 81 }
  0x1e   : > { %s635_s8 = sshll.u32 %s928_s6, 2 }
  0x1f   : > { %s872_s11 = scalar_lea.vmem %s917_s1, %s635_s8 }
  0x22   : > { %v794_v4 = vmov 0.0  }
  0x23   : > { %352 = vst [vmem:[#allocation2 + $0x10] sm:$0xff] %v794_v4 }
  0x24   : > { %353 = vst [vmem:[#allocation2] sm:$0xff] %v794_v4 }
  0x25   : > { %354 = vst [vmem:[#allocation2 + $0x18] sm:$0xff] %v794_v4 }
  0x26   : > { %355 = vst [vmem:[#allocation2 + $0x8] sm:$0xff] %v794_v4 }
  0x27 PF: > { %v691_v5 = vld [vmem:[%s872_s11 + $0x38] sm:$0xff]  ;;  %v690_v6 = vld [vmem:[%s872_s11 + $0x30] sm:$0xff]  ;;  %v689_v7 = vld [vmem:[%s872_s11 + $0x28] sm:$0xff]  ;;  %p677_p11 = scmp.ne.s32.totalorder %s784_s17, 4 }
  0x28   : > { %440 = vmatpush.bf16.msra.mxu0 %v691_v5  ;;  %703 = vmatpush.bf16.msra.mxu1 %v691_v5  ;;  %v688_v8 = vld [vmem:[%s872_s11 + $0x20] sm:$0xff]  ;;  %v687_v9 = vld [vmem:[%s872_s11 + $0x18] sm:$0xff]  ;;  %v686_v10 = vld [vmem:[%s872_s11 + $0x10] sm:$0xff] }
  0x29   : > { %v685_v11 = vld [vmem:[%s872_s11 + $0x8] sm:$0xff]  ;;  %v684_v12 = vld [vmem:[%s872_s11] sm:$0xff] }
  0x2a   : > { %v682_v13 = vld [vmem:[%s283_s12] sm:$0xff]  ;;  %v683_v14 = vld [vmem:[%s283_s12 + $0x8] sm:$0xff] }
  0x2b   : > { %v356_v15 = vld [vmem:[#allocation2 + $0x10] sm:$0xff]  ;;  %v357_v21 = vld [vmem:[#allocation2] sm:$0xff] }
  0x2c   : > { %441 = vmatpush.bf16.msra.mxu0 %v690_v6  ;;  %704 = vmatpush.bf16.msra.mxu1 %v690_v6  ;;  %v358_v16 = vld [vmem:[#allocation2 + $0x18] sm:$0xff] }
  0x2d   : > { %v359_v22 = vld [vmem:[#allocation2 + $0x8] sm:$0xff] }
  0x30   : > { %442 = vmatpush.bf16.msra.mxu0 %v689_v7  ;;  %705 = vmatpush.bf16.msra.mxu1 %v689_v7 }
  0x34   : > { %443 = vmatpush.bf16.msra.mxu0 %v688_v8  ;;  %706 = vmatpush.bf16.msra.mxu1 %v688_v8 }
  0x38   : > { %444 = vmatpush.bf16.msra.mxu0 %v687_v9  ;;  %707 = vmatpush.bf16.msra.mxu1 %v687_v9 }
  0x3c   : > { %445 = vmatpush.bf16.msra.mxu0 %v686_v10  ;;  %708 = vmatpush.bf16.msra.mxu1 %v686_v10 }
  0x40   : > { %446 = vmatpush.bf16.msra.mxu0 %v685_v11  ;;  %709 = vmatpush.bf16.msra.mxu1 %v685_v11 }
  0x44   : > { %447 = vmatpush.bf16.msra.mxu0 %v684_v12  ;;  %710 = vmatpush.bf16.msra.mxu1 %v684_v12 }
  0x47   : > { %448 = vmatmul.bf16.vlgmr.msra.gmra.mxu0 %v682_v13  ;;  %453 = vmatmul.bf16.vlgmr.msra.gmra.mxu1 %v683_v14 }
  0xc4   : > { %v449_v17 = vpop.f32.mrf.mxu0  ;;  %v454_v18 = vpop.f32.mrf.mxu1 }
  0xc5   : > { %v459_v19 = vadd.f32 %v449_v17, %v356_v15  ;;  %v461_v20 = vadd.f32 %v454_v18, %v358_v16 }
  0xc7   : > { %463 = vst [vmem:[#allocation2 + $0x10] sm:$0xff] %v459_v19 }
  0xc8   : > { %465 = vst [vmem:[#allocation2 + $0x18] sm:$0xff] %v461_v20 }
  0xcc   : > { %v451_v23 = vpop.f32.mrf.mxu0  ;;  %v456_v24 = vpop.f32.mrf.mxu1  ;;  %470 = sbr.rel (%p677_p11) target bundleno = 225 (0xe1), region = 85 }
  0xcd   : > { %v460_v25 = vadd.f32 %v451_v23, %v357_v21  ;;  %v462_v26 = vadd.f32 %v456_v24, %v359_v22 }
  0xcf   : > { %464 = vst [vmem:[#allocation2] sm:$0xff] %v460_v25 }
  0xd0   : > { %466 = vst [vmem:[#allocation2 + $0x8] sm:$0xff] %v462_v26 }
  0xd1   : > { %v471_v27 = vld [vmem:[#allocation2 + $0x10] sm:$0xff]  ;;  %v752_v29 = vld [vmem:[%s918_s2] ss:$0 sm:$0xff]  ;;  %v473_v31 = vld [vmem:[#allocation2 + $0x18] sm:$0xff] }
  0xd2   : > { %v753_v30 = vld [vmem:[%s919_s3] ss:$0 sm:$0xff]  ;;  %v479_v33 = vmul.f32 %v752_v29, %v471_v27  ;;  %v481_v35 = vmul.f32 %v752_v29, %v473_v31 }
  0xd4   : > { %v487_v37 = vadd.f32 %v753_v30, %v479_v33  ;;  %v489_v39 = vadd.f32 %v753_v30, %v481_v35 }
  0xd6   : > { %v472_v28 = vld [vmem:[#allocation2] sm:$0xff]  ;;  %v491_v41 = vmax.f32 %v487_v37, 0.0  ;;  %v493_v43 = vmax.f32 %v489_v39, 0.0 }
  0xd7   : > { %v474_v32 = vld [vmem:[#allocation2 + $0x8] sm:$0xff]  ;;  %v480_v34 = vmul.f32 %v752_v29, %v472_v28 }
  0xd8   : > { %v482_v36 = vmul.f32 %v752_v29, %v474_v32 }
  0xd9   : > { %v488_v38 = vadd.f32 %v753_v30, %v480_v34 }
  0xda   : > { %v490_v40 = vadd.f32 %v753_v30, %v482_v36 }
  0xdb   : > { %v492_v42 = vmax.f32 %v488_v38, 0.0 }
  0xdc   : > { %v494_v44 = vmax.f32 %v490_v40, 0.0 }
  0xdd   : > { %v695_v45 = vpack.c.bf16 %v492_v42, %v491_v41 }
  0xde   : > { %v700_v46 = vpack.c.bf16 %v494_v44, %v493_v43 }
  0xdf   : > { %696 = vst [vmem:[%s920_s4] sm:$0xff] %v695_v45  }
  0xe0   : > { %702 = vst [vmem:[%s920_s4 + $0x8] sm:$0xff] %v700_v46  }
  0xe1 PF: > { %s14_s19 = sadd.s32 1, %s792_s19   ;;  %s921_s15 = smov %s780_s16 }
  0xe2   : > { %p11_p12 = scmp.ge.s32.totalorder %s14_s19, 7   ;;  %s922_s16 = smov %s855_s23 }
  0xe3   : > { %s923_s17 = smov %s788_s18  ;;  %s924_s18 = smov %s926_s20 }
  0xe4   :  { %13 = sbr.rel (!%p11_p12) target bundleno = 3 (0x3), region = 129 }

// kernel: resnext_forward.41
= control target key start
LH: loop header
LB: loop body
LE: loop exit
PB: predicated region body
PF: predicated region fallthrough
CT: control target
= control target key end

     0   :  { %s309_s1 = inlined_call_operand.vmem [shape: bf16[128,128], index: 1, kind: input, shape index: {}]   ;;  %s310_s2 = inlined_call_operand.vmem [shape: f32[1,128], index: 2, kind: input, shape index: {}]   ;;  %s311_s3 = inlined_call_operand.vmem [shape: f32[1,128], index: 3, kind: input, shape index: {}]   ;;  %s312_s0 = inlined_call_operand.vmem [shape: bf16[32,128], index: 0, kind: input, shape index: {}]   ;;  %s313_s4 = inlined_call_operand.vmem [shape: bf16[32,128], index: 4, kind: output, shape index: {}]  }
   0x1   :  { %v220_v0 = vld [vmem:[%s309_s1 + $0x38] sm:$0xff]  ;;  %v219_v1 = vld [vmem:[%s309_s1 + $0x30] sm:$0xff]  ;;  %v218_v2 = vld [vmem:[%s309_s1 + $0x28] sm:$0xff] }
   0x2   :  { %109 = vmatpush.bf16.msra.mxu0 %v220_v0  ;;  %232 = vmatpush.bf16.msra.mxu1 %v220_v0  ;;  %v217_v3 = vld [vmem:[%s309_s1 + $0x20] sm:$0xff]  ;;  %v216_v4 = vld [vmem:[%s309_s1 + $0x18] sm:$0xff]  ;;  %v215_v5 = vld [vmem:[%s309_s1 + $0x10] sm:$0xff] }
   0x3   :  { %v214_v6 = vld [vmem:[%s309_s1 + $0x8] sm:$0xff]  ;;  %v213_v7 = vld [vmem:[%s309_s1] sm:$0xff] }
   0x4   :  { %v211_v8 = vld [vmem:[%s312_s0] sm:$0xff]  ;;  %v212_v9 = vld [vmem:[%s312_s0 + $0x8] sm:$0xff] }
   0x5   :  { %v240_v12 = vld [vmem:[%s310_s2] ss:$0 sm:$0xff] }
   0x6   :  { %110 = vmatpush.bf16.msra.mxu0 %v219_v1  ;;  %233 = vmatpush.bf16.msra.mxu1 %v219_v1  ;;  %v241_v14 = vld [vmem:[%s311_s3] ss:$0 sm:$0xff] }
   0xa   :  { %111 = vmatpush.bf16.msra.mxu0 %v218_v2  ;;  %234 = vmatpush.bf16.msra.mxu1 %v218_v2 }
   0xe   :  { %112 = vmatpush.bf16.msra.mxu0 %v217_v3  ;;  %235 = vmatpush.bf16.msra.mxu1 %v217_v3 }
  0x12   :  { %113 = vmatpush.bf16.msra.mxu0 %v216_v4  ;;  %236 = vmatpush.bf16.msra.mxu1 %v216_v4 }
  0x16   :  { %114 = vmatpush.bf16.msra.mxu0 %v215_v5  ;;  %237 = vmatpush.bf16.msra.mxu1 %v215_v5 }
  0x1a   :  { %115 = vmatpush.bf16.msra.mxu0 %v214_v6  ;;  %238 = vmatpush.bf16.msra.mxu1 %v214_v6 }
  0x1e   :  { %116 = vmatpush.bf16.msra.mxu0 %v213_v7  ;;  %239 = vmatpush.bf16.msra.mxu1 %v213_v7 }
  0x21   :  { %117 = vmatmul.bf16.vlgmr.msra.gmra.mxu0 %v211_v8  ;;  %122 = vmatmul.bf16.vlgmr.msra.gmra.mxu1 %v212_v9 }
  0x9e   :  { %v118_v10 = vpop.f32.mrf.mxu0  ;;  %v123_v11 = vpop.f32.mrf.mxu1 }
  0x9f   :  { %v147_v13 = vmul.f32 %v240_v12, %v118_v10  ;;  %v149_v15 = vmul.f32 %v240_v12, %v123_v11 }
  0xa1   :  { %v155_v20 = vadd.f32 %v241_v14, %v147_v13  ;;  %v157_v21 = vadd.f32 %v241_v14, %v149_v15 }
  0xa6   :  { %v120_v16 = vpop.f32.mrf.mxu0  ;;  %v125_v17 = vpop.f32.mrf.mxu1 }
  0xa7   :  { %v148_v18 = vmul.f32 %v240_v12, %v120_v16  ;;  %v150_v19 = vmul.f32 %v240_v12, %v125_v17 }
  0xa9   :  { %v156_v22 = vadd.f32 %v241_v14, %v148_v18  ;;  %v158_v23 = vadd.f32 %v241_v14, %v150_v19 }
  0xab   :  { %v224_v24 = vpack.c.bf16 %v156_v22, %v155_v20  ;;  %v229_v25 = vpack.c.bf16 %v158_v23, %v157_v21 }
  0xad   :  { %225 = vst [vmem:[%s313_s4] sm:$0xff] %v224_v24  }
  0xae   :  { %231 = vst [vmem:[%s313_s4 + $0x8] sm:$0xff] %v229_v25  }

// kernel: resnext_forward.42
= control target key start
LH: loop header
LB: loop body
LE: loop exit
PB: predicated region body
PF: predicated region fallthrough
CT: control target
= control target key end

     0   :  { %vm125_vm0 = vcmask 261120   ;;  %s295_s1 = inlined_call_operand.vmem [shape: bf16[128,32], index: 1, kind: input, shape index: {}]   ;;  %s296_s2 = inlined_call_operand.vmem [shape: f32[1,32], index: 2, kind: input, shape index: {}]   ;;  %s297_s0 = inlined_call_operand.vmem [shape: bf16[2,128], index: 0, kind: input, shape index: {}]   ;;  %s298_s4 = inlined_call_operand.vmem [shape: f32[1,128], index: 4, kind: input, shape index: {}]   ;;  %s299_s3 = inlined_call_operand.vmem [shape: bf16[32,128], index: 3, kind: input, shape index: {}]   ;;  %s300_s5 = inlined_call_operand.vmem [shape: f32[2,128], index: 5, kind: output, shape index: {}]  }
   0x1   :  { %v214_v0 = vld [vmem:[%s295_s1 + $0x38] sm:$0xff]  ;;  %v213_v1 = vld [vmem:[%s295_s1 + $0x30] sm:$0xff]  ;;  %v212_v2 = vld [vmem:[%s295_s1 + $0x28] sm:$0xff] }
   0x2   :  { %90 = vmatpush.bf16.msra.mxu0 %v214_v0  ;;  %v211_v3 = vld [vmem:[%s295_s1 + $0x20] sm:$0xff]  ;;  %v210_v4 = vld [vmem:[%s295_s1 + $0x18] sm:$0xff]  ;;  %v209_v5 = vld [vmem:[%s295_s1 + $0x10] sm:$0xff] }
   0x3   :  { %v208_v6 = vld [vmem:[%s295_s1 + $0x8] sm:$0xff]  ;;  %v207_v7 = vld [vmem:[%s295_s1] sm:$0xff] }
   0x4   :  { %v21_v8 = vld [vmem:[%s297_s0] sm:$0x1]  ;;  %v216_v9 = vld [vmem:[%s299_s3 + $0x8] sm:$0xff] }
   0x5   :  { %135 = vmatpush.bf16.msra.mxu1 %v216_v9  ;;  %v215_v10 = vld [vmem:[%s299_s3] sm:$0xff] }
   0x6   :  { %91 = vmatpush.bf16.msra.mxu0 %v213_v1  ;;  %v217_v11 = vld [vmem:[%s296_s2] ss:$0 sm:$0xff] }
   0x7   :  { %v218_v17 = vld [vmem:[%s298_s4] ss:$0 sm:$0xff] }
   0x9   :  { %136 = vmatpush.bf16.msra.mxu1 %v215_v10 }
   0xa   :  { %92 = vmatpush.bf16.msra.mxu0 %v212_v2 }
   0xe   :  { %93 = vmatpush.bf16.msra.mxu0 %v211_v3 }
  0x12   :  { %94 = vmatpush.bf16.msra.mxu0 %v210_v4 }
  0x16   :  { %95 = vmatpush.bf16.msra.mxu0 %v209_v5 }
  0x1a   :  { %96 = vmatpush.bf16.msra.mxu0 %v208_v6 }
  0x1e   :  { %97 = vmatpush.bf16.msra.mxu0 %v207_v7 }
  0x21   :  { %98 = vmatmul.bf16.vlgmr.msra.gmra.mxu0 %v21_v8 }
  0x9e   :  { %v99_v12 = vpop.f32.mrf.mxu0 }
  0x9f   :  { %v100_v13 = vadd.f32 %v217_v11, %v99_v12 }
  0xa1   :  { %v103_v14 = vmax.f32 %v100_v13, 0.0 }
  0xa3   :  { %v104_v15 = vpack.c.bf16 %v103_v14, %v103_v14 }
  0xa5   :  { %206 = vmatmul.msk.bf16.vlgmr.msra.gmra.mxu1 %vm125_vm0, %v104_v15 }
  0xa6   :  { %v101_v16 = vpop.f32.mrf.mxu0 }
 0x122   :  { %v138_v18 = vpop.f32.mrf.mxu1 }
 0x123   :  { %v139_v19 = vadd.f32 %v218_v17, %v138_v18 }
 0x125   :  { %v142_v20 = vsub.f32 0.0, %v139_v19 }
 0x127   :  { %v143_v21 = vmul.f32 1.442695, %v142_v20 }
 0x129   :  { %219 = vpow2.f32 %v143_v21 }
 0x12a   :  { %v140_v22 = vpop.f32.mrf.mxu1 }
 0x12f   :  { %v220_v23 = vpop.eup %219 }
 0x130   :  { %v145_v24 = vadd.f32 1.0, %v220_v23 }
 0x132   :  { %221 = vrcp.f32 %v145_v24  ;;  %v157_v28 = vand.u32 2147483648, %v145_v24  ;;  %v155_v30 = vand.u32 2147483647, %v145_v24  ;;  %vm151_vm2 = vweird.f32 %v145_v24 }
 0x134   :  { %v158_v32 = vor.u32 1.1754944e-38, %v157_v28  ;;  %vm156_vm4 = vcmp.eq.f32.partialorder %v155_v30, 8.507059e+37 }
 0x138   :  { %v222_v25 = vpop.eup %221 }
 0x139   :  { %v147_v26 = vmul.f32 %v222_v25, %v145_v24  ;;  %vm152_vm1 = vweird.f32 %v222_v25 }
 0x13a   :  { %vm153_vm3 = vmor %vm151_vm2, %vm152_vm1 }
 0x13b   :  { %v148_v27 = vsub.f32 1.0, %v147_v26 }
 0x13d   :  { %v149_v29 = vmul.f32 %v222_v25, %v148_v27 }
 0x13f   :  { %v150_v31 = vadd.f32 %v222_v25, %v149_v29 }
 0x141   :  { %v154_v33 = vsel %vm153_vm3, %v222_v25, %v150_v31 }
 0x142   :  { %v159_v34 = vsel %vm156_vm4, %v158_v32, %v154_v33 }
 0x143   :  { %161 = vst [vmem:[%s300_s5] sm:$0x3] %v159_v34 }

// kernel: resnext_forward.49
= control target key start
LH: loop header
LB: loop body
LE: loop exit
PB: predicated region body
PF: predicated region fallthrough
CT: control target
= control target key end

     0   :  { %s776_s15 = smov 0   ;;  %s778_s16 = smov 0   ;;  %s869_s0 = inlined_call_operand.vmem [shape: bf16[8,128], index: 0, kind: input, shape index: {}]   ;;  %s870_s1 = inlined_call_operand.vmem [shape: bf16[128,256], index: 1, kind: input, shape index: {}]   ;;  %s871_s2 = inlined_call_operand.vmem [shape: f32[1,256], index: 2, kind: input, shape index: {}]   ;;  %s872_s3 = inlined_call_operand.vmem [shape: f32[1,256], index: 3, kind: input, shape index: {}]   ;;  %s873_s4 = inlined_call_operand.vmem [shape: bf16[8,256], index: 4, kind: output, shape index: {}]  }
   0x1   :  { %s780_s17 = smov 0   ;;  %s782_s18 = smov 0  }
   0x2   :  { %s784_s19 = smov 0  }
   0x3 LB: > { %s29_s20 = sadd.s32 1, %s745_s18  ;;  %p77_p1 = scmp.ne.s32.totalorder %s737_s16, %s733_s15  ;;  %s749_s19 = sphi %s784_s19, %s14_s19   ;;  %s745_s18 = sphi %s782_s18, %s877_s18   ;;  %s741_s17 = sphi %s780_s17, %s876_s17   ;;  %s737_s16 = sphi %s778_s16, %s875_s16   ;;  %s733_s15 = sphi %s776_s15, %s874_s15  }
   0x4   : > { %p31_p0 = scmp.ge.s32.totalorder %s29_s20, 2  ;;  %p78_p2 = scmp.eq.s32.totalorder %s749_s19, 0 }
   0x5   : > { %s70_s22 = sadd.s32 1, %s737_s16  ;;  %p621_p5 = scmp.ge.s32.totalorder %s749_s19, 2 }
   0x6   : > { %s879_s20 = smov (%p31_p0, %s29_s20), 0  ;;  %p79_p3 = por %p78_p2, %p77_p1 }
   0x7   : > { %s66_s21 = ssub.s32 %s745_s18, %s879_s20  ;;  %193 = sbr.rel (%p621_p5) target bundleno = 32 (0x20), region = 20 }
   0x8   : > { %p68_p4 = scmp.eq.s32.totalorder %s66_s21, 0 }
   0xa   : > { %s811_s23 = scalar_select %p68_p4, %s737_s16, %s70_s22  }
   0xc   : > { %196 = sbr.rel (!%p79_p3) target bundleno = 32 (0x20), region = 24  ;;  %s198_s24 = sand.u32 (%p79_p3), 1, %s737_s16  }
   0xd   : > { %s623_s25 = sshll.u32 (%p79_p3), %s745_s18, 2  ;;  %s622_s26 = sshll.u32 (%p79_p3), %s198_s24, 6 }
   0xe   : > { %s819_s29 = scalar_lea.vmem (%p79_p3), %s870_s1, %s623_s25  ;;  %s200_s30 = scalar_lea.vmem (%p79_p3), [#allocation3], %s622_s26 }
   0xf   : > { %v222_v0 = vld [vmem:[%s819_s29] sm:$0xf] (%p79_p3)  ;;  %v224_v1 = vld [vmem:[%s819_s29 + $0x8] sm:$0xf] (%p79_p3)  ;;  %v226_v2 = vld [vmem:[%s819_s29 + $0x10] sm:$0xf] (%p79_p3) }
  0x10   : > { %223 = vst [vmem:[%s200_s30] sm:$0xf] (%p79_p3), %v222_v0  ;;  %v228_v3 = vld [vmem:[%s819_s29 + $0x18] sm:$0xf] (%p79_p3)  ;;  %v230_v4 = vld [vmem:[%s819_s29 + $0x20] sm:$0xf] (%p79_p3) }
  0x11   : > { %225 = vst [vmem:[%s200_s30 + $0x4] sm:$0xf] %v224_v1  ;;  %v232_v5 = vld [vmem:[%s819_s29 + $0x28] sm:$0xf]  ;;  %v234_v6 = vld [vmem:[%s819_s29 + $0x30] sm:$0xf] }
  0x12   : > { %227 = vst [vmem:[%s200_s30 + $0x8] sm:$0xf] %v226_v2  ;;  %v236_v7 = vld [vmem:[%s819_s29 + $0x38] sm:$0xf]  ;;  %v238_v8 = vld [vmem:[%s819_s29 + $0x40] sm:$0xf] }
  0x13   : > { %229 = vst [vmem:[%s200_s30 + $0xc] sm:$0xf] %v228_v3  ;;  %v240_v9 = vld [vmem:[%s819_s29 + $0x48] sm:$0xf]  ;;  %v242_v10 = vld [vmem:[%s819_s29 + $0x50] sm:$0xf] }
  0x14   : > { %231 = vst [vmem:[%s200_s30 + $0x10] sm:$0xf] %v230_v4  ;;  %v244_v11 = vld [vmem:[%s819_s29 + $0x58] sm:$0xf]  ;;  %v246_v12 = vld [vmem:[%s819_s29 + $0x60] sm:$0xf] }
  0x15   : > { %233 = vst [vmem:[%s200_s30 + $0x14] sm:$0xf] %v232_v5  ;;  %v248_v13 = vld [vmem:[%s819_s29 + $0x68] sm:$0xf]  ;;  %v250_v14 = vld [vmem:[%s819_s29 + $0x70] sm:$0xf] }
  0x16   : > { %235 = vst [vmem:[%s200_s30 + $0x18] sm:$0xf] %v234_v6  ;;  %v252_v15 = vld [vmem:[%s819_s29 + $0x78] sm:$0xf] }
  0x17   : > { %237 = vst [vmem:[%s200_s30 + $0x1c] sm:$0xf] %v236_v7 }
  0x18   : > { %239 = vst [vmem:[%s200_s30 + $0x20] sm:$0xf] %v238_v8 }
  0x19   : > { %241 = vst [vmem:[%s200_s30 + $0x24] sm:$0xf] %v240_v9 }
  0x1a   : > { %243 = vst [vmem:[%s200_s30 + $0x28] sm:$0xf] %v242_v10 }
  0x1b   : > { %245 = vst [vmem:[%s200_s30 + $0x2c] sm:$0xf] %v244_v11 }
  0x1c   : > { %247 = vst [vmem:[%s200_s30 + $0x30] sm:$0xf] %v246_v12 }
  0x1d   : > { %249 = vst [vmem:[%s200_s30 + $0x34] sm:$0xf] %v248_v13 }
  0x1e   : > { %251 = vst [vmem:[%s200_s30 + $0x38] sm:$0xf] %v250_v14 }
  0x1f   : > { %253 = vst [vmem:[%s200_s30 + $0x3c] sm:$0xf] %v252_v15 }
  0x20 PF: > { %p624_p6 = scmp.ge.s32.totalorder %s749_s19, 1  ;;  %p320_p7 = scmp.lt.s32.totalorder %s749_s19, 3 }
  0x22   : > { %p321_p8 = pnand %p624_p6, %p320_p7 }
  0x23   : > { %s327_s5 = sand.u32 (!%p321_p8), 1, %s733_s15   ;;  %p376_p9 = scmp.lt.s32.totalorder (!%p321_p8), %s741_s17, 1 }
  0x24   : > { %324 = sbr.rel (%p321_p8) target bundleno = 207 (0xcf), region = 73  ;;  %s625_s6 = sshll.u32 (!%p321_p8), %s327_s5, 6 }
  0x25   : > { %s329_s7 = scalar_lea.vmem (!%p321_p8), [#allocation3], %s625_s6 }
  0x29   : > { %v668_v16 = vld [vmem:[%s329_s7 + $0x38] sm:$0xff]  ;;  %s881_s17 = smov (!%p376_p9, %s741_s17), 1  ;;  %v667_v17 = vld [vmem:[%s329_s7 + $0x30] sm:$0xff]  ;;  %v666_v18 = vld [vmem:[%s329_s7 + $0x28] sm:$0xff] }
  0x2a   : > { %461 = vmatpush.bf16.msra.mxu0 %v668_v16  ;;  %s378_s10 = scalar_lea.vmem %s871_s2, %s881_s17  ;;  %s381_s13 = scalar_lea.vmem %s872_s3, %s881_s17  ;;  %v665_v19 = vld [vmem:[%s329_s7 + $0x20] sm:$0xff]  ;;  %v664_v20 = vld [vmem:[%s329_s7 + $0x18] sm:$0xff]  ;;  %v663_v21 = vld [vmem:[%s329_s7 + $0x10] sm:$0xff] }
  0x2b   : > { %v662_v22 = vld [vmem:[%s329_s7 + $0x8] sm:$0xff]  ;;  %v661_v23 = vld [vmem:[%s329_s7] sm:$0xff]  ;;  %s626_s21 = sshll.u32 %s881_s17, 2 }
  0x2c   : > { %v396_v24 = vld [vmem:[%s869_s0] sm:$0xf]  ;;  %s389_s25 = scalar_lea.vmem %s873_s4, %s626_s21 }
  0x2d   : > { %v709_v25 = vld [vmem:[%s378_s10] ss:$0 sm:$0xff] }
  0x2e   : > { %462 = vmatpush.bf16.msra.mxu0 %v667_v17  ;;  %v710_v26 = vld [vmem:[%s381_s13] ss:$0 sm:$0xff] }
  0x32   : > { %463 = vmatpush.bf16.msra.mxu0 %v666_v18 }
  0x36   : > { %464 = vmatpush.bf16.msra.mxu0 %v665_v19 }
  0x3a   : > { %465 = vmatpush.bf16.msra.mxu0 %v664_v20 }
  0x3e   : > { %466 = vmatpush.bf16.msra.mxu0 %v663_v21 }
  0x42   : > { %467 = vmatpush.bf16.msra.mxu0 %v662_v22 }
  0x46   : > { %468 = vmatpush.bf16.msra.mxu0 %v661_v23 }
  0x49   : > { %469 = vmatmul.bf16.vlgmr.msra.gmra.mxu0 %v396_v24 }
  0xc6   : > { %v470_v27 = vpop.f32.mrf.mxu0 }
  0xc7   : > { %v484_v28 = vmul.f32 %v709_v25, %v470_v27 }
  0xc9   : > { %v489_v29 = vadd.f32 %v710_v26, %v484_v28 }
  0xcb   : > { %v490_v30 = vpack.c.bf16 %v489_v29, %v489_v29 }
  0xcd   : > { %491 = vst [vmem:[%s389_s25] sm:$0xf] %v490_v30 }
  0xce   : > { %v472_v31 = vpop.f32.mrf.mxu0 }
  0xcf PF: > { %s14_s19 = sadd.s32 1, %s749_s19   ;;  %s874_s15 = smov %s737_s16 }
  0xd0   : > { %p11_p10 = scmp.ge.s32.totalorder %s14_s19, 4   ;;  %s875_s16 = smov %s811_s23 }
  0xd1   : > { %s876_s17 = smov %s745_s18  ;;  %s877_s18 = smov %s879_s20 }
  0xd2   :  { %13 = sbr.rel (!%p11_p10) target bundleno = 3 (0x3), region = 129 }

// kernel: resnext_forward.45
= control target key start
LH: loop header
LB: loop body
LE: loop exit
PB: predicated region body
PF: predicated region fallthrough
CT: control target
= control target key end

     0   :  { %s313_s1 = inlined_call_operand.vmem [shape: bf16[128,128], index: 1, kind: input, shape index: {}]   ;;  %s314_s2 = inlined_call_operand.vmem [shape: f32[1,128], index: 2, kind: input, shape index: {}]   ;;  %s315_s3 = inlined_call_operand.vmem [shape: f32[1,128], index: 3, kind: input, shape index: {}]   ;;  %s316_s0 = inlined_call_operand.vmem [shape: bf16[32,128], index: 0, kind: input, shape index: {}]   ;;  %s317_s4 = inlined_call_operand.vmem [shape: bf16[32,128], index: 4, kind: output, shape index: {}]  }
   0x1   :  { %v224_v0 = vld [vmem:[%s313_s1 + $0x38] sm:$0xff]  ;;  %v223_v1 = vld [vmem:[%s313_s1 + $0x30] sm:$0xff]  ;;  %v222_v2 = vld [vmem:[%s313_s1 + $0x28] sm:$0xff] }
   0x2   :  { %109 = vmatpush.bf16.msra.mxu0 %v224_v0  ;;  %236 = vmatpush.bf16.msra.mxu1 %v224_v0  ;;  %v221_v3 = vld [vmem:[%s313_s1 + $0x20] sm:$0xff]  ;;  %v220_v4 = vld [vmem:[%s313_s1 + $0x18] sm:$0xff]  ;;  %v219_v5 = vld [vmem:[%s313_s1 + $0x10] sm:$0xff] }
   0x3   :  { %v218_v6 = vld [vmem:[%s313_s1 + $0x8] sm:$0xff]  ;;  %v217_v7 = vld [vmem:[%s313_s1] sm:$0xff] }
   0x4   :  { %v215_v8 = vld [vmem:[%s316_s0] sm:$0xff]  ;;  %v216_v9 = vld [vmem:[%s316_s0 + $0x8] sm:$0xff] }
   0x5   :  { %v244_v12 = vld [vmem:[%s314_s2] ss:$0 sm:$0xff] }
   0x6   :  { %110 = vmatpush.bf16.msra.mxu0 %v223_v1  ;;  %237 = vmatpush.bf16.msra.mxu1 %v223_v1  ;;  %v245_v14 = vld [vmem:[%s315_s3] ss:$0 sm:$0xff] }
   0xa   :  { %111 = vmatpush.bf16.msra.mxu0 %v222_v2  ;;  %238 = vmatpush.bf16.msra.mxu1 %v222_v2 }
   0xe   :  { %112 = vmatpush.bf16.msra.mxu0 %v221_v3  ;;  %239 = vmatpush.bf16.msra.mxu1 %v221_v3 }
  0x12   :  { %113 = vmatpush.bf16.msra.mxu0 %v220_v4  ;;  %240 = vmatpush.bf16.msra.mxu1 %v220_v4 }
  0x16   :  { %114 = vmatpush.bf16.msra.mxu0 %v219_v5  ;;  %241 = vmatpush.bf16.msra.mxu1 %v219_v5 }
  0x1a   :  { %115 = vmatpush.bf16.msra.mxu0 %v218_v6  ;;  %242 = vmatpush.bf16.msra.mxu1 %v218_v6 }
  0x1e   :  { %116 = vmatpush.bf16.msra.mxu0 %v217_v7  ;;  %243 = vmatpush.bf16.msra.mxu1 %v217_v7 }
  0x21   :  { %117 = vmatmul.bf16.vlgmr.msra.gmra.mxu0 %v215_v8  ;;  %122 = vmatmul.bf16.vlgmr.msra.gmra.mxu1 %v216_v9 }
  0x9e   :  { %v118_v10 = vpop.f32.mrf.mxu0  ;;  %v123_v11 = vpop.f32.mrf.mxu1 }
  0x9f   :  { %v147_v13 = vmul.f32 %v244_v12, %v118_v10  ;;  %v149_v15 = vmul.f32 %v244_v12, %v123_v11 }
  0xa1   :  { %v155_v18 = vadd.f32 %v245_v14, %v147_v13  ;;  %v157_v19 = vadd.f32 %v245_v14, %v149_v15 }
  0xa3   :  { %v159_v24 = vmax.f32 %v155_v18, 0.0  ;;  %v161_v25 = vmax.f32 %v157_v19, 0.0 }
  0xa6   :  { %v120_v16 = vpop.f32.mrf.mxu0  ;;  %v125_v17 = vpop.f32.mrf.mxu1 }
  0xa7   :  { %v148_v20 = vmul.f32 %v244_v12, %v120_v16  ;;  %v150_v21 = vmul.f32 %v244_v12, %v125_v17 }
  0xa9   :  { %v156_v22 = vadd.f32 %v245_v14, %v148_v20  ;;  %v158_v23 = vadd.f32 %v245_v14, %v150_v21 }
  0xab   :  { %v160_v26 = vmax.f32 %v156_v22, 0.0  ;;  %v162_v27 = vmax.f32 %v158_v23, 0.0 }
  0xad   :  { %v228_v28 = vpack.c.bf16 %v160_v26, %v159_v24  ;;  %v233_v29 = vpack.c.bf16 %v162_v27, %v161_v25 }
  0xaf   :  { %229 = vst [vmem:[%s317_s4] sm:$0xff] %v228_v28  }
  0xb0   :  { %235 = vst [vmem:[%s317_s4 + $0x8] sm:$0xff] %v233_v29  }

// kernel: resnext_forward.50
= control target key start
LH: loop header
LB: loop body
LE: loop exit
PB: predicated region body
PF: predicated region fallthrough
CT: control target
= control target key end

     0   :  { %s498_s12 = smov 0   ;;  %s500_s13 = smov 0   ;;  %s537_s0 = inlined_call_operand.vmem [shape: bf16[2,4,256], index: 0, kind: input, shape index: {}]   ;;  %s538_s1 = inlined_call_operand.vmem [shape: f32[2,1,256], index: 1, kind: input, shape index: {}]   ;;  %s539_s2 = inlined_call_operand.vmem [shape: bf16[2,4,256], index: 2, kind: input, shape index: {}]   ;;  %s540_s3 = inlined_call_operand.vmem [shape: bf16[2,4,256], index: 3, kind: output, shape index: {}]  }
   0x1   :  { %s502_s14 = smov 0  }
   0x2 LB: > { %s25_s15 = sadd.s32 1, %s472_s13  ;;  %p417_p0 = scmp.ge.s32.totalorder %s476_s14, 1  ;;  %s476_s14 = sphi %s502_s14, %s13_s14   ;;  %s472_s13 = sphi %s500_s13, %s542_s13   ;;  %s468_s12 = sphi %s498_s12, %s541_s12  }
   0x3   : > { %p27_p1 = scmp.ge.s32.totalorder %s25_s15, 2  ;;  %p182_p2 = scmp.lt.s32.totalorder %s476_s14, 3 }
   0x5   : > { %s544_s15 = smov (%p27_p1, %s25_s15), 0  ;;  %p183_p3 = pnand %p417_p0, %p182_p2 }
   0x6   : > { %p227_p4 = scmp.lt.s32.totalorder (!%p183_p3), %s468_s12, 1 }
   0x7   : > { %186 = sbr.rel (%p183_p3) target bundleno = 42 (0x2a), region = 32 }
   0xc   : > { %s546_s12 = smov (!%p227_p4, %s468_s12), 1  ;;  %vm267_vm0 = vcmask 1043456   ;;  %vm282_vm1 = vcmask 1041408  }
   0xd   : > { %s427_s16 = sshll.u32 %s546_s12, 2  ;;  %s420_s17 = sshll.u32 %s546_s12, 1 }
   0xe   : > { %s235_s20 = scalar_lea.vmem %s537_s0, %s427_s16  ;;  %s239_s23 = scalar_lea.vmem %s538_s1, %s420_s17 }
   0xf   : > { %s248_s26 = scalar_lea.vmem %s539_s2, %s427_s16  ;;  %v258_v0 = vld [vmem:[%s235_s20] sm:$0xf]  ;;  %s257_s29 = scalar_lea.vmem %s540_s3, %s427_s16 }
  0x10   : > { %v262_v1 = vld [vmem:[%s239_s23] sm:$0x3]  ;;  %v259_v5 = vunpack.c.l.bf16 %v258_v0 }
  0x11   : > { %v260_v2 = vld [vmem:[%s248_s26] sm:$0xf]  ;;  %v264_v3 = vperm.slane %v262_v1, 0  ;;  %v265_v4 = vperm.slane %v262_v1, 1 }
  0x12   : > { %v261_v7 = vunpack.c.l.bf16 %v260_v2 }
  0x13   : > { %v266_v6 = vrot.slane %v265_v4, 4 }
  0x15   : > { %v268_v8 = vsel %vm267_vm0, %v264_v3, %v266_v6 }
  0x16   : > { %v270_v9 = vmul.f32 %v268_v8, %v259_v5 }
  0x18   : > { %v271_v10 = vadd.f32 %v270_v9, %v261_v7 }
  0x1a   : > { %v272_v11 = vmax.f32 %v271_v10, 0.0 }
  0x1c   : > { %274 = vst [vmem:[#allocation1] ss:$2 sm:$0xff] %v272_v11 }
  0x23   : > { %v275_v12 = vld.sshfl [vmem:[#allocation1] sm:$0xff pattern:$0x75316420]  ;;  %v276_v13 = vld.sshfl [vmem:[#allocation1 + $0x8] sm:$0xff pattern:$0x75316420] }
  0x24   : > { %v279_v14 = vpack.c.bf16 %v276_v13, %v275_v12 }
  0x26   : > { %v281_v15 = vrot.slane %v279_v14, 2 }
  0x28   : > { %v285_v16 = vsel %vm282_vm1, %v279_v14, %v281_v15 }
  0x29   : > { %287 = vst [vmem:[%s257_s29] sm:$0xf] %v285_v16 }
  0x2a PF: > { %s13_s14 = sadd.s32 1, %s476_s14   ;;  %s541_s12 = smov %s472_s13 }
  0x2b   : > { %p10_p5 = scmp.ge.s32.totalorder %s13_s14, 4   ;;  %s542_s13 = smov %s544_s15 }
  0x2d   :  { %12 = sbr.rel (!%p10_p5) target bundleno = 2 (0x2), region = 68 }

// kernel: resnext_forward.48
= control target key start
LH: loop header
LB: loop body
LE: loop exit
PB: predicated region body
PF: predicated region fallthrough
CT: control target
= control target key end

     0   :  { %vm242_vm0 = vcmask 523264   ;;  %vm313_vm8 = vcmask 1041408   ;;  %s596_s1 = inlined_call_operand.vmem [shape: bf16[256,64], index: 1, kind: input, shape index: {}]   ;;  %s597_s0 = inlined_call_operand.vmem [shape: bf16[2,256], index: 0, kind: input, shape index: {}]   ;;  %s598_s3 = inlined_call_operand.vmem [shape: bf16[64,256], index: 3, kind: input, shape index: {}]   ;;  %s599_s2 = inlined_call_operand.vmem [shape: f32[1,64], index: 2, kind: input, shape index: {}]   ;;  %s600_s4 = inlined_call_operand.vmem [shape: f32[1,256], index: 4, kind: input, shape index: {}]   ;;  %s601_s5 = inlined_call_operand.vmem [shape: f32[2,256], index: 5, kind: output, shape index: {}]  }
   0x1   :  { %v426_v0 = vld [vmem:[%s596_s1 + $0x38] sm:$0xff]  ;;  %v425_v2 = vld [vmem:[%s596_s1 + $0x30] sm:$0xff]  ;;  %v424_v4 = vld [vmem:[%s596_s1 + $0x28] sm:$0xff] }
   0x2   :  { %v434_v1 = vld [vmem:[%s596_s1 + $0x78] sm:$0xff]  ;;  %160 = vmatpush.bf16.msra.mxu0 %v426_v0  ;;  %v433_v3 = vld [vmem:[%s596_s1 + $0x70] sm:$0xff]  ;;  %v432_v5 = vld [vmem:[%s596_s1 + $0x68] sm:$0xff] }
   0x3   :  { %173 = vmatpush.bf16.msra.mxu1 %v434_v1  ;;  %v21_v6 = vld [vmem:[%s597_s0] sm:$0x3]  ;;  %v411_v7 = vld [vmem:[%s598_s3 + $0x30] sm:$0xf]  ;;  %v442_v8 = vld [vmem:[%s598_s3 + $0x34] sm:$0xf0] }
   0x4   :  { %59 = vst [vmem:[#allocation1] ss:$9 sm:$0xff] %v21_v6  ;;  %v441_v9 = vld [vmem:[%s598_s3 + $0x34] sm:$0xf]  ;;  %v412_v10 = vor.u32 %v442_v8, %v411_v7  ;;  %v413_v11 = vld [vmem:[%s598_s3 + $0x38] sm:$0xf0] }
   0x5   :  { %v403_v12 = vld [vmem:[%s598_s3 + $0x20] sm:$0xf]  ;;  %v440_v13 = vld [vmem:[%s598_s3 + $0x24] sm:$0xf0]  ;;  %v416_v14 = vor.u32 %v441_v9, %v413_v11  ;;  %v439_v15 = vld [vmem:[%s598_s3 + $0x24] sm:$0xf] }
   0x6   :  { %161 = vmatpush.bf16.msra.mxu0 %v425_v2  ;;  %v405_v16 = vld [vmem:[%s598_s3 + $0x28] sm:$0xf0]  ;;  %250 = vmatpush.bf16.msra.mxu2 %v412_v10  ;;  %v404_v17 = vor.u32 %v440_v13, %v403_v12  ;;  %v423_v18 = vld [vmem:[%s596_s1 + $0x20] sm:$0xff]  ;;  %v422_v21 = vld [vmem:[%s596_s1 + $0x18] sm:$0xff] }
   0x7   :  { %174 = vmatpush.bf16.msra.mxu1 %v433_v3  ;;  %v431_v19 = vld [vmem:[%s596_s1 + $0x60] sm:$0xff]  ;;  %263 = vmatpush.bf16.msra.mxu3 %v416_v14  ;;  %v408_v20 = vor.u32 %v439_v15, %v405_v16  ;;  %v430_v22 = vld [vmem:[%s596_s1 + $0x58] sm:$0xff]  ;;  %v421_v23 = vld [vmem:[%s596_s1 + $0x10] sm:$0xff] }
   0x8   :  { %v429_v24 = vld [vmem:[%s596_s1 + $0x50] sm:$0xff]  ;;  %v420_v25 = vld [vmem:[%s596_s1 + $0x8] sm:$0xff]  ;;  %v419_v27 = vld [vmem:[%s596_s1] sm:$0xff] }
   0x9   :  { %v428_v26 = vld [vmem:[%s596_s1 + $0x48] sm:$0xff]  ;;  %v427_v28 = vld [vmem:[%s596_s1 + $0x40] sm:$0xff]  ;;  %v395_v31 = vld [vmem:[%s598_s3 + $0x10] sm:$0xf] }
   0xa   :  { %162 = vmatpush.bf16.msra.mxu0 %v424_v4  ;;  %251 = vmatpush.bf16.msra.mxu2 %v404_v17  ;;  %v438_v32 = vld [vmem:[%s598_s3 + $0x14] sm:$0xf0]  ;;  %v437_v33 = vld [vmem:[%s598_s3 + $0x14] sm:$0xf]  ;;  %v397_v35 = vld [vmem:[%s598_s3 + $0x18] sm:$0xf0] }
   0xb   :  { %175 = vmatpush.bf16.msra.mxu1 %v432_v5  ;;  %264 = vmatpush.bf16.msra.mxu3 %v408_v20  ;;  %v60_v29 = vld [vmem:[#allocation1] sm:$0xff]  ;;  %v61_v30 = vld [vmem:[#allocation1 + $0x9] sm:$0xff]  ;;  %v396_v34 = vor.u32 %v438_v32, %v395_v31  ;;  %v400_v36 = vor.u32 %v437_v33, %v397_v35 }
   0xc   :  { %v387_v37 = vld [vmem:[%s598_s3] sm:$0xf]  ;;  %v436_v38 = vld [vmem:[%s598_s3 + $0x4] sm:$0xf0]  ;;  %v435_v39 = vld [vmem:[%s598_s3 + $0x4] sm:$0xf] }
   0xd   :  { %v388_v40 = vor.u32 %v436_v38, %v387_v37  ;;  %v389_v41 = vld [vmem:[%s598_s3 + $0x8] sm:$0xf0]  ;;  %v443_v43 = vld [vmem:[%s599_s2] ss:$0 sm:$0xff] }
   0xe   :  { %163 = vmatpush.bf16.msra.mxu0 %v423_v18  ;;  %252 = vmatpush.bf16.msra.mxu2 %v396_v34  ;;  %v392_v42 = vor.u32 %v435_v39, %v389_v41  ;;  %v196_v52 = vld [vmem:[%s600_s4] sm:$0x3] }
   0xf   :  { %176 = vmatpush.bf16.msra.mxu1 %v431_v19  ;;  %265 = vmatpush.bf16.msra.mxu3 %v400_v36  ;;  %v198_v53 = vperm.slane %v196_v52, 0  ;;  %v199_v54 = vperm.slane %v196_v52, 1 }
  0x12   :  { %164 = vmatpush.bf16.msra.mxu0 %v422_v21  ;;  %253 = vmatpush.bf16.msra.mxu2 %v388_v40 }
  0x13   :  { %177 = vmatpush.bf16.msra.mxu1 %v430_v22  ;;  %266 = vmatpush.bf16.msra.mxu3 %v392_v42 }
  0x16   :  { %165 = vmatpush.bf16.msra.mxu0 %v421_v23 }
  0x17   :  { %178 = vmatpush.bf16.msra.mxu1 %v429_v24 }
  0x1a   :  { %166 = vmatpush.bf16.msra.mxu0 %v420_v25 }
  0x1b   :  { %179 = vmatpush.bf16.msra.mxu1 %v428_v26 }
  0x1e   :  { %167 = vmatpush.bf16.msra.mxu0 %v419_v27 }
  0x1f   :  { %180 = vmatpush.bf16.msra.mxu1 %v427_v28 }
  0x21   :  { %168 = vmatmul.bf16.vlgmr.msra.gmra.mxu0 %v60_v29 }
  0x22   :  { %181 = vmatmul.bf16.vlgmr.msra.gmra.mxu1 %v61_v30 }
  0x9e   :  { %v169_v44 = vpop.f32.mrf.mxu0 }
  0x9f   :  { %v182_v45 = vpop.f32.mrf.mxu1  ;;  %v170_v46 = vadd.f32 %v443_v43, %v169_v44 }
  0xa1   :  { %v183_v47 = vadd.f32 %v182_v45, %v170_v46 }
  0xa3   :  { %v186_v48 = vmax.f32 %v183_v47, 0.0 }
  0xa5   :  { %v187_v49 = vpack.c.bf16 %v186_v48, %v186_v48 }
  0xa6   :  { %v171_v50 = vpop.f32.mrf.mxu0 }
  0xa7   :  { %v184_v51 = vpop.f32.mrf.mxu1  ;;  %417 = vmatmul.msk.bf16.vlgmr.msra.gmra.mxu2 %vm242_vm0, %v187_v49  ;;  %418 = vmatmul.msk.bf16.vlgmr.msra.gmra.mxu3 %vm242_vm0, %v187_v49 }
 0x12a   :  { %v255_v55 = vpop.f32.mrf.mxu2  ;;  %v268_v56 = vpop.f32.mrf.mxu3 }
 0x12b   :  { %v256_v57 = vadd.f32 %v255_v55, %v198_v53  ;;  %v269_v58 = vadd.f32 %v268_v56, %v199_v54 }
 0x12d   :  { %v272_v59 = vsub.f32 0.0, %v256_v57  ;;  %v273_v60 = vsub.f32 0.0, %v269_v58 }
 0x12f   :  { %v274_v61 = vmul.f32 1.442695, %v272_v59  ;;  %v276_v62 = vmul.f32 1.442695, %v273_v60 }
 0x131   :  { %444 = vpow2.f32 %v274_v61 }
 0x132   :  { %446 = vpow2.f32 %v276_v62  ;;  %v257_v63 = vpop.f32.mrf.mxu2  ;;  %v270_v0 = vpop.f32.mrf.mxu3 }
 0x137   :  { %v445_v1 = vpop.eup %444 }
 0x138   :  { %v447_v2 = vpop.eup %446  ;;  %v278_v3 = vadd.f32 1.0, %v445_v1 }
 0x139   :  { %v279_v4 = vadd.f32 1.0, %v447_v2 }
 0x13a   :  { %448 = vrcp.f32 %v278_v3  ;;  %vm285_vm3 = vweird.f32 %v278_v3  ;;  %v291_v16 = vand.u32 2147483648, %v278_v3  ;;  %v289_v18 = vand.u32 2147483647, %v278_v3 }
 0x13b   :  { %450 = vrcp.f32 %v279_v4  ;;  %v306_v12 = vand.u32 2147483648, %v279_v4  ;;  %v304_v14 = vand.u32 2147483647, %v279_v4  ;;  %vm300_vm5 = vweird.f32 %v279_v4 }
 0x13c   :  { %v292_v23 = vor.u32 1.1754944e-38, %v291_v16  ;;  %vm290_vm9 = vcmp.eq.f32.partialorder %v289_v18, 8.507059e+37 }
 0x13d   :  { %v307_v20 = vor.u32 1.1754944e-38, %v306_v12  ;;  %vm305_vm7 = vcmp.eq.f32.partialorder %v304_v14, 8.507059e+37 }
 0x140   :  { %v449_v5 = vpop.eup %448 }
 0x141   :  { %v451_v6 = vpop.eup %450  ;;  %v281_v7 = vmul.f32 %v449_v5, %v278_v3  ;;  %vm286_vm1 = vweird.f32 %v449_v5 }
 0x142   :  { %v296_v8 = vmul.f32 %v451_v6, %v279_v4  ;;  %vm301_vm2 = vweird.f32 %v451_v6  ;;  %vm587_vm4 = vmor %vm285_vm3, %vm286_vm1 }
 0x143   :  { %v282_v9 = vsub.f32 1.0, %v281_v7  ;;  %vm302_vm6 = vmor %vm300_vm5, %vm301_vm2 }
 0x144   :  { %v297_v10 = vsub.f32 1.0, %v296_v8 }
 0x145   :  { %v283_v11 = vmul.f32 %v449_v5, %v282_v9 }
 0x146   :  { %v298_v13 = vmul.f32 %v451_v6, %v297_v10 }
 0x147   :  { %v284_v15 = vadd.f32 %v449_v5, %v283_v11 }
 0x148   :  { %v299_v19 = vadd.f32 %v451_v6, %v298_v13 }
 0x149   :  { %v288_v21 = vsel %vm587_vm4, %v449_v5, %v284_v15 }
 0x14a   :  { %v303_v22 = vsel %vm302_vm6, %v451_v6, %v299_v19  ;;  %v293_v26 = vsel %vm290_vm9, %v292_v23, %v288_v21 }
 0x14b   :  { %v308_v24 = vsel %vm305_vm7, %v307_v20, %v303_v22 }
 0x14c   :  { %v312_v25 = vrot.slane %v308_v24, 6 }
 0x14e   :  { %v314_v27 = vsel %vm313_vm8, %v293_v26, %v312_v25 }
 0x14f   :  { %316 = vst [vmem:[%s601_s5] sm:$0xf] %v314_v27 }

// kernel: resnext_forward.46
= control target key start
LH: loop header
LB: loop body
LE: loop exit
PB: predicated region body
PF: predicated region fallthrough
CT: control target
= control target key end

     0   :  { %s647_s15 = smov 0   ;;  %s649_s16 = smov 0   ;;  %s696_s0 = inlined_call_operand.vmem [shape: bf16[8,1152], index: 0, kind: input, shape index: {}]   ;;  %s697_s1 = inlined_call_operand.vmem [shape: bf16[1152,128], index: 1, kind: input, shape index: {}]   ;;  %s698_s2 = inlined_call_operand.vmem [shape: f32[1,128], index: 2, kind: input, shape index: {}]   ;;  %s699_s3 = inlined_call_operand.vmem [shape: f32[1,128], index: 3, kind: input, shape index: {}]   ;;  %s700_s4 = inlined_call_operand.vmem [shape: bf16[8,128], index: 4, kind: output, shape index: {}]  }
   0x1   :  { %s651_s17 = smov 0  }
   0x2 LB: > { %s26_s18 = sadd.s32 1, %s615_s16  ;;  %p521_p0 = scmp.ge.s32.totalorder %s619_s17, 1  ;;  %s619_s17 = sphi %s651_s17, %s14_s17   ;;  %s615_s16 = sphi %s649_s16, %s702_s16   ;;  %s611_s15 = sphi %s647_s15, %s701_s15  }
   0x3   : > { %p27_p1 = scmp.ge.s32.totalorder %s26_s18, 9  ;;  %p220_p2 = scmp.lt.s32.totalorder %s619_s17, 10 }
   0x5   : > { %s704_s18 = smov (%p27_p1, %s26_s18), 0  ;;  %p221_p3 = pnand %p521_p0, %p220_p2 }
   0x6   : > { %p267_p4 = scmp.lt.s32.totalorder (!%p221_p3), %s611_s15, 8  ;;  %s523_s19 = sshll.u32 (!%p221_p3), %s611_s15, 4 }
   0x7   : > { %224 = sbr.rel (%p221_p3) target bundleno = 197 (0xc5), region = 36  ;;  %p274_p5 = scmp.lt.s32.totalorder (!%p221_p3), %s523_s19, 143 }
   0x8   : > { %p525_p6 = scmp.ne.s32.totalorder (!%p221_p3), %s611_s15, 0 }
   0xc   : > { %s268_s20 = scalar_select %p267_p4, %s611_s15, 8 }
   0xd   : > { %s706_s19 = smov (!%p274_p5, %s523_s19), 143  ;;  %298 = sbr.rel (%p525_p6) target bundleno = 20 (0x14), region = 40 }
   0xe   : > { %s522_s21 = sshll.u32 %s268_s20, 2  ;;  %s524_s25 = sshll.u32 %s706_s19, 2 }
   0xf   : > { %s272_s24 = scalar_lea.vmem %s696_s0, %s522_s21  ;;  %s280_s28 = scalar_lea.vmem %s697_s1, %s524_s25 }
  0x12   : > { %v621_v0 = vmov 0.0  }
  0x13   : > { %299 = vst [vmem:[#allocation2] sm:$0xff] %v621_v0 }
  0x14 PF: > { %v569_v1 = vld [vmem:[%s280_s28 + $0x38] sm:$0xff]  ;;  %v568_v2 = vld [vmem:[%s280_s28 + $0x30] sm:$0xff]  ;;  %v567_v3 = vld [vmem:[%s280_s28 + $0x28] sm:$0xff]  ;;  %p558_p7 = scmp.ne.s32.totalorder %s611_s15, 8 }
  0x15   : > { %366 = vmatpush.bf16.msra.mxu0 %v569_v1  ;;  %v566_v4 = vld [vmem:[%s280_s28 + $0x20] sm:$0xff]  ;;  %v565_v5 = vld [vmem:[%s280_s28 + $0x18] sm:$0xff]  ;;  %v564_v6 = vld [vmem:[%s280_s28 + $0x10] sm:$0xff] }
  0x16   : > { %v563_v7 = vld [vmem:[%s280_s28 + $0x8] sm:$0xff]  ;;  %v562_v8 = vld [vmem:[%s280_s28] sm:$0xff] }
  0x17   : > { %v301_v9 = vld [vmem:[%s272_s24] sm:$0xf] }
  0x19   : > { %367 = vmatpush.bf16.msra.mxu0 %v568_v2 }
  0x1a   : > { %v300_v10 = vld [vmem:[#allocation2] sm:$0xff] }
  0x1d   : > { %368 = vmatpush.bf16.msra.mxu0 %v567_v3 }
  0x21   : > { %369 = vmatpush.bf16.msra.mxu0 %v566_v4 }
  0x25   : > { %370 = vmatpush.bf16.msra.mxu0 %v565_v5 }
  0x29   : > { %371 = vmatpush.bf16.msra.mxu0 %v564_v6 }
  0x2d   : > { %372 = vmatpush.bf16.msra.mxu0 %v563_v7 }
  0x31   : > { %373 = vmatpush.bf16.msra.mxu0 %v562_v8 }
  0x34   : > { %374 = vmatmul.bf16.vlgmr.msra.gmra.mxu0 %v301_v9 }
  0xb1   : > { %v375_v11 = vpop.f32.mrf.mxu0 }
  0xb2   : > { %v379_v12 = vadd.f32 %v375_v11, %v300_v10 }
  0xb4   : > { %380 = vst [vmem:[#allocation2] sm:$0xff] %v379_v12 }
  0xb5   : > { %384 = sbr.rel (%p558_p7) target bundleno = 197 (0xc5), region = 44 }
  0xb9   : > { %v377_v13 = vpop.f32.mrf.mxu0 }
  0xba   : > { %v595_v15 = vld [vmem:[%s698_s2] ss:$0 sm:$0xff] }
  0xbb   : > { %v385_v14 = vld [vmem:[#allocation2] sm:$0xff] }
  0xbc   : > { %v596_v16 = vld [vmem:[%s699_s3] ss:$0 sm:$0xff]  ;;  %v390_v17 = vmul.f32 %v595_v15, %v385_v14 }
  0xbe   : > { %v395_v18 = vadd.f32 %v596_v16, %v390_v17 }
  0xc0   : > { %v396_v19 = vmax.f32 %v395_v18, 0.0 }
  0xc2   : > { %v397_v20 = vpack.c.bf16 %v396_v19, %v396_v19 }
  0xc4   : > { %398 = vst [vmem:[%s700_s4] sm:$0xf] %v397_v20 }
  0xc5 PF: > { %s14_s17 = sadd.s32 1, %s619_s17   ;;  %s701_s15 = smov %s615_s16 }
  0xc6   : > { %p11_p8 = scmp.ge.s32.totalorder %s14_s17, 11   ;;  %s702_s16 = smov %s704_s18 }
  0xc8   :  { %13 = sbr.rel (!%p11_p8) target bundleno = 2 (0x2), region = 83 }

// kernel: resnext_forward.51
= control target key start
LH: loop header
LB: loop body
LE: loop exit
PB: predicated region body
PF: predicated region fallthrough
CT: control target
= control target key end

     0   :  { %v418_v2 = vmov 4.0   ;;  %s503_s0 = inlined_call_operand.vmem [shape: bf16[2,4,256], index: 0, kind: input, shape index: {}]   ;;  %s504_s1 = inlined_call_operand.vmem [shape: bf16[256,32], index: 1, kind: input, shape index: {}]   ;;  %s505_s2 = inlined_call_operand.vmem [shape: f32[1,32], index: 2, kind: input, shape index: {}]   ;;  %s506_s3 = inlined_call_operand.hbm [shape: f32[2,32], index: 3, kind: output, shape index: {}]  }
   0x1   :  { %v370_v0 = vld [vmem:[%s504_s1 + $0x38] sm:$0xff]  ;;  %386 = vrcp.f32 %v418_v2  ;;  %v369_v3 = vld [vmem:[%s504_s1 + $0x30] sm:$0xff]  ;;  %v380_v5 = vld [vmem:[%s503_s0] sm:$0xff]  }
   0x2   :  { %v378_v1 = vld [vmem:[%s504_s1 + $0x78] sm:$0xff]  ;;  %223 = vmatpush.bf16.msra.mxu0 %v370_v0  ;;  %v377_v4 = vld [vmem:[%s504_s1 + $0x70] sm:$0xff]  ;;  %v368_v6 = vld [vmem:[%s504_s1 + $0x28] sm:$0xff]  ;;  %v381_v8 = vunpack.c.l.bf16 %v380_v5  ;;  %v382_v9 = vunpack.c.h.bf16 %v380_v5 }
   0x3   :  { %236 = vmatpush.bf16.msra.mxu1 %v378_v1  ;;  %v376_v7 = vld [vmem:[%s504_s1 + $0x68] sm:$0xff] }
   0x6   :  { %224 = vmatpush.bf16.msra.mxu0 %v369_v3 }
   0x7   :  { %237 = vmatpush.bf16.msra.mxu1 %v377_v4 }
   0x8   :  { %8 = vsyncpa [#allocation3], 0  ;;  %v387_v10 = vpop.eup %386  ;;  %21 = vst [vmem:[#allocation1] ss:$2 sm:$0xff] %v381_v8  ;;  %v367_v11 = vld [vmem:[%s504_s1 + $0x20] sm:$0xff]  ;;  %vm32_vm0 = vcmask 1043456  }
   0x9   :  { %25 = vst [vmem:[#allocation1 + $0x10] ss:$2 sm:$0xff] %v382_v9  ;;  %v375_v12 = vld [vmem:[%s504_s1 + $0x60] sm:$0xff]  ;;  %v62_v13 = vmul.f32 4.0, %v387_v10  ;;  %v366_v14 = vld [vmem:[%s504_s1 + $0x18] sm:$0xff]  ;;  %v365_v26 = vld [vmem:[%s504_s1 + $0x10] sm:$0xff]  ;;  %vm66_vm1 = vweird.f32 %v387_v10 }
   0xa   :  { %225 = vmatpush.bf16.msra.mxu0 %v368_v6  ;;  %v374_v15 = vld [vmem:[%s504_s1 + $0x58] sm:$0xff]  ;;  %v373_v27 = vld [vmem:[%s504_s1 + $0x50] sm:$0xff]  ;;  %v364_v38 = vld [vmem:[%s504_s1 + $0x8] sm:$0xff]  ;;  %vm120_vm2 = vcmask 1041409   ;;  %vm250_vm3 = vcmask 254976   ;;  %s290_s22 = sshll.u32 %s506_s3, 4  ;;  %s291_s22 = int_to_ptr.hbm [resolvable:$true] %s290_s22 }
   0xb   :  { %238 = vmatpush.bf16.msra.mxu1 %v376_v7  ;;  %v63_v16 = vsub.f32 1.0, %v62_v13  ;;  %v372_v39 = vld [vmem:[%s504_s1 + $0x48] sm:$0xff]  ;;  %v363_v49 = vld [vmem:[%s504_s1] sm:$0xff] }
   0xc   :  { %v371_v50 = vld [vmem:[%s504_s1 + $0x40] sm:$0xff] }
   0xd   :  { %v64_v29 = vmul.f32 %v387_v10, %v63_v16 }
   0xe   :  { %226 = vmatpush.bf16.msra.mxu0 %v367_v11 }
   0xf   :  { %239 = vmatpush.bf16.msra.mxu1 %v375_v12  ;;  %v22_v17 = vld.sshfl [vmem:[#allocation1] sm:$0xff pattern:$0x75316420]  ;;  %v23_v18 = vld.sshfl [vmem:[#allocation1 + $0x8] sm:$0xff pattern:$0x75316420]  ;;  %v65_v41 = vadd.f32 %v387_v10, %v64_v29 }
  0x10   :  { %v26_v19 = vld.sshfl [vmem:[#allocation1 + $0x10] sm:$0xff pattern:$0x75316420]  ;;  %v33_v20 = vsel %vm32_vm0, %v22_v17, 0.0  ;;  %v40_v21 = vsel %vm32_vm0, %v23_v18, 0.0 }
  0x11   :  { %v34_v22 = vrot.slane %v33_v20, 4  ;;  %v47_v23 = vsel %vm32_vm0, %v26_v19, 0.0  ;;  %v27_v24 = vld.sshfl [vmem:[#allocation1 + $0x18] sm:$0xff pattern:$0x75316420]  ;;  %v41_v25 = vrot.slane %v40_v21, 4  ;;  %v67_v52 = vsel %vm66_vm1, %v387_v10, %v65_v41 }
  0x12   :  { %227 = vmatpush.bf16.msra.mxu0 %v366_v14  ;;  %v48_v28 = vrot.slane %v47_v23, 4  ;;  %v54_v30 = vsel %vm32_vm0, %v27_v24, 0.0  ;;  %v385_v10 = vld [vmem:[%s505_s2] ss:$0 sm:$0xff]  ;;  %s419_s2 = smov [#allocation2]  }
  0x13   :  { %240 = vmatpush.bf16.msra.mxu1 %v374_v15  ;;  %v35_v31 = vadd.f32 %v34_v22, %v33_v20  ;;  %v42_v32 = vadd.f32 %v41_v25, %v40_v21  ;;  %v55_v33 = vrot.slane %v54_v30, 4  ;;  %s288_s19 = sshll.u32 %s419_s2, 4  ;;  %s289_s19 = int_to_ptr.vmem [resolvable:$true] %s288_s19 }
  0x14   :  { %v49_v34 = vadd.f32 %v48_v28, %v47_v23 }
  0x15   :  { %v36_v35 = vrot.slane %v35_v31, 2  ;;  %v43_v36 = vrot.slane %v42_v32, 2  ;;  %v56_v37 = vadd.f32 %v55_v33, %v54_v30 }
  0x16   :  { %228 = vmatpush.bf16.msra.mxu0 %v365_v26  ;;  %v50_v40 = vrot.slane %v49_v34, 2 }
  0x17   :  { %241 = vmatpush.bf16.msra.mxu1 %v373_v27  ;;  %v37_v42 = vadd.f32 %v36_v35, %v35_v31  ;;  %v44_v43 = vadd.f32 %v43_v36, %v42_v32  ;;  %v57_v44 = vrot.slane %v56_v37, 2 }
  0x18   :  { %v51_v45 = vadd.f32 %v50_v40, %v49_v34 }
  0x19   :  { %v38_v46 = vrot.slane %v37_v42, 1  ;;  %v45_v47 = vrot.slane %v44_v43, 1  ;;  %v58_v48 = vadd.f32 %v57_v44, %v56_v37 }
  0x1a   :  { %229 = vmatpush.bf16.msra.mxu0 %v364_v38  ;;  %v52_v51 = vrot.slane %v51_v45, 1 }
  0x1b   :  { %242 = vmatpush.bf16.msra.mxu1 %v372_v39  ;;  %v39_v53 = vadd.f32 %v38_v46, %v37_v42  ;;  %v46_v54 = vadd.f32 %v45_v47, %v44_v43  ;;  %v59_v55 = vrot.slane %v58_v48, 1 }
  0x1c   :  { %v53_v56 = vadd.f32 %v52_v51, %v51_v45 }
  0x1d   :  { %v68_v57 = vmul.f32 %v67_v52, %v39_v53  ;;  %v60_v58 = vadd.f32 %v59_v55, %v58_v48  ;;  %v69_v59 = vmul.f32 %v67_v52, %v46_v54 }
  0x1e   :  { %230 = vmatpush.bf16.msra.mxu0 %v363_v49  ;;  %v70_v60 = vmul.f32 %v67_v52, %v53_v56 }
  0x1f   :  { %243 = vmatpush.bf16.msra.mxu1 %v371_v50  ;;  %v72_v61 = vpack.c.bf16 %v68_v57, %v68_v57  ;;  %v71_v62 = vmul.f32 %v67_v52, %v60_v58  ;;  %v73_v63 = vpack.c.bf16 %v69_v59, %v69_v59 }
  0x20   :  { %v74_v0 = vpack.c.bf16 %v70_v60, %v70_v60 }
  0x21   :  { %v116_v1 = vunpack.c.l.b16 %v72_v61  ;;  %v75_v2 = vpack.c.bf16 %v71_v62, %v71_v62  ;;  %v117_v3 = vunpack.c.l.b16 %v73_v63 }
  0x22   :  { %v118_v4 = vunpack.c.l.b16 %v74_v0 }
  0x23   :  { %v119_v5 = vunpack.c.l.b16 %v75_v2 }
  0x24   :  { %v121_v6 = vsel %vm120_vm2, %v118_v4, %v116_v1 }
  0x25   :  { %v123_v7 = vpack.c.b16 %v121_v6, %v121_v6  ;;  %v122_v8 = vsel %vm120_vm2, %v119_v5, %v117_v3 }
  0x26   :  { %v124_v9 = vpack.c.b16 %v122_v8, %v122_v8 }
  0x27   :  { %231 = vmatmul.bf16.vlgmr.msra.gmra.mxu0 %v123_v7 }
  0x28   :  { %244 = vmatmul.bf16.vlgmr.msra.gmra.mxu1 %v124_v9 }
  0xa4   :  { %v232_v11 = vpop.f32.mrf.mxu0 }
  0xa5   :  { %v233_v12 = vadd.f32 %v385_v10, %v232_v11  ;;  %v245_v13 = vpop.f32.mrf.mxu1 }
  0xa7   :  { %v246_v14 = vadd.f32 %v245_v13, %v233_v12 }
  0xa9   :  { %v249_v15 = vmul.f32 %v246_v14, %v246_v14 }
  0xab   :  { %v251_v16 = vsel %vm250_vm3, %v249_v15, 0.0 }
  0xac   :  { %v234_v17 = vpop.f32.mrf.mxu0  ;;  %252 = vadd.xlane.f32.xlu0 %v251_v16 }
  0xad   :  { %v247_v18 = vpop.f32.mrf.mxu1 }
 0x11f   :  { %v253_v19 = vpop.xlane.xlu0 %252 }
 0x120   :  { %388 = vrsqrt.f32 %v253_v19  ;;  %vm261_vm4 = vcmp.eq.f32.partialorder %v253_v19, inf  ;;  %v264_v27 = vand.u32 2147483648, %v253_v19  ;;  %vm263_vm5 = vcmp.eq.f32.partialorder %v253_v19, 0.0 }
 0x126   :  { %v389_v20 = vpop.eup %388 }
 0x127   :  { %v255_v21 = vmul.f32 %v389_v20, %v253_v19 }
 0x129   :  { %v256_v22 = vmul.f32 %v389_v20, %v255_v21 }
 0x12b   :  { %v257_v23 = vmul.f32 0.5, %v256_v22 }
 0x12d   :  { %v258_v24 = vsub.f32 1.5, %v257_v23 }
 0x12f   :  { %v259_v25 = vmul.f32 %v389_v20, %v258_v24 }
 0x131   :  { %v260_v26 = vmul.f32 %v259_v25, %v253_v19 }
 0x133   :  { %v262_v28 = vsel %vm261_vm4, %v253_v19, %v260_v26 }
 0x134   :  { %v265_v29 = vsel %vm263_vm5, %v264_v27, %v262_v28 }
 0x135   :  { %v266_v30 = vmax.f32 %v265_v29, 1e-12 }
 0x137   :  { %390 = vrcp.f32 %v266_v30  ;;  %v278_v34 = vand.u32 2147483648, %v266_v30  ;;  %v276_v36 = vand.u32 2147483647, %v266_v30  ;;  %vm272_vm7 = vweird.f32 %v266_v30 }
 0x139   :  { %v279_v38 = vor.u32 1.1754944e-38, %v278_v34  ;;  %vm277_vm9 = vcmp.eq.f32.partialorder %v276_v36, 8.507059e+37 }
 0x13d   :  { %v391_v31 = vpop.eup %390 }
 0x13e   :  { %v268_v32 = vmul.f32 %v391_v31, %v266_v30  ;;  %vm273_vm6 = vweird.f32 %v391_v31 }
 0x13f   :  { %vm274_vm8 = vmor %vm272_vm7, %vm273_vm6 }
 0x140   :  { %v269_v33 = vsub.f32 1.0, %v268_v32 }
 0x142   :  { %v270_v35 = vmul.f32 %v391_v31, %v269_v33 }
 0x144   :  { %v271_v37 = vadd.f32 %v391_v31, %v270_v35 }
 0x146   :  { %v275_v39 = vsel %vm274_vm8, %v391_v31, %v271_v37 }
 0x147   :  { %v280_v40 = vsel %vm277_vm9, %v279_v38, %v275_v39 }
 0x148   :  { %v281_v41 = vmul.f32 %v280_v40, %v246_v14 }
 0x14a   :  { %282 = vst.msk [vmem:[#allocation2] sm:$0x3] %vm250_vm3, %v281_v41 }
 0x14b   :  { %293 = dma.vmem_to_hbm [thread:$0]  %s289_s19, 32, %s291_s22, [#allocation3]  }
 0x14c   :  { %416 = dma.done.wait [#allocation3], 32  }
 0x14d   :  { %417 = vsyncadd [#allocation3], 4294967264 }
 0x14e   :  { %298 = vsyncpa [#allocation3], 1 }

</bundles_post_ra>
